<compile_context>
chip_gen: v7x
topology: tpu7x:2x2x1
jax: 0.10.0
libtpu: 0.0.40
codegen_flags: <defaults>
</compile_context>

<pallas_src>
import jax
import jax.numpy as jnp
from jax import lax
from jax.experimental import pallas as pl
from jax.experimental.pallas import tpu as pltpu
import numpy as np


def _round_up(a, b):
    return (a + b - 1) // b * b


def _device_kind():
    try:
        return jax.devices()[0].device_kind.lower()
    except Exception:
        return ""


def _tpu_flags():
    kind = _device_kind()
    is_v7 = ("v7" in kind) or ("tpu7" in kind)
    wide_mxu = is_v7 or ("v6" in kind)
    return wide_mxu, is_v7


# -----------------------------------------------------------------------------
# Pallas kernel: 3x3 stride-1 same-padding conv + per-channel scale/shift + ReLU
# -----------------------------------------------------------------------------
def _conv3x3_bn_relu_kernel(x_ref, w_ref, scale_ref, shift_ref, o_ref):
    # x_ref:     (1, TH+2, Wp, Cb)  bf16  spatially padded row tile (1-row halo)
    # w_ref:     (1, 9*Cb, CO)      bf16  tap-major im2col weight block
    # scale_ref: (1, CO)            f32   fused BatchNorm scale
    # shift_ref: (1, CO)            f32   fused conv-bias + BatchNorm shift
    # o_ref:     (1, TH, W, CO)     bf16 or f32
    Cb = x_ref.shape[3]
    TH, W, CO = o_ref.shape[1], o_ref.shape[2], o_ref.shape[3]

    xb = x_ref[0]                                  # (TH+2, Wp, Cb) bf16, one load
    wb = w_ref[0]                                  # (9*Cb, CO)     bf16

    # Per-tap accumulation: one bf16 tap live at a time, f32 accumulator on the MXU.
    acc = jnp.zeros((TH * W, CO), jnp.float32)
    for t in range(9):
        dy, dx = t // 3, t % 3
        tap = xb[dy:dy + TH, dx:dx + W, :].reshape(TH * W, Cb)      # bf16 shifted view
        acc = acc + jnp.dot(tap, wb[t * Cb:(t + 1) * Cb, :],
                            preferred_element_type=jnp.float32)

    y = acc * scale_ref[...] + shift_ref[...]      # f32 epilogue (bias + BN fold)
    y = jnp.maximum(y, 0.0)
    o_ref[0] = y.reshape(TH, W, CO).astype(o_ref.dtype)


def _expand_grouped_weight(w, groups):
    """(Cout, Cin_per_group, KH, KW) grouped weight -> dense block-diagonal weight."""
    Cout, ipg, KH, KW = w.shape
    opg = Cout // groups
    dense = jnp.zeros((Cout, ipg * groups, KH, KW), w.dtype)
    for g in range(groups):
        dense = dense.at[g * opg:(g + 1) * opg, g * ipg:(g + 1) * ipg].set(
            w[g * opg:(g + 1) * opg])
    return dense


def conv3x3_bn_relu(x_nhwc, weight_oihw, scale, shift, *, groups=1,
                    out_dtype=jnp.bfloat16, keep_cout_pad=False):
    """3x3 / stride-1 / padding-1 (optionally grouped) conv + scale/shift + ReLU.

    x_nhwc may carry more channels than the conv consumes (trailing channels are
    matched with zero weights), so channel-padded stage outputs chain directly.
    """
    B, H, W, Cx = x_nhwc.shape
    Cout, ipg = weight_oihw.shape[0], weight_oihw.shape[1]
    Cin = ipg * groups
    assert Cx >= Cin, (Cx, Cin)

    wide_mxu, is_v7 = _tpu_flags()
    Cout_p = _round_up(Cout, 128)
    co_tile = 256 if (wide_mxu and Cout_p % 256 == 0) else 128
    n_co = Cout_p // co_tile

    # Block-diagonal grouped path: the co-th output tile only reads the co-th
    # input-channel tile (needs lane-aligned groups and Cin == Cout).
    opg = Cout // groups
    block_diag = (groups > 1 and Cin == Cout and Cx == Cin and n_co > 1
                  and Cout % groups == 0 and co_tile % opg == 0)
    if block_diag:
        Cin_p = Cout_p
        c_blk = co_tile
    else:
        Cin_p = _round_up(max(Cx, Cin), 128)
        c_blk = Cin_p

    # Weight -> im2col layout, tap-major rows (matches kernel tap order dy*3+dx).
    w_dense = _expand_grouped_weight(weight_oihw, groups)            # (Cout, Cin, 3, 3)
    w4d = jnp.transpose(w_dense, (2, 3, 1, 0))                       # (3, 3, Cin, Cout)
    w4d = jnp.pad(w4d, ((0, 0), (0, 0), (0, Cin_p - Cin), (0, Cout_p - Cout)))
    if block_diag:
        blks = [w4d[:, :, c * c_blk:(c + 1) * c_blk, c * co_tile:(c + 1) * co_tile]
                .reshape(9 * c_blk, co_tile) for c in range(n_co)]
        w_arr = jnp.stack(blks, axis=0).astype(jnp.bfloat16)         # (n_co, 9*T, T)
    else:
        w_arr = w4d.reshape(1, 9 * Cin_p, Cout_p).astype(jnp.bfloat16)

    scale_p = jnp.pad(scale.astype(jnp.float32), (0, Cout_p - Cout)).reshape(1, Cout_p)
    shift_p = jnp.pad(shift.astype(jnp.float32), (0, Cout_p - Cout)).reshape(1, Cout_p)

    # Row-tile size from a per-generation VMEM budget (double-buffered blocks).
    Wp = _round_up(W + 2, 8)
    out_bytes = jnp.dtype(out_dtype).itemsize
    budget = (16 << 20) if is_v7 else (28 << 20)

    def vmem_need(th):
        return (2 * (th + 2) * Wp * c_blk * 2          # double-buffered bf16 input
                + 2 * 9 * c_blk * co_tile * 2          # double-buffered bf16 weight
                + 2 * th * W * co_tile * out_bytes     # double-buffered output
                + th * W * co_tile * 4                 # f32 accumulator
                + th * W * c_blk * 2)                  # one live bf16 tap

    if H <= 8 or vmem_need(H) <= budget:
        TH = H
    else:
        TH, t = 8, 16
        while t < H and vmem_need(t) <= budget:
            TH, t = t, t + 8
    H_t = _round_up(H, TH)
    n_r = H_t // TH

    # Spatial zero ring (+ bottom/right alignment pad) and channel pad; bf16 in HBM.
    x_p = jnp.pad(x_nhwc.astype(jnp.bfloat16),
                  ((0, 0), (1, 1 + (H_t - H)), (1, Wp - W - 1), (0, Cin_p - Cx)))
    if n_r > 1:
        # TODO(synk): replace this XLA-side halo duplication (one extra HBM pass when
        # row tiling engages) with pl.Element row windows or a manual halo DMA.
        x_t = jnp.stack([x_p[:, r * TH:r * TH + TH + 2] for r in range(n_r)], axis=1)
        x_t = x_t.reshape(B * n_r, TH + 2, Wp, Cin_p)
    else:
        x_t = x_p

    if block_diag:
        x_map = lambda n, co: (n, 0, 0, co)
        w_map = lambda n, co: (co, 0, 0)
    else:
        x_map = lambda n, co: (n, 0, 0, 0)
        w_map = lambda n, co: (0, 0, co)

    vmem_limit = (48 << 20) if is_v7 else (96 << 20)

    y = pl.pallas_call(
        _conv3x3_bn_relu_kernel,
        out_shape=jax.ShapeDtypeStruct((B * n_r, TH, W, Cout_p), out_dtype),
        grid=(B * n_r, n_co),   # co innermost: activation tile stays VMEM-resident
        in_specs=[
            pl.BlockSpec((1, TH + 2, Wp, c_blk), x_map),
            pl.BlockSpec((1, 9 * c_blk, co_tile), w_map),
            pl.BlockSpec((1, co_tile), lambda n, co: (0, co)),
            pl.BlockSpec((1, co_tile), lambda n, co: (0, co)),
        ],
        out_specs=pl.BlockSpec((1, TH, W, co_tile), lambda n, co: (n, 0, 0, co)),
        compiler_params=pltpu.CompilerParams(
            dimension_semantics=("parallel", "parallel"),
            vmem_limit_bytes=vmem_limit,
        ),
    )(x_t, w_arr, scale_p, shift_p)

    y = y.reshape(B, H_t, W, Cout_p)[:, :H]
    if not keep_cout_pad:
        y = y[..., :Cout]
    return y


# -----------------------------------------------------------------------------
# Glue helpers (cheap, bandwidth-bound LRDU front end, NHWC throughout)
# -----------------------------------------------------------------------------
def _grouped_conv_nhwc(x, w_oihw, bias, padding, groups):
    w = jnp.transpose(w_oihw, (2, 3, 1, 0))              # OIHW -> HWIO
    y = lax.conv_general_dilated(
        x, w, (1, 1), padding,
        dimension_numbers=("NHWC", "HWIO", "NHWC"), feature_group_count=groups)
    return y + bias


def _pixel_shuffle_nhwc(x, r):
    B, H, W, Cr2 = x.shape
    C = Cr2 // (r * r)
    x = x.reshape(B, H, W, C, r, r)
    x = jnp.transpose(x, (0, 1, 4, 2, 5, 3))
    return x.reshape(B, H * r, W * r, C)


def _bn_fold(bias, gamma, beta, mean, var, eps=1e-5):
    # BatchNorm in inference mode (running stats), folded with the conv bias.
    scale = gamma / jnp.sqrt(var + eps)
    shift = (bias - mean) * scale + beta
    return scale, shift


# -----------------------------------------------------------------------------
# up_conv forward (Pallas-backed)
# -----------------------------------------------------------------------------
def up_conv_forward(x, p):
    """x: (B, ch_in, H, W) NCHW f32  ->  (B, ch_out, 2H, 2W) NCHW f32."""
    B, C, H, W = x.shape

    # ---- LRDU front end (glue, NHWC so no post-upsample transpose is needed) ----
    # TODO(synk): the depthwise (1,7)/(7,1) convs and PixelShuffle are cheap,
    # bandwidth-bound layout ops left in plain XLA; only the 3x3 convs run in Pallas.
    y = jnp.transpose(x, (0, 2, 3, 1))                               # NHWC
    y = _grouped_conv_nhwc(y, p["w1"], p["b1"], ((0, 0), (3, 3)), groups=C)
    y = _grouped_conv_nhwc(y, p["w2"], p["b2"], ((3, 3), (0, 0)), groups=C)
    y = _pixel_shuffle_nhwc(y, 2)                                    # (B, 2H, 2W, C)

    # ---- LRDU tail: grouped 3x3 conv + BN + ReLU (Pallas, fused, bf16 output) ----
    groups3 = max(C // 4, 1)
    s3, t3 = _bn_fold(p["b3"], p["g3"], p["be3"], p["m3"], p["v3"])
    y = conv3x3_bn_relu(y, p["w3"], s3, t3, groups=groups3,
                        out_dtype=jnp.bfloat16, keep_cout_pad=True)

    # ---- up_conv tail: 3x3 conv (ch_in -> ch_out) + BN + ReLU (Pallas, fused) -----
    s4, t4 = _bn_fold(p["b4"], p["g4"], p["be4"], p["m4"], p["v4"])
    y = conv3x3_bn_relu(y, p["w4"], s4, t4, groups=1,
                        out_dtype=jnp.float32, keep_cout_pad=False)

    return jnp.transpose(y, (0, 3, 1, 2))                            # back to NCHW


# -----------------------------------------------------------------------------
# Pure-JAX reference (matches PyTorch semantics, eval-mode BatchNorm)
# -----------------------------------------------------------------------------
def _pixel_shuffle_nchw(x, r):
    B, Cr2, H, W = x.shape
    C = Cr2 // (r * r)
    x = x.reshape(B, C, r, r, H, W)
    x = jnp.transpose(x, (0, 1, 4, 2, 5, 3))
    return x.reshape(B, C, H * r, W * r)


def _bn_eval_nchw(x, gamma, beta, mean, var, eps=1e-5):
    inv = gamma / jnp.sqrt(var + eps)
    return (x - mean[None, :, None, None]) * inv[None, :, None, None] \
        + beta[None, :, None, None]


def _reference_up_conv(x, p):
    B, C, H, W = x.shape
    y = lax.conv_general_dilated(
        x, p["w1"], (1, 1), ((0, 0), (3, 3)),
        dimension_numbers=("NCHW", "OIHW", "NCHW"), feature_group_count=C)
    y = y + p["b1"][None, :, None, None]
    y = lax.conv_general_dilated(
        y, p["w2"], (1, 1), ((3, 3), (0, 0)),
        dimension_numbers=("NCHW", "OIHW", "NCHW"), feature_group_count=C)
    y = y + p["b2"][None, :, None, None]
    y = _pixel_shuffle_nchw(y, 2)
    groups3 = max(C // 4, 1)
    y = lax.conv_general_dilated(
        y, p["w3"], (1, 1), ((1, 1), (1, 1)),
        dimension_numbers=("NCHW", "OIHW", "NCHW"), feature_group_count=groups3)
    y = y + p["b3"][None, :, None, None]
    y = _bn_eval_nchw(y, p["g3"], p["be3"], p["m3"], p["v3"])
    y = jnp.maximum(y, 0.0)
    y = lax.conv_general_dilated(
        y, p["w4"], (1, 1), ((1, 1), (1, 1)),
        dimension_numbers=("NCHW", "OIHW", "NCHW"))
    y = y + p["b4"][None, :, None, None]
    y = _bn_eval_nchw(y, p["g4"], p["be4"], p["m4"], p["v4"])
    y = jnp.maximum(y, 0.0)
    return y


if __name__ == "__main__":
    B, C_in, C_out, H, W = 2, 4, 8, 16, 16
    key = jax.random.PRNGKey(0)
    k = jax.random.split(key, 20)

    x = jax.random.normal(k[0], (B, C_in, H, W), dtype=jnp.float32)

    f1, f2 = 2, 4  # LRDU factor1 / factor2 for factor = 2
    p = {
        # LRDU: Conv2d(C, 2C, (1,7), padding=(0,3), groups=C)
        "w1": jax.random.normal(k[1], (f1 * C_in, 1, 1, 7), jnp.float32) / np.sqrt(7.0),
        "b1": 0.1 * jax.random.normal(k[2], (f1 * C_in,), jnp.float32),
        # LRDU: Conv2d(2C, 4C, (7,1), padding=(3,0), groups=C)
        "w2": jax.random.normal(k[3], (f2 * C_in, f1, 7, 1), jnp.float32) / np.sqrt(14.0),
        "b2": 0.1 * jax.random.normal(k[4], (f2 * C_in,), jnp.float32),
        # LRDU: Conv2d(C, C, 3, groups=C//4, padding=1)
        "w3": jax.random.normal(k[5], (C_in, 4, 3, 3), jnp.float32) / np.sqrt(36.0),
        "b3": 0.1 * jax.random.normal(k[6], (C_in,), jnp.float32),
        # LRDU: BatchNorm2d(C) (inference / running stats)
        "g3": 1.0 + 0.1 * jax.random.normal(k[7], (C_in,), jnp.float32),
        "be3": 0.1 * jax.random.normal(k[8], (C_in,), jnp.float32),
        "m3": 0.1 * jax.random.normal(k[9], (C_in,), jnp.float32),
        "v3": jax.random.uniform(k[10], (C_in,), jnp.float32, 0.5, 1.5),
        # up_conv: Conv2d(C, C_out, 3, padding=1, bias=True)
        "w4": jax.random.normal(k[11], (C_out, C_in, 3, 3), jnp.float32) / np.sqrt(9.0 * C_in),
        "b4": 0.1 * jax.random.normal(k[12], (C_out,), jnp.float32),
        # up_conv: BatchNorm2d(C_out)
        "g4": 1.0 + 0.1 * jax.random.normal(k[13], (C_out,), jnp.float32),
        "be4": 0.1 * jax.random.normal(k[14], (C_out,), jnp.float32),
        "m4": 0.1 * jax.random.normal(k[15], (C_out,), jnp.float32),
        "v4": jax.random.uniform(k[16], (C_out,), jnp.float32, 0.5, 1.5),
    }

    y = up_conv_forward(x, p)
    y = jax.block_until_ready(y)

    y_ref = _reference_up_conv(x, p)
    assert y.shape == (B, C_out, 2 * H, 2 * W), y.shape
    # bf16 MXU operands + bf16 inter-stage activations vs. f32 reference.
    np.testing.assert_allclose(np.asarray(y), np.asarray(y_ref), rtol=4e-2, atol=4e-2)

    print("KERNEL_OK")
</pallas_src>

<mosaic_0001>
module attributes {stable_mosaic.version = 11 : i64} {
  func.func @_conv3x3_bn_relu_kernel(%arg0: i32, %arg1: i32, %arg2: memref<1x34x40x128xbf16, #tpu.memory_space<vmem>>, %arg3: memref<1x1152x128xbf16, #tpu.memory_space<vmem>>, %arg4: memref<1x128xf32, #tpu.memory_space<vmem>>, %arg5: memref<1x128xf32, #tpu.memory_space<vmem>>, %arg6: memref<1x32x32x128xbf16, #tpu.memory_space<vmem>>) attributes {dimension_semantics = [#tpu.dimension_semantics<parallel>, #tpu.dimension_semantics<parallel>], iteration_bounds = array<i64: 2, 1>, scalar_prefetch = 0 : i64, scratch_operands = 0 : i64, tpu.core_type = #tpu.core_type<tc>, window_params = [{transform_indices = @transform_0, window_bounds = array<i64: 1, 34, 40, 128>}, {transform_indices = @transform_1, window_bounds = array<i64: 1, 1152, 128>}, {transform_indices = @transform_2, window_bounds = array<i64: 1, 128>}, {transform_indices = @transform_3, window_bounds = array<i64: 1, 128>}, {transform_indices = @transform_4, window_bounds = array<i64: 1, 32, 32, 128>}]} {
    %c0 = arith.constant 0 : index
    %c0_0 = arith.constant 0 : index
    %c0_1 = arith.constant 0 : index
    %c0_2 = arith.constant 0 : index
    %0 = vector.load %arg2[%c0, %c0_0, %c0_1, %c0_2] : memref<1x34x40x128xbf16, #tpu.memory_space<vmem>>, vector<1x34x40x128xbf16>
    %1 = vector.shape_cast %0 : vector<1x34x40x128xbf16> to vector<34x40x128xbf16>
    %c0_3 = arith.constant 0 : index
    %c0_4 = arith.constant 0 : index
    %c0_5 = arith.constant 0 : index
    %2 = vector.load %arg3[%c0_3, %c0_4, %c0_5] : memref<1x1152x128xbf16, #tpu.memory_space<vmem>>, vector<1x1152x128xbf16>
    %3 = vector.shape_cast %2 : vector<1x1152x128xbf16> to vector<1152x128xbf16>
    %cst = arith.constant 0.000000e+00 : f32
    %4 = vector.broadcast %cst : f32 to vector<1024x128xf32>
    %5 = vector.extract_strided_slice %1 {offsets = [0, 0, 0], sizes = [32, 32, 128], strides = [1, 1, 1]} : vector<34x40x128xbf16> to vector<32x32x128xbf16>
    %6 = vector.shape_cast %5 : vector<32x32x128xbf16> to vector<1024x128xbf16>
    %7 = vector.extract_strided_slice %3 {offsets = [0, 0], sizes = [128, 128], strides = [1, 1]} : vector<1152x128xbf16> to vector<128x128xbf16>
    %cst_6 = arith.constant dense<0.000000e+00> : vector<1024x128xf32>
    %8 = tpu.matmul %6, %7, %cst_6 {dimension_numbers = #tpu.dot_dimension_numbers<[1], [0], [0], [1], [0, 0, 1, 1], [], []>} : vector<1024x128xbf16>, vector<128x128xbf16>, vector<1024x128xf32> -> vector<1024x128xf32>
    %9 = arith.addf %4, %8 : vector<1024x128xf32>
    %10 = vector.extract_strided_slice %1 {offsets = [0, 1, 0], sizes = [32, 32, 128], strides = [1, 1, 1]} : vector<34x40x128xbf16> to vector<32x32x128xbf16>
    %11 = vector.shape_cast %10 : vector<32x32x128xbf16> to vector<1024x128xbf16>
    %12 = vector.extract_strided_slice %3 {offsets = [128, 0], sizes = [128, 128], strides = [1, 1]} : vector<1152x128xbf16> to vector<128x128xbf16>
    %cst_7 = arith.constant dense<0.000000e+00> : vector<1024x128xf32>
    %13 = tpu.matmul %11, %12, %cst_7 {dimension_numbers = #tpu.dot_dimension_numbers<[1], [0], [0], [1], [0, 0, 1, 1], [], []>} : vector<1024x128xbf16>, vector<128x128xbf16>, vector<1024x128xf32> -> vector<1024x128xf32>
    %14 = arith.addf %9, %13 : vector<1024x128xf32>
    %15 = vector.extract_strided_slice %1 {offsets = [0, 2, 0], sizes = [32, 32, 128], strides = [1, 1, 1]} : vector<34x40x128xbf16> to vector<32x32x128xbf16>
    %16 = vector.shape_cast %15 : vector<32x32x128xbf16> to vector<1024x128xbf16>
    %17 = vector.extract_strided_slice %3 {offsets = [256, 0], sizes = [128, 128], strides = [1, 1]} : vector<1152x128xbf16> to vector<128x128xbf16>
    %cst_8 = arith.constant dense<0.000000e+00> : vector<1024x128xf32>
    %18 = tpu.matmul %16, %17, %cst_8 {dimension_numbers = #tpu.dot_dimension_numbers<[1], [0], [0], [1], [0, 0, 1, 1], [], []>} : vector<1024x128xbf16>, vector<128x128xbf16>, vector<1024x128xf32> -> vector<1024x128xf32>
    %19 = arith.addf %14, %18 : vector<1024x128xf32>
    %20 = vector.extract_strided_slice %1 {offsets = [1, 0, 0], sizes = [32, 32, 128], strides = [1, 1, 1]} : vector<34x40x128xbf16> to vector<32x32x128xbf16>
    %21 = vector.shape_cast %20 : vector<32x32x128xbf16> to vector<1024x128xbf16>
    %22 = vector.extract_strided_slice %3 {offsets = [384, 0], sizes = [128, 128], strides = [1, 1]} : vector<1152x128xbf16> to vector<128x128xbf16>
    %cst_9 = arith.constant dense<0.000000e+00> : vector<1024x128xf32>
    %23 = tpu.matmul %21, %22, %cst_9 {dimension_numbers = #tpu.dot_dimension_numbers<[1], [0], [0], [1], [0, 0, 1, 1], [], []>} : vector<1024x128xbf16>, vector<128x128xbf16>, vector<1024x128xf32> -> vector<1024x128xf32>
    %24 = arith.addf %19, %23 : vector<1024x128xf32>
    %25 = vector.extract_strided_slice %1 {offsets = [1, 1, 0], sizes = [32, 32, 128], strides = [1, 1, 1]} : vector<34x40x128xbf16> to vector<32x32x128xbf16>
    %26 = vector.shape_cast %25 : vector<32x32x128xbf16> to vector<1024x128xbf16>
    %27 = vector.extract_strided_slice %3 {offsets = [512, 0], sizes = [128, 128], strides = [1, 1]} : vector<1152x128xbf16> to vector<128x128xbf16>
    %cst_10 = arith.constant dense<0.000000e+00> : vector<1024x128xf32>
    %28 = tpu.matmul %26, %27, %cst_10 {dimension_numbers = #tpu.dot_dimension_numbers<[1], [0], [0], [1], [0, 0, 1, 1], [], []>} : vector<1024x128xbf16>, vector<128x128xbf16>, vector<1024x128xf32> -> vector<1024x128xf32>
    %29 = arith.addf %24, %28 : vector<1024x128xf32>
    %30 = vector.extract_strided_slice %1 {offsets = [1, 2, 0], sizes = [32, 32, 128], strides = [1, 1, 1]} : vector<34x40x128xbf16> to vector<32x32x128xbf16>
    %31 = vector.shape_cast %30 : vector<32x32x128xbf16> to vector<1024x128xbf16>
    %32 = vector.extract_strided_slice %3 {offsets = [640, 0], sizes = [128, 128], strides = [1, 1]} : vector<1152x128xbf16> to vector<128x128xbf16>
    %cst_11 = arith.constant dense<0.000000e+00> : vector<1024x128xf32>
    %33 = tpu.matmul %31, %32, %cst_11 {dimension_numbers = #tpu.dot_dimension_numbers<[1], [0], [0], [1], [0, 0, 1, 1], [], []>} : vector<1024x128xbf16>, vector<128x128xbf16>, vector<1024x128xf32> -> vector<1024x128xf32>
    %34 = arith.addf %29, %33 : vector<1024x128xf32>
    %35 = vector.extract_strided_slice %1 {offsets = [2, 0, 0], sizes = [32, 32, 128], strides = [1, 1, 1]} : vector<34x40x128xbf16> to vector<32x32x128xbf16>
    %36 = vector.shape_cast %35 : vector<32x32x128xbf16> to vector<1024x128xbf16>
    %37 = vector.extract_strided_slice %3 {offsets = [768, 0], sizes = [128, 128], strides = [1, 1]} : vector<1152x128xbf16> to vector<128x128xbf16>
    %cst_12 = arith.constant dense<0.000000e+00> : vector<1024x128xf32>
    %38 = tpu.matmul %36, %37, %cst_12 {dimension_numbers = #tpu.dot_dimension_numbers<[1], [0], [0], [1], [0, 0, 1, 1], [], []>} : vector<1024x128xbf16>, vector<128x128xbf16>, vector<1024x128xf32> -> vector<1024x128xf32>
    %39 = arith.addf %34, %38 : vector<1024x128xf32>
    %40 = vector.extract_strided_slice %1 {offsets = [2, 1, 0], sizes = [32, 32, 128], strides = [1, 1, 1]} : vector<34x40x128xbf16> to vector<32x32x128xbf16>
    %41 = vector.shape_cast %40 : vector<32x32x128xbf16> to vector<1024x128xbf16>
    %42 = vector.extract_strided_slice %3 {offsets = [896, 0], sizes = [128, 128], strides = [1, 1]} : vector<1152x128xbf16> to vector<128x128xbf16>
    %cst_13 = arith.constant dense<0.000000e+00> : vector<1024x128xf32>
    %43 = tpu.matmul %41, %42, %cst_13 {dimension_numbers = #tpu.dot_dimension_numbers<[1], [0], [0], [1], [0, 0, 1, 1], [], []>} : vector<1024x128xbf16>, vector<128x128xbf16>, vector<1024x128xf32> -> vector<1024x128xf32>
    %44 = arith.addf %39, %43 : vector<1024x128xf32>
    %45 = vector.extract_strided_slice %1 {offsets = [2, 2, 0], sizes = [32, 32, 128], strides = [1, 1, 1]} : vector<34x40x128xbf16> to vector<32x32x128xbf16>
    %46 = vector.shape_cast %45 : vector<32x32x128xbf16> to vector<1024x128xbf16>
    %47 = vector.extract_strided_slice %3 {offsets = [1024, 0], sizes = [128, 128], strides = [1, 1]} : vector<1152x128xbf16> to vector<128x128xbf16>
    %cst_14 = arith.constant dense<0.000000e+00> : vector<1024x128xf32>
    %48 = tpu.matmul %46, %47, %cst_14 {dimension_numbers = #tpu.dot_dimension_numbers<[1], [0], [0], [1], [0, 0, 1, 1], [], []>} : vector<1024x128xbf16>, vector<128x128xbf16>, vector<1024x128xf32> -> vector<1024x128xf32>
    %49 = arith.addf %44, %48 : vector<1024x128xf32>
    %c0_15 = arith.constant 0 : index
    %c0_16 = arith.constant 0 : index
    %50 = vector.load %arg4[%c0_15, %c0_16] : memref<1x128xf32, #tpu.memory_space<vmem>>, vector<1x128xf32>
    %51 = vector.broadcast %50 : vector<1x128xf32> to vector<1024x128xf32>
    %52 = arith.mulf %49, %51 : vector<1024x128xf32>
    %c0_17 = arith.constant 0 : index
    %c0_18 = arith.constant 0 : index
    %53 = vector.load %arg5[%c0_17, %c0_18] : memref<1x128xf32, #tpu.memory_space<vmem>>, vector<1x128xf32>
    %54 = vector.broadcast %53 : vector<1x128xf32> to vector<1024x128xf32>
    %55 = arith.addf %52, %54 : vector<1024x128xf32>
    %cst_19 = arith.constant 0.000000e+00 : f32
    %56 = vector.broadcast %cst_19 : f32 to vector<1024x128xf32>
    %57 = arith.maximumf %55, %56 : vector<1024x128xf32>
    %58 = vector.shape_cast %57 : vector<1024x128xf32> to vector<32x32x128xf32>
    %59 = arith.truncf %58 : vector<32x32x128xf32> to vector<32x32x128xbf16>
    %c0_20 = arith.constant 0 : index
    %c0_21 = arith.constant 0 : index
    %c0_22 = arith.constant 0 : index
    %c0_23 = arith.constant 0 : index
    %60 = vector.load %arg6[%c0_20, %c0_21, %c0_22, %c0_23] : memref<1x32x32x128xbf16, #tpu.memory_space<vmem>>, vector<1x32x32x128xbf16>
    %61 = vector.shape_cast %60 : vector<1x32x32x128xbf16> to vector<32x32x128xbf16>
    %62 = vector.shape_cast %59 : vector<32x32x128xbf16> to vector<1x32x32x128xbf16>
    tpu.vector_store %arg6[%c0_20, %c0_21, %c0_22, %c0_23], %62 {strides = array<i32>} : memref<1x32x32x128xbf16, #tpu.memory_space<vmem>>, vector<1x32x32x128xbf16>,
    return
  }
  func.func @transform_0(%arg0: i32, %arg1: i32) -> (i32, i32, i32, i32) {
    %c0_i32 = arith.constant 0 : i32
    %c0_i32_0 = arith.constant 0 : i32
    %c0_i32_1 = arith.constant 0 : i32
    %c0_i32_2 = arith.constant 0 : i32
    return %arg0, %c0_i32, %c0_i32_0, %c0_i32_1 : i32, i32, i32, i32
  }
  func.func @transform_1(%arg0: i32, %arg1: i32) -> (i32, i32, i32) {
    %c0_i32 = arith.constant 0 : i32
    %c0_i32_0 = arith.constant 0 : i32
    %c0_i32_1 = arith.constant 0 : i32
    return %c0_i32, %c0_i32_0, %arg1 : i32, i32, i32
  }
  func.func @transform_2(%arg0: i32, %arg1: i32) -> (i32, i32) {
    %c0_i32 = arith.constant 0 : i32
    %c0_i32_0 = arith.constant 0 : i32
    return %c0_i32, %arg1 : i32, i32
  }
  func.func @transform_3(%arg0: i32, %arg1: i32) -> (i32, i32) {
    %c0_i32 = arith.constant 0 : i32
    %c0_i32_0 = arith.constant 0 : i32
    return %c0_i32, %arg1 : i32, i32
  }
  func.func @transform_4(%arg0: i32, %arg1: i32) -> (i32, i32, i32, i32) {
    %c0_i32 = arith.constant 0 : i32
    %c0_i32_0 = arith.constant 0 : i32
    %c0_i32_1 = arith.constant 0 : i32
    return %arg0, %c0_i32, %c0_i32_0, %arg1 : i32, i32, i32, i32
  }
}

</mosaic_0001>

<bundles_post_ra>
// kernel: tpu_custom_call.1
= control target key start
LH: loop header
LB: loop body
LE: loop exit
PB: predicated region body
PF: predicated region fallthrough
CT: control target
= control target key end

     0   :  { %9 = vsyncpa [#allocation3], 0  ;;  %s18707_s0 = inlined_call_operand.hbm [shape: bf16[2,34,40,128], index: 0, kind: input, shape index: {}]   ;;  %s18708_s1 = inlined_call_operand.hbm [shape: bf16[1,1152,128], index: 1, kind: input, shape index: {}]   ;;  %s18709_s2 = inlined_call_operand.hbm [shape: f32[1,128], index: 2, kind: input, shape index: {}]   ;;  %s18710_s3 = inlined_call_operand.hbm [shape: f32[1,128], index: 3, kind: input, shape index: {}]   ;;  %s18711_s4 = inlined_call_operand.hbm [shape: bf16[2,32,32,128], index: 4, kind: output, shape index: {}]  }
   0x1   :  { %11 = vsyncpa [#allocation3 + $0x1], 0 }
   0x2   :  { %12 = vsyncpa [#allocation6], 0 }
   0x3   :  { %13 = vsyncpa [#allocation9], 0 }
   0x4   :  { %14 = vsyncpa [#allocation4], 0 }
   0x5   :  { %16 = vsyncpa [#allocation4 + $0x1], 0  ;;  %s15589_s15 = smov 0   ;;  %s15591_s16 = smov 0  }
   0x6   :  { %s15593_s17 = smov 0   ;;  %s15595_s18 = smov 0  }
   0x7   :  { %s15597_s19 = smov 0   ;;  %s15599_s20 = smov 0  }
   0x8 LB: > { %s10940_s21 = sadd.s32 4294967295, %s15553_s20   ;;  %s10941_s22 = sadd.s32 4294967294, %s15553_s20   ;;  %s15553_s20 = sphi %s15599_s20, %s22_s20   ;;  %s15549_s19 = sphi %s15597_s19, %s19617_s19   ;;  %s15545_s18 = sphi %s15595_s18, %s19616_s18   ;;  %s15541_s17 = sphi %s15593_s17, %s19615_s17   ;;  %s15537_s16 = sphi %s15591_s16, %s19614_s16   ;;  %s15533_s15 = sphi %s15589_s15, %s19613_s15  }
   0x9   : > { %p54_p0 = scmp.ne.s32.totalorder %s15537_s16, %s15533_s15  ;;  %p15623_p1 = scmp.eq.s32.totalorder %s10940_s21, 0 }
   0xa   : > { %p15627_p2 = scmp.eq.s32.totalorder %s10940_s21, 1  ;;  %p164_p3 = scmp.eq.s32.totalorder %s10941_s22, 1 }
   0xb   : > { %s19030_s23 = scalar_select %p15623_p1, 1, 0 }
   0xc   : > { %s19031_s24 = scalar_select %p15627_p2, 1, 0 }
   0xd   : > { %p15633_p4 = por %p15623_p1, %p54_p0  ;;  %p10942_p5 = scmp.ge.s32.totalorder %s15553_s20, 1 }
   0xe   : > { %p15638_p6 = por %p164_p3, %p54_p0  ;;  %p171_p7 = scmp.lt.s32.totalorder %s15553_s20, 3 }
   0xf   : > { %s19032_s25 = scalar_select %p15633_p4, 1, 0 }
  0x10   : > { %s19033_s26 = scalar_select %p15638_p6, 1, 0 }
  0x11   : > { %p15643_p8 = pnand %p10942_p5, %p171_p7  ;;  %s15555_s28 = smov [#allocation5]  }
  0x12   : > { %19034 = sst [smem:[#allocation15_spill]] %s19033_s26  ;;  %s185_s29 = sshll.u32 %s15555_s28, 4  ;;  %s15647_s29 = int_to_ptr.vmem [resolvable:$true] %s185_s29 }
  0x13   : > { %s19035_s27 = scalar_select %p15643_p8, 1, 0 }
  0x14   : > { %p14913_p9 = pneg %p15643_p8  ;;  %s15556_s5 = smov [#allocation7]  }
  0x15   : > { %s201_s6 = sshll.u32 %s15556_s5, 4  ;;  %s15557_s7 = smov [#allocation8]   ;;  %s15658_s6 = int_to_ptr.vmem [resolvable:$true] %s201_s6 }
  0x16   : > { %p15654_p11 = pnand %p14913_p9, %p15623_p1  ;;  %s15660_s8 = sshll.u32 %s15557_s7, 4  ;;  %s215_s8 = int_to_ptr.vmem [resolvable:$true] %s15660_s8 }
  0x17   : > { %s15349_s11 = scalar_lea.hbm %s18708_s1, 9216 }
  0x18   : > { %p15350_p12 = scmp.ne.s32.totalorder %s18708_s1, %s15349_s11  ;;  %p15670_p13 = pneg %p15654_p11 }
  0x19   : > { %p15356_p5 = scmp.lt.u32.totalorder %s15349_s11, %s18708_s1 }
  0x1a   : > { %p15352_p0 = pnand %p15670_p13, %p15350_p12 }
  0x1c   : > { %p15353_p3 = pneg %p15352_p0 }
  0x1e   : > { %p15358_p7 = pnand %p15356_p5, %p15353_p3 }
  0x20   : > { %15361 = shalt.err (!%p15358_p7)
}
  0x21   : > { %s15362_s28 = scalar_lea.vmem %s15647_s29, 9216  ;;  %p15370_p1 = scmp.lt.s32.totalorder %s15647_s29, %s15647_s29 }
  0x22   : > { %p15363_p9 = scmp.ne.s32.totalorder %s15647_s29, %s15362_s28  ;;  %p15371_p4 = scmp.lt.s32.totalorder %s15362_s28, %s15362_s28 }
  0x24   : > { %p15365_p10 = pnand %p15363_p9, %p15670_p13  ;;  %p15372_p12 = por %p15371_p4, %p15370_p1 }
  0x26   : > { %p15366_p6 = pneg %p15365_p10 }
  0x28   : > { %p15373_p0 = pnand %p15372_p12, %p15366_p6 }
  0x2a   : > { %15376 = shalt.err (!%p15373_p0)
}
  0x2b   : > { %s18717_s5 = smov 64   ;;  %s15559_s7 = smov 4  }
  0x2c   : > { %14916 = dma.hbm_to_vmem [thread:$0]  (!%p15654_p11), %s18708_s1, 9216, %s15647_s29, [#allocation6], %s18717_s5, %s18717_s5, %s15559_s7  }
  0x2d   : > { %s15377_s13 = scalar_lea.hbm %s18709_s2, 16 }
  0x2e   : > { %p15378_p1 = scmp.ne.s32.totalorder %s18709_s2, %s15377_s13  ;;  %p15384_p10 = scmp.lt.u32.totalorder %s15377_s13, %s18709_s2 }
  0x30   : > { %p15380_p4 = pnand %p15378_p1, %p15670_p13 }
  0x32   : > { %p15381_p6 = pneg %p15380_p4 }
  0x34   : > { %p15386_p3 = pnand %p15384_p10, %p15381_p6 }
  0x36   : > { %15389 = shalt.err (!%p15386_p3)
}
  0x37   : > { %s15390_s29 = scalar_lea.vmem %s15658_s6, 16  ;;  %s15397_s9 = scalar_lea.vmem %s15658_s6, 32 }
  0x38   : > { %p15391_p5 = scmp.ne.s32.totalorder %s15658_s6, %s15390_s29  ;;  %p15398_p12 = scmp.lt.s32.totalorder %s15658_s6, %s15658_s6 }
  0x39   : > { %p15399_p0 = scmp.lt.s32.totalorder %s15397_s9, %s15390_s29 }
  0x3a   : > { %p15393_p7 = pnand %p15391_p5, %p15670_p13 }
  0x3b   : > { %p15400_p1 = por %p15399_p0, %p15398_p12 }
  0x3c   : > { %p15394_p9 = pneg %p15393_p7 }
  0x3e   : > { %p15401_p4 = pnand %p15400_p1, %p15394_p9 }
  0x40   : > { %15404 = shalt.err (!%p15401_p4)
}
  0x41   : > { %14919 = dma.hbm_to_vmem [thread:$0]  (!%p15654_p11), %s18709_s2, 16, %s15658_s6, [#allocation6]  }
  0x42   : > { %s15405_s13 = scalar_lea.hbm %s18710_s3, 16 }
  0x43   : > { %p15406_p6 = scmp.ne.s32.totalorder %s18710_s3, %s15405_s13  ;;  %p15412_p5 = scmp.lt.u32.totalorder %s15405_s13, %s18710_s3 }
  0x45   : > { %p15408_p10 = pnand %p15406_p6, %p15670_p13 }
  0x47   : > { %p15409_p3 = pneg %p15408_p10 }
  0x49   : > { %p15414_p7 = pnand %p15412_p5, %p15409_p3 }
  0x4b   : > { %15417 = shalt.err (!%p15414_p7)
}
  0x4c   : > { %s15418_s9 = scalar_lea.vmem %s215_s8, 16  ;;  %s15425_s6 = scalar_lea.vmem %s215_s8, 32 }
  0x4d   : > { %p15419_p9 = scmp.ne.s32.totalorder %s215_s8, %s15418_s9  ;;  %p15426_p1 = scmp.lt.s32.totalorder %s215_s8, %s215_s8 }
  0x4e   : > { %p15427_p4 = scmp.lt.s32.totalorder %s15425_s6, %s15418_s9 }
  0x4f   : > { %p15421_p12 = pnand %p15419_p9, %p15670_p13 }
  0x50   : > { %p15428_p8 = por %p15427_p4, %p15426_p1 }
  0x51   : > { %p15422_p0 = pneg %p15421_p12 }
  0x53   : > { %p15429_p2 = pnand %p15428_p8, %p15422_p0 }
  0x55   : > { %15432 = shalt.err (!%p15429_p2)
}
  0x56   : > { %14922 = dma.hbm_to_vmem [thread:$0]  (!%p15654_p11), %s18710_s3, 16, %s215_s8, [#allocation9]  }
  0x57   : > { %s41_s14 = sadd.s32 1, %s15541_s17  ;;  %s34_s11 = sadd.s32 1, %s15549_s19 }
  0x58   : > { %p48_p2 = scmp.ne.s32.totalorder %s15541_s17, %s15537_s16  ;;  %p36_p8 = scmp.ge.s32.totalorder %s34_s11, 2 }
  0x59   : > { %p49_p13 = scmp.eq.s32.totalorder %s15553_s20, 0  ;;  %p19038_p6 = scmp.ne.s32.totalorder %s19031_s24, 0 }
  0x5a   : > { %p14934_p3 = scmp.lt.s32.totalorder %s15553_s20, 2  ;;  %s19619_s11 = smov (%p36_p8, %s34_s11), 0 }
  0x5b   : > { %p15744_p10 = por %p19038_p6, %p48_p2  ;;  %p50_p5 = por %p49_p13, %p48_p2 }
  0x5c   : > { %s225_s12 = sand.u32 1, %s15541_s17   ;;  %s38_s13 = ssub.s32 %s15549_s19, %s19619_s11 }
  0x5d   : > { %p39_p7 = scmp.eq.s32.totalorder %s38_s13, 0  ;;  %s14894_s8 = smul.u32 680, %s225_s12 }
  0x5e   : > { %s14895_s21 = smul.u32 10880, %s15549_s19  ;;  %p15755_p11 = pnand %p14934_p3, %p50_p5 }
  0x5f   : > { %s15760_s24 = scalar_select %p39_p7, %s15541_s17, %s41_s14  }
  0x60   : > { %s15765_s9 = scalar_lea.hbm %s18707_s0, %s14895_s21  ;;  %s229_s6 = scalar_lea.vmem [#allocation2], %s14894_s8 }
  0x61   : > { %s236_s26 = sshll.u32 %s229_s6, 4  ;;  %s15769_s10 = scalar_lea.sflag [#allocation3], %s225_s12  ;;  %s15767_s26 = int_to_ptr.vmem [resolvable:$true] %s236_s26 }
  0x62   : > { %s15433_s13 = scalar_lea.hbm %s15765_s9, 10880  ;;  %p15435_p12 = pneg %p15755_p11 }
  0x63   : > { %p15434_p9 = scmp.ne.s32.totalorder %s15765_s9, %s15433_s13  ;;  %s15438_s28 = scalar_lea.hbm %s18707_s0, 21760 }
  0x64   : > { %p15439_p4 = scmp.lt.u32.totalorder %s15765_s9, %s18707_s0  ;;  %p15440_p2 = scmp.lt.u32.totalorder %s15438_s28, %s15433_s13 }
  0x65   : > { %p15436_p0 = pnand %p15435_p12, %p15434_p9  ;;  %p15442_p13 = scmp.lt.u32.totalorder %s15433_s13, %s15765_s9 }
  0x66   : > { %p15441_p8 = por %p15440_p2, %p15439_p4 }
  0x67   : > { %p15437_p1 = pneg %p15436_p0 }
  0x68   : > { %p15443_p6 = por %p15442_p13, %p15441_p8 }
  0x6a   : > { %p15444_p3 = pnand %p15443_p6, %p15437_p1 }
  0x6c   : > { %15447 = shalt.err (!%p15444_p3)
}
  0x6d   : > { %s15448_s12 = scalar_lea.vmem %s15767_s26, 10880  ;;  %s15560_s8 = smov [#allocation2]  }
  0x6e   : > { %p15449_p5 = scmp.ne.s32.totalorder %s15767_s26, %s15448_s12  ;;  %s15453_s6 = sshll.u32 %s15560_s8, 4  ;;  %s15454_s6 = int_to_ptr.vmem [resolvable:$false] %s15453_s6 }
  0x6f   : > { %s15455_s5 = scalar_lea.vmem %s15454_s6, 21760  ;;  %p15456_p0 = scmp.lt.s32.totalorder %s15767_s26, %s15454_s6 }
  0x70   : > { %p15451_p7 = pnand %p15449_p5, %p15435_p12  ;;  %p15457_p4 = scmp.lt.s32.totalorder %s15455_s5, %s15448_s12 }
  0x72   : > { %p15452_p9 = pneg %p15451_p7  ;;  %p15458_p2 = por %p15457_p4, %p15456_p0 }
  0x74   : > { %p15459_p8 = pnand %p15458_p2, %p15452_p9 }
  0x76   : > { %15462 = shalt.err (!%p15459_p8)
}
  0x77   : > { %s19041_s13 = smov 64   ;;  %p19042_p12 = scmp.ne.s32.totalorder %s19035_s27, 0 }
  0x78   : > { %14926 = dma.hbm_to_vmem [thread:$0]  (!%p15755_p11), %s15765_s9, 10880, %s15767_s26, %s15769_s10, %s19041_s13, %s19041_s13, %s15559_s7  }
  0x79   : > { %248 = sbr.rel (%p19042_p12) target bundleno = 1597 (0x63d), region = 36 }
  0x80   : > { %s15803_s14 = sand.u32 1, %s15537_s16   ;;  %p19043_p1 = scmp.ne.s32.totalorder %s19032_s25, 0 }
  0x81   : > { %s14896_s21 = smul.u32 680, %s15803_s14  ;;  %s251_s28 = scalar_lea.sflag [#allocation3], %s15803_s14 }
  0x83   : > { %s15807_s29 = scalar_lea.vmem [#allocation2], %s14896_s21 }
  0x84   : > { %15516 = dma.done.wait (%p19043_p1), %s251_s28, 10880  }
  0x85   : > { %15518 = vsyncadd (%p19043_p1), %s251_s28, 4294956416  ;;  %p19044_p11 = scmp.ne.s32.totalorder %s19030_s23, 0 }
  0x87   : > { %15520 = dma.done.wait (%p19044_p11), [#allocation6], 9232  }
  0x88   : > { %15522 = vsyncadd (%p19044_p11), [#allocation6], 4294958064 }
  0x89   : > { %15524 = dma.done.wait (%p19044_p11), [#allocation9], 16  }
  0x8a   : > { %15526 = vsyncadd (%p19044_p11), [#allocation9], 4294967280  ;;  %v14994_v0 = vld [vmem:[#allocation5 + $0x40] sm:$0xff]   ;;  %v14996_v2 = vld [vmem:[#allocation5 + $0x48] sm:$0xff]   ;;  %vm606_vm0 = vsmask.f32 3328 }
  0x8b   : > { %v14995_v1 = vld [vmem:[#allocation5 + $0x100] sm:$0xff]   ;;  %12558 = vmatprep.subr.bf16.mxu1 %v14994_v0  ;;  %v14997_v3 = vld [vmem:[#allocation5 + $0x108] sm:$0xff]   ;;  %v14998_v4 = vld [vmem:[#allocation5 + $0x50] sm:$0xff]   ;;  %vm607_vm1 = vsmask.f32 7440  ;;  %v19045_v38 = vmov 0 }
  0x8c   : > { %13134 = vmatprep.subr.bf16.mxu0 %v14995_v1  ;;  %12559 = vmatpush3.bf16.msra.mxu1 %v14994_v0  ;;  %v14999_v5 = vld [vmem:[#allocation5 + $0x110] sm:$0xff]   ;;  %v15000_v6 = vld [vmem:[#allocation5 + $0x58] sm:$0xff]   ;;  %v15002_v8 = vld [vmem:[#allocation5 + $0x60] sm:$0xff]   ;;  %vm3875_vm3 = vcmask 1042432   ;;  %vm3876_vm4 = vcmask 1046532   ;;  %s10952_s23 = sshll.u32 %s15803_s14, 9 }
  0x8d   : > { %13135 = vmatpush3.bf16.msra.mxu0 %v14995_v1  ;;  %12560 = vmatprep.subr.bf16.mxu1 %v14996_v2  ;;  %v15001_v7 = vld [vmem:[#allocation5 + $0x118] sm:$0xff]   ;;  %v15003_v9 = vld [vmem:[#allocation5 + $0x120] sm:$0xff]   ;;  %v15004_v10 = vld [vmem:[#allocation5 + $0x68] sm:$0xff]   ;;  %s18254_s25 = scalar_lea.vmem [#allocation10], %s10952_s23  ;;  %s11526_s27 = sshll.u32 %s15545_s18, 13 }
  0x8e   : > { %13136 = vmatprep.subr.bf16.mxu0 %v14997_v3  ;;  %v15005_v11 = vld [vmem:[#allocation5 + $0x128] sm:$0xff]   ;;  %v292_v12 = vld [vmem:[%s15807_s29] sm:$0xf]  ;;  %v293_v13 = vld [vmem:[%s15807_s29 + $0x4] sm:$0xf]  ;;  %s10822_s7 = sshll.u32 %s18254_s25, 4  ;;  %s18654_s26 = scalar_lea.hbm %s18711_s4, %s11526_s27  ;;  %s18656_s7 = int_to_ptr.vmem [resolvable:$true] %s10822_s7 }
  0x8f   : > { %v294_v14 = vld [vmem:[%s15807_s29 + $0x8] sm:$0xf]  ;;  %v610_v15 = vshrl.u32 %v292_v12, 16  ;;  %v613_v16 = vshll.u32 %v292_v12, 16  ;;  %v619_v17 = vshll.u32 %v293_v13, 16  ;;  %v623_v18 = vshrl.u32 %v293_v13, 16  ;;  %vm15829_vm2 = vmor %vm606_vm0, %vm607_vm1 }
  0x90   : > { %12561 = vmatpush3.bf16.msra.mxu1 %v14996_v2  ;;  %v297_v19 = vld [vmem:[%s15807_s29 + $0x14] sm:$0xf]  ;;  %v629_v20 = vshll.u32 %v294_v14, 16  ;;  %v633_v21 = vshrl.u32 %v294_v14, 16  ;;  %v298_v22 = vld [vmem:[%s15807_s29 + $0x18] sm:$0xf]  ;;  %vm16165_vm5 = vmor %vm3875_vm3, %vm3876_vm4 }
  0x91   : > { %13137 = vmatpush3.bf16.msra.mxu0 %v14997_v3  ;;  %12562 = vmatprep.subr.bf16.mxu1 %v14998_v4  ;;  %v612_v23 = vrot.slane %v610_v15, 4  ;;  %v615_v24 = vrot.slane %v613_v16, 5  ;;  %v621_v25 = vrot.slane %v619_v17, 5  ;;  %v625_v26 = vrot.slane %v623_v18, 4  ;;  %v299_v27 = vld [vmem:[%s15807_s29 + $0x1c] sm:$0xf] }
  0x92   : > { %13138 = vmatprep.subr.bf16.mxu0 %v14999_v5  ;;  %v15006_v28 = vld [vmem:[#allocation5 + $0x70] sm:$0xff]   ;;  %v631_v30 = vrot.slane %v629_v20, 5  ;;  %v635_v31 = vrot.slane %v633_v21, 4  ;;  %v654_v32 = vshrl.u32 %v297_v19, 16  ;;  %v657_v33 = vshll.u32 %v297_v19, 16  ;;  %v15008_v49 = vld [vmem:[#allocation5 + $0x78] sm:$0xff]  }
  0x93   : > { %v15007_v29 = vld [vmem:[#allocation5 + $0x130] sm:$0xff]   ;;  %v616_v34 = vor.u32 %v615_v24, %v612_v23  ;;  %v626_v35 = vor.u32 %v625_v26, %v621_v25  ;;  %v663_v36 = vshll.u32 %v298_v22, 16  ;;  %v667_v37 = vshrl.u32 %v298_v22, 16  ;;  %v295_v43 = vld [vmem:[%s15807_s29 + $0xc] sm:$0xf]  ;;  %s10808_s18 = scalar_lea.sflag [#allocation4], %s15803_s14 }
  0x94   : > { %12563 = vmatpush3.bf16.msra.mxu1 %v14998_v4  ;;  %v19046_v38 = vsel %vm15829_vm2, 4294967295, %v19045_v38  ;;  %v636_v39 = vor.u32 %v635_v31, %v631_v30  ;;  %v656_v40 = vrot.slane %v654_v32, 4  ;;  %v659_v41 = vrot.slane %v657_v33, 5  ;;  %v296_v48 = vld [vmem:[%s15807_s29 + $0x10] sm:$0xf]  ;;  %v15009_v54 = vld [vmem:[#allocation5 + $0x138] sm:$0xff]  }
  0x95   : > { %13139 = vmatpush3.bf16.msra.mxu0 %v14999_v5  ;;  %12564 = vmatprep.subr.bf16.mxu1 %v15000_v6  ;;  %19047 = vst [vmem:[#allocation16_spill] sm:$0xff] %v19046_v38  ;;  %v673_v42 = vshll.u32 %v299_v27, 16  ;;  %v617_v44 = vrot.slane %v616_v34, 4  ;;  %v627_v45 = vrot.slane %v626_v35, 4  ;;  %v665_v46 = vrot.slane %v663_v36, 5  ;;  %v15010_v12 = vld [vmem:[#allocation5] sm:$0xff]  }
  0x96   : > { %13140 = vmatprep.subr.bf16.mxu0 %v15001_v7  ;;  %v669_v47 = vrot.slane %v667_v37, 4  ;;  %v15835_v50 = vrot.slane %v636_v39, 4  ;;  %v660_v51 = vor.u32 %v659_v41, %v656_v40  ;;  %v677_v53 = vshrl.u32 %v299_v27, 16  ;;  %v300_v59 = vld [vmem:[%s15807_s29 + $0x20] sm:$0xf]  ;;  %v15853_v14 = vld [vmem:[#allocation5 + $0x140] sm:$0xff]  }
  0x97   : > { %v675_v52 = vrot.slane %v673_v42, 5  ;;  %v622_v55 = vsel %vm15829_vm2, %v617_v44, %v621_v25  ;;  %v632_v56 = vsel %vm15829_vm2, %v627_v45, %v631_v30  ;;  %v639_v58 = vshll.u32 %v295_v43, 16  ;;  %v303_v15 = vld [vmem:[%s15807_s29 + $0x2c] sm:$0xf]  ;;  %v304_v20 = vld [vmem:[%s15807_s29 + $0x30] sm:$0xf] }
  0x98   : > { %12565 = vmatpush3.bf16.msra.mxu1 %v15000_v6  ;;  %v670_v57 = vor.u32 %v669_v47, %v665_v46  ;;  %v10953_v60 = vcombine.low %v622_v55, %v632_v56  ;;  %v661_v61 = vrot.slane %v660_v51, 4  ;;  %v679_v62 = vrot.slane %v677_v53, 4  ;;  %v15845_v6 = vld [vmem:[%s15807_s29 + $0x24] sm:$0xf]  ;;  %v305_v25 = vld [vmem:[%s15807_s29 + $0x34] sm:$0xf] }
  0x99   : > { %13141 = vmatpush3.bf16.msra.mxu0 %v15001_v7  ;;  %12566 = vmatprep.subr.bf16.mxu1 %v15002_v8  ;;  %v643_v63 = vshrl.u32 %v295_v43, 16  ;;  %v641_v1 = vrot.slane %v639_v58, 5  ;;  %v649_v2 = vshll.u32 %v296_v48, 16  ;;  %v683_v7 = vshll.u32 %v300_v59, 16  ;;  %v306_v39 = vld [vmem:[%s15807_s29 + $0x38] sm:$0xf] }
  0x9a   : > { %13142 = vmatprep.subr.bf16.mxu0 %v15003_v9  ;;  %v671_v0 = vrot.slane %v670_v57, 4  ;;  %v666_v3 = vsel %vm15829_vm2, %v661_v61, %v665_v46  ;;  %v680_v4 = vor.u32 %v679_v62, %v675_v52  ;;  %12574 = vmatprep.mubr.bf16.mxu1 %v10953_v60  ;;  %v687_v13 = vshrl.u32 %v300_v59, 16  ;;  %v15013_v44 = vld [vmem:[#allocation5 + $0x8] sm:$0xff]   ;;  %s15463_s10 = scalar_lea.vmem %s18656_s7, 8192  ;;  %s15561_s12 = smov [#allocation10]  }
  0x9b   : > { %v645_v5 = vrot.slane %v643_v63, 4  ;;  %v685_v19 = vrot.slane %v683_v7, 5  ;;  %v693_v22 = vshll.u32 %v15845_v6, 16  ;;  %v3902_v23 = vrot.slane %v15845_v6, 5  ;;  %v15012_v59 = vld [vmem:[#allocation5 + $0x148] sm:$0xff]   ;;  %p15464_p13 = scmp.ne.s32.totalorder %s18656_s7, %s15463_s10  ;;  %s15467_s8 = sshll.u32 %s15561_s12, 4  ;;  %s15468_s8 = int_to_ptr.vmem [resolvable:$false] %s15467_s8 }
  0x9c   : > { %12567 = vmatpush3.bf16.msra.mxu1 %v15002_v8  ;;  %v302_v8 = vld [vmem:[%s15807_s29 + $0x28] sm:$0xf]  ;;  %v681_v18 = vrot.slane %v680_v4, 4  ;;  %v689_v21 = vrot.slane %v687_v13, 4  ;;  %v711_v33 = vshrl.u32 %v303_v15, 16  ;;  %v717_v37 = vshll.u32 %v304_v20, 16  ;;  %p15470_p5 = scmp.lt.s32.totalorder %s18656_s7, %s15468_s8 }
  0x9d   : > { %13143 = vmatpush3.bf16.msra.mxu0 %v15003_v9  ;;  %12568 = vmatprep.subr.bf16.mxu1 %v15004_v10  ;;  %v676_v9 = vsel %vm15829_vm2, %v671_v0, %v675_v52  ;;  %v646_v17 = vor.u32 %v645_v5, %v641_v1  ;;  %v698_v24 = vshrl.u32 %v302_v8, 16  ;;  %v695_v31 = vrot.slane %v693_v22, 5  ;;  %v309_v63 = vld [vmem:[%s15807_s29 + $0x44] sm:$0xf]  ;;  %v310_v7 = vld [vmem:[%s15807_s29 + $0x48] sm:$0xf]  ;;  %p15465_p6 = pnand %p15464_p13, %p15744_p10 }
  0x9e   : > { %13144 = vmatprep.subr.bf16.mxu0 %v15005_v11  ;;  %v10955_v16 = vcombine.low %v666_v3, %v676_v9  ;;  %v686_v27 = vsel %vm15829_vm2, %v681_v18, %v685_v19  ;;  %v690_v30 = vor.u32 %v689_v21, %v685_v19  ;;  %v713_v42 = vrot.slane %v711_v33, 4  ;;  %v15014_v18 = vld [vmem:[#allocation5 + $0x150] sm:$0xff]   ;;  %v312_v22 = vld [vmem:[%s15807_s29 + $0x50] sm:$0xf]  ;;  %v313_v33 = vld [vmem:[%s15807_s29 + $0x54] sm:$0xf] }
  0x9f   : > { %v647_v26 = vrot.slane %v646_v17, 4  ;;  %v700_v32 = vrot.slane %v698_v24, 4  ;;  %v721_v43 = vshrl.u32 %v304_v20, 16  ;;  %v719_v46 = vrot.slane %v717_v37, 5  ;;  %v311_v17 = vld [vmem:[%s15807_s29 + $0x4c] sm:$0xf]  ;;  %p15466_p3 = pneg %p15465_p6 }
  0xa0   : > { %12569 = vmatpush3.bf16.msra.mxu1 %v15004_v10  ;;  %v642_v10 = vsel %vm15829_vm2, %v15835_v50, %v641_v1  ;;  %13150 = vmatprep.mubr.bf16.mxu0 %v10955_v16  ;;  %v691_v41 = vrot.slane %v690_v30, 4  ;;  %v727_v47 = vshll.u32 %v305_v25, 16  ;;  %v731_v48 = vshrl.u32 %v305_v25, 16  ;;  %v15016_v1 = vld [vmem:[#allocation5 + $0x10] sm:$0xff]   ;;  %v15019_v24 = vld [vmem:[#allocation5 + $0x18] sm:$0xff]   ;;  %s15469_s6 = scalar_lea.vmem %s15468_s8, 16384 }
  0xa1   : > { %13145 = vmatpush3.bf16.msra.mxu0 %v15005_v11  ;;  %12570 = vmatprep.subr.bf16.mxu1 %v15006_v28  ;;  %v651_v11 = vrot.slane %v649_v2, 5  ;;  %v723_v52 = vrot.slane %v721_v43, 4  ;;  %v737_v53 = vshll.u32 %v306_v39, 16  ;;  %v761_v20 = vshll.u32 %v309_v63, 16  ;;  %v15015_v39 = vld [vmem:[#allocation5 + $0x158] sm:$0xff]   ;;  %p15471_p7 = scmp.lt.s32.totalorder %s15469_s6, %s15463_s10 }
  0xa2   : > { %13146 = vmatprep.subr.bf16.mxu0 %v15007_v29  ;;  %v696_v50 = vsel %vm15829_vm2, %v691_v41, %v695_v31  ;;  %v729_v57 = vrot.slane %v727_v47, 5  ;;  %v733_v58 = vrot.slane %v731_v48, 4  ;;  %v765_v21 = vshrl.u32 %v309_v63, 16  ;;  %v314_v47 = vld [vmem:[%s15807_s29 + $0x58] sm:$0xf] }
  0xa3   : > { %v652_v34 = vsel %vm15829_vm2, %v647_v26, %v651_v11  ;;  %v10956_v55 = vcombine.low %v686_v27, %v696_v50  ;;  %v724_v61 = vor.u32 %v723_v52, %v719_v46  ;;  %v739_v62 = vrot.slane %v737_v53, 5  ;;  %v381_v6 = vld [vmem:[%s15807_s29 + $0x164] sm:$0xf]  ;;  %p15472_p9 = por %p15471_p7, %p15470_p5 }
  0xa4   : > { %12571 = vmatpush3.bf16.msra.mxu1 %v15006_v28  ;;  %v701_v28 = vshll.u32 %v302_v8, 16  ;;  %v10954_v40 = vcombine.low %v642_v10, %v652_v34  ;;  %v734_v3 = vor.u32 %v733_v58, %v729_v57  ;;  %v771_v27 = vshll.u32 %v310_v7, 16 }
  0xa5   : > { %13147 = vmatpush3.bf16.msra.mxu0 %v15007_v29  ;;  %12572 = vmatprep.subr.bf16.mxu1 %v15008_v49  ;;  %v707_v29 = vshll.u32 %v303_v15, 16  ;;  %v725_v9 = vrot.slane %v724_v61, 4  ;;  %v763_v31 = vrot.slane %v761_v20, 5  ;;  %v781_v37 = vshll.u32 %v311_v17, 16  ;;  %v319_v20 = vld [vmem:[%s15807_s29 + $0x6c] sm:$0xf]  ;;  %p15473_p0 = pnand %p15472_p9, %p15466_p3 }
  0xa6   : > { %13148 = vmatprep.subr.bf16.mxu0 %v15009_v54  ;;  %v703_v35 = vrot.slane %v701_v28, 5  ;;  %v735_v13 = vrot.slane %v734_v3, 4  ;;  %v775_v28 = vshrl.u32 %v310_v7, 16  ;;  %v789_v43 = vshll.u32 %v312_v22, 16 }
  0xa7   : > { %v709_v36 = vrot.slane %v707_v29, 5  ;;  %v730_v19 = vsel %vm15829_vm2, %v725_v9, %v729_v57  ;;  %v795_v48 = vshll.u32 %v313_v33, 16  ;;  %v799_v58 = vshrl.u32 %v313_v33, 16  ;;  %v320_v33 = vld [vmem:[%s15807_s29 + $0x70] sm:$0xf] }
  0xa8   : > { %12573 = vmatpush3.bf16.msra.mxu1 %v15008_v49  ;;  %v704_v45 = vor.u32 %v703_v35, %v700_v32  ;;  %v307_v49 = vld [vmem:[%s15807_s29 + $0x3c] sm:$0xf]  ;;  %v740_v25 = vsel %vm15829_vm2, %v735_v13, %v739_v62  ;;  %v767_v32 = vrot.slane %v765_v21, 4  ;;  %v773_v35 = vrot.slane %v771_v27, 5 }
  0xa9   : > { %13149 = vmatpush3.bf16.msra.mxu0 %v15009_v54  ;;  %12702 = vmatprep.subr.bf16.mxu1 %v15010_v12  ;;  %v714_v51 = vor.u32 %v713_v42, %v709_v36  ;;  %v308_v54 = vld [vmem:[%s15807_s29 + $0x40] sm:$0xf]  ;;  %v742_v0 = vshrl.u32 %v307_v49, 16  ;;  %v745_v4 = vshll.u32 %v307_v49, 16  ;;  %v15886_v29 = vcombine.low %v730_v19, %v740_v25  ;;  %v15022_v49 = vld [vmem:[#allocation5 + $0x20] sm:$0xff]  }
  0xaa   : > { %13278 = vmatprep.subr.bf16.mxu0 %v15853_v14  ;;  %v705_v56 = vrot.slane %v704_v45, 4  ;;  %v751_v5 = vshll.u32 %v308_v54, 16  ;;  %v755_v11 = vshrl.u32 %v308_v54, 16  ;;  %v768_v41 = vor.u32 %v767_v32, %v763_v31  ;;  %v315_v54 = vld [vmem:[%s15807_s29 + $0x5c] sm:$0xf] }
  0xab   : > { %12575 = vmatmul.mubr.bf16.vlgmr.msra.gmra.mrb[0].mxu1 %v10954_v40  ;;  %v715_v60 = vrot.slane %v714_v51, 4  ;;  %v744_v10 = vrot.slane %v742_v0, 4  ;;  %v747_v15 = vrot.slane %v745_v4, 5  ;;  %19049 = vst [vmem:[#allocation18_spill] sm:$0xff] %v15886_v29  ;;  %v786_v42 = vshrl.u32 %v312_v22, 16 }
  0xac   : > { %12703 = vmatpush3.bf16.msra.mxu1 %v15010_v12  ;;  %12578 = vmatprep.mubr.bf16.mxu1 %v10955_v16  ;;  %v710_v2 = vsel %vm15829_vm2, %v705_v56, %v709_v36  ;;  %v753_v16 = vrot.slane %v751_v5, 5  ;;  %v777_v36 = vrot.slane %v775_v28, 4  ;;  %v769_v51 = vrot.slane %v768_v41, 4 }
  0xad   : > { %12704 = vmatprep.subr.bf16.mxu1 %v15013_v44  ;;  %13151 = vmatmul.mubr.bf16.vlgmr.msra.gmra.mrb[0].mxu0 %v10956_v55  ;;  %v720_v8 = vsel %vm15829_vm2, %v715_v60, %v719_v46  ;;  %v748_v26 = vor.u32 %v747_v15, %v744_v10  ;;  %v783_v46 = vrot.slane %v781_v37, 5  ;;  %v788_v52 = vrot.slane %v786_v42, 4  ;;  %v15017_v60 = vld [vmem:[#allocation5 + $0x160] sm:$0xff]  }
  0xae   : > { %13279 = vmatpush3.bf16.msra.mxu0 %v15853_v14  ;;  %v15877_v12 = vcombine.low %v710_v2, %v720_v8  ;;  %v757_v14 = vrot.slane %v755_v11, 4  ;;  %v778_v45 = vor.u32 %v777_v36, %v773_v35  ;;  %v791_v53 = vrot.slane %v789_v43, 5  ;;  %v318_v2 = vld [vmem:[%s15807_s29 + $0x68] sm:$0xf]  ;;  %v321_v43 = vld [vmem:[%s15807_s29 + $0x74] sm:$0xf] }
  0xaf   : > { %13280 = vmatprep.subr.bf16.mxu0 %v15012_v59  ;;  %v749_v34 = vrot.slane %v748_v26, 4  ;;  %v797_v57 = vrot.slane %v795_v48, 5  ;;  %v774_v61 = vsel %vm15829_vm2, %v769_v51, %v773_v35  ;;  %v805_v63 = vshll.u32 %v314_v47, 16 }
  0xb0   : > { %19048 = vst [vmem:[#allocation17_spill] sm:$0xff] %v15877_v12  ;;  %12705 = vmatpush3.bf16.msra.mxu1 %v15013_v44  ;;  %13154 = vmatprep.mubr.bf16.mxu0 %v15877_v12  ;;  %v758_v30 = vor.u32 %v757_v14, %v753_v16  ;;  %v779_v56 = vrot.slane %v778_v45, 4  ;;  %v792_v62 = vor.u32 %v791_v53, %v788_v52  ;;  %v809_v0 = vshrl.u32 %v314_v47, 16  ;;  %v15020_v45 = vld [vmem:[#allocation5 + $0x170] sm:$0xff]  }
  0xb1   : > { %12706 = vmatprep.subr.bf16.mxu1 %v15016_v1  ;;  %v754_v44 = vsel %vm15829_vm2, %v749_v34, %v753_v16  ;;  %v801_v4 = vrot.slane %v799_v58, 4  ;;  %v815_v5 = vshll.u32 %v315_v54, 16  ;;  %v819_v7 = vshrl.u32 %v315_v54, 16  ;;  %v323_v54 = vld [vmem:[%s15807_s29 + $0x7c] sm:$0xf] }
  0xb2   : > { %13281 = vmatpush3.bf16.msra.mxu0 %v15012_v59  ;;  %v759_v40 = vrot.slane %v758_v30, 4  ;;  %v316_v59 = vld [vmem:[%s15807_s29 + $0x60] sm:$0xf]  ;;  %v784_v3 = vsel %vm15829_vm2, %v779_v56, %v783_v46  ;;  %v793_v9 = vrot.slane %v792_v62, 4  ;;  %v807_v10 = vrot.slane %v805_v63, 5 }
  0xb3   : > { %12579 = vmatmul.mubr.bf16.gmra.mrb[4].mxu1 %v10956_v55  ;;  %13282 = vmatprep.subr.bf16.mxu0 %v15014_v18  ;;  %v15908_v8 = vcombine.low %v774_v61, %v784_v3  ;;  %v811_v11 = vrot.slane %v809_v0, 4  ;;  %v802_v13 = vor.u32 %v801_v4, %v797_v57  ;;  %v817_v15 = vrot.slane %v815_v5, 5 }
  0xb4   : > { %12582 = vmatprep.mubr.bf16.mxu1 %v15877_v12  ;;  %12707 = vmatpush3.bf16.msra.mxu1 %v15016_v1  ;;  %v764_v50 = vsel %vm15829_vm2, %v759_v40, %v763_v31  ;;  %v317_v1 = vld [vmem:[%s15807_s29 + $0x64] sm:$0xf]  ;;  %v821_v16 = vrot.slane %v819_v7, 4  ;;  %v825_v17 = vshll.u32 %v316_v59, 16  ;;  %v798_v19 = vsel %vm15829_vm2, %v793_v9, %v797_v57  ;;  %v324_v59 = vld [vmem:[%s15807_s29 + $0x80] sm:$0xf] }
  0xb5   : > { %13155 = vmatmul.mubr.bf16.gmra.mrb[4].mxu0 %v15886_v29  ;;  %12708 = vmatprep.subr.bf16.mxu1 %v15019_v24  ;;  %v15897_v55 = vcombine.low %v754_v44, %v764_v50  ;;  %19051 = vst [vmem:[#allocation20_spill] sm:$0xff] %v15908_v8  ;;  %v812_v14 = vor.u32 %v811_v11, %v807_v10  ;;  %v830_v21 = vshrl.u32 %v317_v1, 16  ;;  %v833_v22 = vshll.u32 %v317_v1, 16  ;;  %v322_v44 = vld [vmem:[%s15807_s29 + $0x78] sm:$0xf]  ;;  %v15021_v1 = vld [vmem:[#allocation5 + $0x178] sm:$0xff]  }
  0xb6   : > { %13283 = vmatpush3.bf16.msra.mxu0 %v15014_v18  ;;  %v15018_v18 = vld [vmem:[#allocation5 + $0x168] sm:$0xff]   ;;  %v822_v25 = vor.u32 %v821_v16, %v817_v15  ;;  %v827_v26 = vrot.slane %v825_v17, 5  ;;  %v839_v27 = vshll.u32 %v318_v2, 16  ;;  %v843_v32 = vshrl.u32 %v318_v2, 16 }
  0xb7   : > { %19050 = vst [vmem:[#allocation19_spill] sm:$0xff] %v15897_v55  ;;  %13284 = vmatprep.subr.bf16.mxu0 %v15015_v39  ;;  %13158 = vmatprep.mubr.bf16.mxu0 %v15897_v55  ;;  %v813_v28 = vrot.slane %v812_v14, 4  ;;  %v832_v30 = vrot.slane %v830_v21, 4  ;;  %v835_v31 = vrot.slane %v833_v22, 5  ;;  %v849_v37 = vshll.u32 %v319_v20, 16 }
  0xb8   : > { %12709 = vmatpush3.bf16.msra.mxu1 %v15019_v24  ;;  %v803_v24 = vrot.slane %v802_v13, 4  ;;  %v823_v35 = vrot.slane %v822_v25, 4  ;;  %v841_v36 = vrot.slane %v839_v27, 5  ;;  %v845_v42 = vrot.slane %v843_v32, 4  ;;  %v325_v13 = vld [vmem:[%s15807_s29 + $0x84] sm:$0xf] }
  0xb9   : > { %12710 = vmatprep.subr.bf16.mxu1 %v15022_v49  ;;  %v818_v40 = vsel %vm15829_vm2, %v813_v28, %v817_v15  ;;  %v836_v41 = vor.u32 %v835_v31, %v832_v30  ;;  %v851_v47 = vrot.slane %v849_v37, 5  ;;  %v853_v48 = vshrl.u32 %v319_v20, 16  ;;  %v326_v21 = vld [vmem:[%s15807_s29 + $0x88] sm:$0xf]  ;;  %v327_v30 = vld [vmem:[%s15807_s29 + $0x8c] sm:$0xf] }
  0xba   : > { %13285 = vmatpush3.bf16.msra.mxu0 %v15015_v39  ;;  %v808_v34 = vsel %vm15829_vm2, %v803_v24, %v807_v10  ;;  %v828_v46 = vsel %vm15829_vm2, %v823_v35, %v827_v26  ;;  %v846_v52 = vor.u32 %v845_v42, %v841_v36  ;;  %v863_v53 = vshrl.u32 %v320_v33, 16  ;;  %v15023_v24 = vld [vmem:[#allocation5 + $0x180] sm:$0xff]  }
  0xbb   : > { %12583 = vmatmul.mubr.bf16.gmra.mrb[8].mxu1 %v15886_v29  ;;  %13286 = vmatprep.subr.bf16.mxu0 %v15017_v60  ;;  %v15918_v39 = vcombine.low %v798_v19, %v808_v34  ;;  %v15928_v50 = vcombine.low %v818_v40, %v828_v46  ;;  %v837_v51 = vrot.slane %v836_v41, 4  ;;  %v855_v56 = vrot.slane %v853_v48, 4  ;;  %v328_v35 = vld [vmem:[%s15807_s29 + $0x90] sm:$0xf] }
  0xbc   : > { %12586 = vmatprep.mubr.bf16.mxu1 %v15897_v55  ;;  %12711 = vmatpush3.bf16.msra.mxu1 %v15022_v49  ;;  %v859_v49 = vshll.u32 %v320_v33, 16  ;;  %v869_v58 = vshll.u32 %v321_v43, 16  ;;  %v847_v62 = vrot.slane %v846_v52, 4  ;;  %v865_v63 = vrot.slane %v863_v53, 4 }
  0xbd   : > { %13159 = vmatmul.mubr.bf16.gmra.mrb[8].mxu0 %v15908_v8  ;;  %19052 = vst [vmem:[#allocation21_spill] sm:$0xff] %v15918_v39  ;;  %19053 = vst [vmem:[#allocation22_spill] sm:$0xff] %v15928_v50  ;;  %v842_v61 = vsel %vm15829_vm2, %v837_v51, %v841_v36  ;;  %v877_v0 = vshll.u32 %v322_v44, 16  ;;  %v856_v2 = vor.u32 %v855_v56, %v851_v47  ;;  %v883_v5 = vshll.u32 %v323_v54, 16 }
  0xbe   : > { %13287 = vmatpush3.bf16.msra.mxu0 %v15017_v60  ;;  %13162 = vmatprep.mubr.bf16.mxu0 %v15918_v39  ;;  %v861_v57 = vrot.slane %v859_v49, 5  ;;  %v874_v60 = vshrl.u32 %v322_v44, 16  ;;  %v871_v3 = vrot.slane %v869_v58, 5  ;;  %v852_v7 = vsel %vm15829_vm2, %v847_v62, %v851_v47  ;;  %v330_v47 = vld [vmem:[%s15807_s29 + $0x98] sm:$0xf] }
  0xbf   : > { %13288 = vmatprep.subr.bf16.mxu0 %v15018_v18  ;;  %v879_v10 = vrot.slane %v877_v0, 5  ;;  %v887_v11 = vshrl.u32 %v323_v54, 16  ;;  %v15939_v15 = vcombine.low %v842_v61, %v852_v7  ;;  %v857_v16 = vrot.slane %v856_v2, 4 }
  0xc0   : > { %v876_v4 = vrot.slane %v874_v60, 4  ;;  %v866_v9 = vor.u32 %v865_v63, %v861_v57  ;;  %v885_v17 = vrot.slane %v883_v5, 5  ;;  %v897_v22 = vshrl.u32 %v324_v59, 16 }
  0xc1   : > { %19054 = vst [vmem:[#allocation23_spill] sm:$0xff] %v15939_v15  ;;  %v889_v20 = vrot.slane %v887_v11, 4  ;;  %v862_v25 = vsel %vm15829_vm2, %v857_v16, %v861_v57  ;;  %v903_v27 = vshll.u32 %v325_v13, 16  ;;  %v907_v28 = vshrl.u32 %v325_v13, 16 }
  0xc2   : > { %13289 = vmatpush3.bf16.msra.mxu0 %v15018_v18  ;;  %v893_v18 = vshll.u32 %v324_v59, 16  ;;  %v867_v19 = vrot.slane %v866_v9, 4  ;;  %v880_v14 = vor.u32 %v879_v10, %v876_v4  ;;  %v899_v34 = vrot.slane %v897_v22, 4  ;;  %v332_v9 = vld [vmem:[%s15807_s29 + $0xa0] sm:$0xf] }
  0xc3   : > { %12587 = vmatmul.mubr.bf16.gmra.mrb[12].mxu1 %v15908_v8  ;;  %13290 = vmatprep.subr.bf16.mxu0 %v15020_v45  ;;  %v890_v33 = vor.u32 %v889_v20, %v885_v17  ;;  %v905_v37 = vrot.slane %v903_v27, 5  ;;  %v909_v40 = vrot.slane %v907_v28, 4  ;;  %v913_v41 = vshll.u32 %v326_v21, 16  ;;  %v15024_v27 = vld [vmem:[#allocation5 + $0x28] sm:$0xff]  }
  0xc4   : > { %12590 = vmatprep.mubr.bf16.mxu1 %v15918_v39  ;;  %v895_v26 = vrot.slane %v893_v18, 5  ;;  %v872_v31 = vsel %vm15829_vm2, %v867_v19, %v871_v3  ;;  %v881_v32 = vrot.slane %v880_v14, 4  ;;  %v918_v46 = vshrl.u32 %v327_v30, 16  ;;  %12712 = vmatprep.subr.bf16.mxu1 %v15024_v27  ;;  %v15198_v39 = vld [vmem:[%s15807_s29 + $0x114] sm:$0xf] }
  0xc5   : > { %13163 = vmatmul.mubr.bf16.gmra.mrb[12].mxu0 %v15928_v50  ;;  %v15950_v36 = vcombine.low %v862_v25, %v872_v31  ;;  %v891_v43 = vrot.slane %v890_v33, 4  ;;  %v910_v48 = vor.u32 %v909_v40, %v905_v37  ;;  %v915_v49 = vrot.slane %v913_v41, 5  ;;  %v335_v40 = vld [vmem:[%s15807_s29 + $0xac] sm:$0xf]  ;;  %12713 = vmatpush3.bf16.msra.mxu1 %v15024_v27 }
  0xc6   : > { %13291 = vmatpush3.bf16.msra.mxu0 %v15020_v45  ;;  %13166 = vmatprep.mubr.bf16.mxu0 %v15939_v15  ;;  %v886_v42 = vsel %vm15829_vm2, %v881_v32, %v885_v17  ;;  %v900_v44 = vor.u32 %v899_v34, %v895_v26  ;;  %v329_v45 = vld [vmem:[%s15807_s29 + $0x94] sm:$0xf]  ;;  %v921_v51 = vshll.u32 %v327_v30, 16  ;;  %v927_v52 = vshll.u32 %v328_v35, 16  ;;  %v333_v17 = vld [vmem:[%s15807_s29 + $0xa4] sm:$0xf] }
  0xc7   : > { %13292 = vmatprep.subr.bf16.mxu0 %v15021_v1  ;;  %19055 = vst [vmem:[#allocation24_spill] sm:$0xff] %v15950_v36  ;;  %v896_v53 = vsel %vm15829_vm2, %v891_v43, %v895_v26  ;;  %v920_v56 = vrot.slane %v918_v46, 4  ;;  %v931_v57 = vshrl.u32 %v328_v35, 16  ;;  %v911_v59 = vrot.slane %v910_v48, 4 }
  0xc8   : > { %v901_v54 = vrot.slane %v900_v44, 4  ;;  %v15960_v58 = vcombine.low %v886_v42, %v896_v53  ;;  %v923_v60 = vrot.slane %v921_v51, 5  ;;  %v929_v61 = vrot.slane %v927_v52, 5 }
  0xc9   : > { %v933_v63 = vrot.slane %v931_v57, 4  ;;  %v937_v0 = vshll.u32 %v329_v45, 16  ;;  %v941_v2 = vshrl.u32 %v329_v45, 16  ;;  %v916_v3 = vsel %vm15829_vm2, %v911_v59, %v915_v49  ;;  %v336_v45 = vld [vmem:[%s15807_s29 + $0xb0] sm:$0xf] }
  0xca   : > { %13293 = vmatpush3.bf16.msra.mxu0 %v15021_v1  ;;  %19056 = vst [vmem:[#allocation25_spill] sm:$0xff] %v15960_v58  ;;  %v906_v62 = vsel %vm15829_vm2, %v901_v54, %v905_v37  ;;  %v331_v1 = vld [vmem:[%s15807_s29 + $0x9c] sm:$0xf]  ;;  %v924_v4 = vor.u32 %v923_v60, %v920_v56  ;;  %v947_v5 = vshll.u32 %v330_v47, 16  ;;  %v951_v7 = vshrl.u32 %v330_v47, 16 }
  0xcb   : > { %12591 = vmatmul.mubr.bf16.gmra.mrb[16].mxu1 %v15928_v50  ;;  %13422 = vmatprep.subr.bf16.mxu0 %v15023_v24  ;;  %v15970_v10 = vcombine.low %v906_v62, %v916_v3  ;;  %v934_v11 = vor.u32 %v933_v63, %v929_v61  ;;  %v939_v13 = vrot.slane %v937_v0, 5  ;;  %v943_v16 = vrot.slane %v941_v2, 4  ;;  %v334_v24 = vld [vmem:[%s15807_s29 + $0xa8] sm:$0xf]  ;;  %v337_v56 = vld [vmem:[%s15807_s29 + $0xb4] sm:$0xf] }
  0xcc   : > { %12594 = vmatprep.mubr.bf16.mxu1 %v15939_v15  ;;  %v925_v18 = vrot.slane %v924_v4, 4  ;;  %v949_v19 = vrot.slane %v947_v5, 5  ;;  %v953_v14 = vrot.slane %v951_v7, 4  ;;  %v957_v20 = vshll.u32 %v331_v1, 16  ;;  %v338_v62 = vld [vmem:[%s15807_s29 + $0xb8] sm:$0xf] }
  0xcd   : > { %13167 = vmatmul.mubr.bf16.gmra.mrb[16].mxu0 %v15950_v36  ;;  %19057 = vst [vmem:[#allocation26_spill] sm:$0xff] %v15970_v10  ;;  %v935_v21 = vrot.slane %v934_v11, 4  ;;  %v944_v22 = vor.u32 %v943_v16, %v939_v13  ;;  %v962_v25 = vshrl.u32 %v332_v9, 16  ;;  %v965_v26 = vshll.u32 %v332_v9, 16  ;;  %v339_v5 = vld [vmem:[%s15807_s29 + $0xbc] sm:$0xf] }
  0xce   : > { %13170 = vmatprep.mubr.bf16.mxu0 %v15960_v58  ;;  %v930_v28 = vsel %vm15829_vm2, %v925_v18, %v929_v61  ;;  %v954_v30 = vor.u32 %v953_v14, %v949_v19  ;;  %v959_v31 = vrot.slane %v957_v20, 5  ;;  %v971_v32 = vshll.u32 %v333_v17, 16  ;;  %v16681_v15 = vld [vmem:[%s15807_s29 + $0x248] sm:$0xf] }
  0xcf   : > { %v940_v33 = vsel %vm15829_vm2, %v935_v21, %v939_v13  ;;  %v945_v34 = vrot.slane %v944_v22, 4  ;;  %v964_v35 = vrot.slane %v962_v25, 4  ;;  %v967_v37 = vrot.slane %v965_v26, 5  ;;  %v340_v21 = vld [vmem:[%s15807_s29 + $0xc0] sm:$0xf] }
  0xd0   : > { %v15981_v41 = vcombine.low %v930_v28, %v940_v33  ;;  %v955_v42 = vrot.slane %v954_v30, 4  ;;  %v973_v43 = vrot.slane %v971_v32, 5  ;;  %v975_v44 = vshrl.u32 %v333_v17, 16  ;;  %v341_v32 = vld [vmem:[%s15807_s29 + $0xc4] sm:$0xf] }
  0xd1   : > { %v950_v46 = vsel %vm15829_vm2, %v945_v34, %v949_v19  ;;  %v968_v47 = vor.u32 %v967_v37, %v964_v35  ;;  %v981_v48 = vshll.u32 %v334_v24, 16  ;;  %v985_v49 = vshrl.u32 %v334_v24, 16  ;;  %v342_v33 = vld [vmem:[%s15807_s29 + $0xc8] sm:$0xf] }
  0xd2   : > { %19058 = vst [vmem:[#allocation27_spill] sm:$0xff] %v15981_v41  ;;  %v960_v51 = vsel %vm15829_vm2, %v955_v42, %v959_v31  ;;  %v977_v52 = vrot.slane %v975_v44, 4  ;;  %v991_v53 = vshll.u32 %v335_v40, 16  ;;  %v995_v54 = vshrl.u32 %v335_v40, 16 }
  0xd3   : > { %12595 = vmatmul.mubr.bf16.gmra.mrb[20].mxu1 %v15950_v36  ;;  %v15991_v57 = vcombine.low %v950_v46, %v960_v51  ;;  %v969_v59 = vrot.slane %v968_v47, 4  ;;  %v983_v60 = vrot.slane %v981_v48, 5  ;;  %v987_v61 = vrot.slane %v985_v49, 4  ;;  %v343_v46 = vld [vmem:[%s15807_s29 + $0xcc] sm:$0xf] }
  0xd4   : > { %12598 = vmatprep.mubr.bf16.mxu1 %v15960_v58  ;;  %v978_v63 = vor.u32 %v977_v52, %v973_v43  ;;  %v993_v0 = vrot.slane %v991_v53, 5  ;;  %v997_v1 = vrot.slane %v995_v54, 4  ;;  %v1001_v2 = vshll.u32 %v336_v45, 16  ;;  %v16674_v58 = vld [vmem:[%s15807_s29 + $0x244] sm:$0xf] }
  0xd5   : > { %13171 = vmatmul.mubr.bf16.gmra.mrb[20].mxu0 %v15970_v10  ;;  %19059 = vst [vmem:[#allocation28_spill] sm:$0xff] %v15991_v57  ;;  %v974_v3 = vsel %vm15829_vm2, %v969_v59, %v973_v43  ;;  %v988_v4 = vor.u32 %v987_v61, %v983_v60  ;;  %v1006_v7 = vshrl.u32 %v337_v56, 16  ;;  %v1009_v9 = vshll.u32 %v337_v56, 16  ;;  %v344_v56 = vld [vmem:[%s15807_s29 + $0xd0] sm:$0xf] }
  0xd6   : > { %13174 = vmatprep.mubr.bf16.mxu0 %v15981_v41  ;;  %v979_v11 = vrot.slane %v978_v63, 4  ;;  %v998_v13 = vor.u32 %v997_v1, %v993_v0  ;;  %v1003_v16 = vrot.slane %v1001_v2, 5  ;;  %v1015_v17 = vshll.u32 %v338_v62, 16 }
  0xd7   : > { %v989_v18 = vrot.slane %v988_v4, 4  ;;  %v1008_v19 = vrot.slane %v1006_v7, 4  ;;  %v1011_v14 = vrot.slane %v1009_v9, 5  ;;  %v1019_v20 = vshrl.u32 %v338_v62, 16 }
  0xd8   : > { %v984_v22 = vsel %vm15829_vm2, %v979_v11, %v983_v60  ;;  %v999_v24 = vrot.slane %v998_v13, 4  ;;  %v1017_v25 = vrot.slane %v1015_v17, 5  ;;  %v1025_v26 = vshll.u32 %v339_v5, 16 }
  0xd9   : > { %v16002_v27 = vcombine.low %v974_v3, %v984_v22  ;;  %v994_v28 = vsel %vm15829_vm2, %v989_v18, %v993_v0  ;;  %v1012_v30 = vor.u32 %v1011_v14, %v1008_v19  ;;  %v1021_v31 = vrot.slane %v1019_v20, 4  ;;  %v345_v0 = vld [vmem:[%s15807_s29 + $0xd4] sm:$0xf] }
  0xda   : > { %v1004_v34 = vsel %vm15829_vm2, %v999_v24, %v1003_v16  ;;  %v1027_v35 = vrot.slane %v1025_v26, 5  ;;  %v1029_v37 = vshrl.u32 %v339_v5, 16  ;;  %v1035_v40 = vshll.u32 %v340_v21, 16  ;;  %v346_v5 = vld [vmem:[%s15807_s29 + $0xd8] sm:$0xf] }
  0xdb   : > { %12599 = vmatmul.mubr.bf16.gmra.mrb[24].mxu1 %v15970_v10  ;;  %19060 = vst [vmem:[#allocation29_spill] sm:$0xff] %v16002_v27  ;;  %v16012_v42 = vcombine.low %v994_v28, %v1004_v34  ;;  %v1013_v43 = vrot.slane %v1012_v30, 4  ;;  %v1022_v44 = vor.u32 %v1021_v31, %v1017_v25  ;;  %v1039_v45 = vshrl.u32 %v340_v21, 16  ;;  %v347_v16 = vld [vmem:[%s15807_s29 + $0xdc] sm:$0xf] }
  0xdc   : > { %12602 = vmatprep.mubr.bf16.mxu1 %v15981_v41  ;;  %v1031_v47 = vrot.slane %v1029_v37, 4  ;;  %v1037_v48 = vrot.slane %v1035_v40, 5  ;;  %v1045_v49 = vshll.u32 %v341_v32, 16  ;;  %v1050_v51 = vshrl.u32 %v342_v33, 16  ;;  %v348_v31 = vld [vmem:[%s15807_s29 + $0xe0] sm:$0xf] }
  0xdd   : > { %13175 = vmatmul.mubr.bf16.gmra.mrb[24].mxu0 %v15991_v57  ;;  %19061 = vst [vmem:[#allocation30_spill] sm:$0xff] %v16012_v42  ;;  %v1018_v52 = vsel %vm15829_vm2, %v1013_v43, %v1017_v25  ;;  %v1023_v53 = vrot.slane %v1022_v44, 4  ;;  %v1041_v54 = vrot.slane %v1039_v45, 4  ;;  %v1053_v59 = vshll.u32 %v342_v33, 16 }
  0xde   : > { %13178 = vmatprep.mubr.bf16.mxu0 %v16002_v27  ;;  %v1032_v60 = vor.u32 %v1031_v47, %v1027_v35  ;;  %v1047_v61 = vrot.slane %v1045_v49, 5  ;;  %v1052_v62 = vrot.slane %v1050_v51, 4  ;;  %v1059_v63 = vshll.u32 %v343_v46, 16  ;;  %v349_v47 = vld [vmem:[%s15807_s29 + $0xe4] sm:$0xf] }
  0xdf   : > { %v1028_v1 = vsel %vm15829_vm2, %v1023_v53, %v1027_v35  ;;  %v1042_v2 = vor.u32 %v1041_v54, %v1037_v48  ;;  %v1055_v3 = vrot.slane %v1053_v59, 5  ;;  %v1063_v4 = vshrl.u32 %v343_v46, 16 }
  0xe0   : > { %v16024_v7 = vcombine.low %v1018_v52, %v1028_v1  ;;  %v1033_v9 = vrot.slane %v1032_v60, 4  ;;  %v1061_v11 = vrot.slane %v1059_v63, 5  ;;  %v1069_v13 = vshll.u32 %v344_v56, 16 }
  0xe1   : > { %v1043_v17 = vrot.slane %v1042_v2, 4  ;;  %v1056_v18 = vor.u32 %v1055_v3, %v1052_v62  ;;  %v1065_v19 = vrot.slane %v1063_v4, 4  ;;  %v1073_v14 = vshrl.u32 %v344_v56, 16  ;;  %v350_v56 = vld [vmem:[%s15807_s29 + $0xe8] sm:$0xf] }
  0xe2   : > { %19062 = vst [vmem:[#allocation31_spill] sm:$0xff] %v16024_v7  ;;  %v1038_v20 = vsel %vm15829_vm2, %v1033_v9, %v1037_v48  ;;  %v1071_v21 = vrot.slane %v1069_v13, 5  ;;  %v1079_v22 = vshll.u32 %v345_v0, 16  ;;  %v1083_v24 = vshrl.u32 %v345_v0, 16  ;;  %v351_v2 = vld [vmem:[%s15807_s29 + $0xec] sm:$0xf] }
  0xe3   : > { %12603 = vmatmul.mubr.bf16.gmra.mrb[28].mxu1 %v15991_v57  ;;  %v1048_v25 = vsel %vm15829_vm2, %v1043_v17, %v1047_v61  ;;  %v1057_v26 = vrot.slane %v1056_v18, 4  ;;  %v1066_v28 = vor.u32 %v1065_v19, %v1061_v11  ;;  %v1075_v30 = vrot.slane %v1073_v14, 4  ;;  %v352_v13 = vld [vmem:[%s15807_s29 + $0xf0] sm:$0xf]  ;;  %v353_v14 = vld [vmem:[%s15807_s29 + $0xf4] sm:$0xf] }
  0xe4   : > { %12606 = vmatprep.mubr.bf16.mxu1 %v16002_v27  ;;  %v16034_v32 = vcombine.low %v1038_v20, %v1048_v25  ;;  %v1081_v33 = vrot.slane %v1079_v22, 5  ;;  %v1085_v34 = vrot.slane %v1083_v24, 4  ;;  %v1089_v35 = vshll.u32 %v346_v5, 16  ;;  %v15192_v27 = vld [vmem:[%s15807_s29 + $0xfc] sm:$0xf] }
  0xe5   : > { %13179 = vmatmul.mubr.bf16.gmra.mrb[28].mxu0 %v16012_v42  ;;  %v1062_v37 = vsel %vm15829_vm2, %v1057_v26, %v1061_v11  ;;  %v1067_v40 = vrot.slane %v1066_v28, 4  ;;  %v1076_v43 = vor.u32 %v1075_v30, %v1071_v21  ;;  %v1094_v44 = vshrl.u32 %v347_v16, 16 }
  0xe6   : > { %13182 = vmatprep.mubr.bf16.mxu0 %v16024_v7  ;;  %19063 = vst [vmem:[#allocation32_spill] sm:$0xff] %v16034_v32  ;;  %v1086_v45 = vor.u32 %v1085_v34, %v1081_v33  ;;  %v1091_v46 = vrot.slane %v1089_v35, 5  ;;  %v1097_v48 = vshll.u32 %v347_v16, 16  ;;  %v1103_v49 = vshll.u32 %v348_v31, 16  ;;  %v354_v35 = vld [vmem:[%s15807_s29 + $0xf8] sm:$0xf] }
  0xe7   : > { %v1072_v51 = vsel %vm15829_vm2, %v1067_v40, %v1071_v21  ;;  %v1077_v52 = vrot.slane %v1076_v43, 4  ;;  %v1096_v53 = vrot.slane %v1094_v44, 4  ;;  %v1107_v54 = vshrl.u32 %v348_v31, 16  ;;  %v355_v40 = vld [vmem:[%s15807_s29 + $0xfc] sm:$0xf] }
  0xe8   : > { %v16044_v59 = vcombine.low %v1062_v37, %v1072_v51  ;;  %v1087_v60 = vrot.slane %v1086_v45, 4  ;;  %v1099_v61 = vrot.slane %v1097_v48, 5  ;;  %v1105_v62 = vrot.slane %v1103_v49, 5 }
  0xe9   : > { %v1082_v63 = vsel %vm15829_vm2, %v1077_v52, %v1081_v33  ;;  %v1109_v0 = vrot.slane %v1107_v54, 4  ;;  %v1113_v1 = vshll.u32 %v349_v47, 16  ;;  %v1117_v3 = vshrl.u32 %v349_v47, 16  ;;  %v356_v47 = vld [vmem:[%s15807_s29 + $0x100] sm:$0xf] }
  0xea   : > { %19064 = vst [vmem:[#allocation33_spill] sm:$0xff] %v16044_v59  ;;  %v1092_v4 = vsel %vm15829_vm2, %v1087_v60, %v1091_v46  ;;  %v1100_v5 = vor.u32 %v1099_v61, %v1096_v53  ;;  %v1123_v9 = vshll.u32 %v350_v56, 16  ;;  %v1127_v11 = vshrl.u32 %v350_v56, 16  ;;  %v357_v53 = vld [vmem:[%s15807_s29 + $0x104] sm:$0xf] }
  0xeb   : > { %12607 = vmatmul.mubr.bf16.gmra.mrb[32].mxu1 %v16012_v42  ;;  %v16054_v16 = vcombine.low %v1082_v63, %v1092_v4  ;;  %v1110_v17 = vor.u32 %v1109_v0, %v1105_v62  ;;  %v1115_v18 = vrot.slane %v1113_v1, 5  ;;  %v1119_v19 = vrot.slane %v1117_v3, 4 }
  0xec   : > { %12610 = vmatprep.mubr.bf16.mxu1 %v16024_v7  ;;  %v1101_v20 = vrot.slane %v1100_v5, 4  ;;  %v1125_v21 = vrot.slane %v1123_v9, 5  ;;  %v1129_v22 = vrot.slane %v1127_v11, 4  ;;  %v1133_v24 = vshll.u32 %v351_v2, 16 }
  0xed   : > { %13183 = vmatmul.mubr.bf16.gmra.mrb[32].mxu0 %v16034_v32  ;;  %19065 = vst [vmem:[#allocation34_spill] sm:$0xff] %v16054_v16  ;;  %v1111_v25 = vrot.slane %v1110_v17, 4  ;;  %v1120_v26 = vor.u32 %v1119_v19, %v1115_v18  ;;  %v1138_v28 = vshrl.u32 %v352_v13, 16  ;;  %v1141_v30 = vshll.u32 %v352_v13, 16 }
  0xee   : > { %13186 = vmatprep.mubr.bf16.mxu0 %v16044_v59  ;;  %v1106_v31 = vsel %vm15829_vm2, %v1101_v20, %v1105_v62  ;;  %v1130_v33 = vor.u32 %v1129_v22, %v1125_v21  ;;  %v1135_v34 = vrot.slane %v1133_v24, 5  ;;  %v1147_v37 = vshll.u32 %v353_v14, 16  ;;  %v358_v62 = vld [vmem:[%s15807_s29 + $0x108] sm:$0xf]  ;;  %v359_v20 = vld [vmem:[%s15807_s29 + $0x10c] sm:$0xf] }
  0xef   : > { %v1116_v43 = vsel %vm15829_vm2, %v1111_v25, %v1115_v18  ;;  %v1121_v44 = vrot.slane %v1120_v26, 4  ;;  %v1140_v45 = vrot.slane %v1138_v28, 4  ;;  %v1143_v46 = vrot.slane %v1141_v30, 5 }
  0xf0   : > { %v16066_v48 = vcombine.low %v1106_v31, %v1116_v43  ;;  %v1131_v49 = vrot.slane %v1130_v33, 4  ;;  %v1149_v51 = vrot.slane %v1147_v37, 5  ;;  %v1151_v52 = vshrl.u32 %v353_v14, 16 }
  0xf1   : > { %v1126_v54 = vsel %vm15829_vm2, %v1121_v44, %v1125_v21  ;;  %v1144_v56 = vor.u32 %v1143_v46, %v1140_v45  ;;  %v1157_v60 = vshll.u32 %v354_v35, 16  ;;  %v1161_v61 = vshrl.u32 %v354_v35, 16  ;;  %v360_v35 = vld [vmem:[%s15807_s29 + $0x110] sm:$0xf] }
  0xf2   : > { %19066 = vst [vmem:[#allocation35_spill] sm:$0xff] %v16066_v48  ;;  %v1136_v63 = vsel %vm15829_vm2, %v1131_v49, %v1135_v34  ;;  %v1153_v0 = vrot.slane %v1151_v52, 4  ;;  %v1167_v1 = vshll.u32 %v355_v40, 16  ;;  %v1171_v2 = vshrl.u32 %v355_v40, 16  ;;  %v362_v52 = vld [vmem:[%s15807_s29 + $0x118] sm:$0xf] }
  0xf3   : > { %12611 = vmatmul.mubr.bf16.gmra.mrb[36].mxu1 %v16034_v32  ;;  %v16076_v3 = vcombine.low %v1126_v54, %v1136_v63  ;;  %v1145_v4 = vrot.slane %v1144_v56, 4  ;;  %v1159_v5 = vrot.slane %v1157_v60, 5  ;;  %v1163_v9 = vrot.slane %v1161_v61, 4  ;;  %v16616_v32 = vld [vmem:[%s15807_s29 + $0x234] sm:$0xf] }
  0xf4   : > { %12614 = vmatprep.mubr.bf16.mxu1 %v16044_v59  ;;  %v1154_v11 = vor.u32 %v1153_v0, %v1149_v51  ;;  %v1169_v13 = vrot.slane %v1167_v1, 5  ;;  %v1173_v17 = vrot.slane %v1171_v2, 4  ;;  %v1177_v18 = vshll.u32 %v356_v47, 16  ;;  %v363_v1 = vld [vmem:[%s15807_s29 + $0x11c] sm:$0xf] }
  0xf5   : > { %13187 = vmatmul.mubr.bf16.gmra.mrb[36].mxu0 %v16054_v16  ;;  %19067 = vst [vmem:[#allocation36_spill] sm:$0xff] %v16076_v3  ;;  %v1150_v19 = vsel %vm15829_vm2, %v1145_v4, %v1149_v51  ;;  %v1164_v14 = vor.u32 %v1163_v9, %v1159_v5  ;;  %v1182_v21 = vshrl.u32 %v357_v53, 16  ;;  %v1185_v22 = vshll.u32 %v357_v53, 16  ;;  %v361_v51 = vld [vmem:[%s15807_s29 + $0x114] sm:$0xf] }
  0xf6   : > { %13190 = vmatprep.mubr.bf16.mxu0 %v16066_v48  ;;  %v1155_v24 = vrot.slane %v1154_v11, 4  ;;  %v1174_v25 = vor.u32 %v1173_v17, %v1169_v13  ;;  %v1179_v26 = vrot.slane %v1177_v18, 5  ;;  %v1191_v28 = vshll.u32 %v358_v62, 16  ;;  %v364_v18 = vld [vmem:[%s15807_s29 + $0x120] sm:$0xf] }
  0xf7   : > { %v1165_v30 = vrot.slane %v1164_v14, 4  ;;  %v1184_v31 = vrot.slane %v1182_v21, 4  ;;  %v1187_v33 = vrot.slane %v1185_v22, 5  ;;  %v1195_v34 = vshrl.u32 %v358_v62, 16  ;;  %v15026_v14 = vld [vmem:[#allocation5 + $0x30] sm:$0xff]  }
  0xf8   : > { %v1160_v37 = vsel %vm15829_vm2, %v1155_v24, %v1159_v5  ;;  %v1175_v40 = vrot.slane %v1174_v25, 4  ;;  %v1193_v43 = vrot.slane %v1191_v28, 5  ;;  %v1201_v44 = vshll.u32 %v359_v20, 16  ;;  %12714 = vmatprep.subr.bf16.mxu1 %v15026_v14  ;;  %v15186_v59 = vld [vmem:[%s15807_s29 + $0xe4] sm:$0xf] }
  0xf9   : > { %v16086_v45 = vcombine.low %v1150_v19, %v1160_v37  ;;  %v1170_v46 = vsel %vm15829_vm2, %v1165_v30, %v1169_v13  ;;  %v1188_v47 = vor.u32 %v1187_v33, %v1184_v31  ;;  %v1197_v49 = vrot.slane %v1195_v34, 4  ;;  %v365_v31 = vld [vmem:[%s15807_s29 + $0x124] sm:$0xf]  ;;  %12715 = vmatpush3.bf16.msra.mxu1 %v15026_v14 }
  0xfa   : > { %v1180_v53 = vsel %vm15829_vm2, %v1175_v40, %v1179_v26  ;;  %v1203_v54 = vrot.slane %v1201_v44, 5  ;;  %v1205_v56 = vshrl.u32 %v359_v20, 16  ;;  %v1211_v60 = vshll.u32 %v360_v35, 16 }
  0xfb   : > { %12615 = vmatmul.mubr.bf16.gmra.mrb[40].mxu1 %v16054_v16  ;;  %19068 = vst [vmem:[#allocation37_spill] sm:$0xff] %v16086_v45  ;;  %v16096_v61 = vcombine.low %v1170_v46, %v1180_v53  ;;  %v1189_v62 = vrot.slane %v1188_v47, 4  ;;  %v1198_v63 = vor.u32 %v1197_v49, %v1193_v43  ;;  %v1215_v0 = vshrl.u32 %v360_v35, 16  ;;  %v366_v46 = vld [vmem:[%s15807_s29 + $0x128] sm:$0xf] }
  0xfc   : > { %12618 = vmatprep.mubr.bf16.mxu1 %v16066_v48  ;;  %v1207_v2 = vrot.slane %v1205_v56, 4  ;;  %v1213_v4 = vrot.slane %v1211_v60, 5  ;;  %v1221_v5 = vshll.u32 %v361_v51, 16  ;;  %v1226_v9 = vshrl.u32 %v362_v52, 16 }
  0xfd   : > { %13191 = vmatmul.mubr.bf16.gmra.mrb[40].mxu0 %v16076_v3  ;;  %19069 = vst [vmem:[#allocation38_spill] sm:$0xff] %v16096_v61  ;;  %v1194_v11 = vsel %vm15829_vm2, %v1189_v62, %v1193_v43  ;;  %v1199_v13 = vrot.slane %v1198_v63, 4  ;;  %v1217_v17 = vrot.slane %v1215_v0, 4  ;;  %v1229_v19 = vshll.u32 %v362_v52, 16  ;;  %v368_v0 = vld [vmem:[%s15807_s29 + $0x130] sm:$0xf] }
  0xfe   : > { %13194 = vmatprep.mubr.bf16.mxu0 %v16086_v45  ;;  %v1208_v20 = vor.u32 %v1207_v2, %v1203_v54  ;;  %v1223_v21 = vrot.slane %v1221_v5, 5  ;;  %v1228_v22 = vrot.slane %v1226_v9, 4  ;;  %v1235_v24 = vshll.u32 %v363_v1, 16  ;;  %v369_v9 = vld [vmem:[%s15807_s29 + $0x134] sm:$0xf] }
  0xff   : > { %v1204_v25 = vsel %vm15829_vm2, %v1199_v13, %v1203_v54  ;;  %v1218_v26 = vor.u32 %v1217_v17, %v1213_v4  ;;  %v1231_v28 = vrot.slane %v1229_v19, 5  ;;  %v1239_v30 = vshrl.u32 %v363_v1, 16  ;;  %v367_v54 = vld [vmem:[%s15807_s29 + $0x12c] sm:$0xf] }
 0x100   : > { %v16107_v33 = vcombine.low %v1194_v11, %v1204_v25  ;;  %v1209_v34 = vrot.slane %v1208_v20, 4  ;;  %v1237_v35 = vrot.slane %v1235_v24, 5  ;;  %v1245_v37 = vshll.u32 %v364_v18, 16 }
 0x101   : > { %v1219_v40 = vrot.slane %v1218_v26, 4  ;;  %v1232_v43 = vor.u32 %v1231_v28, %v1228_v22  ;;  %v1241_v44 = vrot.slane %v1239_v30, 4  ;;  %v1249_v47 = vshrl.u32 %v364_v18, 16  ;;  %v370_v28 = vld [vmem:[%s15807_s29 + $0x138] sm:$0xf] }
 0x102   : > { %19070 = vst [vmem:[#allocation39_spill] sm:$0xff] %v16107_v33  ;;  %v1214_v49 = vsel %vm15829_vm2, %v1209_v34, %v1213_v4  ;;  %v1247_v51 = vrot.slane %v1245_v37, 5  ;;  %v1255_v52 = vshll.u32 %v365_v31, 16  ;;  %v1259_v53 = vshrl.u32 %v365_v31, 16 }
 0x103   : > { %12619 = vmatmul.mubr.bf16.gmra.mrb[44].mxu1 %v16076_v3  ;;  %v1224_v56 = vsel %vm15829_vm2, %v1219_v40, %v1223_v21  ;;  %v1233_v60 = vrot.slane %v1232_v43, 4  ;;  %v1242_v62 = vor.u32 %v1241_v44, %v1237_v35  ;;  %v1251_v63 = vrot.slane %v1249_v47, 4  ;;  %v371_v44 = vld [vmem:[%s15807_s29 + $0x13c] sm:$0xf] }
 0x104   : > { %12622 = vmatprep.mubr.bf16.mxu1 %v16086_v45  ;;  %v16118_v1 = vcombine.low %v1214_v49, %v1224_v56  ;;  %v1257_v2 = vrot.slane %v1255_v52, 5  ;;  %v1261_v4 = vrot.slane %v1259_v53, 4  ;;  %v1265_v5 = vshll.u32 %v366_v46, 16  ;;  %v372_v53 = vld [vmem:[%s15807_s29 + $0x140] sm:$0xf] }
 0x105   : > { %13195 = vmatmul.mubr.bf16.gmra.mrb[44].mxu0 %v16096_v61  ;;  %v1238_v11 = vsel %vm15829_vm2, %v1233_v60, %v1237_v35  ;;  %v1243_v13 = vrot.slane %v1242_v62, 4  ;;  %v1252_v17 = vor.u32 %v1251_v63, %v1247_v51  ;;  %v1270_v18 = vshrl.u32 %v367_v54, 16  ;;  %v373_v63 = vld [vmem:[%s15807_s29 + $0x144] sm:$0xf]  ;;  %v15176_v45 = vld [vmem:[%s15807_s29 + $0xbc] sm:$0xf] }
 0x106   : > { %13198 = vmatprep.mubr.bf16.mxu0 %v16107_v33  ;;  %19071 = vst [vmem:[#allocation40_spill] sm:$0xff] %v16118_v1  ;;  %v1262_v19 = vor.u32 %v1261_v4, %v1257_v2  ;;  %v1267_v14 = vrot.slane %v1265_v5, 5  ;;  %v1273_v20 = vshll.u32 %v367_v54, 16  ;;  %v1279_v21 = vshll.u32 %v368_v0, 16 }
 0x107   : > { %v1248_v22 = vsel %vm15829_vm2, %v1243_v13, %v1247_v51  ;;  %v1253_v24 = vrot.slane %v1252_v17, 4  ;;  %v1272_v25 = vrot.slane %v1270_v18, 4  ;;  %v1283_v26 = vshrl.u32 %v368_v0, 16 }
 0x108   : > { %v16128_v30 = vcombine.low %v1238_v11, %v1248_v22  ;;  %v1263_v31 = vrot.slane %v1262_v19, 4  ;;  %v1275_v34 = vrot.slane %v1273_v20, 5  ;;  %v1281_v35 = vrot.slane %v1279_v21, 5  ;;  %v374_v20 = vld [vmem:[%s15807_s29 + $0x148] sm:$0xf] }
 0x109   : > { %v1258_v37 = vsel %vm15829_vm2, %v1253_v24, %v1257_v2  ;;  %v1285_v40 = vrot.slane %v1283_v26, 4  ;;  %v1289_v43 = vshll.u32 %v369_v9, 16  ;;  %v1293_v46 = vshrl.u32 %v369_v9, 16 }
 0x10a   : > { %19072 = vst [vmem:[#allocation41_spill] sm:$0xff] %v16128_v30  ;;  %v1268_v47 = vsel %vm15829_vm2, %v1263_v31, %v1267_v14  ;;  %v1276_v49 = vor.u32 %v1275_v34, %v1272_v25  ;;  %v1299_v51 = vshll.u32 %v370_v28, 16  ;;  %v1303_v52 = vshrl.u32 %v370_v28, 16  ;;  %v375_v28 = vld [vmem:[%s15807_s29 + $0x14c] sm:$0xf] }
 0x10b   : > { %12623 = vmatmul.mubr.bf16.gmra.mrb[48].mxu1 %v16096_v61  ;;  %v16138_v54 = vcombine.low %v1258_v37, %v1268_v47  ;;  %v1286_v56 = vor.u32 %v1285_v40, %v1281_v35  ;;  %v1291_v60 = vrot.slane %v1289_v43, 5  ;;  %v1295_v62 = vrot.slane %v1293_v46, 4  ;;  %v376_v46 = vld [vmem:[%s15807_s29 + $0x150] sm:$0xf] }
 0x10c   : > { %12626 = vmatprep.mubr.bf16.mxu1 %v16107_v33  ;;  %v1277_v0 = vrot.slane %v1276_v49, 4  ;;  %v1301_v2 = vrot.slane %v1299_v51, 5  ;;  %v1305_v4 = vrot.slane %v1303_v52, 4  ;;  %v1309_v5 = vshll.u32 %v371_v44, 16 }
 0x10d   : > { %13199 = vmatmul.mubr.bf16.gmra.mrb[48].mxu0 %v16118_v1  ;;  %19073 = vst [vmem:[#allocation42_spill] sm:$0xff] %v16138_v54  ;;  %v1287_v9 = vrot.slane %v1286_v56, 4  ;;  %v1296_v11 = vor.u32 %v1295_v62, %v1291_v60  ;;  %v1314_v13 = vshrl.u32 %v372_v53, 16  ;;  %v1317_v17 = vshll.u32 %v372_v53, 16 }
 0x10e   : > { %13202 = vmatprep.mubr.bf16.mxu0 %v16128_v30  ;;  %v1282_v18 = vsel %vm15829_vm2, %v1277_v0, %v1281_v35  ;;  %v1306_v19 = vor.u32 %v1305_v4, %v1301_v2  ;;  %v1311_v14 = vrot.slane %v1309_v5, 5  ;;  %v1323_v21 = vshll.u32 %v373_v63, 16  ;;  %v377_v0 = vld [vmem:[%s15807_s29 + $0x154] sm:$0xf] }
 0x10f   : > { %v1292_v22 = vsel %vm15829_vm2, %v1287_v9, %v1291_v60  ;;  %v1297_v24 = vrot.slane %v1296_v11, 4  ;;  %v1316_v25 = vrot.slane %v1314_v13, 4  ;;  %v1319_v26 = vrot.slane %v1317_v17, 5 }
 0x110   : > { %v16149_v31 = vcombine.low %v1282_v18, %v1292_v22  ;;  %v1307_v34 = vrot.slane %v1306_v19, 4  ;;  %v1325_v37 = vrot.slane %v1323_v21, 5  ;;  %v1327_v40 = vshrl.u32 %v373_v63, 16  ;;  %v378_v22 = vld [vmem:[%s15807_s29 + $0x158] sm:$0xf] }
 0x111   : > { %v1302_v35 = vsel %vm15829_vm2, %v1297_v24, %v1301_v2  ;;  %v1320_v43 = vor.u32 %v1319_v26, %v1316_v25  ;;  %v1333_v44 = vshll.u32 %v374_v20, 16  ;;  %v1337_v47 = vshrl.u32 %v374_v20, 16  ;;  %v15134_v20 = vld [vmem:[%s15807_s29 + $0x14] sm:$0xf]  ;;  %v15135_v25 = vld [vmem:[%s15807_s29 + $0x18] sm:$0xf] }
 0x112   : > { %19074 = vst [vmem:[#allocation43_spill] sm:$0xff] %v16149_v31  ;;  %v1312_v49 = vsel %vm15829_vm2, %v1307_v34, %v1311_v14  ;;  %v1329_v51 = vrot.slane %v1327_v40, 4  ;;  %v1343_v52 = vshll.u32 %v375_v28, 16  ;;  %v1347_v53 = vshrl.u32 %v375_v28, 16  ;;  %v15136_v28 = vld [vmem:[%s15807_s29 + $0x1c] sm:$0xf] }
 0x113   : > { %12627 = vmatmul.mubr.bf16.gmra.mrb[52].mxu1 %v16118_v1  ;;  %v16158_v56 = vcombine.low %v1302_v35, %v1312_v49  ;;  %v1321_v60 = vrot.slane %v1320_v43, 4  ;;  %v1335_v62 = vrot.slane %v1333_v44, 5  ;;  %v1339_v63 = vrot.slane %v1337_v47, 4 }
 0x114   : > { %12630 = vmatprep.mubr.bf16.mxu1 %v16128_v30  ;;  %v1330_v2 = vor.u32 %v1329_v51, %v1325_v37  ;;  %v1345_v4 = vrot.slane %v1343_v52, 5  ;;  %v1349_v5 = vrot.slane %v1347_v53, 4  ;;  %v1353_v9 = vshll.u32 %v376_v46, 16 }
 0x115   : > { %13203 = vmatmul.mubr.bf16.gmra.mrb[52].mxu0 %v16138_v54  ;;  %19075 = vst [vmem:[#allocation44_spill] sm:$0xff] %v16158_v56  ;;  %v1326_v11 = vsel %vm15829_vm2, %v1321_v60, %v1325_v37  ;;  %v1340_v13 = vor.u32 %v1339_v63, %v1335_v62  ;;  %v19076_v14 = vmov 0  ;;  %v11098_v21 = vrot.slane %v15134_v20, 9  ;;  %v15137_v37 = vld [vmem:[%s15807_s29 + $0x20] sm:$0xf] }
 0x116   : > { %13206 = vmatprep.mubr.bf16.mxu0 %v16149_v31  ;;  %v1331_v17 = vrot.slane %v1330_v2, 4  ;;  %v1350_v18 = vor.u32 %v1349_v5, %v1345_v4  ;;  %v1355_v19 = vrot.slane %v1353_v9, 5  ;;  %v19077_v14 = vsel %vm16165_vm5, 4294967295, %v19076_v14  ;;  %v379_v2 = vld [vmem:[%s15807_s29 + $0x15c] sm:$0xf] }
 0x117   : > { %19078 = vst [vmem:[#allocation45_spill] sm:$0xff] %v19077_v14  ;;  %v1341_v24 = vrot.slane %v1340_v13, 4  ;;  %v3893_v26 = vrot.slane %v15135_v25, 5  ;;  %v3896_v34 = vrot.slane %v15136_v28, 5  ;;  %v3899_v40 = vrot.slane %v15137_v37, 5 }
 0x118   : > { %v1336_v35 = vsel %vm15829_vm2, %v1331_v17, %v1335_v62  ;;  %v1351_v43 = vrot.slane %v1350_v18, 4  ;;  %v1358_v44 = vshrl.u32 %v377_v0, 16  ;;  %v1361_v46 = vshll.u32 %v377_v0, 16  ;;  %v15138_v28 = vld [vmem:[%s15807_s29 + $0x28] sm:$0xf] }
 0x119   : > { %v16176_v47 = vcombine.low %v1326_v11, %v1336_v35  ;;  %v1346_v49 = vsel %vm15829_vm2, %v1341_v24, %v1345_v4  ;;  %v3894_v51 = vsel %vm16165_vm5, %v11098_v21, %v3893_v26  ;;  %v3895_v52 = vrot.slane %v3893_v26, 4  ;;  %v380_v11 = vld [vmem:[%s15807_s29 + $0x160] sm:$0xf]  ;;  %v15139_v37 = vld [vmem:[%s15807_s29 + $0x2c] sm:$0xf] }
 0x11a   : > { %v1356_v53 = vsel %vm15829_vm2, %v1351_v43, %v1355_v19  ;;  %v3898_v60 = vrot.slane %v3896_v34, 4  ;;  %v3901_v63 = vrot.slane %v3899_v40, 4  ;;  %v1360_v62 = vrot.slane %v1358_v44, 4 }
 0x11b   : > { %12631 = vmatmul.mubr.bf16.gmra.mrb[56].mxu1 %v16138_v54  ;;  %19079 = vst [vmem:[#allocation46_spill] sm:$0xff] %v16176_v47  ;;  %v16187_v0 = vcombine.low %v1346_v49, %v1356_v53  ;;  %v3897_v4 = vsel %vm16165_vm5, %v3895_v52, %v3896_v34  ;;  %v1363_v5 = vrot.slane %v1361_v46, 5  ;;  %v1367_v9 = vshll.u32 %v378_v22, 16  ;;  %v382_v49 = vld [vmem:[%s15807_s29 + $0x168] sm:$0xf] }
 0x11c   : > { %12634 = vmatprep.mubr.bf16.mxu1 %v16149_v31  ;;  %v16193_v13 = vcombine.low %v3894_v51, %v3897_v4  ;;  %v3900_v17 = vsel %vm16165_vm5, %v3898_v60, %v3899_v40  ;;  %v3903_v18 = vsel %vm16165_vm5, %v3901_v63, %v3902_v23  ;;  %v1371_v19 = vshrl.u32 %v378_v22, 16  ;;  %v15140_v40 = vld [vmem:[%s15807_s29 + $0x30] sm:$0xf]  ;;  %v404_v31 = vld [vmem:[%s15807_s29 + $0x1c0] sm:$0xf] }
 0x11d   : > { %13207 = vmatmul.mubr.bf16.gmra.mrb[56].mxu0 %v16158_v56  ;;  %19080 = vst [vmem:[#allocation47_spill] sm:$0xff] %v16187_v0  ;;  %v16201_v20 = vcombine.low %v3900_v17, %v3903_v18  ;;  %v1364_v21 = vor.u32 %v1363_v5, %v1360_v62  ;;  %v1369_v24 = vrot.slane %v1367_v9, 5  ;;  %v1377_v25 = vshll.u32 %v379_v2, 16  ;;  %v383_v9 = vld [vmem:[%s15807_s29 + $0x16c] sm:$0xf] }
 0x11e   : > { %13210 = vmatprep.mubr.bf16.mxu0 %v16176_v47  ;;  %19081 = vst [vmem:[#allocation48_spill] sm:$0xff] %v16193_v13  ;;  %v1373_v26 = vrot.slane %v1371_v19, 4  ;;  %v11099_v34 = vrot.slane %v15138_v28, 9  ;;  %v3906_v35 = vrot.slane %v15139_v37, 5  ;;  %v3909_v43 = vrot.slane %v15140_v40, 5 }
 0x11f   : > { %19082 = vst [vmem:[#allocation49_spill] sm:$0xff] %v16201_v20  ;;  %v1365_v23 = vrot.slane %v1364_v21, 4  ;;  %v1379_v22 = vrot.slane %v1377_v25, 5  ;;  %v1381_v44 = vshrl.u32 %v379_v2, 16  ;;  %v1387_v46 = vshll.u32 %v380_v11, 16  ;;  %v15025_v25 = vld [vmem:[#allocation5 + $0x188] sm:$0xff]  }
 0x120   : > { %v1374_v51 = vor.u32 %v1373_v26, %v1369_v24  ;;  %v3907_v52 = vsel %vm16165_vm5, %v11099_v34, %v3906_v35  ;;  %v3908_v53 = vrot.slane %v3906_v35, 4  ;;  %v1391_v60 = vshrl.u32 %v380_v11, 16  ;;  %v384_v21 = vld [vmem:[%s15807_s29 + $0x170] sm:$0xf]  ;;  %v15142_v40 = vld [vmem:[%s15807_s29 + $0x38] sm:$0xf] }
 0x121   : > { %v1370_v63 = vsel %vm15829_vm2, %v1365_v23, %v1369_v24  ;;  %v1383_v62 = vrot.slane %v1381_v44, 4  ;;  %v1389_v4 = vrot.slane %v1387_v46, 5  ;;  %v1397_v5 = vshll.u32 %v381_v6, 16  ;;  %v15141_v24 = vld [vmem:[%s15807_s29 + $0x34] sm:$0xf] }
 0x122   : > { %v1375_v17 = vrot.slane %v1374_v51, 4  ;;  %v3910_v2 = vsel %vm16165_vm5, %v3908_v53, %v3909_v43  ;;  %v1393_v18 = vrot.slane %v1391_v60, 4  ;;  %v3911_v19 = vrot.slane %v3909_v43, 4 }
 0x123   : > { %12635 = vmatmul.mubr.bf16.gmra.mrb[60].mxu1 %v16158_v56  ;;  %v16219_v11 = vcombine.low %v3907_v52, %v3910_v2  ;;  %v1384_v26 = vor.u32 %v1383_v62, %v1379_v22  ;;  %v1399_v28 = vrot.slane %v1397_v5, 5  ;;  %v3912_v34 = vrot.slane %v15141_v24, 5  ;;  %v385_v5 = vld [vmem:[%s15807_s29 + $0x174] sm:$0xf]  ;;  %v386_v2 = vld [vmem:[%s15807_s29 + $0x178] sm:$0xf] }
 0x124   : > { %12638 = vmatprep.mubr.bf16.mxu1 %v16176_v47  ;;  %v1380_v37 = vsel %vm15829_vm2, %v1375_v17, %v1379_v22  ;;  %v1394_v35 = vor.u32 %v1393_v18, %v1389_v4  ;;  %v3915_v6 = vrot.slane %v15142_v40, 5  ;;  %v1402_v23 = vshrl.u32 %v382_v49, 16  ;;  %v15143_v22 = vld [vmem:[#allocation5 + $0x180] sm:$0xff]  }
 0x125   : > { %13211 = vmatmul.mubr.bf16.gmra.mrb[60].mxu0 %v16187_v0  ;;  %19083 = vst [vmem:[#allocation50_spill] sm:$0xff] %v16219_v11  ;;  %v16225_v43 = vcombine.low %v1370_v63, %v1380_v37  ;;  %v1385_v44 = vrot.slane %v1384_v26, 4  ;;  %v3913_v46 = vsel %vm16165_vm5, %v3911_v19, %v3912_v34  ;;  %v3914_v51 = vrot.slane %v3912_v34, 4  ;;  %v15027_v26 = vld [vmem:[#allocation5 + $0x190] sm:$0xff]   ;;  %v15157_v56 = vld [vmem:[%s15807_s29 + $0x70] sm:$0xf] }
 0x126   : > { %13294 = vmatprep.mubr.bf16.mxu0 %v16193_v13  ;;  %v1395_v52 = vrot.slane %v1394_v35, 4  ;;  %v1404_v53 = vrot.slane %v1402_v23, 4  ;;  %v1405_v60 = vshll.u32 %v382_v49, 16  ;;  %v1411_v62 = vshll.u32 %v383_v9, 16  ;;  %v15028_v23 = vld [vmem:[#allocation5 + $0x38] sm:$0xff]  }
 0x127   : > { %19084 = vst [vmem:[#allocation51_spill] sm:$0xff] %v16225_v43  ;;  %v1390_v63 = vsel %vm15829_vm2, %v1385_v44, %v1389_v4  ;;  %v3916_v17 = vsel %vm16165_vm5, %v3914_v51, %v3915_v6  ;;  %v1415_v18 = vshrl.u32 %v383_v9, 16  ;;  %v1421_v19 = vshll.u32 %v384_v21, 16  ;;  %v15144_v9 = vld [vmem:[%s15807_s29 + $0x3c] sm:$0xf]  ;;  %12716 = vmatprep.subr.bf16.mxu1 %v15028_v23 }
 0x128   : > { %v1400_v49 = vsel %vm15829_vm2, %v1395_v52, %v1399_v28  ;;  %v16240_v24 = vcombine.low %v3913_v46, %v3916_v17  ;;  %v1407_v34 = vrot.slane %v1405_v60, 5  ;;  %v1413_v37 = vrot.slane %v1411_v62, 5  ;;  %v15145_v51 = vld [vmem:[%s15807_s29 + $0x40] sm:$0xf]  ;;  %v387_v62 = vld [vmem:[%s15807_s29 + $0x17c] sm:$0xf]  ;;  %12717 = vmatpush3.bf16.msra.mxu1 %v15028_v23 }
 0x129   : > { %v16242_v35 = vcombine.low %v1390_v63, %v1400_v49  ;;  %v1417_v4 = vrot.slane %v1415_v18, 4  ;;  %v1423_v40 = vrot.slane %v1421_v19, 5  ;;  %v11100_v6 = vrot.slane %v15144_v9, 9  ;;  %v389_v9 = vld [vmem:[%s15807_s29 + $0x184] sm:$0xf] }
 0x12a   : > { %19085 = vst [vmem:[#allocation52_spill] sm:$0xff] %v16240_v24  ;;  %v1408_v44 = vor.u32 %v1407_v34, %v1404_v53  ;;  %v1425_v47 = vshrl.u32 %v384_v21, 16  ;;  %v1431_v46 = vshll.u32 %v385_v5, 16  ;;  %v1435_v52 = vshrl.u32 %v385_v5, 16 }
 0x12b   : > { %12639 = vmatmul.mubr.bf16.gmra.mrb[64].mxu1 %v16187_v0  ;;  %19086 = vst [vmem:[#allocation53_spill] sm:$0xff] %v16242_v35  ;;  %v1418_v28 = vor.u32 %v1417_v4, %v1413_v37  ;;  %v1441_v60 = vshll.u32 %v386_v2, 16  ;;  %v388_v4 = vld [vmem:[%s15807_s29 + $0x180] sm:$0xf]  ;;  %v4042_v57 = vrot.slane %v15192_v27, 5  ;;  %v1886_v8 = vshrl.u32 %v16674_v58, 16 }
 0x12c   : > { %12642 = vmatprep.mubr.bf16.mxu1 %v16225_v43  ;;  %v15146_v43 = vld [vmem:[%s15807_s29 + $0x44] sm:$0xf]  ;;  %v1409_v63 = vrot.slane %v1408_v44, 4  ;;  %v1427_v53 = vrot.slane %v1425_v47, 4  ;;  %v1433_v19 = vrot.slane %v1431_v46, 5  ;;  %v1437_v49 = vrot.slane %v1435_v52, 4 }
 0x12d   : > { %13295 = vmatmul.mubr.bf16.vlgmr.msra.gmra.mrb[0].mxu0 %v16201_v20  ;;  %v3922_v0 = vrot.slane %v15146_v43, 5  ;;  %v15029_v43 = vld [vmem:[#allocation5 + $0x198] sm:$0xff]   ;;  %v1419_v21 = vrot.slane %v1418_v28, 4  ;;  %v1443_v34 = vrot.slane %v1441_v60, 5  ;;  %v1446_v60 = vshrl.u32 %v387_v62, 16 }
 0x12e   : > { %13423 = vmatpush3.bf16.msra.mxu0 %v15143_v22  ;;  %13298 = vmatprep.mubr.bf16.mxu0 %v16219_v11  ;;  %v3919_v22 = vrot.slane %v15145_v51, 5  ;;  %v1428_v47 = vor.u32 %v1427_v53, %v1423_v40  ;;  %v1438_v51 = vor.u32 %v1437_v49, %v1433_v19  ;;  %v15148_v52 = vld [vmem:[%s15807_s29 + $0x4c] sm:$0xf]  ;;  %v1455_v53 = vshll.u32 %v388_v4, 16 }
 0x12f   : > { %13424 = vmatprep.subr.bf16.mxu0 %v15025_v25  ;;  %v3924_v2 = vrot.slane %v3922_v0, 4 }
 0x130   : > { %v3920_v17 = vsel %vm16165_vm5, %v11100_v6, %v3919_v22  ;;  %v3921_v18 = vrot.slane %v3919_v22, 4  ;;  %v1424_v6 = vsel %vm15829_vm2, %v1419_v21, %v1423_v40  ;;  %v15147_v22 = vld [vmem:[%s15807_s29 + $0x48] sm:$0xf]  ;;  %v1429_v46 = vrot.slane %v1428_v47, 4 }
 0x131   : > { %v3925_v28 = vrot.slane %v15147_v22, 5  ;;  %v1459_v21 = vshrl.u32 %v388_v4, 16  ;;  %v1465_v47 = vshll.u32 %v389_v9, 16 }
 0x132   : > { %13425 = vmatpush3.bf16.msra.mxu0 %v15025_v25  ;;  %v1414_v25 = vsel %vm15829_vm2, %v1409_v63, %v1413_v37  ;;  %v3923_v5 = vsel %vm16165_vm5, %v3921_v18, %v3922_v0  ;;  %v3928_v37 = vrot.slane %v15148_v52, 5  ;;  %v1439_v0 = vrot.slane %v1438_v51, 4  ;;  %v15150_v52 = vld [vmem:[%s15807_s29 + $0x54] sm:$0xf] }
 0x133   : > { %12643 = vmatmul.mubr.bf16.gmra.mrb[68].mxu1 %v16242_v35  ;;  %13426 = vmatprep.subr.bf16.mxu0 %v15027_v26  ;;  %v16260_v44 = vcombine.low %v3920_v17, %v3923_v5  ;;  %v16263_v23 = vcombine.low %v1414_v25, %v1424_v6  ;;  %v3926_v40 = vsel %vm16165_vm5, %v3924_v2, %v3925_v28  ;;  %v3927_v63 = vrot.slane %v3925_v28, 4  ;;  %v390_v2 = vld [vmem:[%s15807_s29 + $0x188] sm:$0xf]  ;;  %v399_v35 = vld [vmem:[%s15807_s29 + $0x1ac] sm:$0xf] }
 0x134   : > { %v1449_v17 = vshll.u32 %v387_v62, 16  ;;  %v1448_v18 = vrot.slane %v1446_v60, 4  ;;  %v1444_v49 = vsel %vm15829_vm2, %v1439_v0, %v1443_v34  ;;  %v391_v62 = vld [vmem:[%s15807_s29 + $0x18c] sm:$0xf]  ;;  %v1457_v51 = vrot.slane %v1455_v53, 5 }
 0x135   : > { %13299 = vmatmul.mubr.bf16.gmra.mrb[4].mxu0 %v16240_v24  ;;  %19087 = vst [vmem:[#allocation54_spill] sm:$0xff] %v16260_v44  ;;  %19088 = vst [vmem:[#allocation55_spill] sm:$0xff] %v16263_v23  ;;  %12646 = vmatprep.mubr.bf16.mxu1 %v16263_v23  ;;  %v3929_v25 = vsel %vm16165_vm5, %v3927_v63, %v3928_v37  ;;  %v1461_v22 = vrot.slane %v1459_v21, 4  ;;  %v1467_v28 = vrot.slane %v1465_v47, 5  ;;  %v3932_v37 = vrot.slane %v15150_v52, 5 }
 0x136   : > { %13427 = vmatpush3.bf16.msra.mxu0 %v15027_v26  ;;  %13302 = vmatprep.mubr.bf16.mxu0 %v16260_v44  ;;  %v1434_v26 = vsel %vm15829_vm2, %v1429_v46, %v1433_v19  ;;  %v1451_v5 = vrot.slane %v1449_v17, 5  ;;  %v16280_v19 = vcombine.low %v3926_v40, %v3929_v25  ;;  %v15149_v46 = vld [vmem:[%s15807_s29 + $0x50] sm:$0xf]  ;;  %v1469_v63 = vshrl.u32 %v389_v9, 16 }
 0x137   : > { %13428 = vmatprep.subr.bf16.mxu0 %v15029_v43  ;;  %v16278_v6 = vcombine.low %v1434_v26, %v1444_v49  ;;  %v11101_v34 = vrot.slane %v15149_v46, 9  ;;  %v1462_v60 = vor.u32 %v1461_v22, %v1457_v51  ;;  %v1475_v40 = vshll.u32 %v390_v2, 16  ;;  %v392_v21 = vld [vmem:[%s15807_s29 + $0x190] sm:$0xf]  ;;  %v393_v49 = vld [vmem:[%s15807_s29 + $0x194] sm:$0xf] }
 0x138   : > { %19090 = vst [vmem:[#allocation57_spill] sm:$0xff] %v16280_v19  ;;  %v1452_v4 = vor.u32 %v1451_v5, %v1448_v18  ;;  %v3934_v18 = vrot.slane %v3932_v37, 4  ;;  %v1479_v53 = vshrl.u32 %v390_v2, 16  ;;  %v1471_v5 = vrot.slane %v1469_v63, 4 }
 0x139   : > { %19089 = vst [vmem:[#allocation56_spill] sm:$0xff] %v16278_v6  ;;  %v3933_v26 = vsel %vm16165_vm5, %v11101_v34, %v3932_v37  ;;  %v1463_v25 = vrot.slane %v1462_v60, 4  ;;  %v1477_v47 = vrot.slane %v1475_v40, 5  ;;  %v1485_v46 = vshll.u32 %v391_v62, 16  ;;  %v15152_v62 = vld [vmem:[%s15807_s29 + $0x5c] sm:$0xf] }
 0x13a   : > { %13429 = vmatpush3.bf16.msra.mxu0 %v15029_v43  ;;  %v15151_v43 = vld [vmem:[%s15807_s29 + $0x58] sm:$0xf]  ;;  %v1453_v17 = vrot.slane %v1452_v4, 4  ;;  %v1481_v4 = vrot.slane %v1479_v53, 4  ;;  %v1472_v37 = vor.u32 %v1471_v5, %v1467_v28  ;;  %v3938_v40 = vrot.slane %v15152_v62, 5 }
 0x13b   : > { %12647 = vmatmul.mubr.bf16.gmra.mrb[72].mxu1 %v16278_v6  ;;  %v3935_v0 = vrot.slane %v15151_v43, 5  ;;  %v1468_v2 = vsel %vm15829_vm2, %v1463_v25, %v1467_v28  ;;  %v1487_v60 = vrot.slane %v1485_v46, 5  ;;  %v15153_v6 = vld [vmem:[%s15807_s29 + $0x60] sm:$0xf]  ;;  %v1493_v53 = vshll.u32 %v392_v21, 16 }
 0x13c   : > { %v1458_v22 = vsel %vm15829_vm2, %v1453_v17, %v1457_v51  ;;  %v1482_v63 = vor.u32 %v1481_v4, %v1477_v47  ;;  %v3941_v51 = vrot.slane %v15153_v6, 5  ;;  %v1473_v17 = vrot.slane %v1472_v37, 4  ;;  %v396_v62 = vld [vmem:[%s15807_s29 + $0x1a0] sm:$0xf] }
 0x13d   : > { %13303 = vmatmul.mubr.bf16.gmra.mrb[8].mxu0 %v16280_v19  ;;  %v3936_v9 = vsel %vm16165_vm5, %v3934_v18, %v3935_v0  ;;  %v3937_v52 = vrot.slane %v3935_v0, 4  ;;  %v16299_v43 = vcombine.low %v1458_v22, %v1468_v2  ;;  %v394_v18 = vld [vmem:[%s15807_s29 + $0x198] sm:$0xf]  ;;  %v1490_v0 = vshrl.u32 %v392_v21, 16  ;;  %v395_v21 = vld [vmem:[%s15807_s29 + $0x19c] sm:$0xf] }
 0x13e   : > { %v16297_v34 = vcombine.low %v3933_v26, %v3936_v9  ;;  %v1499_v25 = vshll.u32 %v393_v49, 16  ;;  %v1483_v28 = vrot.slane %v1482_v63, 4  ;;  %v3940_v5 = vrot.slane %v3938_v40, 4 }
 0x13f   : > { %19092 = vst [vmem:[#allocation59_spill] sm:$0xff] %v16299_v43  ;;  %12650 = vmatprep.mubr.bf16.mxu1 %v16299_v43  ;;  %v3939_v26 = vsel %vm16165_vm5, %v3937_v52, %v3938_v40  ;;  %v1503_v46 = vshrl.u32 %v393_v49, 16  ;;  %v1478_v6 = vsel %vm15829_vm2, %v1473_v17, %v1477_v47  ;;  %v1492_v22 = vrot.slane %v1490_v0, 4  ;;  %v15154_v17 = vld [vmem:[%s15807_s29 + $0x64] sm:$0xf] }
 0x140   : > { %19091 = vst [vmem:[#allocation58_spill] sm:$0xff] %v16297_v34  ;;  %13306 = vmatprep.mubr.bf16.mxu0 %v16297_v34  ;;  %v1495_v9 = vrot.slane %v1493_v53, 5  ;;  %v1501_v4 = vrot.slane %v1499_v25, 5  ;;  %v1488_v2 = vsel %vm15829_vm2, %v1483_v28, %v1487_v60  ;;  %v3942_v37 = vsel %vm16165_vm5, %v3940_v5, %v3941_v51  ;;  %v15155_v43 = vld [vmem:[%s15807_s29 + $0x68] sm:$0xf] }
 0x141   : > { %v1505_v63 = vrot.slane %v1503_v46, 4  ;;  %v1509_v52 = vshll.u32 %v394_v18, 16  ;;  %v16316_v40 = vcombine.low %v1478_v6, %v1488_v2  ;;  %v16318_v49 = vcombine.low %v3939_v26, %v3942_v37  ;;  %v15156_v60 = vld [vmem:[%s15807_s29 + $0x6c] sm:$0xf]  ;;  %v397_v6 = vld [vmem:[%s15807_s29 + $0x1a4] sm:$0xf] }
 0x142   : > { %v1496_v47 = vor.u32 %v1495_v9, %v1492_v22  ;;  %v11102_v0 = vrot.slane %v15154_v17, 9  ;;  %v3945_v23 = vrot.slane %v15155_v43, 5  ;;  %v3948_v28 = vrot.slane %v15156_v60, 5  ;;  %v398_v43 = vld [vmem:[%s15807_s29 + $0x1a8] sm:$0xf] }
 0x143   : > { %19093 = vst [vmem:[#allocation60_spill] sm:$0xff] %v16316_v40  ;;  %19094 = vst [vmem:[#allocation61_spill] sm:$0xff] %v16318_v49  ;;  %v1506_v53 = vor.u32 %v1505_v63, %v1501_v4  ;;  %v1511_v25 = vrot.slane %v1509_v52, 5  ;;  %12651 = vmatmul.mubr.bf16.gmra.mrb[76].mxu1 %v16316_v40  ;;  %v1513_v5 = vshrl.u32 %v394_v18, 16  ;;  %v1519_v46 = vshll.u32 %v395_v21, 16 }
 0x144   : > { %v1497_v51 = vrot.slane %v1496_v47, 4  ;;  %v1523_v26 = vshrl.u32 %v395_v21, 16  ;;  %v3946_v22 = vsel %vm16165_vm5, %v11102_v0, %v3945_v23  ;;  %v3947_v9 = vrot.slane %v3945_v23, 4 }
 0x145   : > { %13307 = vmatmul.mubr.bf16.gmra.mrb[12].mxu0 %v16318_v49  ;;  %v1507_v2 = vrot.slane %v1506_v53, 4  ;;  %v1529_v37 = vshll.u32 %v396_v62, 16  ;;  %v1515_v52 = vrot.slane %v1513_v5, 4  ;;  %v1521_v17 = vrot.slane %v1519_v46, 5 }
 0x146   : > { %v1502_v63 = vsel %vm15829_vm2, %v1497_v51, %v1501_v4  ;;  %v1525_v47 = vrot.slane %v1523_v26, 4  ;;  %v3949_v21 = vsel %vm16165_vm5, %v3947_v9, %v3948_v28  ;;  %v3950_v0 = vrot.slane %v3948_v28, 4  ;;  %v15158_v51 = vld [vmem:[%s15807_s29 + $0x74] sm:$0xf] }
 0x147   : > { %v1512_v18 = vsel %vm15829_vm2, %v1507_v2, %v1511_v25  ;;  %v1531_v53 = vrot.slane %v1529_v37, 5  ;;  %v16337_v23 = vcombine.low %v3946_v22, %v3949_v21  ;;  %v1516_v62 = vor.u32 %v1515_v52, %v1511_v25  ;;  %v400_v52 = vld [vmem:[%s15807_s29 + $0x1b0] sm:$0xf]  ;;  %v401_v21 = vld [vmem:[%s15807_s29 + $0x1b4] sm:$0xf] }
 0x148   : > { %v16335_v60 = vcombine.low %v1502_v63, %v1512_v18  ;;  %v1526_v40 = vor.u32 %v1525_v47, %v1521_v17  ;;  %v3951_v4 = vrot.slane %v15157_v56, 5  ;;  %v3954_v5 = vrot.slane %v15158_v51, 5 }
 0x149   : > { %19096 = vst [vmem:[#allocation63_spill] sm:$0xff] %v16337_v23  ;;  %v1534_v46 = vshrl.u32 %v397_v6, 16  ;;  %v1537_v26 = vshll.u32 %v397_v6, 16  ;;  %13310 = vmatprep.mubr.bf16.mxu0 %v16337_v23  ;;  %v1517_v28 = vrot.slane %v1516_v62, 4  ;;  %v1543_v9 = vshll.u32 %v398_v43, 16 }
 0x14a   : > { %19095 = vst [vmem:[#allocation62_spill] sm:$0xff] %v16335_v60  ;;  %12654 = vmatprep.mubr.bf16.mxu1 %v16335_v60  ;;  %v1527_v2 = vrot.slane %v1526_v40, 4  ;;  %v1547_v22 = vshrl.u32 %v398_v43, 16  ;;  %v3952_v25 = vsel %vm16165_vm5, %v3950_v0, %v3951_v4  ;;  %v3953_v37 = vrot.slane %v3951_v4, 4  ;;  %v402_v60 = vld [vmem:[%s15807_s29 + $0x1b8] sm:$0xf] }
 0x14b   : > { %v1536_v63 = vrot.slane %v1534_v46, 4  ;;  %v1539_v56 = vrot.slane %v1537_v26, 5  ;;  %v1522_v6 = vsel %vm15829_vm2, %v1517_v28, %v1521_v17  ;;  %v1545_v18 = vrot.slane %v1543_v9, 5  ;;  %v15159_v26 = vld [vmem:[%s15807_s29 + $0x78] sm:$0xf] }
 0x14c   : > { %v1532_v47 = vsel %vm15829_vm2, %v1527_v2, %v1531_v53  ;;  %v1549_v40 = vrot.slane %v1547_v22, 4  ;;  %v3955_v0 = vsel %vm16165_vm5, %v3953_v37, %v3954_v5  ;;  %v1553_v4 = vshll.u32 %v399_v35, 16  ;;  %v15160_v28 = vld [vmem:[%s15807_s29 + $0x7c] sm:$0xf]  ;;  %v15161_v22 = vld [vmem:[%s15807_s29 + $0x80] sm:$0xf] }
 0x14d   : > { %v16352_v43 = vcombine.low %v1522_v6, %v1532_v47  ;;  %v1540_v62 = vor.u32 %v1539_v56, %v1536_v63  ;;  %v16356_v51 = vcombine.low %v3952_v25, %v3955_v0  ;;  %v11103_v17 = vrot.slane %v15159_v26, 9  ;;  %v403_v56 = vld [vmem:[%s15807_s29 + $0x1bc] sm:$0xf] }
 0x14e   : > { %v1550_v46 = vor.u32 %v1549_v40, %v1545_v18  ;;  %v3958_v53 = vrot.slane %v15160_v28, 5  ;;  %v1555_v9 = vrot.slane %v1553_v4, 5  ;;  %v3961_v6 = vrot.slane %v15161_v22, 5 }
 0x14f   : > { %19097 = vst [vmem:[#allocation64_spill] sm:$0xff] %v16352_v43  ;;  %19098 = vst [vmem:[#allocation65_spill] sm:$0xff] %v16356_v51  ;;  %12655 = vmatmul.mubr.bf16.gmra.mrb[80].mxu1 %v16352_v43  ;;  %v1541_v2 = vrot.slane %v1540_v62, 4  ;;  %v1557_v47 = vshrl.u32 %v399_v35, 16  ;;  %13311 = vmatmul.mubr.bf16.gmra.mrb[16].mxu0 %v16356_v51  ;;  %v1563_v63 = vshll.u32 %v400_v52, 16  ;;  %v1567_v62 = vshrl.u32 %v400_v52, 16 }
 0x150   : > { %v1551_v5 = vrot.slane %v1550_v46, 4  ;;  %v3959_v25 = vsel %vm16165_vm5, %v11103_v17, %v3958_v53  ;;  %v3960_v37 = vrot.slane %v3958_v53, 4  ;;  %v1573_v4 = vshll.u32 %v401_v21, 16  ;;  %v15163_v52 = vld [vmem:[%s15807_s29 + $0x88] sm:$0xf] }
 0x151   : > { %v1546_v40 = vsel %vm15829_vm2, %v1541_v2, %v1545_v18  ;;  %v1559_v0 = vrot.slane %v1557_v47, 4  ;;  %v1565_v26 = vrot.slane %v1563_v63, 5  ;;  %v3963_v17 = vrot.slane %v3961_v6, 4  ;;  %v15162_v2 = vld [vmem:[%s15807_s29 + $0x84] sm:$0xf] }
 0x152   : > { %v1556_v35 = vsel %vm15829_vm2, %v1551_v5, %v1555_v9  ;;  %v3962_v46 = vsel %vm16165_vm5, %v3960_v37, %v3961_v6  ;;  %v1569_v43 = vrot.slane %v1567_v62, 4  ;;  %v1575_v18 = vrot.slane %v1573_v4, 5  ;;  %v15032_v62 = vld [vmem:[#allocation5 + $0x80] sm:$0xff]  }
 0x153   : > { %v16373_v28 = vcombine.low %v1546_v40, %v1556_v35  ;;  %v16375_v53 = vcombine.low %v3959_v25, %v3962_v46  ;;  %v1560_v22 = vor.u32 %v1559_v0, %v1555_v9  ;;  %v3964_v47 = vrot.slane %v15162_v2, 5  ;;  %v15033_v4 = vld [vmem:[#allocation5 + $0x1a0] sm:$0xff]   ;;  %12846 = vmatprep.subr.bf16.mxu1 %v15032_v62 }
 0x154   : > { %v3967_v21 = vrot.slane %v15163_v52, 5  ;;  %v1578_v54 = vshrl.u32 %v402_v60, 16  ;;  %v1570_v37 = vor.u32 %v1569_v43, %v1565_v26  ;;  %v1581_v6 = vshll.u32 %v402_v60, 16  ;;  %13430 = vmatprep.subr.bf16.mxu0 %v15033_v4 }
 0x155   : > { %19099 = vst [vmem:[#allocation66_spill] sm:$0xff] %v16373_v28  ;;  %19100 = vst [vmem:[#allocation67_spill] sm:$0xff] %v16375_v53  ;;  %12658 = vmatprep.mubr.bf16.mxu1 %v16373_v28  ;;  %13314 = vmatprep.mubr.bf16.mxu0 %v16375_v53  ;;  %v1561_v5 = vrot.slane %v1560_v22, 4  ;;  %v1587_v63 = vshll.u32 %v403_v56, 16  ;;  %v3965_v9 = vsel %vm16165_vm5, %v3963_v17, %v3964_v47  ;;  %v3966_v25 = vrot.slane %v3964_v47, 4 }
 0x156   : > { %v1580_v40 = vrot.slane %v1578_v54, 4  ;;  %v1591_v0 = vshrl.u32 %v403_v56, 16  ;;  %v1571_v46 = vrot.slane %v1570_v37, 4  ;;  %v1583_v22 = vrot.slane %v1581_v6, 5  ;;  %v15164_v17 = vld [vmem:[%s15807_s29 + $0x8c] sm:$0xf]  ;;  %13431 = vmatpush3.bf16.msra.mxu0 %v15033_v4 }
 0x157   : > { %v1566_v35 = vsel %vm15829_vm2, %v1561_v5, %v1565_v26  ;;  %v1589_v43 = vrot.slane %v1587_v63, 5  ;;  %v3968_v60 = vsel %vm16165_vm5, %v3966_v25, %v3967_v21  ;;  %v1597_v52 = vshll.u32 %v404_v31, 16  ;;  %v15165_v5 = vld [vmem:[%s15807_s29 + $0x90] sm:$0xf]  ;;  %v405_v6 = vld [vmem:[%s15807_s29 + $0x1c4] sm:$0xf] }
 0x158   : > { %v1593_v2 = vrot.slane %v1591_v0, 4  ;;  %v11104_v54 = vrot.slane %v15164_v17, 9  ;;  %v1576_v56 = vsel %vm15829_vm2, %v1571_v46, %v1575_v18  ;;  %v16391_v47 = vcombine.low %v3965_v9, %v3968_v60  ;;  %v406_v63 = vld [vmem:[%s15807_s29 + $0x1c8] sm:$0xf]  ;;  %v15166_v0 = vld [vmem:[%s15807_s29 + $0x94] sm:$0xf] }
 0x159   : > { %v1584_v26 = vor.u32 %v1583_v22, %v1580_v40  ;;  %v3971_v37 = vrot.slane %v15165_v5, 5  ;;  %v16396_v28 = vcombine.low %v1566_v35, %v1576_v56  ;;  %v1599_v25 = vrot.slane %v1597_v52, 5  ;;  %v15208_v53 = vld [vmem:[%s15807_s29 + $0x13c] sm:$0xf] }
 0x15a   : > { %19101 = vst [vmem:[#allocation68_spill] sm:$0xff] %v16391_v47  ;;  %v1594_v21 = vor.u32 %v1593_v2, %v1589_v43  ;;  %v3974_v17 = vrot.slane %v15166_v0, 5  ;;  %13315 = vmatmul.mubr.bf16.gmra.mrb[20].mxu0 %v16391_v47  ;;  %v1601_v40 = vshrl.u32 %v404_v31, 16  ;;  %v1607_v4 = vshll.u32 %v405_v6, 16  ;;  %v15167_v0 = vld [vmem:[%s15807_s29 + $0x98] sm:$0xf] }
 0x15b   : > { %19102 = vst [vmem:[#allocation69_spill] sm:$0xff] %v16396_v28  ;;  %v1585_v62 = vrot.slane %v1584_v26, 4  ;;  %v3972_v18 = vsel %vm16165_vm5, %v11104_v54, %v3971_v37  ;;  %v3973_v9 = vrot.slane %v3971_v37, 4  ;;  %12659 = vmatmul.mubr.bf16.gmra.mrb[84].mxu1 %v16396_v28  ;;  %v1611_v35 = vshrl.u32 %v405_v6, 16  ;;  %v407_v54 = vld [vmem:[%s15807_s29 + $0x1cc] sm:$0xf] }
 0x15c   : > { %v1595_v46 = vrot.slane %v1594_v21, 4  ;;  %v1617_v22 = vshll.u32 %v406_v63, 16  ;;  %v1603_v52 = vrot.slane %v1601_v40, 4  ;;  %v3976_v56 = vrot.slane %v3974_v17, 4  ;;  %v408_v6 = vld [vmem:[%s15807_s29 + $0x1d0] sm:$0xf] }
 0x15d   : > { %v1590_v60 = vsel %vm15829_vm2, %v1585_v62, %v1589_v43  ;;  %v3975_v2 = vsel %vm16165_vm5, %v3973_v9, %v3974_v17  ;;  %v1609_v5 = vrot.slane %v1607_v4, 5  ;;  %v1613_v37 = vrot.slane %v1611_v35, 4  ;;  %v15168_v17 = vld [vmem:[%s15807_s29 + $0x9c] sm:$0xf]  ;;  %v409_v28 = vld [vmem:[%s15807_s29 + $0x1d4] sm:$0xf] }
 0x15e   : > { %v1600_v31 = vsel %vm15829_vm2, %v1595_v46, %v1599_v25  ;;  %v16410_v26 = vcombine.low %v3972_v18, %v3975_v2  ;;  %v1604_v21 = vor.u32 %v1603_v52, %v1599_v25  ;;  %v1619_v43 = vrot.slane %v1617_v22, 5  ;;  %v16821_v47 = vld [vmem:[%s15807_s29 + $0x270] sm:$0xf] }
 0x15f   : > { %v16413_v63 = vcombine.low %v1590_v60, %v1600_v31  ;;  %v3977_v62 = vrot.slane %v15167_v0, 5  ;;  %v1614_v9 = vor.u32 %v1613_v37, %v1609_v5  ;;  %v3980_v40 = vrot.slane %v15168_v17, 5 }
 0x160   : > { %19103 = vst [vmem:[#allocation70_spill] sm:$0xff] %v16410_v26  ;;  %13318 = vmatprep.mubr.bf16.mxu0 %v16410_v26  ;;  %v1622_v30 = vshrl.u32 %v407_v54, 16  ;;  %v1625_v1 = vshll.u32 %v407_v54, 16  ;;  %v1605_v18 = vrot.slane %v1604_v21, 4  ;;  %v1631_v25 = vshll.u32 %v408_v6, 16 }
 0x161   : > { %19104 = vst [vmem:[#allocation71_spill] sm:$0xff] %v16413_v63  ;;  %12662 = vmatprep.mubr.bf16.mxu1 %v16413_v63  ;;  %v3978_v46 = vsel %vm16165_vm5, %v3976_v56, %v3977_v62  ;;  %v3979_v4 = vrot.slane %v3977_v62, 4  ;;  %v1615_v35 = vrot.slane %v1614_v9, 4  ;;  %v1635_v2 = vshrl.u32 %v408_v6, 16  ;;  %v410_v62 = vld [vmem:[%s15807_s29 + $0x1d8] sm:$0xf] }
 0x162   : > { %v1624_v22 = vrot.slane %v1622_v30, 4  ;;  %v1627_v60 = vrot.slane %v1625_v1, 5  ;;  %v1610_v52 = vsel %vm15829_vm2, %v1605_v18, %v1609_v5  ;;  %v1633_v31 = vrot.slane %v1631_v25, 5  ;;  %v15169_v9 = vld [vmem:[%s15807_s29 + $0xa0] sm:$0xf] }
 0x163   : > { %v3981_v54 = vsel %vm16165_vm5, %v3979_v4, %v3980_v40  ;;  %v1641_v37 = vshll.u32 %v409_v28, 16  ;;  %v1620_v56 = vsel %vm15829_vm2, %v1615_v35, %v1619_v43  ;;  %v1637_v30 = vrot.slane %v1635_v2, 4  ;;  %v15170_v5 = vld [vmem:[%s15807_s29 + $0xa4] sm:$0xf]  ;;  %v411_v63 = vld [vmem:[%s15807_s29 + $0x1dc] sm:$0xf] }
 0x164   : > { %v16428_v21 = vcombine.low %v3978_v46, %v3981_v54  ;;  %v1628_v0 = vor.u32 %v1627_v60, %v1624_v22  ;;  %v16431_v1 = vcombine.low %v1610_v52, %v1620_v56  ;;  %v11105_v17 = vrot.slane %v15169_v9, 9  ;;  %v15171_v25 = vld [vmem:[%s15807_s29 + $0xa8] sm:$0xf] }
 0x165   : > { %v1643_v6 = vrot.slane %v1641_v37, 5  ;;  %v3984_v18 = vrot.slane %v15170_v5, 5  ;;  %v1638_v4 = vor.u32 %v1637_v30, %v1633_v31  ;;  %v3987_v43 = vrot.slane %v15171_v25, 5 }
 0x166   : > { %19105 = vst [vmem:[#allocation72_spill] sm:$0xff] %v16428_v21  ;;  %19106 = vst [vmem:[#allocation73_spill] sm:$0xff] %v16431_v1  ;;  %13319 = vmatmul.mubr.bf16.gmra.mrb[24].mxu0 %v16428_v21  ;;  %v1629_v40 = vrot.slane %v1628_v0, 4  ;;  %v1645_v46 = vshrl.u32 %v409_v28, 16  ;;  %12663 = vmatmul.mubr.bf16.gmra.mrb[88].mxu1 %v16431_v1  ;;  %v1651_v60 = vshll.u32 %v410_v62, 16  ;;  %v1655_v2 = vshrl.u32 %v410_v62, 16 }
 0x167   : > { %v3985_v35 = vsel %vm16165_vm5, %v11105_v17, %v3984_v18  ;;  %v3986_v22 = vrot.slane %v3984_v18, 4  ;;  %v1639_v54 = vrot.slane %v1638_v4, 4  ;;  %v1661_v56 = vshll.u32 %v411_v63, 16  ;;  %v412_v0 = vld [vmem:[%s15807_s29 + $0x1e0] sm:$0xf] }
 0x168   : > { %v1634_v52 = vsel %vm15829_vm2, %v1629_v40, %v1633_v31  ;;  %v1647_v37 = vrot.slane %v1645_v46, 4  ;;  %v1653_v30 = vrot.slane %v1651_v60, 5  ;;  %v1657_v9 = vrot.slane %v1655_v2, 4  ;;  %v413_v17 = vld [vmem:[%s15807_s29 + $0x1e4] sm:$0xf] }
 0x169   : > { %v3988_v28 = vsel %vm16165_vm5, %v3986_v22, %v3987_v43  ;;  %v3989_v5 = vrot.slane %v3987_v43, 4  ;;  %v1644_v62 = vsel %vm15829_vm2, %v1639_v54, %v1643_v6  ;;  %v1663_v40 = vrot.slane %v1661_v56, 5  ;;  %v15172_v63 = vld [vmem:[%s15807_s29 + $0xac] sm:$0xf]  ;;  %v15173_v1 = vld [vmem:[%s15807_s29 + $0xb0] sm:$0xf] }
 0x16a   : > { %v16449_v18 = vcombine.low %v3985_v35, %v3988_v28  ;;  %v1648_v31 = vor.u32 %v1647_v37, %v1643_v6  ;;  %v16451_v4 = vcombine.low %v1634_v52, %v1644_v62  ;;  %v1658_v25 = vor.u32 %v1657_v9, %v1653_v30  ;;  %v414_v60 = vld [vmem:[%s15807_s29 + $0x1e8] sm:$0xf] }
 0x16b   : > { %v3990_v46 = vrot.slane %v15172_v63, 5  ;;  %v3993_v33 = vrot.slane %v15173_v1, 5  ;;  %v1666_v43 = vshrl.u32 %v412_v0, 16  ;;  %v1669_v2 = vshll.u32 %v412_v0, 16 }
 0x16c   : > { %19107 = vst [vmem:[#allocation74_spill] sm:$0xff] %v16449_v18  ;;  %19108 = vst [vmem:[#allocation75_spill] sm:$0xff] %v16451_v4  ;;  %13322 = vmatprep.mubr.bf16.mxu0 %v16449_v18  ;;  %v1649_v22 = vrot.slane %v1648_v31, 4  ;;  %v1675_v61 = vshll.u32 %v413_v17, 16  ;;  %12666 = vmatprep.mubr.bf16.mxu1 %v16451_v4  ;;  %v1659_v35 = vrot.slane %v1658_v25, 4  ;;  %v1679_v54 = vshrl.u32 %v413_v17, 16 }
 0x16d   : > { %v3991_v6 = vsel %vm16165_vm5, %v3989_v5, %v3990_v46  ;;  %v3992_v52 = vrot.slane %v3990_v46, 4  ;;  %v1668_v37 = vrot.slane %v1666_v43, 4  ;;  %v1671_v56 = vrot.slane %v1669_v2, 5  ;;  %v415_v5 = vld [vmem:[%s15807_s29 + $0x1ec] sm:$0xf] }
 0x16e   : > { %v1654_v1 = vsel %vm15829_vm2, %v1649_v22, %v1653_v30  ;;  %v1677_v28 = vrot.slane %v1675_v61, 5  ;;  %v1664_v0 = vsel %vm15829_vm2, %v1659_v35, %v1663_v40  ;;  %v1681_v62 = vrot.slane %v1679_v54, 4  ;;  %v15174_v30 = vld [vmem:[%s15807_s29 + $0xb4] sm:$0xf]  ;;  %v416_v22 = vld [vmem:[%s15807_s29 + $0x1f0] sm:$0xf] }
 0x16f   : > { %v3994_v9 = vsel %vm16165_vm5, %v3992_v52, %v3993_v33  ;;  %v1685_v31 = vshll.u32 %v414_v60, 16  ;;  %v16467_v25 = vcombine.low %v1654_v1, %v1664_v0  ;;  %v1672_v63 = vor.u32 %v1671_v56, %v1668_v37  ;;  %v15175_v2 = vld [vmem:[%s15807_s29 + $0xb8] sm:$0xf] }
 0x170   : > { %v16469_v17 = vcombine.low %v3991_v6, %v3994_v9  ;;  %v11106_v46 = vrot.slane %v15174_v30, 9  ;;  %v1682_v43 = vor.u32 %v1681_v62, %v1677_v28  ;;  %v3997_v4 = vrot.slane %v15175_v2, 5  ;;  %v15043_v2 = vld [vmem:[#allocation5 + $0x1a8] sm:$0xff]  }
 0x171   : > { %19109 = vst [vmem:[#allocation76_spill] sm:$0xff] %v16467_v25  ;;  %v1687_v61 = vrot.slane %v1685_v31, 5  ;;  %v4000_v40 = vrot.slane %v15176_v45, 5  ;;  %12667 = vmatmul.mubr.bf16.gmra.mrb[92].mxu1 %v16467_v25  ;;  %v1673_v33 = vrot.slane %v1672_v63, 4  ;;  %v1689_v35 = vshrl.u32 %v414_v60, 16  ;;  %13432 = vmatprep.subr.bf16.mxu0 %v15043_v2 }
 0x172   : > { %19110 = vst [vmem:[#allocation77_spill] sm:$0xff] %v16469_v17  ;;  %13323 = vmatmul.mubr.bf16.gmra.mrb[28].mxu0 %v16469_v17  ;;  %v1695_v6 = vshll.u32 %v415_v5, 16  ;;  %v1699_v52 = vshrl.u32 %v415_v5, 16  ;;  %v1683_v54 = vrot.slane %v1682_v43, 4  ;;  %v3998_v1 = vsel %vm16165_vm5, %v11106_v46, %v3997_v4  ;;  %v417_v31 = vld [vmem:[%s15807_s29 + $0x1f4] sm:$0xf] }
 0x173   : > { %v3999_v37 = vrot.slane %v3997_v4, 4  ;;  %v1705_v56 = vshll.u32 %v416_v22, 16  ;;  %v1678_v0 = vsel %vm15829_vm2, %v1673_v33, %v1677_v28  ;;  %v1691_v45 = vrot.slane %v1689_v35, 4  ;;  %v418_v46 = vld [vmem:[%s15807_s29 + $0x1f8] sm:$0xf]  ;;  %13433 = vmatpush3.bf16.msra.mxu0 %v15043_v2 }
 0x174   : > { %v1697_v9 = vrot.slane %v1695_v6, 5  ;;  %v1701_v62 = vrot.slane %v1699_v52, 4  ;;  %v1688_v60 = vsel %vm15829_vm2, %v1683_v54, %v1687_v61  ;;  %v4002_v30 = vrot.slane %v4000_v40, 4  ;;  %v15177_v33 = vld [vmem:[%s15807_s29 + $0xc0] sm:$0xf] }
 0x175   : > { %v4001_v5 = vsel %vm16165_vm5, %v3999_v37, %v4000_v40  ;;  %v1707_v63 = vrot.slane %v1705_v56, 5  ;;  %v16487_v4 = vcombine.low %v1678_v0, %v1688_v60  ;;  %v1692_v28 = vor.u32 %v1691_v45, %v1687_v61  ;;  %v15178_v6 = vld [vmem:[%s15807_s29 + $0xc4] sm:$0xf]  ;;  %v419_v56 = vld [vmem:[%s15807_s29 + $0x1fc] sm:$0xf] }
 0x176   : > { %v16489_v22 = vcombine.low %v3998_v1, %v4001_v5  ;;  %v1702_v43 = vor.u32 %v1701_v62, %v1697_v9  ;;  %v4003_v35 = vrot.slane %v15177_v33, 5  ;;  %v4006_v52 = vrot.slane %v15178_v6, 5  ;;  %v16798_v17 = vld [vmem:[%s15807_s29 + $0x134] sm:$0xf] }
 0x177   : > { %19111 = vst [vmem:[#allocation78_spill] sm:$0xff] %v16487_v4  ;;  %v1710_v25 = vshrl.u32 %v417_v31, 16  ;;  %v1713_v54 = vshll.u32 %v417_v31, 16  ;;  %12670 = vmatprep.mubr.bf16.mxu1 %v16487_v4  ;;  %v1693_v40 = vrot.slane %v1692_v28, 4  ;;  %v1719_v0 = vshll.u32 %v418_v46, 16 }
 0x178   : > { %19112 = vst [vmem:[#allocation79_spill] sm:$0xff] %v16489_v22  ;;  %13326 = vmatprep.mubr.bf16.mxu0 %v16489_v22  ;;  %v1703_v37 = vrot.slane %v1702_v43, 4  ;;  %v1723_v1 = vshrl.u32 %v418_v46, 16  ;;  %v4004_v61 = vsel %vm16165_vm5, %v4002_v30, %v4003_v35  ;;  %v4005_v45 = vrot.slane %v4003_v35, 4  ;;  %v420_v35 = vld [vmem:[%s15807_s29 + $0x200] sm:$0xf] }
 0x179   : > { %v1712_v62 = vrot.slane %v1710_v25, 4  ;;  %v1715_v60 = vrot.slane %v1713_v54, 5  ;;  %v1698_v31 = vsel %vm15829_vm2, %v1693_v40, %v1697_v9  ;;  %v1721_v28 = vrot.slane %v1719_v0, 5  ;;  %v15179_v9 = vld [vmem:[%s15807_s29 + $0xc8] sm:$0xf] }
 0x17a   : > { %v1708_v5 = vsel %vm15829_vm2, %v1703_v37, %v1707_v63  ;;  %v1725_v43 = vrot.slane %v1723_v1, 4  ;;  %v4007_v30 = vsel %vm16165_vm5, %v4005_v45, %v4006_v52  ;;  %v1729_v33 = vshll.u32 %v419_v56, 16  ;;  %v15180_v4 = vld [vmem:[%s15807_s29 + $0xcc] sm:$0xf]  ;;  %v421_v63 = vld [vmem:[%s15807_s29 + $0x204] sm:$0xf] }
 0x17b   : > { %v16502_v46 = vcombine.low %v1698_v31, %v1708_v5  ;;  %v1716_v25 = vor.u32 %v1715_v60, %v1712_v62  ;;  %v16507_v6 = vcombine.low %v4004_v61, %v4007_v30  ;;  %v11107_v40 = vrot.slane %v15179_v9, 9  ;;  %v15181_v0 = vld [vmem:[%s15807_s29 + $0xd0] sm:$0xf]  ;;  %v422_v30 = vld [vmem:[%s15807_s29 + $0x208] sm:$0xf] }
 0x17c   : > { %v1726_v54 = vor.u32 %v1725_v43, %v1721_v28  ;;  %v4010_v3 = vrot.slane %v15180_v4, 5  ;;  %v1731_v37 = vrot.slane %v1729_v33, 5  ;;  %v4013_v1 = vrot.slane %v15181_v0, 5 }
 0x17d   : > { %19113 = vst [vmem:[#allocation80_spill] sm:$0xff] %v16502_v46  ;;  %19114 = vst [vmem:[#allocation81_spill] sm:$0xff] %v16507_v6  ;;  %12671 = vmatmul.mubr.bf16.gmra.mrb[96].mxu1 %v16502_v46  ;;  %v1717_v2 = vrot.slane %v1716_v25, 4  ;;  %v1733_v52 = vshrl.u32 %v419_v56, 16  ;;  %13327 = vmatmul.mubr.bf16.gmra.mrb[32].mxu0 %v16507_v6  ;;  %v1739_v60 = vshll.u32 %v420_v35, 16  ;;  %v1743_v5 = vshrl.u32 %v420_v35, 16 }
 0x17e   : > { %v1727_v45 = vrot.slane %v1726_v54, 4  ;;  %v4011_v61 = vsel %vm16165_vm5, %v11107_v40, %v4010_v3  ;;  %v4012_v62 = vrot.slane %v4010_v3, 4  ;;  %v1749_v43 = vshll.u32 %v421_v63, 16  ;;  %v423_v3 = vld [vmem:[%s15807_s29 + $0x20c] sm:$0xf] }
 0x17f   : > { %v1722_v4 = vsel %vm15829_vm2, %v1717_v2, %v1721_v28  ;;  %v1735_v31 = vrot.slane %v1733_v52, 4  ;;  %v1741_v33 = vrot.slane %v1739_v60, 5  ;;  %v4015_v54 = vrot.slane %v4013_v1, 4  ;;  %v15182_v35 = vld [vmem:[%s15807_s29 + $0xd4] sm:$0xf]  ;;  %v19339_v14 = vld [vmem:[#allocation79_spill] sm:$0xff] }
 0x180   : > { %v1732_v56 = vsel %vm15829_vm2, %v1727_v45, %v1731_v37  ;;  %v4014_v25 = vsel %vm16165_vm5, %v4012_v62, %v4013_v1  ;;  %v1745_v2 = vrot.slane %v1743_v5, 4  ;;  %v1751_v0 = vrot.slane %v1749_v43, 5  ;;  %v15183_v52 = vld [vmem:[%s15807_s29 + $0xd8] sm:$0xf]  ;;  %v424_v62 = vld [vmem:[%s15807_s29 + $0x210] sm:$0xf] }
 0x181   : > { %v16525_v9 = vcombine.low %v1722_v4, %v1732_v56  ;;  %v16527_v40 = vcombine.low %v4011_v61, %v4014_v25  ;;  %v1736_v28 = vor.u32 %v1735_v31, %v1731_v37  ;;  %v4016_v63 = vrot.slane %v15182_v35, 5  ;;  %v16778_v6 = vld [vmem:[%s15807_s29 + $0x12c] sm:$0xf] }
 0x182   : > { %v4019_v46 = vrot.slane %v15183_v52, 5  ;;  %v1754_v48 = vshrl.u32 %v422_v30, 16  ;;  %v1746_v1 = vor.u32 %v1745_v2, %v1741_v33  ;;  %v1757_v60 = vshll.u32 %v422_v30, 16  ;;  %v15184_v52 = vld [vmem:[%s15807_s29 + $0xdc] sm:$0xf] }
 0x183   : > { %19115 = vst [vmem:[#allocation82_spill] sm:$0xff] %v16525_v9  ;;  %19116 = vst [vmem:[#allocation83_spill] sm:$0xff] %v16527_v40  ;;  %12674 = vmatprep.mubr.bf16.mxu1 %v16525_v9  ;;  %13330 = vmatprep.mubr.bf16.mxu0 %v16527_v40  ;;  %v1737_v45 = vrot.slane %v1736_v28, 4  ;;  %v1763_v4 = vshll.u32 %v423_v3, 16  ;;  %v4017_v37 = vsel %vm16165_vm5, %v4015_v54, %v4016_v63  ;;  %v4018_v61 = vrot.slane %v4016_v63, 4 }
 0x184   : > { %v1756_v31 = vrot.slane %v1754_v48, 4  ;;  %v1767_v5 = vshrl.u32 %v423_v3, 16  ;;  %v1747_v56 = vrot.slane %v1746_v1, 4  ;;  %v1759_v25 = vrot.slane %v1757_v60, 5  ;;  %v15185_v9 = vld [vmem:[%s15807_s29 + $0xe0] sm:$0xf] }
 0x185   : > { %v1742_v43 = vsel %vm15829_vm2, %v1737_v45, %v1741_v33  ;;  %v1765_v28 = vrot.slane %v1763_v4, 5  ;;  %v4020_v30 = vsel %vm16165_vm5, %v4018_v61, %v4019_v46  ;;  %v1773_v35 = vshll.u32 %v424_v62, 16  ;;  %v425_v33 = vld [vmem:[%s15807_s29 + $0x214] sm:$0xf]  ;;  %v426_v45 = vld [vmem:[%s15807_s29 + $0x218] sm:$0xf] }
 0x186   : > { %v1769_v2 = vrot.slane %v1767_v5, 4  ;;  %v11108_v54 = vrot.slane %v15184_v52, 9  ;;  %v1752_v48 = vsel %vm15829_vm2, %v1747_v56, %v1751_v0  ;;  %v16543_v63 = vcombine.low %v4017_v37, %v4020_v30 }
 0x187   : > { %v1760_v3 = vor.u32 %v1759_v25, %v1756_v31  ;;  %v4023_v16 = vrot.slane %v15185_v9, 5  ;;  %v16548_v1 = vcombine.low %v1742_v43, %v1752_v48  ;;  %v1775_v4 = vrot.slane %v1773_v35, 5  ;;  %v16565_v48 = vld [vmem:[%s15807_s29 + $0x220] sm:$0xf] }
 0x188   : > { %19117 = vst [vmem:[#allocation84_spill] sm:$0xff] %v16543_v63  ;;  %v1770_v60 = vor.u32 %v1769_v2, %v1765_v28  ;;  %v4026_v46 = vrot.slane %v15186_v59, 5  ;;  %13331 = vmatmul.mubr.bf16.gmra.mrb[36].mxu0 %v16543_v63  ;;  %v1777_v31 = vshrl.u32 %v424_v62, 16  ;;  %v1783_v5 = vshll.u32 %v425_v33, 16 }
 0x189   : > { %19118 = vst [vmem:[#allocation85_spill] sm:$0xff] %v16548_v1  ;;  %v1761_v61 = vrot.slane %v1760_v3, 4  ;;  %v4024_v0 = vsel %vm16165_vm5, %v11108_v54, %v4023_v16  ;;  %v4025_v37 = vrot.slane %v4023_v16, 4  ;;  %12675 = vmatmul.mubr.bf16.gmra.mrb[100].mxu1 %v16548_v1  ;;  %v1787_v43 = vshrl.u32 %v425_v33, 16  ;;  %v427_v16 = vld [vmem:[%s15807_s29 + $0x21c] sm:$0xf] }
 0x18a   : > { %v1771_v9 = vrot.slane %v1770_v60, 4  ;;  %v1793_v56 = vshll.u32 %v426_v45, 16  ;;  %v1779_v30 = vrot.slane %v1777_v31, 4  ;;  %v4028_v2 = vrot.slane %v4026_v46, 4  ;;  %v15187_v45 = vld [vmem:[%s15807_s29 + $0xe8] sm:$0xf] }
 0x18b   : > { %v1766_v25 = vsel %vm15829_vm2, %v1761_v61, %v1765_v28  ;;  %v4027_v59 = vsel %vm16165_vm5, %v4025_v37, %v4026_v46  ;;  %v1785_v52 = vrot.slane %v1783_v5, 5  ;;  %v1789_v54 = vrot.slane %v1787_v43, 4  ;;  %v15188_v61 = vld [vmem:[%s15807_s29 + $0xec] sm:$0xf]  ;;  %v16573_v31 = vld [vmem:[%s15807_s29 + $0x224] sm:$0xf] }
 0x18c   : > { %v1776_v62 = vsel %vm15829_vm2, %v1771_v9, %v1775_v4  ;;  %v16562_v35 = vcombine.low %v4024_v0, %v4027_v59  ;;  %v1780_v28 = vor.u32 %v1779_v30, %v1775_v4  ;;  %v1795_v33 = vrot.slane %v1793_v56, 5  ;;  %v15190_v1 = vld [vmem:[%s15807_s29 + $0xf4] sm:$0xf] }
 0x18d   : > { %v16567_v3 = vcombine.low %v1766_v25, %v1776_v62  ;;  %v4029_v60 = vrot.slane %v15187_v45, 5  ;;  %v1790_v46 = vor.u32 %v1789_v54, %v1785_v52  ;;  %v4032_v37 = vrot.slane %v15188_v61, 5 }
 0x18e   : > { %19119 = vst [vmem:[#allocation86_spill] sm:$0xff] %v16562_v35  ;;  %13334 = vmatprep.mubr.bf16.mxu0 %v16562_v35  ;;  %v1798_v9 = vshrl.u32 %v427_v16, 16  ;;  %v1801_v0 = vshll.u32 %v427_v16, 16  ;;  %v1781_v5 = vrot.slane %v1780_v28, 4  ;;  %v1807_v56 = vshll.u32 %v16565_v48, 16 }
 0x18f   : > { %19120 = vst [vmem:[#allocation87_spill] sm:$0xff] %v16567_v3  ;;  %12678 = vmatprep.mubr.bf16.mxu1 %v16567_v3  ;;  %v4030_v43 = vsel %vm16165_vm5, %v4028_v2, %v4029_v60  ;;  %v4031_v4 = vrot.slane %v4029_v60, 4  ;;  %v1791_v25 = vrot.slane %v1790_v46, 4  ;;  %v1811_v62 = vshrl.u32 %v16565_v48, 16  ;;  %v16757_v35 = vld [vmem:[%s15807_s29 + $0x124] sm:$0xf] }
 0x190   : > { %v1800_v59 = vrot.slane %v1798_v9, 4  ;;  %v1803_v30 = vrot.slane %v1801_v0, 5  ;;  %v1786_v16 = vsel %vm15829_vm2, %v1781_v5, %v1785_v52  ;;  %v1809_v28 = vrot.slane %v1807_v56, 5  ;;  %v16590_v9 = vld [vmem:[%s15807_s29 + $0x228] sm:$0xf] }
 0x191   : > { %v4033_v54 = vsel %vm16165_vm5, %v4031_v4, %v4032_v37  ;;  %v1817_v2 = vshll.u32 %v16573_v31, 16  ;;  %v1796_v45 = vsel %vm15829_vm2, %v1791_v25, %v1795_v33  ;;  %v1813_v61 = vrot.slane %v1811_v62, 4  ;;  %v15189_v52 = vld [vmem:[%s15807_s29 + $0xf0] sm:$0xf]  ;;  %v16597_v4 = vld [vmem:[%s15807_s29 + $0x22c] sm:$0xf] }
 0x192   : > { %v16587_v60 = vcombine.low %v4030_v43, %v4033_v54  ;;  %v1804_v46 = vor.u32 %v1803_v30, %v1800_v59  ;;  %v16592_v0 = vcombine.low %v1786_v16, %v1796_v45  ;;  %v11109_v5 = vrot.slane %v15189_v52, 9  ;;  %v15191_v43 = vld [vmem:[%s15807_s29 + $0xf8] sm:$0xf] }
 0x193   : > { %v1819_v3 = vrot.slane %v1817_v2, 5  ;;  %v4036_v37 = vrot.slane %v15190_v1, 5  ;;  %v1814_v33 = vor.u32 %v1813_v61, %v1809_v28  ;;  %v4039_v25 = vrot.slane %v15191_v43, 5  ;;  %v16611_v61 = vld [vmem:[%s15807_s29 + $0x230] sm:$0xf]  ;;  %v15053_v52 = vld [vmem:[#allocation5 + $0x1b0] sm:$0xff]  }
 0x194   : > { %19121 = vst [vmem:[#allocation88_spill] sm:$0xff] %v16587_v60  ;;  %19122 = vst [vmem:[#allocation89_spill] sm:$0xff] %v16592_v0  ;;  %13335 = vmatmul.mubr.bf16.gmra.mrb[40].mxu0 %v16587_v60  ;;  %v1805_v56 = vrot.slane %v1804_v46, 4  ;;  %v1821_v59 = vshrl.u32 %v16573_v31, 16  ;;  %12679 = vmatmul.mubr.bf16.gmra.mrb[104].mxu1 %v16592_v0  ;;  %v1827_v1 = vshll.u32 %v16590_v9, 16  ;;  %v1831_v16 = vshrl.u32 %v16590_v9, 16 }
 0x195   : > { %v4037_v30 = vsel %vm16165_vm5, %v11109_v5, %v4036_v37  ;;  %v4038_v62 = vrot.slane %v4036_v37, 4  ;;  %v1815_v2 = vrot.slane %v1814_v33, 4  ;;  %v1837_v46 = vshll.u32 %v16597_v4, 16  ;;  %13434 = vmatprep.subr.bf16.mxu0 %v15053_v52 }
 0x196   : > { %v1810_v54 = vsel %vm15829_vm2, %v1805_v56, %v1809_v28  ;;  %v1823_v45 = vrot.slane %v1821_v59, 4  ;;  %v1829_v37 = vrot.slane %v1827_v1, 5  ;;  %v1833_v43 = vrot.slane %v1831_v16, 4  ;;  %13435 = vmatpush3.bf16.msra.mxu0 %v15053_v52  ;;  %v16628_v16 = vld [vmem:[%s15807_s29 + $0x238] sm:$0xf] }
 0x197   : > { %v4040_v5 = vsel %vm16165_vm5, %v4038_v62, %v4039_v25  ;;  %v4041_v0 = vrot.slane %v4039_v25, 4  ;;  %v1820_v28 = vsel %vm15829_vm2, %v1815_v2, %v1819_v3  ;;  %v1839_v59 = vrot.slane %v1837_v46, 5  ;;  %v15193_v62 = vld [vmem:[%s15807_s29 + $0x100] sm:$0xf] }
 0x198   : > { %v16620_v56 = vcombine.low %v4037_v30, %v4040_v5  ;;  %v1824_v33 = vor.u32 %v1823_v45, %v1819_v3  ;;  %v16622_v7 = vcombine.low %v1810_v54, %v1820_v28  ;;  %v1834_v42 = vor.u32 %v1833_v43, %v1829_v37 }
 0x199   : > { %v4045_v1 = vrot.slane %v15193_v62, 5  ;;  %v1842_v2 = vshrl.u32 %v16611_v61, 16  ;;  %v1845_v3 = vshll.u32 %v16611_v61, 16  ;;  %v1851_v30 = vshll.u32 %v16616_v32, 16 }
 0x19a   : > { %19123 = vst [vmem:[#allocation90_spill] sm:$0xff] %v16620_v56  ;;  %19124 = vst [vmem:[#allocation91_spill] sm:$0xff] %v16622_v7  ;;  %13338 = vmatprep.mubr.bf16.mxu0 %v16620_v56  ;;  %v1825_v25 = vrot.slane %v1824_v33, 4  ;;  %12682 = vmatprep.mubr.bf16.mxu1 %v16622_v7  ;;  %v1835_v54 = vrot.slane %v1834_v42, 4  ;;  %v4043_v27 = vsel %vm16165_vm5, %v4041_v0, %v4042_v57  ;;  %v4044_v45 = vrot.slane %v4042_v57, 4 }
 0x19b   : > { %v1855_v46 = vshrl.u32 %v16616_v32, 16  ;;  %v1844_v5 = vrot.slane %v1842_v2, 4  ;;  %v1847_v43 = vrot.slane %v1845_v3, 5  ;;  %v1853_v28 = vrot.slane %v1851_v30, 5  ;;  %v16645_v0 = vld [vmem:[%s15807_s29 + $0x23c] sm:$0xf] }
 0x19c   : > { %v1830_v52 = vsel %vm15829_vm2, %v1825_v25, %v1829_v37  ;;  %v1840_v33 = vsel %vm15829_vm2, %v1835_v54, %v1839_v59  ;;  %v4046_v42 = vsel %vm16165_vm5, %v4044_v45, %v4045_v1  ;;  %v1861_v57 = vshll.u32 %v16628_v16, 16  ;;  %v16652_v25 = vld [vmem:[%s15807_s29 + $0x104] sm:$0xf]  ;;  %v16656_v3 = vld [vmem:[%s15807_s29 + $0x240] sm:$0xf] }
 0x19d   : > { %v1857_v62 = vrot.slane %v1855_v46, 4  ;;  %v16647_v7 = vcombine.low %v1830_v52, %v1840_v33  ;;  %v16649_v41 = vcombine.low %v4043_v27, %v4046_v42  ;;  %v1848_v37 = vor.u32 %v1847_v43, %v1844_v5  ;;  %v16659_v54 = vld [vmem:[%s15807_s29 + $0x108] sm:$0xf]  ;;  %v15196_v45 = vld [vmem:[%s15807_s29 + $0x10c] sm:$0xf] }
 0x19e   : > { %v11110_v2 = vrot.slane %v16652_v25, 9  ;;  %v1863_v30 = vrot.slane %v1861_v57, 5  ;;  %v4049_v1 = vrot.slane %v16659_v54, 5  ;;  %v4052_v46 = vrot.slane %v15196_v45, 5 }
 0x19f   : > { %19125 = vst [vmem:[#allocation92_spill] sm:$0xff] %v16647_v7  ;;  %19126 = vst [vmem:[#allocation93_spill] sm:$0xff] %v16649_v41  ;;  %v1858_v59 = vor.u32 %v1857_v62, %v1853_v28  ;;  %12683 = vmatmul.mubr.bf16.gmra.mrb[108].mxu1 %v16647_v7  ;;  %13339 = vmatmul.mubr.bf16.gmra.mrb[44].mxu0 %v16649_v41  ;;  %v1849_v27 = vrot.slane %v1848_v37, 4  ;;  %v1865_v52 = vshrl.u32 %v16628_v16, 16  ;;  %v1871_v5 = vshll.u32 %v16645_v0, 16 }
 0x1a0   : > { %v1875_v43 = vshrl.u32 %v16645_v0, 16  ;;  %v4050_v42 = vsel %vm16165_vm5, %v11110_v2, %v4049_v1  ;;  %v4051_v62 = vrot.slane %v4049_v1, 4  ;;  %v1881_v57 = vshll.u32 %v16656_v3, 16  ;;  %v16750_v41 = vld [vmem:[%s15807_s29 + $0x25c] sm:$0xf] }
 0x1a1   : > { %v1859_v33 = vrot.slane %v1858_v59, 4  ;;  %v1854_v45 = vsel %vm15829_vm2, %v1849_v27, %v1853_v28  ;;  %v1867_v37 = vrot.slane %v1865_v52, 4  ;;  %v1873_v7 = vrot.slane %v1871_v5, 5  ;;  %v16688_v5 = vld [vmem:[%s15807_s29 + $0x110] sm:$0xf] }
 0x1a2   : > { %v1877_v10 = vrot.slane %v1875_v43, 4  ;;  %v4053_v59 = vsel %vm16165_vm5, %v4051_v62, %v4052_v46  ;;  %v1883_v2 = vrot.slane %v1881_v57, 5  ;;  %v4054_v1 = vrot.slane %v4052_v46, 4 }
 0x1a3   : > { %v1864_v36 = vsel %vm15829_vm2, %v1859_v33, %v1863_v30  ;;  %v16685_v28 = vcombine.low %v4050_v42, %v4053_v59  ;;  %v1868_v27 = vor.u32 %v1867_v37, %v1863_v30  ;;  %v4055_v43 = vrot.slane %v16688_v5, 5  ;;  %v16697_v42 = vld [vmem:[%s15807_s29 + $0x24c] sm:$0xf] }
 0x1a4   : > { %v16683_v50 = vcombine.low %v1854_v45, %v1864_v36  ;;  %v1878_v52 = vor.u32 %v1877_v10, %v1873_v7  ;;  %v4058_v33 = vrot.slane %v15198_v39, 5  ;;  %v1889_v62 = vshll.u32 %v16674_v58, 16 }
 0x1a5   : > { %19128 = vst [vmem:[#allocation95_spill] sm:$0xff] %v16685_v28  ;;  %13342 = vmatprep.mubr.bf16.mxu0 %v16685_v28  ;;  %v1869_v36 = vrot.slane %v1868_v27, 4  ;;  %v1895_v10 = vshll.u32 %v16681_v15, 16  ;;  %v1899_v30 = vshrl.u32 %v16681_v15, 16  ;;  %v4056_v39 = vsel %vm16165_vm5, %v4054_v1, %v4055_v43  ;;  %v16743_v28 = vld [vmem:[%s15807_s29 + $0x258] sm:$0xf] }
 0x1a6   : > { %19127 = vst [vmem:[#allocation94_spill] sm:$0xff] %v16683_v50  ;;  %12686 = vmatprep.mubr.bf16.mxu1 %v16683_v50  ;;  %v1879_v46 = vrot.slane %v1878_v52, 4  ;;  %v4057_v57 = vrot.slane %v4055_v43, 4  ;;  %v1888_v45 = vrot.slane %v1886_v8, 4  ;;  %v1891_v37 = vrot.slane %v1889_v62, 5 }
 0x1a7   : > { %v1874_v59 = vsel %vm15829_vm2, %v1869_v36, %v1873_v7  ;;  %v1897_v52 = vrot.slane %v1895_v10, 5  ;;  %v1901_v50 = vrot.slane %v1899_v30, 4  ;;  %v1905_v43 = vshll.u32 %v16697_v42, 16  ;;  %v16713_v8 = vld [vmem:[%s15807_s29 + $0x250] sm:$0xf] }
 0x1a8   : > { %v1884_v27 = vsel %vm15829_vm2, %v1879_v46, %v1883_v2  ;;  %v4059_v29 = vsel %vm16165_vm5, %v4057_v57, %v4058_v33  ;;  %v1892_v1 = vor.u32 %v1891_v37, %v1888_v45  ;;  %v16718_v7 = vld [vmem:[%s15807_s29 + $0x118] sm:$0xf]  ;;  %v16722_v36 = vld [vmem:[%s15807_s29 + $0x11c] sm:$0xf]  ;;  %v16726_v10 = vld [vmem:[%s15807_s29 + $0x254] sm:$0xf] }
 0x1a9   : > { %v16707_v55 = vcombine.low %v1874_v59, %v1884_v27  ;;  %v16715_v62 = vcombine.low %v4056_v39, %v4059_v29  ;;  %v1902_v12 = vor.u32 %v1901_v50, %v1897_v52  ;;  %v11111_v2 = vrot.slane %v16718_v7, 9  ;;  %v16730_v57 = vld [vmem:[%s15807_s29 + $0x120] sm:$0xf] }
 0x1aa   : > { %v4062_v46 = vrot.slane %v16722_v36, 5  ;;  %v1893_v33 = vrot.slane %v1892_v1, 4  ;;  %v1907_v30 = vrot.slane %v1905_v43, 5  ;;  %v4065_v29 = vrot.slane %v16730_v57, 5 }
 0x1ab   : > { %19129 = vst [vmem:[#allocation96_spill] sm:$0xff] %v16707_v55  ;;  %19130 = vst [vmem:[#allocation97_spill] sm:$0xff] %v16715_v62  ;;  %12687 = vmatmul.mubr.bf16.gmra.mrb[112].mxu1 %v16707_v55  ;;  %v1909_v50 = vshrl.u32 %v16697_v42, 16  ;;  %13343 = vmatmul.mubr.bf16.gmra.mrb[48].mxu0 %v16715_v62  ;;  %v1903_v39 = vrot.slane %v1902_v12, 4  ;;  %v1915_v59 = vshll.u32 %v16713_v8, 16  ;;  %v1919_v43 = vshrl.u32 %v16713_v8, 16 }
 0x1ac   : > { %v4063_v45 = vsel %vm16165_vm5, %v11111_v2, %v4062_v46  ;;  %v4064_v37 = vrot.slane %v4062_v46, 4  ;;  %v1898_v27 = vsel %vm15829_vm2, %v1893_v33, %v1897_v52  ;;  %v1925_v55 = vshll.u32 %v16726_v10, 16 }
 0x1ad   : > { %v1911_v1 = vrot.slane %v1909_v50, 4  ;;  %v1908_v12 = vsel %vm15829_vm2, %v1903_v39, %v1907_v30  ;;  %v1917_v46 = vrot.slane %v1915_v59, 5  ;;  %v4067_v62 = vrot.slane %v4065_v29, 4  ;;  %v15203_v39 = vld [vmem:[%s15807_s29 + $0x128] sm:$0xf] }
 0x1ae   : > { %v4066_v2 = vsel %vm16165_vm5, %v4064_v37, %v4065_v29  ;;  %v16752_v52 = vcombine.low %v1898_v27, %v1908_v12  ;;  %v1921_v56 = vrot.slane %v1919_v43, 4  ;;  %v1927_v60 = vrot.slane %v1925_v55, 5 }
 0x1af   : > { %v16754_v33 = vcombine.low %v4063_v45, %v4066_v2  ;;  %v1912_v50 = vor.u32 %v1911_v1, %v1907_v30  ;;  %v4068_v63 = vrot.slane %v16757_v35, 5  ;;  %v4071_v40 = vrot.slane %v15203_v39, 5  ;;  %v16765_v45 = vld [vmem:[%s15807_s29 + $0x260] sm:$0xf] }
 0x1b0   : > { %19131 = vst [vmem:[#allocation98_spill] sm:$0xff] %v16752_v52  ;;  %v1930_v37 = vshrl.u32 %v16743_v28, 16  ;;  %12690 = vmatprep.mubr.bf16.mxu1 %v16752_v52  ;;  %v1922_v59 = vor.u32 %v1921_v56, %v1917_v46  ;;  %v1933_v30 = vshll.u32 %v16743_v28, 16  ;;  %v1939_v55 = vshll.u32 %v16750_v41, 16 }
 0x1b1   : > { %19132 = vst [vmem:[#allocation99_spill] sm:$0xff] %v16754_v33  ;;  %13346 = vmatprep.mubr.bf16.mxu0 %v16754_v33  ;;  %v1913_v29 = vrot.slane %v1912_v50, 4  ;;  %v4069_v27 = vsel %vm16165_vm5, %v4067_v62, %v4068_v63  ;;  %v4070_v1 = vrot.slane %v4068_v63, 4  ;;  %v1943_v12 = vshrl.u32 %v16750_v41, 16 }
 0x1b2   : > { %v1932_v43 = vrot.slane %v1930_v37, 4  ;;  %v1923_v56 = vrot.slane %v1922_v59, 4  ;;  %v1935_v50 = vrot.slane %v1933_v30, 5  ;;  %v1941_v39 = vrot.slane %v1939_v55, 5  ;;  %v16790_v30 = vld [vmem:[%s15807_s29 + $0x264] sm:$0xf] }
 0x1b3   : > { %v1918_v2 = vsel %vm15829_vm2, %v1913_v29, %v1917_v46  ;;  %v4072_v52 = vsel %vm16165_vm5, %v4070_v1, %v4071_v40  ;;  %v1945_v33 = vrot.slane %v1943_v12, 4  ;;  %v1949_v62 = vshll.u32 %v16765_v45, 16  ;;  %v16786_v29 = vld [vmem:[%s15807_s29 + $0x130] sm:$0xf]  ;;  %v16793_v40 = vld [vmem:[%s15807_s29 + $0x268] sm:$0xf] }
 0x1b4   : > { %v11112_v63 = vrot.slane %v16778_v6, 9  ;;  %v1928_v37 = vsel %vm15829_vm2, %v1923_v56, %v1927_v60  ;;  %v16783_v22 = vcombine.low %v4069_v27, %v4072_v52  ;;  %v1936_v46 = vor.u32 %v1935_v50, %v1932_v43  ;;  %v15063_v60 = vld [vmem:[#allocation5 + $0x1b8] sm:$0xff]  }
 0x1b5   : > { %v4075_v59 = vrot.slane %v16786_v29, 5  ;;  %v16795_v55 = vcombine.low %v1918_v2, %v1928_v37  ;;  %v1946_v1 = vor.u32 %v1945_v33, %v1941_v39  ;;  %v1951_v12 = vrot.slane %v1949_v62, 5  ;;  %13436 = vmatprep.subr.bf16.mxu0 %v15063_v60 }
 0x1b6   : > { %19133 = vst [vmem:[#allocation100_spill] sm:$0xff] %v16783_v22  ;;  %v4078_v18 = vrot.slane %v16798_v17, 5  ;;  %13347 = vmatmul.mubr.bf16.gmra.mrb[52].mxu0 %v16783_v22  ;;  %v1937_v52 = vrot.slane %v1936_v46, 4  ;;  %v1953_v56 = vshrl.u32 %v16765_v45, 16  ;;  %v1959_v2 = vshll.u32 %v16790_v30, 16 }
 0x1b7   : > { %19134 = vst [vmem:[#allocation101_spill] sm:$0xff] %v16795_v55  ;;  %v4076_v27 = vsel %vm16165_vm5, %v11112_v63, %v4075_v59  ;;  %v4077_v43 = vrot.slane %v4075_v59, 4  ;;  %12691 = vmatmul.mubr.bf16.gmra.mrb[116].mxu1 %v16795_v55  ;;  %v1947_v33 = vrot.slane %v1946_v1, 4  ;;  %v1963_v50 = vshrl.u32 %v16790_v30, 16  ;;  %v16814_v55 = vld [vmem:[%s15807_s29 + $0x26c] sm:$0xf]  ;;  %13437 = vmatpush3.bf16.msra.mxu0 %v15063_v60 }
 0x1b8   : > { %v1969_v62 = vshll.u32 %v16793_v40, 16  ;;  %v1942_v37 = vsel %vm15829_vm2, %v1937_v52, %v1941_v39  ;;  %v1955_v46 = vrot.slane %v1953_v56, 4  ;;  %v4080_v59 = vrot.slane %v4078_v18, 4  ;;  %v16826_v56 = vld [vmem:[%s15807_s29 + $0x138] sm:$0xf] }
 0x1b9   : > { %v4079_v63 = vsel %vm16165_vm5, %v4077_v43, %v4078_v18  ;;  %v1952_v1 = vsel %vm15829_vm2, %v1947_v33, %v1951_v12  ;;  %v1961_v21 = vrot.slane %v1959_v2, 5  ;;  %v1965_v26 = vrot.slane %v1963_v50, 4  ;;  %v16832_v33 = vld [vmem:[%s15807_s29 + $0x274] sm:$0xf] }
 0x1ba   : > { %v16818_v22 = vcombine.low %v4076_v27, %v4079_v63  ;;  %v16823_v39 = vcombine.low %v1942_v37, %v1952_v1  ;;  %v1956_v52 = vor.u32 %v1955_v46, %v1951_v12  ;;  %v1971_v43 = vrot.slane %v1969_v62, 5 }
 0x1bb   : > { %v4081_v18 = vrot.slane %v16826_v56, 5  ;;  %v1966_v60 = vor.u32 %v1965_v26, %v1961_v21  ;;  %v4084_v51 = vrot.slane %v15208_v53, 5  ;;  %v1974_v27 = vshrl.u32 %v16814_v55, 16 }
 0x1bc   : > { %19135 = vst [vmem:[#allocation102_spill] sm:$0xff] %v16818_v22  ;;  %19136 = vst [vmem:[#allocation103_spill] sm:$0xff] %v16823_v39  ;;  %13350 = vmatprep.mubr.bf16.mxu0 %v16818_v22  ;;  %v1977_v2 = vshll.u32 %v16814_v55, 16  ;;  %12694 = vmatprep.mubr.bf16.mxu1 %v16823_v39  ;;  %v1957_v50 = vrot.slane %v1956_v52, 4  ;;  %v1983_v37 = vshll.u32 %v16821_v47, 16  ;;  %v1987_v46 = vshrl.u32 %v16821_v47, 16 }
 0x1bd   : > { %v4082_v12 = vsel %vm16165_vm5, %v4080_v59, %v4081_v18  ;;  %v4083_v62 = vrot.slane %v4081_v18, 4  ;;  %v1967_v26 = vrot.slane %v1966_v60, 4  ;;  %v1976_v63 = vrot.slane %v1974_v27, 4  ;;  %v16851_v22 = vld [vmem:[%s15807_s29 + $0x278] sm:$0xf] }
 0x1be   : > { %v1979_v53 = vrot.slane %v1977_v2, 5  ;;  %v1962_v1 = vsel %vm15829_vm2, %v1957_v50, %v1961_v21  ;;  %v1985_v39 = vrot.slane %v1983_v37, 5  ;;  %v1993_v59 = vshll.u32 %v16832_v33, 16  ;;  %v16856_v21 = vld [vmem:[%s15807_s29 + $0x140] sm:$0xf] }
 0x1bf   : > { %v4085_v52 = vsel %vm16165_vm5, %v4083_v62, %v4084_v51  ;;  %v1972_v18 = vsel %vm15829_vm2, %v1967_v26, %v1971_v43  ;;  %v1989_v2 = vrot.slane %v1987_v46, 4  ;;  %v11113_v51 = vrot.slane %v16856_v21, 9  ;;  %v16860_v50 = vld [vmem:[%s15807_s29 + $0x144] sm:$0xf]  ;;  %v16864_v37 = vld [vmem:[%s15807_s29 + $0x27c] sm:$0xf] }
 0x1c0   : > { %v16848_v60 = vcombine.low %v4082_v12, %v4085_v52  ;;  %v1980_v27 = vor.u32 %v1979_v53, %v1976_v63  ;;  %v16853_v23 = vcombine.low %v1962_v1, %v1972_v18  ;;  %v1995_v49 = vrot.slane %v1993_v59, 5  ;;  %v16868_v26 = vld [vmem:[%s15807_s29 + $0x148] sm:$0xf] }
 0x1c1   : > { %v4088_v62 = vrot.slane %v16860_v50, 5  ;;  %v1990_v12 = vor.u32 %v1989_v2, %v1985_v39  ;;  %v4091_v63 = vrot.slane %v16868_v26, 5  ;;  %v1997_v53 = vshrl.u32 %v16832_v33, 16 }
 0x1c2   : > { %19137 = vst [vmem:[#allocation104_spill] sm:$0xff] %v16848_v60  ;;  %19138 = vst [vmem:[#allocation105_spill] sm:$0xff] %v16853_v23  ;;  %13351 = vmatmul.mubr.bf16.gmra.mrb[56].mxu0 %v16848_v60  ;;  %v1981_v43 = vrot.slane %v1980_v27, 4  ;;  %12695 = vmatmul.mubr.bf16.gmra.mrb[120].mxu1 %v16853_v23  ;;  %v2003_v52 = vshll.u32 %v16851_v22, 16  ;;  %v2007_v59 = vshrl.u32 %v16851_v22, 16  ;;  %v2013_v60 = vshll.u32 %v16864_v37, 16 }
 0x1c3   : > { %v4089_v46 = vsel %vm16165_vm5, %v11113_v51, %v4088_v62  ;;  %v4090_v1 = vrot.slane %v4088_v62, 4  ;;  %v1991_v27 = vrot.slane %v1990_v12, 4  ;;  %v1999_v2 = vrot.slane %v1997_v53, 4  ;;  %v16889_v53 = vld [vmem:[%s15807_s29 + $0x14c] sm:$0xf] }
 0x1c4   : > { %v1986_v18 = vsel %vm15829_vm2, %v1981_v43, %v1985_v39  ;;  %v2005_v34 = vrot.slane %v2003_v52, 5  ;;  %v2009_v51 = vrot.slane %v2007_v59, 4  ;;  %v4093_v62 = vrot.slane %v4091_v63, 4  ;;  %v15213_v52 = vld [vmem:[%s15807_s29 + $0x150] sm:$0xf] }
 0x1c5   : > { %v4092_v23 = vsel %vm16165_vm5, %v4090_v1, %v4091_v63  ;;  %v1996_v19 = vsel %vm15829_vm2, %v1991_v27, %v1995_v49  ;;  %v2000_v24 = vor.u32 %v1999_v2, %v1995_v49  ;;  %v2015_v39 = vrot.slane %v2013_v60, 5  ;;  %v16895_v27 = vld [vmem:[%s15807_s29 + $0x154] sm:$0xf]  ;;  %v16906_v2 = vld [vmem:[%s15807_s29 + $0x15c] sm:$0xf] }
 0x1c6   : > { %v16884_v44 = vcombine.low %v4089_v46, %v4092_v23  ;;  %v16886_v43 = vcombine.low %v1986_v18, %v1996_v19  ;;  %v2010_v12 = vor.u32 %v2009_v51, %v2005_v34  ;;  %v4094_v1 = vrot.slane %v16889_v53, 5  ;;  %19141 = vst [vmem:[#allocation108_spill] sm:$0xff] %v16895_v27  ;;  %v16899_v23 = vld [vmem:[%s15807_s29 + $0x158] sm:$0xf]  ;;  %19143 = vst [vmem:[#allocation110_spill] sm:$0xff] %v16906_v2 }
 0x1c7   : > { %v4097_v59 = vrot.slane %v15213_v52, 5  ;;  %v2001_v63 = vrot.slane %v2000_v24, 4  ;;  %v11114_v49 = vrot.slane %v16895_v27, 9  ;;  %19142 = vst [vmem:[#allocation109_spill] sm:$0xff] %v16899_v23  ;;  %v4101_v19 = vrot.slane %v16899_v23, 5 }
 0x1c8   : > { %19139 = vst [vmem:[#allocation106_spill] sm:$0xff] %v16884_v44  ;;  %19140 = vst [vmem:[#allocation107_spill] sm:$0xff] %v16886_v43  ;;  %13354 = vmatprep.mubr.bf16.mxu0 %v16884_v44  ;;  %12698 = vmatprep.mubr.bf16.mxu1 %v16886_v43  ;;  %v2011_v60 = vrot.slane %v2010_v12, 4  ;;  %v4095_v46 = vsel %vm16165_vm5, %v4093_v62, %v4094_v1  ;;  %v4096_v18 = vrot.slane %v4094_v1, 4  ;;  %v4104_v24 = vrot.slane %v16906_v2, 5 }
 0x1c9   : > { %v2006_v51 = vsel %vm15829_vm2, %v2001_v63, %v2005_v34  ;;  %v16912_v52 = vld [vmem:[%s15807_s29] sm:$0xf]  ;;  %v16915_v44 = vld [vmem:[%s15807_s29 + $0x4] sm:$0xf]  ;;  %v4102_v12 = vsel %vm16165_vm5, %v11114_v49, %v4101_v19  ;;  %v4103_v62 = vrot.slane %v4101_v19, 4 }
 0x1ca   : > { %19144 = vst [vmem:[#allocation111_spill] sm:$0xff] %v16912_v52  ;;  %19145 = vst [vmem:[#allocation112_spill] sm:$0xff] %v16915_v44  ;;  %v11025_v43 = vcombine.low %v16912_v52, %v16915_v44  ;;  %v2016_v1 = vsel %vm15829_vm2, %v2011_v60, %v2015_v39  ;;  %v4098_v11 = vsel %vm16165_vm5, %v4096_v18, %v4097_v59  ;;  %v4106_v34 = vrot.slane %v4104_v24, 4  ;;  %v16926_v63 = vld [vmem:[%s15807_s29 + $0x160] sm:$0xf] }
 0x1cb   : > { %19146 = vst [vmem:[#allocation113_spill] sm:$0xff] %v16926_v63  ;;  %v4107_v20 = vrot.slane %v16926_v63, 5  ;;  %v16929_v13 = vcombine.low %v2006_v51, %v2016_v1  ;;  %v16931_v52 = vcombine.low %v4095_v46, %v4098_v11  ;;  %v4105_v49 = vsel %vm16165_vm5, %v4103_v62, %v4104_v24  ;;  %v15220_v19 = vld [vmem:[%s15807_s29 + $0x164] sm:$0xf]  ;;  %v16941_v59 = vld [vmem:[%s15807_s29 + $0x168] sm:$0xf] }
 0x1cc   : > { %v4110_v39 = vrot.slane %v15220_v19, 5  ;;  %v16936_v60 = vcombine.low %v4102_v12, %v4105_v49  ;;  %19150 = vst [vmem:[#allocation117_spill] sm:$0xff] %v16941_v59  ;;  %v11115_v11 = vrot.slane %v16941_v59, 9  ;;  %v16945_v46 = vld [vmem:[%s15807_s29 + $0x16c] sm:$0xf] }
 0x1cd   : > { %19147 = vst [vmem:[#allocation114_spill] sm:$0xff] %v16929_v13  ;;  %19148 = vst [vmem:[#allocation115_spill] sm:$0xff] %v16931_v52  ;;  %v4109_v38 = vrot.slane %v4107_v20, 4  ;;  %12699 = vmatmul.mubr.bf16.gmra.mrb[124].mxu1 %v16929_v13  ;;  %13355 = vmatmul.mubr.bf16.gmra.mrb[60].mxu0 %v16931_v52  ;;  %v4114_v18 = vrot.slane %v16945_v46, 5  ;;  %v16949_v24 = vld [vmem:[%s15807_s29 + $0x170] sm:$0xf]  ;;  %v4108_v12 = vsel %vm16165_vm5, %v4106_v34, %v4107_v20 }
 0x1ce   : > { %19149 = vst [vmem:[#allocation116_spill] sm:$0xff] %v16936_v60  ;;  %19151 = vst [vmem:[#allocation118_spill] sm:$0xff] %v16945_v46  ;;  %v4117_v51 = vrot.slane %v16949_v24, 5  ;;  %12718 = vmatprep.mubr.bf16.mxu1 %v11025_v43  ;;  %13358 = vmatprep.mubr.bf16.mxu0 %v16936_v60  ;;  %v16958_v1 = vld [vmem:[%s15807_s29 + $0x174] sm:$0xf] }
 0x1cf   : > { %19152 = vst [vmem:[#allocation119_spill] sm:$0xff] %v16949_v24  ;;  %v4111_v62 = vsel %vm16165_vm5, %v4109_v38, %v4110_v39  ;;  %19153 = vst [vmem:[#allocation120_spill] sm:$0xff] %v16958_v1  ;;  %v4120_v49 = vrot.slane %v16958_v1, 5  ;;  %v4116_v19 = vrot.slane %v4114_v18, 4  ;;  %v4115_v13 = vsel %vm16165_vm5, %v11115_v11, %v4114_v18  ;;  %v16964_v43 = vld [vmem:[%s15807_s29 + $0x180] sm:$0xf] }
 0x1d0   : > { %19154 = vst [vmem:[#allocation121_spill] sm:$0xff] %v16964_v43  ;;  %v4127_v60 = vrot.slane %v16964_v43, 5  ;;  %v16968_v52 = vld [vmem:[%s15807_s29 + $0x8] sm:$0xf]  ;;  %v16971_v20 = vld [vmem:[%s15807_s29 + $0xc] sm:$0xf]  ;;  %v16975_v34 = vcombine.low %v4108_v12, %v4111_v62 }
 0x1d1   : > { %19155 = vst [vmem:[#allocation122_spill] sm:$0xff] %v16968_v52  ;;  %19156 = vst [vmem:[#allocation123_spill] sm:$0xff] %v16971_v20  ;;  %v11026_v38 = vcombine.low %v16968_v52, %v16971_v20  ;;  %v4118_v39 = vsel %vm16165_vm5, %v4116_v19, %v4117_v51  ;;  %v15228_v44 = vld [vmem:[%s15807_s29 + $0x14] sm:$0xf]  ;;  %v15229_v11 = vld [vmem:[%s15807_s29 + $0x18] sm:$0xf] }
 0x1d2   : > { %19157 = vst [vmem:[#allocation124_spill] sm:$0xff] %v16975_v34  ;;  %v16981_v18 = vcombine.low %v15228_v44, %v15229_v11  ;;  %v4119_v24 = vrot.slane %v4117_v51, 4  ;;  %v4122_v1 = vrot.slane %v4120_v49, 4  ;;  %v15230_v43 = vld [vmem:[%s15807_s29 + $0x178] sm:$0xf]  ;;  %v16984_v46 = vcombine.low %v4115_v13, %v4118_v39  ;;  %v16995_v44 = vld [vmem:[#allocation5 + $0x1c0] sm:$0xff]  }
 0x1d3   : > { %v4123_v59 = vrot.slane %v15230_v43, 5  ;;  %v16987_v2 = vld [vmem:[%s15807_s29 + $0x17c] sm:$0xf]  ;;  %v4129_v12 = vrot.slane %v4127_v60, 4  ;;  %v16991_v62 = vld [vmem:[%s15807_s29 + $0x184] sm:$0xf]  ;;  %13566 = vmatprep.subr.bf16.mxu0 %v16995_v44 }
 0x1d4   : > { %19158 = vst [vmem:[#allocation125_spill] sm:$0xff] %v16981_v18  ;;  %19159 = vst [vmem:[#allocation126_spill] sm:$0xff] %v16984_v46  ;;  %v11116_v20 = vrot.slane %v16987_v2, 9  ;;  %v4130_v19 = vrot.slane %v16991_v62, 5  ;;  %v15042_v52 = vld [vmem:[#allocation5 + $0x88] sm:$0xff]   ;;  %v15233_v51 = vld [vmem:[#allocation5 + $0x80] sm:$0xff]   ;;  %v4121_v13 = vsel %vm16165_vm5, %v4119_v24, %v4120_v49 }
 0x1d5   : > { %19160 = vst [vmem:[#allocation127_spill] sm:$0xff] %v16987_v2  ;;  %19161 = vst [vmem:[#allocation128_spill] sm:$0xff] %v16991_v62  ;;  %12719 = vmatmul.mubr.bf16.vlgmr.msra.gmra.mrb[0].mxu1 %v11026_v38  ;;  %13359 = vmatmul.mubr.bf16.gmra.mrb[64].mxu0 %v16975_v34  ;;  %v4124_v43 = vsel %vm16165_vm5, %v4122_v1, %v4123_v59  ;;  %v17003_v39 = vld [vmem:[%s15807_s29 + $0x188] sm:$0xf]  ;;  %v15052_v59 = vld [vmem:[#allocation5 + $0x90] sm:$0xff]  }
 0x1d6   : > { %19162 = vst [vmem:[#allocation129_spill] sm:$0xff] %v16995_v44  ;;  %12847 = vmatpush3.bf16.msra.mxu1 %v15233_v51  ;;  %12722 = vmatprep.mubr.bf16.mxu1 %v16981_v18  ;;  %19163 = vst [vmem:[#allocation130_spill] sm:$0xff] %v17003_v39  ;;  %v4133_v38 = vrot.slane %v17003_v39, 5  ;;  %v4128_v11 = vsel %vm16165_vm5, %v11116_v20, %v4127_v60  ;;  %v4131_v51 = vsel %vm16165_vm5, %v4129_v12, %v4130_v19  ;;  %v17012_v18 = vld [vmem:[%s15807_s29 + $0x194] sm:$0xf] }
 0x1d7   : > { %13362 = vmatprep.mubr.bf16.mxu0 %v16984_v46  ;;  %19164 = vst [vmem:[#allocation131_spill] sm:$0xff] %v17012_v18  ;;  %v4140_v24 = vrot.slane %v17012_v18, 5  ;;  %12848 = vmatprep.subr.bf16.mxu1 %v15042_v52  ;;  %v15236_v1 = vld [vmem:[%s15807_s29 + $0x1c] sm:$0xf]  ;;  %v15237_v49 = vld [vmem:[%s15807_s29 + $0x20] sm:$0xf]  ;;  %v17020_v34 = vcombine.low %v4121_v13, %v4124_v43  ;;  %v17026_v62 = vcombine.low %v4128_v11, %v4131_v51 }
 0x1d8   : > { %v17018_v46 = vcombine.low %v15236_v1, %v15237_v49  ;;  %v15238_v60 = vld [vmem:[%s15807_s29 + $0x28] sm:$0xf]  ;;  %v15239_v20 = vld [vmem:[%s15807_s29 + $0x2c] sm:$0xf]  ;;  %v4132_v39 = vrot.slane %v4130_v19, 4  ;;  %v4135_v18 = vrot.slane %v4133_v38, 4 }
 0x1d9   : > { %19166 = vst [vmem:[#allocation133_spill] sm:$0xff] %v17020_v34  ;;  %v17024_v12 = vcombine.low %v15238_v60, %v15239_v20  ;;  %19168 = vst [vmem:[#allocation135_spill] sm:$0xff] %v17026_v62  ;;  %v15240_v2 = vld [vmem:[%s15807_s29 + $0x18c] sm:$0xf]  ;;  %v17030_v44 = vld [vmem:[%s15807_s29 + $0x190] sm:$0xf] }
 0x1da   : > { %19165 = vst [vmem:[#allocation132_spill] sm:$0xff] %v17018_v46  ;;  %v4136_v63 = vrot.slane %v15240_v2, 5  ;;  %12849 = vmatpush3.bf16.msra.mxu1 %v15042_v52  ;;  %19169 = vst [vmem:[#allocation136_spill] sm:$0xff] %v17030_v44  ;;  %v11117_v27 = vrot.slane %v17030_v44, 9  ;;  %v4142_v1 = vrot.slane %v4140_v24, 4  ;;  %v15062_v49 = vld [vmem:[#allocation5 + $0x98] sm:$0xff]   ;;  %v4134_v2 = vsel %vm16165_vm5, %v4132_v39, %v4133_v38 }
 0x1db   : > { %19167 = vst [vmem:[#allocation134_spill] sm:$0xff] %v17024_v12  ;;  %v17034_v13 = vld [vmem:[%s15807_s29 + $0x198] sm:$0xf]  ;;  %12850 = vmatprep.subr.bf16.mxu1 %v15052_v59  ;;  %v17046_v19 = vld [vmem:[%s15807_s29 + $0x19c] sm:$0xf]  ;;  %v15072_v39 = vld [vmem:[#allocation5 + $0xa0] sm:$0xff]  }
 0x1dc   : > { %19170 = vst [vmem:[#allocation137_spill] sm:$0xff] %v17034_v13  ;;  %v4143_v43 = vrot.slane %v17034_v13, 5  ;;  %v4137_v52 = vsel %vm16165_vm5, %v4135_v18, %v4136_v63  ;;  %19171 = vst [vmem:[#allocation138_spill] sm:$0xff] %v17046_v19  ;;  %v4146_v11 = vrot.slane %v17046_v19, 5  ;;  %v4141_v51 = vsel %vm16165_vm5, %v11117_v27, %v4140_v24  ;;  %v17054_v20 = vld [vmem:[%s15807_s29 + $0x1a8] sm:$0xf] }
 0x1dd   : > { %12723 = vmatmul.mubr.bf16.gmra.mrb[4].mxu1 %v17018_v46  ;;  %13363 = vmatmul.mubr.bf16.gmra.mrb[68].mxu0 %v17020_v34  ;;  %19172 = vst [vmem:[#allocation139_spill] sm:$0xff] %v17054_v20  ;;  %v4153_v46 = vrot.slane %v17054_v20, 5  ;;  %v15245_v63 = vld [vmem:[%s15807_s29 + $0x30] sm:$0xf]  ;;  %v15246_v18 = vld [vmem:[%s15807_s29 + $0x34] sm:$0xf] }
 0x1de   : > { %12726 = vmatprep.mubr.bf16.mxu1 %v17024_v12  ;;  %13366 = vmatprep.mubr.bf16.mxu0 %v17026_v62  ;;  %v4144_v60 = vsel %vm16165_vm5, %v4142_v1, %v4143_v43  ;;  %v17059_v38 = vcombine.low %v15245_v63, %v15246_v18  ;;  %v17061_v62 = vcombine.low %v4134_v2, %v4137_v52  ;;  %v15247_v27 = vld [vmem:[%s15807_s29 + $0x3c] sm:$0xf]  ;;  %v15248_v24 = vld [vmem:[%s15807_s29 + $0x40] sm:$0xf]  ;;  %v4145_v13 = vrot.slane %v4143_v43, 4 }
 0x1df   : > { %12851 = vmatpush3.bf16.msra.mxu1 %v15052_v59  ;;  %v17065_v34 = vcombine.low %v15247_v27, %v15248_v24  ;;  %v17067_v1 = vcombine.low %v4141_v51, %v4144_v60  ;;  %v4148_v19 = vrot.slane %v4146_v11, 4  ;;  %v15249_v20 = vld [vmem:[%s15807_s29 + $0x1a0] sm:$0xf]  ;;  %v17071_v44 = vld [vmem:[%s15807_s29 + $0x1a4] sm:$0xf]  ;;  %v4155_v63 = vrot.slane %v4153_v46, 4 }
 0x1e0   : > { %12852 = vmatprep.subr.bf16.mxu1 %v15062_v49  ;;  %19173 = vst [vmem:[#allocation140_spill] sm:$0xff] %v17059_v38  ;;  %19174 = vst [vmem:[#allocation141_spill] sm:$0xff] %v17061_v62  ;;  %v4149_v59 = vrot.slane %v15249_v20, 5  ;;  %v11118_v23 = vrot.slane %v17071_v44, 9  ;;  %v17075_v18 = vld [vmem:[%s15807_s29 + $0x1ac] sm:$0xf]  ;;  %v4147_v43 = vsel %vm16165_vm5, %v4145_v13, %v4146_v11 }
 0x1e1   : > { %19175 = vst [vmem:[#allocation142_spill] sm:$0xff] %v17065_v34  ;;  %19176 = vst [vmem:[#allocation143_spill] sm:$0xff] %v17067_v1  ;;  %v4156_v2 = vrot.slane %v17075_v18, 5  ;;  %v17087_v51 = vld [vmem:[%s15807_s29 + $0x1b0] sm:$0xf] }
 0x1e2   : > { %19177 = vst [vmem:[#allocation144_spill] sm:$0xff] %v17071_v44  ;;  %19178 = vst [vmem:[#allocation145_spill] sm:$0xff] %v17075_v18  ;;  %v4150_v52 = vsel %vm16165_vm5, %v4148_v19, %v4149_v59  ;;  %v4154_v60 = vsel %vm16165_vm5, %v11118_v23, %v4153_v46  ;;  %v17095_v27 = vld [vmem:[%s15807_s29 + $0x1bc] sm:$0xf]  ;;  %v15254_v13 = vld [vmem:[%s15807_s29 + $0x44] sm:$0xf] }
 0x1e3   : > { %12853 = vmatpush3.bf16.msra.mxu1 %v15062_v49  ;;  %19179 = vst [vmem:[#allocation146_spill] sm:$0xff] %v17087_v51  ;;  %v4159_v49 = vrot.slane %v17087_v51, 5  ;;  %v4157_v20 = vsel %vm16165_vm5, %v4155_v63, %v4156_v2  ;;  %19180 = vst [vmem:[#allocation147_spill] sm:$0xff] %v17095_v27  ;;  %v4166_v24 = vrot.slane %v17095_v27, 5  ;;  %v15255_v19 = vld [vmem:[%s15807_s29 + $0x48] sm:$0xf]  ;;  %v17102_v59 = vcombine.low %v4147_v43, %v4150_v52 }
 0x1e4   : > { %12854 = vmatprep.subr.bf16.mxu1 %v15072_v39  ;;  %v17100_v11 = vcombine.low %v15254_v13, %v15255_v19  ;;  %v17108_v23 = vcombine.low %v4154_v60, %v4157_v20  ;;  %v4158_v46 = vrot.slane %v4156_v2, 4  ;;  %v15258_v51 = vld [vmem:[%s15807_s29 + $0x1b4] sm:$0xf]  ;;  %v17116_v43 = vld [vmem:[%s15807_s29 + $0x1c0] sm:$0xf] }
 0x1e5   : > { %12727 = vmatmul.mubr.bf16.gmra.mrb[8].mxu1 %v17059_v38  ;;  %13367 = vmatmul.mubr.bf16.gmra.mrb[72].mxu0 %v17061_v62  ;;  %19182 = vst [vmem:[#allocation149_spill] sm:$0xff] %v17102_v59  ;;  %v15257_v62 = vld [vmem:[%s15807_s29 + $0x54] sm:$0xf]  ;;  %v4161_v63 = vrot.slane %v4159_v49, 4  ;;  %v4162_v44 = vrot.slane %v15258_v51, 5  ;;  %v4168_v13 = vrot.slane %v4166_v24, 4 }
 0x1e6   : > { %12730 = vmatprep.mubr.bf16.mxu1 %v17065_v34  ;;  %13370 = vmatprep.mubr.bf16.mxu0 %v17067_v1  ;;  %19181 = vst [vmem:[#allocation148_spill] sm:$0xff] %v17100_v11  ;;  %v15256_v1 = vld [vmem:[%s15807_s29 + $0x50] sm:$0xf]  ;;  %19184 = vst [vmem:[#allocation151_spill] sm:$0xff] %v17108_v23  ;;  %v17128_v52 = vld [vmem:[%s15807_s29 + $0x1c4] sm:$0xf] }
 0x1e7   : > { %12855 = vmatpush3.bf16.msra.mxu1 %v15072_v39  ;;  %v17106_v18 = vcombine.low %v15256_v1, %v15257_v62  ;;  %v17112_v39 = vld [vmem:[%s15807_s29 + $0x1b8] sm:$0xf]  ;;  %19186 = vst [vmem:[#allocation153_spill] sm:$0xff] %v17116_v43  ;;  %v4169_v62 = vrot.slane %v17116_v43, 5  ;;  %v4160_v1 = vsel %vm16165_vm5, %v4158_v46, %v4159_v49  ;;  %v4163_v2 = vsel %vm16165_vm5, %v4161_v63, %v4162_v44  ;;  %v17136_v19 = vld [vmem:[%s15807_s29 + $0x1d0] sm:$0xf] }
 0x1e8   : > { %19185 = vst [vmem:[#allocation152_spill] sm:$0xff] %v17112_v39  ;;  %v11119_v27 = vrot.slane %v17112_v39, 9  ;;  %19187 = vst [vmem:[#allocation154_spill] sm:$0xff] %v17128_v52  ;;  %v4172_v51 = vrot.slane %v17128_v52, 5  ;;  %v15263_v49 = vld [vmem:[%s15807_s29 + $0x58] sm:$0xf]  ;;  %v17143_v63 = vcombine.low %v4160_v1, %v4163_v2 }
 0x1e9   : > { %19183 = vst [vmem:[#allocation150_spill] sm:$0xff] %v17106_v18  ;;  %v4170_v20 = vsel %vm16165_vm5, %v4168_v13, %v4169_v62  ;;  %19188 = vst [vmem:[#allocation155_spill] sm:$0xff] %v17136_v19  ;;  %v15264_v46 = vld [vmem:[%s15807_s29 + $0x5c] sm:$0xf]  ;;  %v15266_v43 = vld [vmem:[%s15807_s29 + $0x68] sm:$0xf] }
 0x1ea   : > { %v4167_v60 = vsel %vm16165_vm5, %v11119_v27, %v4166_v24  ;;  %v17141_v44 = vcombine.low %v15263_v49, %v15264_v46  ;;  %19190 = vst [vmem:[#allocation157_spill] sm:$0xff] %v17143_v63  ;;  %v4171_v24 = vrot.slane %v4169_v62, 4  ;;  %v4174_v13 = vrot.slane %v4172_v51, 4  ;;  %v15267_v39 = vld [vmem:[%s15807_s29 + $0x1c8] sm:$0xf] }
 0x1eb   : > { %v17149_v27 = vcombine.low %v4167_v60, %v4170_v20  ;;  %v17157_v46 = vld [vmem:[%s15807_s29 + $0x1d4] sm:$0xf]  ;;  %v17169_v62 = vld [vmem:[%s15807_s29 + $0x1d8] sm:$0xf] }
 0x1ec   : > { %19189 = vst [vmem:[#allocation156_spill] sm:$0xff] %v17141_v44  ;;  %19194 = vst [vmem:[#allocation161_spill] sm:$0xff] %v17157_v46  ;;  %v4182_v1 = vrot.slane %v17157_v46, 5  ;;  %v4185_v2 = vrot.slane %v17169_v62, 5  ;;  %v15274_v46 = vld [vmem:[%s15807_s29 + $0x78] sm:$0xf] }
 0x1ed   : > { %12731 = vmatmul.mubr.bf16.gmra.mrb[12].mxu1 %v17100_v11  ;;  %13371 = vmatmul.mubr.bf16.gmra.mrb[76].mxu0 %v17102_v59  ;;  %v15265_v59 = vld [vmem:[%s15807_s29 + $0x64] sm:$0xf]  ;;  %19192 = vst [vmem:[#allocation159_spill] sm:$0xff] %v17149_v27  ;;  %v17153_v11 = vld [vmem:[%s15807_s29 + $0x1cc] sm:$0xf]  ;;  %19195 = vst [vmem:[#allocation162_spill] sm:$0xff] %v17169_v62 }
 0x1ee   : > { %12734 = vmatprep.mubr.bf16.mxu1 %v17106_v18  ;;  %13374 = vmatprep.mubr.bf16.mxu0 %v17108_v23  ;;  %v4179_v23 = vrot.slane %v17136_v19, 5  ;;  %v17147_v52 = vcombine.low %v15265_v59, %v15266_v43  ;;  %v4175_v18 = vrot.slane %v15267_v39, 5  ;;  %19193 = vst [vmem:[#allocation160_spill] sm:$0xff] %v17153_v11  ;;  %v11120_v19 = vrot.slane %v17153_v11, 9  ;;  %v15082_v59 = vld [vmem:[#allocation5 + $0xa8] sm:$0xff]  }
 0x1ef   : > { %v4173_v39 = vsel %vm16165_vm5, %v4171_v24, %v4172_v51  ;;  %12856 = vmatprep.subr.bf16.mxu1 %v15082_v59  ;;  %v15273_v51 = vld [vmem:[%s15807_s29 + $0x70] sm:$0xf]  ;;  %v4187_v11 = vrot.slane %v4185_v2, 4 }
 0x1f0   : > { %19191 = vst [vmem:[#allocation158_spill] sm:$0xff] %v17147_v52  ;;  %v4181_v49 = vrot.slane %v4179_v23, 4  ;;  %v4176_v43 = vsel %vm16165_vm5, %v4174_v13, %v4175_v18  ;;  %v4180_v60 = vsel %vm16165_vm5, %v11120_v19, %v4179_v23  ;;  %12857 = vmatpush3.bf16.msra.mxu1 %v15082_v59  ;;  %v15272_v18 = vld [vmem:[%s15807_s29 + $0x6c] sm:$0xf]  ;;  %v15275_v23 = vld [vmem:[%s15807_s29 + $0x7c] sm:$0xf] }
 0x1f1   : > { %v17182_v24 = vcombine.low %v15272_v18, %v15273_v51  ;;  %v17184_v13 = vcombine.low %v4173_v39, %v4176_v43  ;;  %v17188_v19 = vcombine.low %v15274_v46, %v15275_v23  ;;  %v17194_v59 = vld [vmem:[%s15807_s29 + $0x1e0] sm:$0xf]  ;;  %v17198_v39 = vld [vmem:[%s15807_s29 + $0x1e8] sm:$0xf]  ;;  %v17210_v43 = vld [vmem:[%s15807_s29 + $0x1ec] sm:$0xf] }
 0x1f2   : > { %v4183_v20 = vsel %vm16165_vm5, %v4181_v49, %v4182_v1  ;;  %v4184_v49 = vrot.slane %v4182_v1, 4  ;;  %19201 = vst [vmem:[#allocation168_spill] sm:$0xff] %v17194_v59  ;;  %19202 = vst [vmem:[#allocation169_spill] sm:$0xff] %v17198_v39  ;;  %v4195_v46 = vrot.slane %v17198_v39, 5  ;;  %v17218_v23 = vld [vmem:[%s15807_s29 + $0x1f8] sm:$0xf] }
 0x1f3   : > { %19197 = vst [vmem:[#allocation164_spill] sm:$0xff] %v17182_v24  ;;  %19198 = vst [vmem:[#allocation165_spill] sm:$0xff] %v17184_v13  ;;  %v17190_v62 = vcombine.low %v4180_v60, %v4183_v20  ;;  %v4198_v60 = vrot.slane %v17210_v43, 5  ;;  %v15284_v39 = vld [vmem:[%s15807_s29 + $0x90] sm:$0xf] }
 0x1f4   : > { %19199 = vst [vmem:[#allocation166_spill] sm:$0xff] %v17188_v19  ;;  %19203 = vst [vmem:[#allocation170_spill] sm:$0xff] %v17210_v43 }
 0x1f5   : > { %12735 = vmatmul.mubr.bf16.gmra.mrb[16].mxu1 %v17141_v44  ;;  %13375 = vmatmul.mubr.bf16.gmra.mrb[80].mxu0 %v17143_v63  ;;  %v17177_v63 = vld [vmem:[%s15807_s29 + $0x1e4] sm:$0xf]  ;;  %19200 = vst [vmem:[#allocation167_spill] sm:$0xff] %v17190_v62  ;;  %v11121_v44 = vrot.slane %v17194_v59, 9  ;;  %19204 = vst [vmem:[#allocation171_spill] sm:$0xff] %v17218_v23 }
 0x1f6   : > { %12738 = vmatprep.mubr.bf16.mxu1 %v17147_v52  ;;  %13378 = vmatprep.mubr.bf16.mxu0 %v17149_v27  ;;  %19196 = vst [vmem:[#allocation163_spill] sm:$0xff] %v17177_v63  ;;  %v4192_v27 = vrot.slane %v17177_v63, 5  ;;  %v15276_v52 = vld [vmem:[%s15807_s29 + $0x1dc] sm:$0xf]  ;;  %v15285_v59 = vld [vmem:[%s15807_s29 + $0x1f0] sm:$0xf] }
 0x1f7   : > { %v4188_v63 = vrot.slane %v15276_v52, 5  ;;  %v4186_v52 = vsel %vm16165_vm5, %v4184_v49, %v4185_v2  ;;  %v15281_v2 = vld [vmem:[%s15807_s29 + $0x80] sm:$0xf]  ;;  %v15282_v49 = vld [vmem:[%s15807_s29 + $0x84] sm:$0xf] }
 0x1f8   : > { %v4194_v18 = vrot.slane %v4192_v27, 4  ;;  %v4193_v20 = vsel %vm16165_vm5, %v11121_v44, %v4192_v27  ;;  %v4197_v27 = vrot.slane %v4195_v46, 4 }
 0x1f9   : > { %v4189_v1 = vsel %vm16165_vm5, %v4187_v11, %v4188_v63  ;;  %v17223_v11 = vcombine.low %v15281_v2, %v15282_v49  ;;  %v17259_v49 = vld [vmem:[%s15807_s29 + $0x20c] sm:$0xf] }
 0x1fa   : > { %v4196_v51 = vsel %vm16165_vm5, %v4194_v18, %v4195_v46  ;;  %v17225_v63 = vcombine.low %v4186_v52, %v4189_v1  ;;  %v4200_v18 = vrot.slane %v4198_v60, 4  ;;  %v17239_v52 = vld [vmem:[%s15807_s29 + $0x1fc] sm:$0xf]  ;;  %v17251_v46 = vld [vmem:[%s15807_s29 + $0x200] sm:$0xf]  ;;  %19212 = vst [vmem:[#allocation179_spill] sm:$0xff] %v17259_v49 }
 0x1fb   : > { %19205 = vst [vmem:[#allocation172_spill] sm:$0xff] %v17223_v11  ;;  %v17231_v44 = vcombine.low %v4193_v20, %v4196_v51  ;;  %19210 = vst [vmem:[#allocation177_spill] sm:$0xff] %v17239_v52  ;;  %v4211_v1 = vrot.slane %v17251_v46, 5 }
 0x1fc   : > { %19206 = vst [vmem:[#allocation173_spill] sm:$0xff] %v17225_v63  ;;  %19211 = vst [vmem:[#allocation178_spill] sm:$0xff] %v17251_v46 }
 0x1fd   : > { %12739 = vmatmul.mubr.bf16.gmra.mrb[20].mxu1 %v17182_v24  ;;  %13379 = vmatmul.mubr.bf16.gmra.mrb[84].mxu0 %v17184_v13  ;;  %v15283_v13 = vld [vmem:[%s15807_s29 + $0x8c] sm:$0xf]  ;;  %19208 = vst [vmem:[#allocation175_spill] sm:$0xff] %v17231_v44 }
 0x1fe   : > { %12742 = vmatprep.mubr.bf16.mxu1 %v17188_v19  ;;  %13382 = vmatprep.mubr.bf16.mxu0 %v17190_v62  ;;  %v4205_v62 = vrot.slane %v17218_v23, 5  ;;  %v17229_v43 = vcombine.low %v15283_v13, %v15284_v39  ;;  %v4201_v19 = vrot.slane %v15285_v59, 5  ;;  %v17235_v23 = vld [vmem:[%s15807_s29 + $0x1f4] sm:$0xf]  ;;  %v4208_v13 = vrot.slane %v17239_v52, 5 }
 0x1ff   : > { %19209 = vst [vmem:[#allocation176_spill] sm:$0xff] %v17235_v23  ;;  %v11122_v24 = vrot.slane %v17235_v23, 9  ;;  %v4199_v59 = vsel %vm16165_vm5, %v4197_v27, %v4198_v60  ;;  %v15290_v60 = vld [vmem:[%s15807_s29 + $0x94] sm:$0xf]  ;;  %v15291_v27 = vld [vmem:[%s15807_s29 + $0x98] sm:$0xf] }
 0x200   : > { %19207 = vst [vmem:[#allocation174_spill] sm:$0xff] %v17229_v43  ;;  %v4207_v2 = vrot.slane %v4205_v62, 4  ;;  %v4202_v39 = vsel %vm16165_vm5, %v4200_v18, %v4201_v19  ;;  %v17264_v19 = vcombine.low %v15290_v60, %v15291_v27  ;;  %v15293_v52 = vld [vmem:[%s15807_s29 + $0xa4] sm:$0xf]  ;;  %v4231_v27 = vrot.slane %v16565_v48, 5 }
 0x201   : > { %v4206_v20 = vsel %vm16165_vm5, %v11122_v24, %v4205_v62  ;;  %v17266_v18 = vcombine.low %v4199_v59, %v4202_v39  ;;  %v4210_v24 = vrot.slane %v4208_v13, 4  ;;  %v15294_v23 = vld [vmem:[%s15807_s29 + $0x204] sm:$0xf]  ;;  %v17280_v59 = vld [vmem:[%s15807_s29 + $0x210] sm:$0xf] }
 0x202   : > { %v4209_v51 = vsel %vm16165_vm5, %v4207_v2, %v4208_v13  ;;  %19213 = vst [vmem:[#allocation180_spill] sm:$0xff] %v17264_v19  ;;  %v4213_v2 = vrot.slane %v4211_v1, 4  ;;  %19218 = vst [vmem:[#allocation185_spill] sm:$0xff] %v17280_v59  ;;  %v4221_v39 = vrot.slane %v17280_v59, 5 }
 0x203   : > { %19214 = vst [vmem:[#allocation181_spill] sm:$0xff] %v17266_v18  ;;  %v17272_v62 = vcombine.low %v4206_v20, %v4209_v51 }
 0x205   : > { %12743 = vmatmul.mubr.bf16.gmra.mrb[24].mxu1 %v17223_v11  ;;  %13383 = vmatmul.mubr.bf16.gmra.mrb[88].mxu0 %v17225_v63  ;;  %v15292_v63 = vld [vmem:[%s15807_s29 + $0xa0] sm:$0xf]  ;;  %19216 = vst [vmem:[#allocation183_spill] sm:$0xff] %v17272_v62  ;;  %v17276_v11 = vld [vmem:[%s15807_s29 + $0x208] sm:$0xf] }
 0x206   : > { %12746 = vmatprep.mubr.bf16.mxu1 %v17229_v43  ;;  %13386 = vmatprep.mubr.bf16.mxu0 %v17231_v44  ;;  %v4218_v44 = vrot.slane %v17259_v49, 5  ;;  %v17270_v46 = vcombine.low %v15292_v63, %v15293_v52  ;;  %v4214_v43 = vrot.slane %v15294_v23, 5  ;;  %19217 = vst [vmem:[#allocation184_spill] sm:$0xff] %v17276_v11  ;;  %v11123_v49 = vrot.slane %v17276_v11, 9  ;;  %v17292_v52 = vld [vmem:[%s15807_s29 + $0x214] sm:$0xf] }
 0x207   : > { %v4212_v23 = vsel %vm16165_vm5, %v4210_v24, %v4211_v1  ;;  %19219 = vst [vmem:[#allocation186_spill] sm:$0xff] %v17292_v52  ;;  %v4224_v13 = vrot.slane %v17292_v52, 5  ;;  %v4223_v11 = vrot.slane %v4221_v39, 4 }
 0x208   : > { %19215 = vst [vmem:[#allocation182_spill] sm:$0xff] %v17270_v46  ;;  %v4220_v60 = vrot.slane %v4218_v44, 4  ;;  %v4215_v63 = vsel %vm16165_vm5, %v4213_v2, %v4214_v43  ;;  %v4219_v20 = vsel %vm16165_vm5, %v11123_v49, %v4218_v44  ;;  %v15300_v43 = vld [vmem:[%s15807_s29 + $0xb4] sm:$0xf]  ;;  %v15301_v2 = vld [vmem:[%s15807_s29 + $0xb8] sm:$0xf] }
 0x209   : > { %v17304_v24 = vcombine.low %v4212_v23, %v4215_v63  ;;  %v17308_v59 = vcombine.low %v15300_v43, %v15301_v2  ;;  %v15302_v44 = vld [vmem:[%s15807_s29 + $0x218] sm:$0xf]  ;;  %v4237_v63 = vrot.slane %v16590_v9, 5  ;;  %v15304_v43 = vld [vmem:[%s15807_s29 + $0xbc] sm:$0xf] }
 0x20a   : > { %v4222_v51 = vsel %vm16165_vm5, %v4220_v60, %v4221_v39  ;;  %v4227_v49 = vrot.slane %v15302_v44, 5  ;;  %v4233_v60 = vrot.slane %v4231_v27, 4  ;;  %v4225_v39 = vsel %vm16165_vm5, %v4223_v11, %v4224_v13  ;;  %v15305_v2 = vld [vmem:[%s15807_s29 + $0xc0] sm:$0xf] }
 0x20b   : > { %19221 = vst [vmem:[#allocation188_spill] sm:$0xff] %v17304_v24  ;;  %19222 = vst [vmem:[#allocation189_spill] sm:$0xff] %v17308_v59  ;;  %v17310_v52 = vcombine.low %v4219_v20, %v4222_v51  ;;  %v4244_v51 = vrot.slane %v16616_v32, 5  ;;  %v17334_v44 = vcombine.low %v15304_v43, %v15305_v2  ;;  %v4240_v32 = vrot.slane %v16597_v4, 5 }
 0x20c   : > { %v4247_v43 = vrot.slane %v16628_v16, 5 }
 0x20d   : > { %12747 = vmatmul.mubr.bf16.gmra.mrb[28].mxu1 %v17264_v19  ;;  %13387 = vmatmul.mubr.bf16.gmra.mrb[92].mxu0 %v17266_v18  ;;  %v15299_v18 = vld [vmem:[%s15807_s29 + $0xac] sm:$0xf]  ;;  %19223 = vst [vmem:[#allocation190_spill] sm:$0xff] %v17310_v52  ;;  %v17314_v19 = vld [vmem:[%s15807_s29 + $0x21c] sm:$0xf]  ;;  %19224 = vst [vmem:[#allocation191_spill] sm:$0xff] %v17334_v44 }
 0x20e   : > { %12750 = vmatprep.mubr.bf16.mxu1 %v17270_v46  ;;  %13390 = vmatprep.mubr.bf16.mxu0 %v17272_v62  ;;  %v15298_v62 = vld [vmem:[%s15807_s29 + $0xa8] sm:$0xf]  ;;  %v4226_v46 = vrot.slane %v4224_v13, 4  ;;  %v11124_v48 = vrot.slane %v17314_v19, 9 }
 0x20f   : > { %v17302_v1 = vcombine.low %v15298_v62, %v15299_v18  ;;  %v4234_v18 = vrot.slane %v16573_v31, 5  ;;  %v15092_v62 = vld [vmem:[#allocation5 + $0xb0] sm:$0xff]   ;;  %v15306_v13 = vld [vmem:[%s15807_s29 + $0xc8] sm:$0xf] }
 0x210   : > { %v4228_v23 = vsel %vm16165_vm5, %v4226_v46, %v4227_v49  ;;  %v4232_v31 = vsel %vm16165_vm5, %v11124_v48, %v4231_v27  ;;  %12858 = vmatprep.subr.bf16.mxu1 %v15092_v62  ;;  %v15307_v46 = vld [vmem:[%s15807_s29 + $0xcc] sm:$0xf]  ;;  %v4239_v48 = vrot.slane %v4237_v63, 4 }
 0x211   : > { %19220 = vst [vmem:[#allocation187_spill] sm:$0xff] %v17302_v1  ;;  %v4235_v20 = vsel %vm16165_vm5, %v4233_v60, %v4234_v18  ;;  %12859 = vmatpush3.bf16.msra.mxu1 %v15092_v62  ;;  %v17336_v11 = vcombine.low %v4225_v39, %v4228_v23  ;;  %v17340_v49 = vcombine.low %v15306_v13, %v15307_v46  ;;  %v4236_v27 = vrot.slane %v4234_v18, 4  ;;  %v15311_v46 = vld [vmem:[%s15807_s29 + $0xe0] sm:$0xf] }
 0x212   : > { %v17342_v9 = vcombine.low %v4232_v31, %v4235_v20  ;;  %v11125_v60 = vrot.slane %v16611_v61, 9  ;;  %v4246_v62 = vrot.slane %v4244_v51, 4  ;;  %v4241_v4 = vsel %vm16165_vm5, %v4239_v48, %v4240_v32  ;;  %v15308_v31 = vld [vmem:[%s15807_s29 + $0xd0] sm:$0xf]  ;;  %v15309_v20 = vld [vmem:[%s15807_s29 + $0xd4] sm:$0xf] }
 0x213   : > { %19225 = vst [vmem:[#allocation192_spill] sm:$0xff] %v17336_v11  ;;  %19226 = vst [vmem:[#allocation193_spill] sm:$0xff] %v17340_v49  ;;  %v4238_v18 = vsel %vm16165_vm5, %v4236_v27, %v4237_v63  ;;  %v4250_v61 = vrot.slane %v16645_v0, 5  ;;  %v4257_v23 = vrot.slane %v16681_v15, 5  ;;  %v17363_v2 = vcombine.low %v15308_v31, %v15309_v20  ;;  %v15310_v63 = vld [vmem:[%s15807_s29 + $0xdc] sm:$0xf] }
 0x214   : > { %19227 = vst [vmem:[#allocation194_spill] sm:$0xff] %v17342_v9  ;;  %v4245_v16 = vsel %vm16165_vm5, %v11125_v60, %v4244_v51  ;;  %v4248_v39 = vsel %vm16165_vm5, %v4246_v62, %v4247_v43  ;;  %v17365_v13 = vcombine.low %v4238_v18, %v4241_v4  ;;  %v17369_v27 = vcombine.low %v15310_v63, %v15311_v46  ;;  %v15315_v63 = vld [vmem:[%s15807_s29 + $0xf4] sm:$0xf] }
 0x215   : > { %12751 = vmatmul.mubr.bf16.gmra.mrb[32].mxu1 %v17302_v1  ;;  %13391 = vmatmul.mubr.bf16.gmra.mrb[96].mxu0 %v17304_v24  ;;  %19228 = vst [vmem:[#allocation195_spill] sm:$0xff] %v17363_v2  ;;  %v17371_v48 = vcombine.low %v4245_v16, %v4248_v39  ;;  %v4249_v0 = vrot.slane %v4247_v43, 4  ;;  %v4252_v51 = vrot.slane %v4250_v61, 4  ;;  %v4253_v32 = vrot.slane %v16656_v3, 5  ;;  %v15312_v16 = vld [vmem:[%s15807_s29 + $0xe4] sm:$0xf] }
 0x216   : > { %12754 = vmatprep.mubr.bf16.mxu1 %v17308_v59  ;;  %13394 = vmatprep.mubr.bf16.mxu0 %v17310_v52  ;;  %19229 = vst [vmem:[#allocation196_spill] sm:$0xff] %v17365_v13  ;;  %19230 = vst [vmem:[#allocation197_spill] sm:$0xff] %v17369_v27  ;;  %v11126_v15 = vrot.slane %v16674_v58, 9  ;;  %v4259_v60 = vrot.slane %v4257_v23, 4  ;;  %v4260_v62 = vrot.slane %v16697_v42, 5  ;;  %v4263_v58 = vrot.slane %v16713_v8, 5 }
 0x217   : > { %19231 = vst [vmem:[#allocation198_spill] sm:$0xff] %v17371_v48  ;;  %v4251_v43 = vsel %vm16165_vm5, %v4249_v0, %v4250_v61  ;;  %v4254_v3 = vsel %vm16165_vm5, %v4252_v51, %v4253_v32  ;;  %v4270_v4 = vrot.slane %v16750_v41, 5  ;;  %v15313_v39 = vld [vmem:[%s15807_s29 + $0xe8] sm:$0xf]  ;;  %v15314_v61 = vld [vmem:[%s15807_s29 + $0xf0] sm:$0xf] }
 0x218   : > { %v4258_v42 = vsel %vm16165_vm5, %v11126_v15, %v4257_v23  ;;  %v4261_v18 = vsel %vm16165_vm5, %v4259_v60, %v4260_v62  ;;  %v17392_v31 = vcombine.low %v15312_v16, %v15313_v39  ;;  %v17394_v20 = vcombine.low %v4251_v43, %v4254_v3  ;;  %v15316_v3 = vld [vmem:[%s15807_s29 + $0xf8] sm:$0xf] }
 0x219   : > { %v17398_v46 = vcombine.low %v15314_v61, %v15315_v63  ;;  %v17400_v0 = vcombine.low %v4258_v42, %v4261_v18  ;;  %v4262_v8 = vrot.slane %v4260_v62, 4  ;;  %v4265_v23 = vrot.slane %v4263_v58, 4  ;;  %v15317_v42 = vld [vmem:[%s15807_s29 + $0xfc] sm:$0xf] }
 0x21a   : > { %19232 = vst [vmem:[#allocation199_spill] sm:$0xff] %v17392_v31  ;;  %19233 = vst [vmem:[#allocation200_spill] sm:$0xff] %v17394_v20  ;;  %v4266_v51 = vrot.slane %v16726_v10, 5  ;;  %v11127_v41 = vrot.slane %v16743_v28, 9  ;;  %v4272_v32 = vrot.slane %v4270_v4, 4  ;;  %v4273_v15 = vrot.slane %v16765_v45, 5 }
 0x21b   : > { %19234 = vst [vmem:[#allocation201_spill] sm:$0xff] %v17398_v46  ;;  %19235 = vst [vmem:[#allocation202_spill] sm:$0xff] %v17400_v0  ;;  %v4264_v60 = vsel %vm16165_vm5, %v4262_v8, %v4263_v58  ;;  %v4276_v10 = vrot.slane %v16790_v30, 5  ;;  %v4283_v43 = vrot.slane %v16821_v47, 5  ;;  %v17421_v18 = vcombine.low %v15316_v3, %v15317_v42 }
 0x21c   : > { %v4267_v62 = vsel %vm16165_vm5, %v4265_v23, %v4266_v51  ;;  %v4271_v28 = vsel %vm16165_vm5, %v11127_v41, %v4270_v4  ;;  %v4274_v45 = vsel %vm16165_vm5, %v4272_v32, %v4273_v15  ;;  %v17427_v58 = vcombine.low %v16652_v25, %v16659_v54  ;;  %v17435_v23 = vld [vmem:[%s15807_s29 + $0x284] sm:$0xf]  ;;  %v17452_v32 = vld [vmem:[%s15807_s29 + $0x280] sm:$0xf] }
 0x21d   : > { %12755 = vmatmul.mubr.bf16.gmra.mrb[36].mxu1 %v17334_v44  ;;  %13395 = vmatmul.mubr.bf16.gmra.mrb[100].mxu0 %v17336_v11  ;;  %19236 = vst [vmem:[#allocation203_spill] sm:$0xff] %v17421_v18  ;;  %v17423_v16 = vcombine.low %v4264_v60, %v4267_v62  ;;  %v17429_v30 = vcombine.low %v4271_v28, %v4274_v45  ;;  %v4275_v39 = vrot.slane %v4273_v15, 4  ;;  %v4278_v61 = vrot.slane %v4276_v10, 4  ;;  %v15102_v25 = vld [vmem:[#allocation5 + $0xb8] sm:$0xff]  }
 0x21e   : > { %12758 = vmatprep.mubr.bf16.mxu1 %v17340_v49  ;;  %13398 = vmatprep.mubr.bf16.mxu0 %v17342_v9  ;;  %19238 = vst [vmem:[#allocation205_spill] sm:$0xff] %v17427_v58  ;;  %v4279_v4 = vrot.slane %v16793_v40, 5  ;;  %v11128_v63 = vrot.slane %v16814_v55, 9  ;;  %v4285_v47 = vrot.slane %v4283_v43, 4  ;;  %v4286_v8 = vrot.slane %v16832_v33, 5 }
 0x21f   : > { %19237 = vst [vmem:[#allocation204_spill] sm:$0xff] %v17423_v16  ;;  %19239 = vst [vmem:[#allocation206_spill] sm:$0xff] %v17429_v30  ;;  %v4277_v54 = vsel %vm16165_vm5, %v4275_v39, %v4276_v10  ;;  %v4289_v55 = vrot.slane %v16851_v22, 5  ;;  %v6780_v41 = vrot.slane %v17435_v23, 5  ;;  %12860 = vmatprep.subr.bf16.mxu1 %v15102_v25  ;;  %v17455_v15 = vld [vmem:[%s15807_s29 + $0x288] sm:$0xf]  ;;  %v17465_v10 = vcombine.low %v16718_v7, %v16722_v36 }
 0x220   : > { %v4280_v40 = vsel %vm16165_vm5, %v4278_v61, %v4279_v4  ;;  %v4284_v33 = vsel %vm16165_vm5, %v11128_v63, %v4283_v43  ;;  %v4287_v51 = vsel %vm16165_vm5, %v4285_v47, %v4286_v8  ;;  %12861 = vmatpush3.bf16.msra.mxu1 %v15102_v25  ;;  %v15318_v60 = vld [vmem:[%s15807_s29 + $0x10c] sm:$0xf]  ;;  %v4288_v45 = vrot.slane %v4286_v8, 4  ;;  %v17489_v47 = vld [vmem:[%s15807_s29 + $0x290] sm:$0xf] }
 0x221   : > { %v17459_v62 = vcombine.low %v15318_v60, %v16688_v5  ;;  %v17461_v22 = vcombine.low %v4277_v54, %v4280_v40  ;;  %19242 = vst [vmem:[#allocation209_spill] sm:$0xff] %v17465_v10  ;;  %v17467_v28 = vcombine.low %v4284_v33, %v4287_v51  ;;  %v4291_v43 = vrot.slane %v4289_v55, 4  ;;  %v17473_v5 = vld [vmem:[%s15807_s29 + $0x28c] sm:$0xf]  ;;  %19244 = vst [vmem:[#allocation211_spill] sm:$0xff] %v17489_v47 }
 0x222   : > { %v4292_v3 = vrot.slane %v16864_v37, 5  ;;  %v11221_v42 = vrot.slane %v17452_v32, 9  ;;  %v6782_v39 = vrot.slane %v6780_v41, 4  ;;  %v6783_v61 = vrot.slane %v17455_v15, 5 }
 0x223   : > { %19240 = vst [vmem:[#allocation207_spill] sm:$0xff] %v17459_v62  ;;  %19241 = vst [vmem:[#allocation208_spill] sm:$0xff] %v17461_v22  ;;  %v4290_v7 = vsel %vm16165_vm5, %v4288_v45, %v4289_v55  ;;  %v6786_v37 = vrot.slane %v17473_v5, 5  ;;  %v17493_v8 = vcombine.low %v16730_v57, %v16757_v35  ;;  %v17499_v54 = vcombine.low %v16778_v6, %v16786_v29 }
 0x224   : > { %19243 = vst [vmem:[#allocation210_spill] sm:$0xff] %v17467_v28  ;;  %v4293_v36 = vsel %vm16165_vm5, %v4291_v43, %v4292_v3  ;;  %v6781_v4 = vsel %vm16165_vm5, %v11221_v42, %v6780_v41  ;;  %v6784_v63 = vsel %vm16165_vm5, %v6782_v39, %v6783_v61  ;;  %v6785_v55 = vrot.slane %v6783_v61, 4  ;;  %v15083_v43 = vld [vmem:[#allocation5 + $0x1c8] sm:$0xff]   ;;  %v19257_v3 = vld [vmem:[#allocation110_spill] sm:$0xff] }
 0x225   : > { %12759 = vmatmul.mubr.bf16.gmra.mrb[40].mxu1 %v17363_v2  ;;  %13399 = vmatmul.mubr.bf16.gmra.mrb[104].mxu0 %v17365_v13  ;;  %19245 = vst [vmem:[#allocation212_spill] sm:$0xff] %v17493_v8  ;;  %v17495_v25 = vcombine.low %v4290_v7, %v4293_v36  ;;  %19247 = vst [vmem:[#allocation214_spill] sm:$0xff] %v17499_v54  ;;  %v17501_v40 = vcombine.low %v6781_v4, %v6784_v63  ;;  %v6788_v33 = vrot.slane %v6786_v37, 4  ;;  %v19258_v39 = vld [vmem:[#allocation118_spill] sm:$0xff]  ;;  %v19259_v61 = vld [vmem:[#allocation117_spill] sm:$0xff] }
 0x226   : > { %12762 = vmatprep.mubr.bf16.mxu1 %v17369_v27  ;;  %13402 = vmatprep.mubr.bf16.mxu0 %v17371_v48  ;;  %v6789_v51 = vrot.slane %v17489_v47, 5  ;;  %v6787_v35 = vsel %vm16165_vm5, %v6785_v55, %v6786_v37  ;;  %v17514_v57 = vcombine.low %v16798_v17, %v16826_v56  ;;  %v17520_v41 = vcombine.low %v16856_v21, %v16860_v50  ;;  %v19253_v17 = vld [vmem:[#allocation109_spill] sm:$0xff]  ;;  %v19254_v56 = vld [vmem:[#allocation108_spill] sm:$0xff]  ;;  %v15103_v36 = vld [vmem:[#allocation5 + $0x1d8] sm:$0xff]  }
 0x227   : > { %19246 = vst [vmem:[#allocation213_spill] sm:$0xff] %v17495_v25  ;;  %19248 = vst [vmem:[#allocation215_spill] sm:$0xff] %v17501_v40  ;;  %v17528_v60 = vcombine.low %v16868_v26, %v16889_v53  ;;  %v17532_v45 = vcombine.low %v19254_v56, %v19253_v17  ;;  %v17536_v21 = vld [vmem:[#allocation5 + $0xc0] sm:$0xff]   ;;  %v19255_v50 = vld [vmem:[#allocation129_spill] sm:$0xff]  ;;  %v17548_v7 = vcombine.low %v19259_v61, %v19258_v39 }
 0x228   : > { %v6790_v6 = vsel %vm16165_vm5, %v6788_v33, %v6789_v51  ;;  %19249 = vst [vmem:[#allocation216_spill] sm:$0xff] %v17514_v57  ;;  %19251 = vst [vmem:[#allocation218_spill] sm:$0xff] %v17520_v41  ;;  %v15093_v26 = vld [vmem:[#allocation5 + $0x1d0] sm:$0xff]   ;;  %12990 = vmatprep.subr.bf16.mxu1 %v17536_v21  ;;  %v19260_v37 = vld [vmem:[#allocation148_spill] sm:$0xff] }
 0x229   : > { %v17516_v29 = vcombine.low %v6787_v35, %v6790_v6  ;;  %19252 = vst [vmem:[#allocation219_spill] sm:$0xff] %v17528_v60  ;;  %v19256_v53 = vld [vmem:[#allocation113_spill] sm:$0xff]  ;;  %v19261_v4 = vld [vmem:[#allocation150_spill] sm:$0xff]  ;;  %v15111_v63 = vld [vmem:[#allocation5 + $0x1e0] sm:$0xff]  }
 0x22a   : > { %v17544_v42 = vcombine.low %v19257_v3, %v19256_v53  ;;  %v19262_v55 = vld [vmem:[#allocation120_spill] sm:$0xff]  ;;  %v19263_v33 = vld [vmem:[#allocation119_spill] sm:$0xff]  ;;  %v19264_v35 = vld [vmem:[#allocation121_spill] sm:$0xff] }
 0x22b   : > { %19250 = vst [vmem:[#allocation217_spill] sm:$0xff] %v17516_v29  ;;  %v17556_v51 = vcombine.low %v19263_v33, %v19262_v55  ;;  %v19265_v6 = vld [vmem:[#allocation127_spill] sm:$0xff]  ;;  %v19266_v56 = vld [vmem:[#allocation156_spill] sm:$0xff]  ;;  %v19273_v55 = vld [vmem:[#allocation166_spill] sm:$0xff] }
 0x22c   : > { %v17560_v17 = vcombine.low %v19265_v6, %v19264_v35  ;;  %v19270_v3 = vld [vmem:[#allocation131_spill] sm:$0xff]  ;;  %v19271_v39 = vld [vmem:[#allocation136_spill] sm:$0xff]  ;;  %v19274_v33 = vld [vmem:[#allocation138_spill] sm:$0xff] }
 0x22d   : > { %12763 = vmatmul.mubr.bf16.gmra.mrb[44].mxu1 %v17392_v31  ;;  %13403 = vmatmul.mubr.bf16.gmra.mrb[108].mxu0 %v17394_v20  ;;  %v17572_v61 = vcombine.low %v19271_v39, %v19270_v3  ;;  %v19275_v35 = vld [vmem:[#allocation137_spill] sm:$0xff]  ;;  %v19279_v39 = vld [vmem:[#allocation174_spill] sm:$0xff] }
 0x22e   : > { %12766 = vmatprep.mubr.bf16.mxu1 %v17398_v46  ;;  %13406 = vmatprep.mubr.bf16.mxu0 %v17400_v0  ;;  %v17580_v6 = vcombine.low %v19275_v35, %v19274_v33  ;;  %v15113_v3 = vld [vmem:[#allocation5 + $0x1e8] sm:$0xff]   ;;  %v19282_v33 = vld [vmem:[#allocation147_spill] sm:$0xff] }
 0x22f   : > { %v19281_v47 = vld [vmem:[#allocation145_spill] sm:$0xff]  ;;  %v19283_v35 = vld [vmem:[#allocation152_spill] sm:$0xff] }
 0x235   : > { %12767 = vmatmul.mubr.bf16.gmra.mrb[48].mxu1 %v17421_v18  ;;  %13407 = vmatmul.mubr.bf16.gmra.mrb[112].mxu0 %v17423_v16 }
 0x236   : > { %12770 = vmatprep.mubr.bf16.mxu1 %v17427_v58  ;;  %13410 = vmatprep.mubr.bf16.mxu0 %v17429_v30 }
 0x23d   : > { %12771 = vmatmul.mubr.bf16.gmra.mrb[52].mxu1 %v17459_v62  ;;  %13411 = vmatmul.mubr.bf16.gmra.mrb[116].mxu0 %v17461_v22 }
 0x23e   : > { %12774 = vmatprep.mubr.bf16.mxu1 %v17465_v10  ;;  %13414 = vmatprep.mubr.bf16.mxu0 %v17467_v28 }
 0x245   : > { %12775 = vmatmul.mubr.bf16.gmra.mrb[56].mxu1 %v17493_v8  ;;  %13415 = vmatmul.mubr.bf16.gmra.mrb[120].mxu0 %v17495_v25 }
 0x246   : > { %12778 = vmatprep.mubr.bf16.mxu1 %v17499_v54  ;;  %13418 = vmatprep.mubr.bf16.mxu0 %v17501_v40  ;;  %v19280_v40 = vld [vmem:[#allocation146_spill] sm:$0xff] }
 0x24d   : > { %12779 = vmatmul.mubr.bf16.gmra.mrb[60].mxu1 %v17514_v57  ;;  %13419 = vmatmul.mubr.bf16.gmra.mrb[124].mxu0 %v17516_v29  ;;  %v19277_v29 = vld [vmem:[#allocation144_spill] sm:$0xff] }
 0x24e   : > { %12782 = vmatprep.mubr.bf16.mxu1 %v17520_v41  ;;  %13438 = vmatprep.mubr.bf16.mxu0 %v17024_v12 }
 0x255   : > { %12783 = vmatmul.mubr.bf16.gmra.mrb[64].mxu1 %v17528_v60  ;;  %13439 = vmatmul.mubr.bf16.vlgmr.msra.gmra.mrb[0].mxu0 %v17059_v38 }
 0x256   : > { %13567 = vmatpush3.bf16.msra.mxu0 %v19255_v50  ;;  %12786 = vmatprep.mubr.bf16.mxu1 %v17532_v45  ;;  %v19268_v50 = vld [vmem:[#allocation130_spill] sm:$0xff] }
 0x257   : > { %13442 = vmatprep.mubr.bf16.mxu0 %v17065_v34  ;;  %13568 = vmatprep.subr.bf16.mxu0 %v15083_v43 }
 0x25a   : > { %13569 = vmatpush3.bf16.msra.mxu0 %v15083_v43  ;;  %v19267_v43 = vld [vmem:[#allocation158_spill] sm:$0xff] }
 0x25b   : > { %13570 = vmatprep.subr.bf16.mxu0 %v15093_v26 }
 0x25d   : > { %12787 = vmatmul.mubr.bf16.gmra.mrb[68].mxu1 %v17544_v42  ;;  %13443 = vmatmul.mubr.bf16.gmra.mrb[4].mxu0 %v19260_v37 }
 0x25e   : > { %12790 = vmatprep.mubr.bf16.mxu1 %v17548_v7  ;;  %13446 = vmatprep.mubr.bf16.mxu0 %v19261_v4  ;;  %v19320_v4 = vld [vmem:[#allocation122_spill] sm:$0xff] }
 0x25f   : > { %13571 = vmatpush3.bf16.msra.mxu0 %v15093_v26  ;;  %v19269_v26 = vld [vmem:[#allocation128_spill] sm:$0xff]  ;;  %v3883_v37 = vrot.slane %v19320_v4, 5 }
 0x260   : > { %13572 = vmatprep.subr.bf16.mxu0 %v15103_v36  ;;  %v17568_v53 = vcombine.low %v19269_v26, %v19268_v50  ;;  %v19278_v26 = vld [vmem:[#allocation172_spill] sm:$0xff] }
 0x261   : > { %v15338_v4 = vld [vmem:[%s15807_s29 + $0x10] sm:$0xf]  ;;  %v3885_v38 = vrot.slane %v3883_v37, 4 }
 0x262   : > { %v3889_v34 = vrot.slane %v15338_v4, 5  ;;  %v19330_v4 = vld [vmem:[#allocation61_spill] sm:$0xff] }
 0x263   : > { %13573 = vmatpush3.bf16.msra.mxu0 %v15103_v36  ;;  %v19272_v36 = vld [vmem:[#allocation164_spill] sm:$0xff] }
 0x264   : > { %13574 = vmatprep.subr.bf16.mxu0 %v15111_v63 }
 0x265   : > { %12791 = vmatmul.mubr.bf16.gmra.mrb[72].mxu1 %v17556_v51  ;;  %13447 = vmatmul.mubr.bf16.gmra.mrb[8].mxu0 %v19266_v56  ;;  %v19289_v56 = vld [vmem:[#allocation160_spill] sm:$0xff] }
 0x266   : > { %12794 = vmatprep.mubr.bf16.mxu1 %v17560_v17  ;;  %13450 = vmatprep.mubr.bf16.mxu0 %v19267_v43 }
 0x267   : > { %13575 = vmatpush3.bf16.msra.mxu0 %v15111_v63  ;;  %v19276_v63 = vld [vmem:[#allocation139_spill] sm:$0xff] }
 0x268   : > { %v17584_v50 = vcombine.low %v19277_v29, %v19276_v63  ;;  %13576 = vmatprep.subr.bf16.mxu0 %v15113_v3  ;;  %v19284_v29 = vld [vmem:[#allocation180_spill] sm:$0xff]  ;;  %v19285_v63 = vld [vmem:[#allocation182_spill] sm:$0xff] }
 0x26b   : > { %13577 = vmatpush3.bf16.msra.mxu0 %v15113_v3  ;;  %v19288_v3 = vld [vmem:[#allocation155_spill] sm:$0xff] }
 0x26d   : > { %12795 = vmatmul.mubr.bf16.gmra.mrb[76].mxu1 %v17568_v53  ;;  %13451 = vmatmul.mubr.bf16.gmra.mrb[12].mxu0 %v19272_v36  ;;  %v17596_v36 = vcombine.low %v19283_v35, %v19282_v33  ;;  %v19291_v33 = vld [vmem:[#allocation161_spill] sm:$0xff] }
 0x26e   : > { %12798 = vmatprep.mubr.bf16.mxu1 %v17572_v61  ;;  %13454 = vmatprep.mubr.bf16.mxu0 %v19273_v55  ;;  %v17592_v55 = vcombine.low %v19281_v47, %v19280_v40  ;;  %v17608_v47 = vcombine.low %v19289_v56, %v19288_v3  ;;  %v19290_v40 = vld [vmem:[#allocation162_spill] sm:$0xff] }
 0x26f   : > { %v17616_v35 = vcombine.low %v19291_v33, %v19290_v40  ;;  %v19294_v56 = vld [vmem:[#allocation170_spill] sm:$0xff]  ;;  %v19301_v33 = vld [vmem:[#allocation177_spill] sm:$0xff] }
 0x275   : > { %12799 = vmatmul.mubr.bf16.gmra.mrb[80].mxu1 %v17580_v6  ;;  %13455 = vmatmul.mubr.bf16.gmra.mrb[16].mxu0 %v19278_v26  ;;  %v19286_v26 = vld [vmem:[#allocation154_spill] sm:$0xff] }
 0x276   : > { %12802 = vmatprep.mubr.bf16.mxu1 %v17584_v50  ;;  %13458 = vmatprep.mubr.bf16.mxu0 %v19279_v39  ;;  %v19287_v39 = vld [vmem:[#allocation153_spill] sm:$0xff] }
 0x277   : > { %v17604_v43 = vcombine.low %v19287_v39, %v19286_v26  ;;  %v19295_v39 = vld [vmem:[#allocation169_spill] sm:$0xff] }
 0x278   : > { %v17628_v3 = vcombine.low %v19295_v39, %v19294_v56  ;;  %v19303_v39 = vld [vmem:[#allocation179_spill] sm:$0xff] }
 0x27a   : > { %19296 = vst [vmem:[#allocation109_spill] sm:$0xff] %v17628_v3 }
 0x27d   : > { %12803 = vmatmul.mubr.bf16.gmra.mrb[84].mxu1 %v17592_v55  ;;  %13459 = vmatmul.mubr.bf16.gmra.mrb[20].mxu0 %v19284_v29  ;;  %v19293_v29 = vld [vmem:[#allocation168_spill] sm:$0xff] }
 0x27e   : > { %12806 = vmatprep.mubr.bf16.mxu1 %v17596_v36  ;;  %13462 = vmatprep.mubr.bf16.mxu0 %v19285_v63  ;;  %v19292_v63 = vld [vmem:[#allocation163_spill] sm:$0xff] }
 0x27f   : > { %v17620_v26 = vcombine.low %v19293_v29, %v19292_v63  ;;  %v15115_v29 = vld [vmem:[#allocation5 + $0x1f0] sm:$0xff]  }
 0x280   : > { %13578 = vmatprep.subr.bf16.mxu0 %v15115_v29  ;;  %v19300_v63 = vld [vmem:[#allocation178_spill] sm:$0xff] }
 0x281   : > { %13579 = vmatpush3.bf16.msra.mxu0 %v15115_v29  ;;  %v17640_v56 = vcombine.low %v19301_v33, %v19300_v63  ;;  %v19307_v29 = vld [vmem:[#allocation185_spill] sm:$0xff] }
 0x282   : > { %v15319_v63 = vld [vmem:[%s15807_s29 + $0x220] sm:$0xf] }
 0x283   : > { %19302 = vst [vmem:[#allocation129_spill] sm:$0xff] %v17640_v56  ;;  %v17656_v33 = vcombine.low %v17314_v19, %v15319_v63  ;;  %v15324_v19 = vld [vmem:[%s15807_s29 + $0x238] sm:$0xf]  ;;  %v15325_v63 = vld [vmem:[%s15807_s29 + $0x23c] sm:$0xf] }
 0x285   : > { %12807 = vmatmul.mubr.bf16.gmra.mrb[88].mxu1 %v17604_v43  ;;  %13463 = vmatmul.mubr.bf16.gmra.mrb[24].mxu0 %v17302_v1  ;;  %v19298_v1 = vld [vmem:[#allocation176_spill] sm:$0xff]  ;;  %19309 = vst [vmem:[#allocation118_spill] sm:$0xff] %v17656_v33 }
 0x286   : > { %12810 = vmatprep.mubr.bf16.mxu1 %v17608_v47  ;;  %13466 = vmatprep.mubr.bf16.mxu0 %v17308_v59  ;;  %v19297_v59 = vld [vmem:[#allocation171_spill] sm:$0xff] }
 0x287   : > { %v17632_v40 = vcombine.low %v19298_v1, %v19297_v59  ;;  %v19304_v59 = vld [vmem:[#allocation184_spill] sm:$0xff] }
 0x288   : > { %v17644_v1 = vcombine.low %v19304_v59, %v19303_v39  ;;  %v15320_v39 = vld [vmem:[%s15807_s29 + $0x224] sm:$0xf]  ;;  %v15321_v59 = vld [vmem:[%s15807_s29 + $0x228] sm:$0xf] }
 0x289   : > { %19299 = vst [vmem:[#allocation108_spill] sm:$0xff] %v17632_v40 }
 0x28a   : > { %19305 = vst [vmem:[#allocation113_spill] sm:$0xff] %v17644_v1 }
 0x28d   : > { %12811 = vmatmul.mubr.bf16.gmra.mrb[92].mxu1 %v17616_v35  ;;  %13467 = vmatmul.mubr.bf16.gmra.mrb[28].mxu0 %v17334_v44 }
 0x28e   : > { %12814 = vmatprep.mubr.bf16.mxu1 %v17620_v26  ;;  %13470 = vmatprep.mubr.bf16.mxu0 %v17340_v49  ;;  %v19319_v49 = vld [vmem:[#allocation111_spill] sm:$0xff] }
 0x28f   : > { %v11097_v44 = vrot.slane %v19319_v49, 9  ;;  %v15336_v49 = vld [vmem:[%s15807_s29 + $0x274] sm:$0xf] }
 0x295   : > { %12815 = vmatmul.mubr.bf16.gmra.mrb[96].mxu1 %v17628_v3  ;;  %13471 = vmatmul.mubr.bf16.gmra.mrb[32].mxu0 %v17363_v2 }
 0x296   : > { %12818 = vmatprep.mubr.bf16.mxu1 %v17632_v40  ;;  %13474 = vmatprep.mubr.bf16.mxu0 %v17369_v27  ;;  %v19306_v27 = vld [vmem:[#allocation186_spill] sm:$0xff] }
 0x297   : > { %v17652_v2 = vcombine.low %v19307_v29, %v19306_v27  ;;  %v17664_v27 = vcombine.low %v15320_v39, %v15321_v59  ;;  %v15322_v29 = vld [vmem:[%s15807_s29 + $0x230] sm:$0xf]  ;;  %v17676_v39 = vcombine.low %v15324_v19, %v15325_v63  ;;  %v15326_v59 = vld [vmem:[%s15807_s29 + $0x244] sm:$0xf]  ;;  %v15328_v19 = vld [vmem:[%s15807_s29 + $0x24c] sm:$0xf] }
 0x298   : > { %v15329_v63 = vld [vmem:[%s15807_s29 + $0x250] sm:$0xf] }
 0x299   : > { %19308 = vst [vmem:[#allocation110_spill] sm:$0xff] %v17652_v2  ;;  %19310 = vst [vmem:[#allocation117_spill] sm:$0xff] %v17664_v27 }
 0x29a   : > { %19312 = vst [vmem:[#allocation119_spill] sm:$0xff] %v17676_v39 }
 0x29d   : > { %12819 = vmatmul.mubr.bf16.gmra.mrb[100].mxu1 %v17640_v56  ;;  %13475 = vmatmul.mubr.bf16.gmra.mrb[36].mxu0 %v17392_v31 }
 0x29e   : > { %12822 = vmatprep.mubr.bf16.mxu1 %v17644_v1  ;;  %13478 = vmatprep.mubr.bf16.mxu0 %v17398_v46  ;;  %v15323_v46 = vld [vmem:[%s15807_s29 + $0x234] sm:$0xf] }
 0x29f   : > { %v17668_v31 = vcombine.low %v15322_v29, %v15323_v46  ;;  %v15117_v29 = vld [vmem:[#allocation5 + $0x1f8] sm:$0xff]  }
 0x2a0   : > { %13580 = vmatprep.subr.bf16.mxu0 %v15117_v29 }
 0x2a1   : > { %19311 = vst [vmem:[#allocation120_spill] sm:$0xff] %v17668_v31  ;;  %13581 = vmatpush3.bf16.msra.mxu0 %v15117_v29  ;;  %v15332_v29 = vld [vmem:[%s15807_s29 + $0x260] sm:$0xf] }
 0x2a5   : > { %12823 = vmatmul.mubr.bf16.gmra.mrb[104].mxu1 %v17652_v2  ;;  %13479 = vmatmul.mubr.bf16.gmra.mrb[40].mxu0 %v17421_v18  ;;  %v15333_v18 = vld [vmem:[%s15807_s29 + $0x264] sm:$0xf] }
 0x2a6   : > { %12826 = vmatprep.mubr.bf16.mxu1 %v17656_v33  ;;  %13482 = vmatprep.mubr.bf16.mxu0 %v17427_v58  ;;  %v15327_v58 = vld [vmem:[%s15807_s29 + $0x248] sm:$0xf] }
 0x2a7   : > { %v17680_v46 = vcombine.low %v15326_v59, %v15327_v58  ;;  %v15330_v58 = vld [vmem:[%s15807_s29 + $0x258] sm:$0xf]  ;;  %v15331_v59 = vld [vmem:[%s15807_s29 + $0x25c] sm:$0xf] }
 0x2a9   : > { %19313 = vst [vmem:[#allocation121_spill] sm:$0xff] %v17680_v46 }
 0x2ad   : > { %12827 = vmatmul.mubr.bf16.gmra.mrb[108].mxu1 %v17664_v27  ;;  %13483 = vmatmul.mubr.bf16.gmra.mrb[44].mxu0 %v17459_v62  ;;  %v17692_v62 = vcombine.low %v15330_v58, %v15331_v59  ;;  %v15335_v58 = vld [vmem:[%s15807_s29 + $0x270] sm:$0xf] }
 0x2ae   : > { %12830 = vmatprep.mubr.bf16.mxu1 %v17668_v31  ;;  %13486 = vmatprep.mubr.bf16.mxu0 %v17465_v10  ;;  %v17688_v10 = vcombine.low %v15328_v19, %v15329_v63  ;;  %v17701_v19 = vcombine.low %v15332_v29, %v15333_v18  ;;  %v15334_v63 = vld [vmem:[%s15807_s29 + $0x26c] sm:$0xf] }
 0x2af   : > { %19315 = vst [vmem:[#allocation130_spill] sm:$0xff] %v17692_v62  ;;  %v17705_v59 = vcombine.low %v15334_v63, %v15335_v58  ;;  %v19321_v18 = vld [vmem:[#allocation123_spill] sm:$0xff]  ;;  %v15337_v58 = vld [vmem:[%s15807_s29 + $0x278] sm:$0xf] }
 0x2b0   : > { %19314 = vst [vmem:[#allocation127_spill] sm:$0xff] %v17688_v10  ;;  %19317 = vst [vmem:[#allocation128_spill] sm:$0xff] %v17701_v19 }
 0x2b1   : > { %19318 = vst [vmem:[#allocation131_spill] sm:$0xff] %v17705_v59 }
 0x2b5   : > { %12831 = vmatmul.mubr.bf16.gmra.mrb[112].mxu1 %v17676_v39  ;;  %13487 = vmatmul.mubr.bf16.gmra.mrb[48].mxu0 %v17493_v8 }
 0x2b6   : > { %12834 = vmatprep.mubr.bf16.mxu1 %v17680_v46  ;;  %13490 = vmatprep.mubr.bf16.mxu0 %v17499_v54  ;;  %v19316_v54 = vld [vmem:[#allocation112_spill] sm:$0xff] }
 0x2b7   : > { %v3880_v8 = vrot.slane %v19316_v54, 5  ;;  %v3886_v54 = vrot.slane %v19321_v18, 5  ;;  %v15112_v18 = vld [vmem:[#allocation5 + $0xc8] sm:$0xff]  }
 0x2b9   : > { %v3881_v29 = vsel %vm16165_vm5, %v11097_v44, %v3880_v8  ;;  %v3888_v12 = vrot.slane %v3886_v54, 4  ;;  %v3887_v44 = vsel %vm16165_vm5, %v3885_v38, %v3886_v54  ;;  %v19325_v38 = vld [vmem:[#allocation50_spill] sm:$0xff]  ;;  %v19326_v54 = vld [vmem:[#allocation52_spill] sm:$0xff] }
 0x2bd   : > { %12835 = vmatmul.mubr.bf16.gmra.mrb[116].mxu1 %v17688_v10  ;;  %13491 = vmatmul.mubr.bf16.gmra.mrb[52].mxu0 %v17514_v57  ;;  %v3882_v57 = vrot.slane %v3880_v8, 4  ;;  %v3890_v8 = vsel %vm16165_vm5, %v3888_v12, %v3889_v34  ;;  %v15116_v34 = vld [vmem:[#allocation5 + $0xd8] sm:$0xff]   ;;  %v19324_v12 = vld [vmem:[#allocation49_spill] sm:$0xff] }
 0x2be   : > { %12838 = vmatprep.mubr.bf16.mxu1 %v17692_v62  ;;  %13494 = vmatprep.mubr.bf16.mxu0 %v17520_v41  ;;  %v17720_v41 = vcombine.low %v15336_v49, %v15337_v58  ;;  %v19328_v49 = vld [vmem:[#allocation57_spill] sm:$0xff]  ;;  %v19329_v58 = vld [vmem:[#allocation58_spill] sm:$0xff] }
 0x2bf   : > { %v3884_v63 = vsel %vm16165_vm5, %v3882_v57, %v3883_v37  ;;  %v11130_v57 = vcombine.low %v3887_v44, %v3890_v8  ;;  %v17731_v37 = vld [vmem:[#allocation5 + $0x200] sm:$0xff]   ;;  %v15124_v44 = vld [vmem:[#allocation5 + $0xe8] sm:$0xff]  }
 0x2c0   : > { %19322 = vst [vmem:[#allocation136_spill] sm:$0xff] %v17720_v41  ;;  %13710 = vmatprep.subr.bf16.mxu0 %v17731_v37  ;;  %v19331_v8 = vld [vmem:[#allocation63_spill] sm:$0xff] }
 0x2c5   : > { %12839 = vmatmul.mubr.bf16.gmra.mrb[120].mxu1 %v17701_v19  ;;  %13495 = vmatmul.mubr.bf16.gmra.mrb[56].mxu0 %v17528_v60  ;;  %v11129_v60 = vcombine.low %v3881_v29, %v3884_v63  ;;  %v19323_v29 = vld [vmem:[#allocation48_spill] sm:$0xff]  ;;  %v19327_v63 = vld [vmem:[#allocation54_spill] sm:$0xff] }
 0x2c6   : > { %12842 = vmatprep.mubr.bf16.mxu1 %v17705_v59  ;;  %13498 = vmatprep.mubr.bf16.mxu0 %v17532_v45 }
 0x2cd   : > { %12843 = vmatmul.mubr.bf16.gmra.mrb[124].mxu1 %v17720_v41  ;;  %13499 = vmatmul.mubr.bf16.gmra.mrb[60].mxu0 %v17544_v42 }
 0x2ce   : > { %12862 = vmatprep.mubr.bf16.mxu1 %v11129_v60  ;;  %13502 = vmatprep.mubr.bf16.mxu0 %v17548_v7  ;;  %v15114_v60 = vld [vmem:[#allocation5 + $0xd0] sm:$0xff]  }
 0x2d5   : > { %12863 = vmatmul.mubr.bf16.vlgmr.msra.gmra.mrb[0].mxu1 %v11130_v57  ;;  %13503 = vmatmul.mubr.bf16.gmra.mrb[64].mxu0 %v17556_v51  ;;  %v19332_v57 = vld [vmem:[#allocation65_spill] sm:$0xff] }
 0x2d6   : > { %12991 = vmatpush3.bf16.msra.mxu1 %v17536_v21  ;;  %12866 = vmatprep.mubr.bf16.mxu1 %v19323_v29  ;;  %v15122_v21 = vld [vmem:[#allocation5 + $0xe0] sm:$0xff]  }
 0x2d7   : > { %13506 = vmatprep.mubr.bf16.mxu0 %v17560_v17  ;;  %12992 = vmatprep.subr.bf16.mxu1 %v15112_v18  ;;  %v19334_v29 = vld [vmem:[#allocation68_spill] sm:$0xff] }
 0x2da   : > { %12993 = vmatpush3.bf16.msra.mxu1 %v15112_v18  ;;  %v19333_v18 = vld [vmem:[#allocation67_spill] sm:$0xff] }
 0x2db   : > { %12994 = vmatprep.subr.bf16.mxu1 %v15114_v60 }
 0x2dd   : > { %12867 = vmatmul.mubr.bf16.gmra.mrb[4].mxu1 %v19324_v12  ;;  %13507 = vmatmul.mubr.bf16.gmra.mrb[68].mxu0 %v17568_v53  ;;  %v19337_v12 = vld [vmem:[#allocation74_spill] sm:$0xff] }
 0x2de   : > { %12870 = vmatprep.mubr.bf16.mxu1 %v19325_v38  ;;  %13510 = vmatprep.mubr.bf16.mxu0 %v17572_v61 }
 0x2df   : > { %12995 = vmatpush3.bf16.msra.mxu1 %v15114_v60  ;;  %v19335_v60 = vld [vmem:[#allocation70_spill] sm:$0xff] }
 0x2e0   : > { %12996 = vmatprep.subr.bf16.mxu1 %v15116_v34 }
 0x2e3   : > { %12997 = vmatpush3.bf16.msra.mxu1 %v15116_v34  ;;  %v19336_v34 = vld [vmem:[#allocation72_spill] sm:$0xff] }
 0x2e4   : > { %12998 = vmatprep.subr.bf16.mxu1 %v15122_v21 }
 0x2e5   : > { %12871 = vmatmul.mubr.bf16.gmra.mrb[8].mxu1 %v19326_v54  ;;  %13511 = vmatmul.mubr.bf16.gmra.mrb[72].mxu0 %v17580_v6 }
 0x2e6   : > { %12874 = vmatprep.mubr.bf16.mxu1 %v19327_v63  ;;  %13514 = vmatprep.mubr.bf16.mxu0 %v17584_v50 }
 0x2e7   : > { %12999 = vmatpush3.bf16.msra.mxu1 %v15122_v21  ;;  %v19338_v21 = vld [vmem:[#allocation77_spill] sm:$0xff] }
 0x2e8   : > { %13000 = vmatprep.subr.bf16.mxu1 %v15124_v44 }
 0x2eb   : > { %13001 = vmatpush3.bf16.msra.mxu1 %v15124_v44  ;;  %v15126_v44 = vld [vmem:[#allocation5 + $0xf0] sm:$0xff]  }
 0x2ec   : > { %13002 = vmatprep.subr.bf16.mxu1 %v15126_v44 }
 0x2ed   : > { %12875 = vmatmul.mubr.bf16.gmra.mrb[12].mxu1 %v19328_v49  ;;  %13515 = vmatmul.mubr.bf16.gmra.mrb[76].mxu0 %v17592_v55 }
 0x2ee   : > { %12878 = vmatprep.mubr.bf16.mxu1 %v19329_v58  ;;  %13518 = vmatprep.mubr.bf16.mxu0 %v17596_v36 }
 0x2ef   : > { %13003 = vmatpush3.bf16.msra.mxu1 %v15126_v44  ;;  %v19345_v44 = vld [vmem:[#allocation90_spill] sm:$0xff] }
 0x2f5   : > { %12879 = vmatmul.mubr.bf16.gmra.mrb[16].mxu1 %v19330_v4  ;;  %13519 = vmatmul.mubr.bf16.gmra.mrb[80].mxu0 %v17604_v43 }
 0x2f6   : > { %12882 = vmatprep.mubr.bf16.mxu1 %v19331_v8  ;;  %13522 = vmatprep.mubr.bf16.mxu0 %v17608_v47 }
 0x2fd   : > { %12883 = vmatmul.mubr.bf16.gmra.mrb[20].mxu1 %v19332_v57  ;;  %13523 = vmatmul.mubr.bf16.gmra.mrb[84].mxu0 %v17616_v35 }
 0x2fe   : > { %12886 = vmatprep.mubr.bf16.mxu1 %v19333_v18  ;;  %13526 = vmatprep.mubr.bf16.mxu0 %v17620_v26 }
 0x305   : > { %12887 = vmatmul.mubr.bf16.gmra.mrb[24].mxu1 %v19334_v29  ;;  %13527 = vmatmul.mubr.bf16.gmra.mrb[88].mxu0 %v17628_v3  ;;  %v19344_v3 = vld [vmem:[#allocation88_spill] sm:$0xff] }
 0x306   : > { %12890 = vmatprep.mubr.bf16.mxu1 %v19335_v60  ;;  %13530 = vmatprep.mubr.bf16.mxu0 %v17632_v40  ;;  %v19340_v40 = vld [vmem:[#allocation81_spill] sm:$0xff] }
 0x30d   : > { %12891 = vmatmul.mubr.bf16.gmra.mrb[28].mxu1 %v19336_v34  ;;  %13531 = vmatmul.mubr.bf16.gmra.mrb[92].mxu0 %v17640_v56  ;;  %v19341_v56 = vld [vmem:[#allocation83_spill] sm:$0xff] }
 0x30e   : > { %12894 = vmatprep.mubr.bf16.mxu1 %v19337_v12  ;;  %13534 = vmatprep.mubr.bf16.mxu0 %v17644_v1  ;;  %v19342_v1 = vld [vmem:[#allocation84_spill] sm:$0xff] }
 0x315   : > { %12895 = vmatmul.mubr.bf16.gmra.mrb[32].mxu1 %v19338_v21  ;;  %13535 = vmatmul.mubr.bf16.gmra.mrb[96].mxu0 %v17652_v2  ;;  %v19343_v2 = vld [vmem:[#allocation86_spill] sm:$0xff] }
 0x316   : > { %12898 = vmatprep.mubr.bf16.mxu1 %v19339_v14  ;;  %13538 = vmatprep.mubr.bf16.mxu0 %v17656_v33  ;;  %v19356_v33 = vld [vmem:[#allocation104_spill] sm:$0xff] }
 0x31d   : > { %12899 = vmatmul.mubr.bf16.gmra.mrb[36].mxu1 %v19340_v40  ;;  %13539 = vmatmul.mubr.bf16.gmra.mrb[100].mxu0 %v17664_v27  ;;  %v19346_v27 = vld [vmem:[#allocation93_spill] sm:$0xff]  ;;  %v19377_v40 = vld [vmem:[#allocation151_spill] sm:$0xff] }
 0x31e   : > { %12902 = vmatprep.mubr.bf16.mxu1 %v19341_v56  ;;  %13542 = vmatprep.mubr.bf16.mxu0 %v17668_v31  ;;  %v15128_v31 = vld [vmem:[#allocation5 + $0xf8] sm:$0xff]   ;;  %v15127_v56 = vld [vmem:[#allocation5 + $0x210] sm:$0xff]  }
 0x31f   : > { %13004 = vmatprep.subr.bf16.mxu1 %v15128_v31 }
 0x320   : > { %13005 = vmatpush3.bf16.msra.mxu1 %v15128_v31  ;;  %v17800_v31 = vld [vmem:[%s15807_s29 + $0x298] sm:$0xf] }
 0x321   : > { %19352 = vst [vmem:[#allocation139_spill] sm:$0xff] %v17800_v31 }
 0x325   : > { %12903 = vmatmul.mubr.bf16.gmra.mrb[40].mxu1 %v19342_v1  ;;  %13543 = vmatmul.mubr.bf16.gmra.mrb[104].mxu0 %v17676_v39  ;;  %v19347_v39 = vld [vmem:[#allocation95_spill] sm:$0xff] }
 0x326   : > { %12906 = vmatprep.mubr.bf16.mxu1 %v19343_v2  ;;  %13546 = vmatprep.mubr.bf16.mxu0 %v17680_v46  ;;  %v17785_v46 = vld [vmem:[#allocation5 + $0x100] sm:$0xff]   ;;  %v19358_v2 = vld [vmem:[#allocation17_spill] sm:$0xff] }
 0x327   : > { %13854 = vmatprep.subr.bf16.mxu1 %v17785_v46  ;;  %v19359_v1 = vld [vmem:[#allocation115_spill] sm:$0xff] }
 0x32d   : > { %12907 = vmatmul.mubr.bf16.gmra.mrb[44].mxu1 %v19344_v3  ;;  %13547 = vmatmul.mubr.bf16.gmra.mrb[108].mxu0 %v17688_v10  ;;  %v19349_v10 = vld [vmem:[#allocation97_spill] sm:$0xff]  ;;  %v19357_v3 = vld [vmem:[#allocation106_spill] sm:$0xff] }
 0x32e   : > { %12910 = vmatprep.mubr.bf16.mxu1 %v19345_v44  ;;  %13550 = vmatprep.mubr.bf16.mxu0 %v17692_v62  ;;  %v17790_v62 = vcombine.low %v17452_v32, %v17435_v23  ;;  %v19354_v44 = vld [vmem:[#allocation100_spill] sm:$0xff] }
 0x330   : > { %19348 = vst [vmem:[#allocation138_spill] sm:$0xff] %v17790_v62 }
 0x335   : > { %12911 = vmatmul.mubr.bf16.gmra.mrb[48].mxu1 %v19346_v27  ;;  %13551 = vmatmul.mubr.bf16.gmra.mrb[112].mxu0 %v17701_v19  ;;  %v19350_v19 = vld [vmem:[#allocation99_spill] sm:$0xff] }
 0x336   : > { %12914 = vmatprep.mubr.bf16.mxu1 %v19347_v39  ;;  %13554 = vmatprep.mubr.bf16.mxu0 %v17705_v59  ;;  %v17797_v59 = vld [vmem:[%s15807_s29 + $0x294] sm:$0xf]  ;;  %v17804_v39 = vcombine.low %v17455_v15, %v17473_v5 }
 0x337   : > { %19351 = vst [vmem:[#allocation137_spill] sm:$0xff] %v17797_v59  ;;  %v11232_v27 = vcombine.low %v17797_v59, %v17800_v31 }
 0x338   : > { %19353 = vst [vmem:[#allocation144_spill] sm:$0xff] %v17804_v39 }
 0x33d   : > { %12915 = vmatmul.mubr.bf16.gmra.mrb[52].mxu1 %v19349_v10  ;;  %13555 = vmatmul.mubr.bf16.gmra.mrb[116].mxu0 %v17720_v41  ;;  %v19355_v41 = vld [vmem:[#allocation102_spill] sm:$0xff] }
 0x33e   : > { %12918 = vmatprep.mubr.bf16.mxu1 %v19350_v19  ;;  %13558 = vmatprep.mubr.bf16.mxu0 %v17790_v62  ;;  %v17812_v19 = vld [vmem:[%s15807_s29 + $0x29c] sm:$0xf]  ;;  %v17815_v62 = vld [vmem:[%s15807_s29 + $0x2a0] sm:$0xf] }
 0x33f   : > { %v11233_v10 = vcombine.low %v17812_v19, %v17815_v62 }
 0x345   : > { %12919 = vmatmul.mubr.bf16.gmra.mrb[56].mxu1 %v19354_v44  ;;  %13559 = vmatmul.mubr.bf16.gmra.mrb[120].mxu0 %v17804_v39  ;;  %v15125_v44 = vld [vmem:[#allocation5 + $0x208] sm:$0xff]   ;;  %v19360_v39 = vld [vmem:[#allocation18_spill] sm:$0xff] }
 0x346   : > { %12922 = vmatprep.mubr.bf16.mxu1 %v19355_v41  ;;  %13562 = vmatprep.mubr.bf16.mxu0 %v11232_v27  ;;  %v19361_v27 = vld [vmem:[#allocation116_spill] sm:$0xff]  ;;  %v19362_v41 = vld [vmem:[#allocation19_spill] sm:$0xff] }
 0x34d   : > { %12923 = vmatmul.mubr.bf16.gmra.mrb[60].mxu1 %v19356_v33  ;;  %13563 = vmatmul.mubr.bf16.gmra.mrb[124].mxu0 %v11233_v10  ;;  %v15129_v10 = vld [vmem:[#allocation5 + $0x218] sm:$0xff]   ;;  %v19363_v33 = vld [vmem:[#allocation124_spill] sm:$0xff] }
 0x34e   : > { %12926 = vmatprep.mubr.bf16.mxu1 %v19357_v3  ;;  %13582 = vmatprep.mubr.bf16.mxu0 %v19358_v2  ;;  %v19364_v3 = vld [vmem:[#allocation20_spill] sm:$0xff]  ;;  %v19365_v2 = vld [vmem:[#allocation126_spill] sm:$0xff] }
 0x355   : > { %12927 = vmatmul.mubr.bf16.gmra.mrb[64].mxu1 %v19359_v1  ;;  %13583 = vmatmul.mubr.bf16.vlgmr.msra.gmra.mrb[0].mxu0 %v19360_v39  ;;  %v19366_v1 = vld [vmem:[#allocation21_spill] sm:$0xff]  ;;  %v15130_v39 = vld [vmem:[#allocation5 + $0x220] sm:$0xff]  }
 0x356   : > { %13711 = vmatpush3.bf16.msra.mxu0 %v17731_v37  ;;  %12930 = vmatprep.mubr.bf16.mxu1 %v19361_v27  ;;  %v19367_v37 = vld [vmem:[#allocation133_spill] sm:$0xff]  ;;  %v19370_v27 = vld [vmem:[#allocation23_spill] sm:$0xff] }
 0x357   : > { %13586 = vmatprep.mubr.bf16.mxu0 %v19362_v41  ;;  %13712 = vmatprep.subr.bf16.mxu0 %v15125_v44  ;;  %v19368_v41 = vld [vmem:[#allocation22_spill] sm:$0xff] }
 0x35a   : > { %13713 = vmatpush3.bf16.msra.mxu0 %v15125_v44  ;;  %v19369_v44 = vld [vmem:[#allocation135_spill] sm:$0xff] }
 0x35b   : > { %13714 = vmatprep.subr.bf16.mxu0 %v15127_v56 }
 0x35d   : > { %12931 = vmatmul.mubr.bf16.gmra.mrb[68].mxu1 %v19363_v33  ;;  %13587 = vmatmul.mubr.bf16.gmra.mrb[4].mxu0 %v19364_v3  ;;  %v19371_v33 = vld [vmem:[#allocation141_spill] sm:$0xff]  ;;  %v19372_v3 = vld [vmem:[#allocation24_spill] sm:$0xff] }
 0x35e   : > { %12934 = vmatprep.mubr.bf16.mxu1 %v19365_v2  ;;  %13590 = vmatprep.mubr.bf16.mxu0 %v19366_v1  ;;  %v19373_v2 = vld [vmem:[#allocation143_spill] sm:$0xff]  ;;  %v19375_v1 = vld [vmem:[#allocation149_spill] sm:$0xff] }
 0x35f   : > { %13715 = vmatpush3.bf16.msra.mxu0 %v15127_v56  ;;  %v19374_v56 = vld [vmem:[#allocation25_spill] sm:$0xff] }
 0x360   : > { %13716 = vmatprep.subr.bf16.mxu0 %v15129_v10 }
 0x363   : > { %13717 = vmatpush3.bf16.msra.mxu0 %v15129_v10  ;;  %v19376_v10 = vld [vmem:[#allocation26_spill] sm:$0xff] }
 0x364   : > { %13718 = vmatprep.subr.bf16.mxu0 %v15130_v39 }
 0x365   : > { %12935 = vmatmul.mubr.bf16.gmra.mrb[72].mxu1 %v19367_v37  ;;  %13591 = vmatmul.mubr.bf16.gmra.mrb[8].mxu0 %v19368_v41  ;;  %v15131_v37 = vld [vmem:[#allocation5 + $0x228] sm:$0xff]   ;;  %v19378_v41 = vld [vmem:[#allocation27_spill] sm:$0xff] }
 0x366   : > { %12938 = vmatprep.mubr.bf16.mxu1 %v19369_v44  ;;  %13594 = vmatprep.mubr.bf16.mxu0 %v19370_v27  ;;  %v19379_v27 = vld [vmem:[#allocation157_spill] sm:$0xff] }
 0x367   : > { %13719 = vmatpush3.bf16.msra.mxu0 %v15130_v39  ;;  %v19380_v39 = vld [vmem:[#allocation28_spill] sm:$0xff] }
 0x368   : > { %13720 = vmatprep.subr.bf16.mxu0 %v15131_v37 }
 0x36b   : > { %13721 = vmatpush3.bf16.msra.mxu0 %v15131_v37  ;;  %v19389_v37 = vld [vmem:[#allocation175_spill] sm:$0xff] }
 0x36d   : > { %12939 = vmatmul.mubr.bf16.gmra.mrb[76].mxu1 %v19371_v33  ;;  %13595 = vmatmul.mubr.bf16.gmra.mrb[12].mxu0 %v19372_v3  ;;  %v19381_v3 = vld [vmem:[#allocation159_spill] sm:$0xff] }
 0x36e   : > { %12942 = vmatprep.mubr.bf16.mxu1 %v19373_v2  ;;  %13598 = vmatprep.mubr.bf16.mxu0 %v19374_v56  ;;  %v19382_v2 = vld [vmem:[#allocation29_spill] sm:$0xff]  ;;  %v19386_v33 = vld [vmem:[#allocation31_spill] sm:$0xff] }
 0x36f   : > { %v19383_v56 = vld [vmem:[#allocation165_spill] sm:$0xff] }
 0x375   : > { %12943 = vmatmul.mubr.bf16.gmra.mrb[80].mxu1 %v19375_v1  ;;  %13599 = vmatmul.mubr.bf16.gmra.mrb[16].mxu0 %v19376_v10  ;;  %v19384_v1 = vld [vmem:[#allocation30_spill] sm:$0xff]  ;;  %v19385_v10 = vld [vmem:[#allocation167_spill] sm:$0xff] }
 0x376   : > { %12946 = vmatprep.mubr.bf16.mxu1 %v19377_v40  ;;  %13602 = vmatprep.mubr.bf16.mxu0 %v19378_v41  ;;  %v19387_v40 = vld [vmem:[#allocation173_spill] sm:$0xff]  ;;  %v19388_v41 = vld [vmem:[#allocation32_spill] sm:$0xff] }
 0x37d   : > { %12947 = vmatmul.mubr.bf16.gmra.mrb[84].mxu1 %v19379_v27  ;;  %13603 = vmatmul.mubr.bf16.gmra.mrb[20].mxu0 %v19380_v39  ;;  %v19390_v27 = vld [vmem:[#allocation33_spill] sm:$0xff] }
 0x37e   : > { %12950 = vmatprep.mubr.bf16.mxu1 %v19381_v3  ;;  %13606 = vmatprep.mubr.bf16.mxu0 %v19382_v2  ;;  %v19391_v39 = vld [vmem:[#allocation181_spill] sm:$0xff]  ;;  %v19392_v3 = vld [vmem:[#allocation34_spill] sm:$0xff] }
 0x37f   : > { %v15132_v2 = vld [vmem:[#allocation5 + $0x230] sm:$0xff]  }
 0x380   : > { %13722 = vmatprep.subr.bf16.mxu0 %v15132_v2 }
 0x381   : > { %13723 = vmatpush3.bf16.msra.mxu0 %v15132_v2  ;;  %v19400_v2 = vld [vmem:[#allocation41_spill] sm:$0xff] }
 0x385   : > { %12951 = vmatmul.mubr.bf16.gmra.mrb[88].mxu1 %v19383_v56  ;;  %13607 = vmatmul.mubr.bf16.gmra.mrb[24].mxu0 %v19384_v1  ;;  %v19393_v56 = vld [vmem:[#allocation183_spill] sm:$0xff] }
 0x386   : > { %12954 = vmatprep.mubr.bf16.mxu1 %v19385_v10  ;;  %13610 = vmatprep.mubr.bf16.mxu0 %v19386_v33  ;;  %v19394_v1 = vld [vmem:[#allocation35_spill] sm:$0xff]  ;;  %v19395_v33 = vld [vmem:[#allocation36_spill] sm:$0xff]  ;;  %v19456_v10 = vld [vmem:[#allocation205_spill] sm:$0xff] }
 0x38d   : > { %12955 = vmatmul.mubr.bf16.gmra.mrb[92].mxu1 %v19387_v40  ;;  %13611 = vmatmul.mubr.bf16.gmra.mrb[28].mxu0 %v19388_v41  ;;  %v19396_v41 = vld [vmem:[#allocation37_spill] sm:$0xff] }
 0x38e   : > { %12958 = vmatprep.mubr.bf16.mxu1 %v19389_v37  ;;  %13614 = vmatprep.mubr.bf16.mxu0 %v19390_v27  ;;  %v19397_v27 = vld [vmem:[#allocation38_spill] sm:$0xff]  ;;  %v19438_v37 = vld [vmem:[#allocation187_spill] sm:$0xff] }
 0x395   : > { %12959 = vmatmul.mubr.bf16.gmra.mrb[96].mxu1 %v19391_v39  ;;  %13615 = vmatmul.mubr.bf16.gmra.mrb[32].mxu0 %v19392_v3  ;;  %v19398_v3 = vld [vmem:[#allocation39_spill] sm:$0xff]  ;;  %v19435_v39 = vld [vmem:[#allocation80_spill] sm:$0xff] }
 0x396   : > { %12962 = vmatprep.mubr.bf16.mxu1 %v19393_v56  ;;  %13618 = vmatprep.mubr.bf16.mxu0 %v19394_v1  ;;  %v19399_v1 = vld [vmem:[#allocation40_spill] sm:$0xff]  ;;  %v19432_v56 = vld [vmem:[#allocation174_spill] sm:$0xff] }
 0x39d   : > { %12963 = vmatmul.mubr.bf16.gmra.mrb[100].mxu1 %v17304_v24  ;;  %13619 = vmatmul.mubr.bf16.gmra.mrb[36].mxu0 %v19395_v33  ;;  %v19401_v33 = vld [vmem:[#allocation42_spill] sm:$0xff]  ;;  %v19430_v24 = vld [vmem:[#allocation172_spill] sm:$0xff] }
 0x39e   : > { %12966 = vmatprep.mubr.bf16.mxu1 %v17310_v52  ;;  %13622 = vmatprep.mubr.bf16.mxu0 %v19396_v41  ;;  %v15133_v41 = vld [vmem:[#allocation5 + $0x238] sm:$0xff]  }
 0x39f   : > { %13724 = vmatprep.subr.bf16.mxu0 %v15133_v41  ;;  %v19428_v52 = vld [vmem:[#allocation166_spill] sm:$0xff] }
 0x3a0   : > { %13725 = vmatpush3.bf16.msra.mxu0 %v15133_v41  ;;  %v19408_v41 = vld [vmem:[#allocation125_spill] sm:$0xff] }
 0x3a5   : > { %12967 = vmatmul.mubr.bf16.gmra.mrb[104].mxu1 %v17336_v11  ;;  %13623 = vmatmul.mubr.bf16.gmra.mrb[40].mxu0 %v19397_v27  ;;  %v19402_v27 = vld [vmem:[#allocation43_spill] sm:$0xff] }
 0x3a6   : > { %12970 = vmatprep.mubr.bf16.mxu1 %v17342_v9  ;;  %13626 = vmatprep.mubr.bf16.mxu0 %v19398_v3  ;;  %v19403_v3 = vld [vmem:[#allocation44_spill] sm:$0xff]  ;;  %v19423_v9 = vld [vmem:[#allocation69_spill] sm:$0xff]  ;;  %v19425_v11 = vld [vmem:[#allocation71_spill] sm:$0xff] }
 0x3ad   : > { %12971 = vmatmul.mubr.bf16.gmra.mrb[108].mxu1 %v17365_v13  ;;  %13627 = vmatmul.mubr.bf16.gmra.mrb[44].mxu0 %v19399_v1  ;;  %v19404_v1 = vld [vmem:[#allocation46_spill] sm:$0xff] }
 0x3ae   : > { %12974 = vmatprep.mubr.bf16.mxu1 %v17371_v48  ;;  %13630 = vmatprep.mubr.bf16.mxu0 %v19400_v2  ;;  %v19405_v2 = vld [vmem:[#allocation47_spill] sm:$0xff]  ;;  %v19419_v48 = vld [vmem:[#allocation64_spill] sm:$0xff]  ;;  %v19421_v13 = vld [vmem:[#allocation66_spill] sm:$0xff] }
 0x3b5   : > { %12975 = vmatmul.mubr.bf16.gmra.mrb[112].mxu1 %v17394_v20  ;;  %13631 = vmatmul.mubr.bf16.gmra.mrb[48].mxu0 %v19401_v33  ;;  %v19406_v33 = vld [vmem:[#allocation51_spill] sm:$0xff] }
 0x3b6   : > { %12978 = vmatprep.mubr.bf16.mxu1 %v17400_v0  ;;  %13634 = vmatprep.mubr.bf16.mxu0 %v19402_v27  ;;  %v19407_v27 = vld [vmem:[#allocation53_spill] sm:$0xff]  ;;  %v19416_v0 = vld [vmem:[#allocation142_spill] sm:$0xff] }
 0x3b7   : > { %v15342_v20 = vld [vmem:[#allocation5 + $0x118] sm:$0xff]  }
 0x3bd   : > { %12979 = vmatmul.mubr.bf16.gmra.mrb[116].mxu1 %v17423_v16  ;;  %13635 = vmatmul.mubr.bf16.gmra.mrb[52].mxu0 %v19403_v3  ;;  %v19409_v16 = vld [vmem:[#allocation55_spill] sm:$0xff]  ;;  %v19410_v3 = vld [vmem:[#allocation132_spill] sm:$0xff] }
 0x3be   : > { %12982 = vmatprep.mubr.bf16.mxu1 %v17429_v30  ;;  %13638 = vmatprep.mubr.bf16.mxu0 %v19404_v1  ;;  %v19411_v30 = vld [vmem:[#allocation56_spill] sm:$0xff]  ;;  %v19412_v1 = vld [vmem:[#allocation134_spill] sm:$0xff] }
 0x3c5   : > { %12983 = vmatmul.mubr.bf16.gmra.mrb[120].mxu1 %v17461_v22  ;;  %13639 = vmatmul.mubr.bf16.gmra.mrb[56].mxu0 %v19405_v2  ;;  %v19413_v2 = vld [vmem:[#allocation59_spill] sm:$0xff]  ;;  %v19414_v22 = vld [vmem:[#allocation140_spill] sm:$0xff] }
 0x3c6   : > { %12986 = vmatprep.mubr.bf16.mxu1 %v17467_v28  ;;  %13642 = vmatprep.mubr.bf16.mxu0 %v19406_v33  ;;  %v15340_v28 = vld [vmem:[#allocation5 + $0x108] sm:$0xff]  }
 0x3cd   : > { %12987 = vmatmul.mubr.bf16.gmra.mrb[124].mxu1 %v17495_v25  ;;  %13643 = vmatmul.mubr.bf16.gmra.mrb[60].mxu0 %v19407_v27  ;;  %v15341_v25 = vld [vmem:[#allocation5 + $0x110] sm:$0xff]  }
 0x3ce   : > { %13006 = vmatprep.mubr.bf16.mxu1 %v19408_v41  ;;  %13646 = vmatprep.mubr.bf16.mxu0 %v19409_v16  ;;  %v19415_v41 = vld [vmem:[#allocation60_spill] sm:$0xff]  ;;  %v17964_v16 = vld [vmem:[%s15807_s29 + $0x2a4] sm:$0xf] }
 0x3d5   : > { %13007 = vmatmul.mubr.bf16.vlgmr.msra.gmra.mrb[0].mxu1 %v19410_v3  ;;  %13647 = vmatmul.mubr.bf16.gmra.mrb[64].mxu0 %v19411_v30  ;;  %v19417_v3 = vld [vmem:[#allocation62_spill] sm:$0xff] }
 0x3d6   : > { %13862 = vmatpush3.bf16.msra.mxu1 %v17785_v46  ;;  %13010 = vmatprep.mubr.bf16.mxu1 %v19412_v1  ;;  %v15343_v46 = vld [vmem:[#allocation5 + $0x120] sm:$0xff]  }
 0x3d7   : > { %13650 = vmatprep.mubr.bf16.mxu0 %v19413_v2  ;;  %13855 = vmatprep.subr.bf16.mxu1 %v15340_v28  ;;  %v19418_v1 = vld [vmem:[#allocation148_spill] sm:$0xff] }
 0x3da   : > { %13863 = vmatpush3.bf16.msra.mxu1 %v15340_v28  ;;  %v19420_v28 = vld [vmem:[#allocation150_spill] sm:$0xff] }
 0x3db   : > { %13856 = vmatprep.subr.bf16.mxu1 %v15341_v25 }
 0x3dd   : > { %13011 = vmatmul.mubr.bf16.gmra.mrb[4].mxu1 %v19414_v22  ;;  %13651 = vmatmul.mubr.bf16.gmra.mrb[68].mxu0 %v19415_v41  ;;  %v15344_v22 = vld [vmem:[#allocation5 + $0x128] sm:$0xff]  }
 0x3de   : > { %13014 = vmatprep.mubr.bf16.mxu1 %v19416_v0  ;;  %13654 = vmatprep.mubr.bf16.mxu0 %v19417_v3  ;;  %v15345_v0 = vld [vmem:[#allocation5 + $0x130] sm:$0xff]  }
 0x3df   : > { %13864 = vmatpush3.bf16.msra.mxu1 %v15341_v25  ;;  %v19422_v25 = vld [vmem:[#allocation156_spill] sm:$0xff] }
 0x3e0   : > { %13857 = vmatprep.subr.bf16.mxu1 %v15342_v20 }
 0x3e3   : > { %13865 = vmatpush3.bf16.msra.mxu1 %v15342_v20  ;;  %v19424_v20 = vld [vmem:[#allocation158_spill] sm:$0xff] }
 0x3e4   : > { %13858 = vmatprep.subr.bf16.mxu1 %v15343_v46 }
 0x3e5   : > { %13015 = vmatmul.mubr.bf16.gmra.mrb[8].mxu1 %v19418_v1  ;;  %13655 = vmatmul.mubr.bf16.gmra.mrb[72].mxu0 %v19419_v48  ;;  %v15346_v1 = vld [vmem:[#allocation5 + $0x138] sm:$0xff]  }
 0x3e6   : > { %13018 = vmatprep.mubr.bf16.mxu1 %v19420_v28  ;;  %13658 = vmatprep.mubr.bf16.mxu0 %v19421_v13  ;;  %v19426_v28 = vld [vmem:[#allocation164_spill] sm:$0xff] }
 0x3e7   : > { %13866 = vmatpush3.bf16.msra.mxu1 %v15343_v46  ;;  %v19427_v46 = vld [vmem:[#allocation73_spill] sm:$0xff] }
 0x3e8   : > { %13859 = vmatprep.subr.bf16.mxu1 %v15344_v22 }
 0x3eb   : > { %13867 = vmatpush3.bf16.msra.mxu1 %v15344_v22  ;;  %v19429_v22 = vld [vmem:[#allocation75_spill] sm:$0xff] }
 0x3ec   : > { %13860 = vmatprep.subr.bf16.mxu1 %v15345_v0 }
 0x3ed   : > { %13019 = vmatmul.mubr.bf16.gmra.mrb[12].mxu1 %v19422_v25  ;;  %13659 = vmatmul.mubr.bf16.gmra.mrb[76].mxu0 %v19423_v9  ;;  %v19431_v25 = vld [vmem:[#allocation76_spill] sm:$0xff] }
 0x3ee   : > { %13022 = vmatprep.mubr.bf16.mxu1 %v19424_v20  ;;  %13662 = vmatprep.mubr.bf16.mxu0 %v19425_v11  ;;  %v19433_v20 = vld [vmem:[#allocation78_spill] sm:$0xff]  ;;  %v19457_v11 = vld [vmem:[#allocation103_spill] sm:$0xff] }
 0x3ef   : > { %13868 = vmatpush3.bf16.msra.mxu1 %v15345_v0  ;;  %v19434_v0 = vld [vmem:[#allocation180_spill] sm:$0xff] }
 0x3f0   : > { %13861 = vmatprep.subr.bf16.mxu1 %v15346_v1 }
 0x3f3   : > { %13869 = vmatpush3.bf16.msra.mxu1 %v15346_v1  ;;  %v19436_v1 = vld [vmem:[#allocation182_spill] sm:$0xff] }
 0x3f5   : > { %13023 = vmatmul.mubr.bf16.gmra.mrb[16].mxu1 %v19426_v28  ;;  %13663 = vmatmul.mubr.bf16.gmra.mrb[80].mxu0 %v19427_v46  ;;  %v19437_v28 = vld [vmem:[#allocation82_spill] sm:$0xff]  ;;  %v19454_v46 = vld [vmem:[#allocation203_spill] sm:$0xff] }
 0x3f6   : > { %13026 = vmatprep.mubr.bf16.mxu1 %v19428_v52  ;;  %13666 = vmatprep.mubr.bf16.mxu0 %v19429_v22  ;;  %v19439_v52 = vld [vmem:[#allocation85_spill] sm:$0xff] }
 0x3f7   : > { %v19440_v22 = vld [vmem:[#allocation189_spill] sm:$0xff] }
 0x3fd   : > { %13027 = vmatmul.mubr.bf16.gmra.mrb[20].mxu1 %v19430_v24  ;;  %13667 = vmatmul.mubr.bf16.gmra.mrb[84].mxu0 %v19431_v25  ;;  %v19441_v24 = vld [vmem:[#allocation87_spill] sm:$0xff] }
 0x3fe   : > { %13030 = vmatprep.mubr.bf16.mxu1 %v19432_v56  ;;  %13670 = vmatprep.mubr.bf16.mxu0 %v19433_v20  ;;  %v19442_v25 = vld [vmem:[#allocation191_spill] sm:$0xff]  ;;  %v19443_v56 = vld [vmem:[#allocation89_spill] sm:$0xff] }
 0x3ff   : > { %v19444_v20 = vld [vmem:[#allocation193_spill] sm:$0xff] }
 0x405   : > { %13031 = vmatmul.mubr.bf16.gmra.mrb[24].mxu1 %v19434_v0  ;;  %13671 = vmatmul.mubr.bf16.gmra.mrb[88].mxu0 %v19435_v39  ;;  %v19445_v0 = vld [vmem:[#allocation91_spill] sm:$0xff] }
 0x406   : > { %13034 = vmatprep.mubr.bf16.mxu1 %v19436_v1  ;;  %13674 = vmatprep.mubr.bf16.mxu0 %v19437_v28  ;;  %v19446_v39 = vld [vmem:[#allocation195_spill] sm:$0xff]  ;;  %v19447_v1 = vld [vmem:[#allocation92_spill] sm:$0xff]  ;;  %v19448_v28 = vld [vmem:[#allocation197_spill] sm:$0xff] }
 0x40d   : > { %13035 = vmatmul.mubr.bf16.gmra.mrb[28].mxu1 %v19438_v37  ;;  %13675 = vmatmul.mubr.bf16.gmra.mrb[92].mxu0 %v19439_v52  ;;  %v19449_v37 = vld [vmem:[#allocation94_spill] sm:$0xff]  ;;  %v19450_v52 = vld [vmem:[#allocation199_spill] sm:$0xff] }
 0x40e   : > { %13038 = vmatprep.mubr.bf16.mxu1 %v19440_v22  ;;  %13678 = vmatprep.mubr.bf16.mxu0 %v19441_v24  ;;  %v19451_v22 = vld [vmem:[#allocation96_spill] sm:$0xff]  ;;  %v19452_v24 = vld [vmem:[#allocation201_spill] sm:$0xff] }
 0x415   : > { %13039 = vmatmul.mubr.bf16.gmra.mrb[32].mxu1 %v19442_v25  ;;  %13679 = vmatmul.mubr.bf16.gmra.mrb[96].mxu0 %v19443_v56  ;;  %v19453_v25 = vld [vmem:[#allocation98_spill] sm:$0xff] }
 0x416   : > { %13042 = vmatprep.mubr.bf16.mxu1 %v19444_v20  ;;  %13682 = vmatprep.mubr.bf16.mxu0 %v19445_v0  ;;  %v6005_v20 = vshrl.u32 %v17452_v32, 16  ;;  %v6008_v0 = vshll.u32 %v17452_v32, 16  ;;  %v6038_v32 = vshrl.u32 %v17473_v5, 16 }
 0x418   : > { %v6007_v56 = vrot.slane %v6005_v20, 4  ;;  %v8267_v20 = vshrl.u32 %v17800_v31, 16  ;;  %v6040_v13 = vrot.slane %v6038_v32, 4  ;;  %v19462_v32 = vld [vmem:[#allocation107_spill] sm:$0xff] }
 0x41d   : > { %13043 = vmatmul.mubr.bf16.gmra.mrb[36].mxu1 %v19446_v39  ;;  %13683 = vmatmul.mubr.bf16.gmra.mrb[100].mxu0 %v19447_v1  ;;  %v6014_v39 = vshll.u32 %v17435_v23, 16  ;;  %v6018_v1 = vshrl.u32 %v17435_v23, 16 }
 0x41e   : > { %13046 = vmatprep.mubr.bf16.mxu1 %v19448_v28  ;;  %13686 = vmatprep.mubr.bf16.mxu0 %v19449_v37  ;;  %v6010_v28 = vrot.slane %v6008_v0, 5 }
 0x41f   : > { %v6016_v40 = vrot.slane %v6014_v39, 5  ;;  %v6020_v37 = vrot.slane %v6018_v1, 4  ;;  %v8254_v1 = vshrl.u32 %v17797_v59, 16  ;;  %v8263_v39 = vshll.u32 %v17800_v31, 16 }
 0x420   : > { %v6011_v23 = vor.u32 %v6010_v28, %v6007_v56  ;;  %v8277_v56 = vshrl.u32 %v17812_v19, 16  ;;  %v19458_v28 = vld [vmem:[#allocation207_spill] sm:$0xff] }
 0x421   : > { %v6021_v0 = vor.u32 %v6020_v37, %v6016_v40  ;;  %v8256_v3 = vrot.slane %v8254_v1, 4  ;;  %v8265_v41 = vrot.slane %v8263_v39, 5  ;;  %v8287_v37 = vshrl.u32 %v17815_v62, 16 }
 0x422   : > { %v6012_v48 = vrot.slane %v6011_v23, 4  ;;  %v19493_v23 = vld [vmem:[#allocation102_spill] sm:$0xff] }
 0x423   : > { %v8289_v44 = vrot.slane %v8287_v37, 4 }
 0x425   : > { %13047 = vmatmul.mubr.bf16.gmra.mrb[40].mxu1 %v19450_v52  ;;  %13687 = vmatmul.mubr.bf16.gmra.mrb[104].mxu0 %v19451_v22  ;;  %v19455_v52 = vld [vmem:[#allocation101_spill] sm:$0xff]  ;;  %v6034_v22 = vshll.u32 %v17473_v5, 16  ;;  %v6022_v5 = vrot.slane %v6021_v0, 4  ;;  %v6017_v0 = vsel %vm15829_vm2, %v6012_v48, %v6016_v40 }
 0x426   : > { %13050 = vmatprep.mubr.bf16.mxu1 %v19452_v24  ;;  %13690 = vmatprep.mubr.bf16.mxu0 %v19453_v25  ;;  %v6024_v24 = vshll.u32 %v17455_v15, 16  ;;  %v6028_v25 = vshrl.u32 %v17455_v15, 16 }
 0x427   : > { %v6036_v9 = vrot.slane %v6034_v22, 5  ;;  %v19461_v22 = vld [vmem:[#allocation209_spill] sm:$0xff] }
 0x428   : > { %v6030_v15 = vrot.slane %v6028_v25, 4 }
 0x429   : > { %v6041_v31 = vor.u32 %v6040_v13, %v6036_v9 }
 0x42d   : > { %13051 = vmatmul.mubr.bf16.gmra.mrb[44].mxu1 %v19454_v46  ;;  %13691 = vmatmul.mubr.bf16.gmra.mrb[108].mxu0 %v19455_v52  ;;  %v8257_v46 = vshll.u32 %v17797_v59, 16  ;;  %v6026_v52 = vrot.slane %v6024_v24, 5  ;;  %v19459_v59 = vld [vmem:[#allocation105_spill] sm:$0xff]  ;;  %v19460_v24 = vld [vmem:[#allocation211_spill] sm:$0xff] }
 0x42e   : > { %13054 = vmatprep.mubr.bf16.mxu1 %v19456_v10  ;;  %13694 = vmatprep.mubr.bf16.mxu0 %v19457_v11  ;;  %v8269_v11 = vrot.slane %v8267_v20, 4  ;;  %v6044_v25 = vshll.u32 %v19460_v24, 16  ;;  %v8283_v20 = vshll.u32 %v17815_v62, 16  ;;  %v6042_v24 = vrot.slane %v6041_v31, 4 }
 0x42f   : > { %v8259_v10 = vrot.slane %v8257_v46, 5  ;;  %v6031_v2 = vor.u32 %v6030_v15, %v6026_v52  ;;  %v6027_v1 = vsel %vm15829_vm2, %v6022_v5, %v6026_v52  ;;  %v8273_v46 = vshll.u32 %v17812_v19, 16  ;;  %v19464_v52 = vld [vmem:[#allocation212_spill] sm:$0xff]  ;;  %v19465_v5 = vld [vmem:[#allocation114_spill] sm:$0xff] }
 0x430   : > { %v8270_v15 = vor.u32 %v8269_v11, %v8265_v41  ;;  %v17961_v13 = vcombine.low %v6017_v0, %v6027_v1  ;;  %v8285_v30 = vrot.slane %v8283_v20, 5 }
 0x431   : > { %v8260_v39 = vor.u32 %v8259_v10, %v8256_v3  ;;  %v19466_v3 = vld [vmem:[#allocation214_spill] sm:$0xff] }
 0x432   : > { %v8271_v40 = vrot.slane %v8270_v15, 4  ;;  %v8290_v10 = vor.u32 %v8289_v44, %v8285_v30  ;;  %v19469_v15 = vld [vmem:[#allocation219_spill] sm:$0xff] }
 0x433   : > { %v8261_v48 = vrot.slane %v8260_v39, 4  ;;  %v19467_v39 = vld [vmem:[#allocation216_spill] sm:$0xff] }
 0x435   : > { %13055 = vmatmul.mubr.bf16.gmra.mrb[48].mxu1 %v19458_v28  ;;  %13695 = vmatmul.mubr.bf16.gmra.mrb[112].mxu0 %v19459_v59  ;;  %v6032_v28 = vrot.slane %v6031_v2, 4  ;;  %v8275_v59 = vrot.slane %v8273_v46, 5  ;;  %v8266_v37 = vsel %vm15829_vm2, %v8261_v48, %v8265_v41  ;;  %v8291_v46 = vrot.slane %v8290_v10, 4 }
 0x436   : > { %13058 = vmatprep.mubr.bf16.mxu1 %v19461_v22  ;;  %13698 = vmatprep.mubr.bf16.mxu0 %v19462_v32  ;;  %v6046_v22 = vrot.slane %v6044_v25, 5  ;;  %v8279_v32 = vrot.slane %v8277_v56, 4  ;;  %v8293_v56 = vshll.u32 %v17964_v16, 16 }
 0x437   : > { %v6037_v11 = vsel %vm15829_vm2, %v6032_v28, %v6036_v9  ;;  %v8276_v25 = vsel %vm15829_vm2, %v8271_v40, %v8275_v59  ;;  %v19494_v40 = vld [vmem:[#allocation128_spill] sm:$0xff] }
 0x438   : > { %v6047_v31 = vsel %vm15829_vm2, %v6042_v24, %v6046_v22  ;;  %v8280_v2 = vor.u32 %v8279_v32, %v8275_v59  ;;  %v11242_v9 = vcombine.low %v8266_v37, %v8276_v25  ;;  %v8295_v20 = vrot.slane %v8293_v56, 5  ;;  %v19468_v32 = vld [vmem:[#allocation218_spill] sm:$0xff]  ;;  %v19498_v37 = vld [vmem:[#allocation136_spill] sm:$0xff]  ;;  %v19499_v25 = vld [vmem:[#allocation115_spill] sm:$0xff] }
 0x439   : > { %v17979_v0 = vcombine.low %v6037_v11, %v6047_v31  ;;  %v19496_v11 = vld [vmem:[#allocation131_spill] sm:$0xff] }
 0x43a   : > { %v8281_v1 = vrot.slane %v8280_v2, 4  ;;  %v8296_v41 = vsel %vm15829_vm2, %v8291_v46, %v8295_v20 }
 0x43c   : > { %v8286_v44 = vsel %vm15829_vm2, %v8281_v1, %v8285_v30  ;;  %v19470_v30 = vld [vmem:[#allocation109_spill] sm:$0xff]  ;;  %v19501_v1 = vld [vmem:[#allocation116_spill] sm:$0xff] }
 0x43d   : > { %13059 = vmatmul.mubr.bf16.gmra.mrb[52].mxu1 %v19464_v52  ;;  %13699 = vmatmul.mubr.bf16.gmra.mrb[116].mxu0 %v19465_v5  ;;  %v11243_v59 = vcombine.low %v8286_v44, %v8296_v41  ;;  %v19495_v52 = vld [vmem:[#allocation104_spill] sm:$0xff] }
 0x43e   : > { %13062 = vmatprep.mubr.bf16.mxu1 %v19466_v3  ;;  %13702 = vmatprep.mubr.bf16.mxu0 %v17961_v13  ;;  %v19497_v3 = vld [vmem:[#allocation106_spill] sm:$0xff]  ;;  %v19502_v44 = vld [vmem:[#allocation144_spill] sm:$0xff] }
 0x43f   : > { %v19503_v41 = vld [vmem:[#allocation124_spill] sm:$0xff] }
 0x445   : > { %13063 = vmatmul.mubr.bf16.gmra.mrb[56].mxu1 %v19467_v39  ;;  %13703 = vmatmul.mubr.bf16.gmra.mrb[120].mxu0 %v17979_v0 }
 0x446   : > { %13066 = vmatprep.mubr.bf16.mxu1 %v19468_v32  ;;  %13706 = vmatprep.mubr.bf16.mxu0 %v11242_v9  ;;  %v19500_v9 = vld [vmem:[#allocation138_spill] sm:$0xff] }
 0x44d   : > { %13067 = vmatmul.mubr.bf16.gmra.mrb[60].mxu1 %v19469_v15  ;;  %13707 = vmatmul.mubr.bf16.gmra.mrb[124].mxu0 %v11243_v59  ;;  %v19504_v59 = vld [vmem:[#allocation126_spill] sm:$0xff] }
 0x44e   : > { %13070 = vmatprep.mubr.bf16.mxu1 %v17532_v45  ;;  %13726 = vmatprep.mubr.bf16.mxu0 %v19325_v38  ;;  %v19471_v45 = vld [vmem:[#allocation81_spill] sm:$0xff] }
 0x455   : > { %13071 = vmatmul.mubr.bf16.gmra.mrb[64].mxu1 %v17544_v42  ;;  %13727 = vmatmul.mubr.bf16.vlgmr.msra.gmra.mrb[0].mxu0 %v19326_v54  ;;  %v19472_v42 = vld [vmem:[#allocation108_spill] sm:$0xff] }
 0x456   : > { %13074 = vmatprep.mubr.bf16.mxu1 %v17548_v7  ;;  %13730 = vmatprep.mubr.bf16.mxu0 %v19327_v63  ;;  %v19473_v7 = vld [vmem:[#allocation83_spill] sm:$0xff] }
 0x45d   : > { %13075 = vmatmul.mubr.bf16.gmra.mrb[68].mxu1 %v17556_v51  ;;  %13731 = vmatmul.mubr.bf16.gmra.mrb[4].mxu0 %v19328_v49  ;;  %v19474_v51 = vld [vmem:[#allocation129_spill] sm:$0xff]  ;;  %v19486_v49 = vld [vmem:[#allocation119_spill] sm:$0xff] }
 0x45e   : > { %13078 = vmatprep.mubr.bf16.mxu1 %v17560_v17  ;;  %13734 = vmatprep.mubr.bf16.mxu0 %v19329_v58  ;;  %v19475_v17 = vld [vmem:[#allocation84_spill] sm:$0xff]  ;;  %v19487_v58 = vld [vmem:[#allocation97_spill] sm:$0xff] }
 0x465   : > { %13079 = vmatmul.mubr.bf16.gmra.mrb[72].mxu1 %v17568_v53  ;;  %13735 = vmatmul.mubr.bf16.gmra.mrb[8].mxu0 %v19330_v4  ;;  %v19477_v53 = vld [vmem:[#allocation86_spill] sm:$0xff]  ;;  %v19488_v4 = vld [vmem:[#allocation121_spill] sm:$0xff] }
 0x466   : > { %13082 = vmatprep.mubr.bf16.mxu1 %v17572_v61  ;;  %13738 = vmatprep.mubr.bf16.mxu0 %v19331_v8  ;;  %v19478_v61 = vld [vmem:[#allocation110_spill] sm:$0xff]  ;;  %v19489_v8 = vld [vmem:[#allocation99_spill] sm:$0xff] }
 0x46d   : > { %13083 = vmatmul.mubr.bf16.gmra.mrb[76].mxu1 %v17580_v6  ;;  %13739 = vmatmul.mubr.bf16.gmra.mrb[12].mxu0 %v19332_v57  ;;  %v19482_v6 = vld [vmem:[#allocation117_spill] sm:$0xff] }
 0x46e   : > { %13086 = vmatprep.mubr.bf16.mxu1 %v17584_v50  ;;  %13742 = vmatprep.mubr.bf16.mxu0 %v19333_v18  ;;  %v19483_v50 = vld [vmem:[#allocation93_spill] sm:$0xff] }
 0x475   : > { %13087 = vmatmul.mubr.bf16.gmra.mrb[80].mxu1 %v17592_v55  ;;  %13743 = vmatmul.mubr.bf16.gmra.mrb[16].mxu0 %v19334_v29  ;;  %v19481_v55 = vld [vmem:[#allocation90_spill] sm:$0xff] }
 0x476   : > { %13090 = vmatprep.mubr.bf16.mxu1 %v17596_v36  ;;  %13746 = vmatprep.mubr.bf16.mxu0 %v19335_v60  ;;  %v19479_v36 = vld [vmem:[#allocation88_spill] sm:$0xff] }
 0x47d   : > { %13091 = vmatmul.mubr.bf16.gmra.mrb[84].mxu1 %v17604_v43  ;;  %13747 = vmatmul.mubr.bf16.gmra.mrb[20].mxu0 %v19336_v34  ;;  %v19476_v43 = vld [vmem:[#allocation113_spill] sm:$0xff]  ;;  %v19490_v34 = vld [vmem:[#allocation127_spill] sm:$0xff] }
 0x47e   : > { %13094 = vmatprep.mubr.bf16.mxu1 %v17608_v47  ;;  %13750 = vmatprep.mubr.bf16.mxu0 %v19337_v12  ;;  %v19484_v47 = vld [vmem:[#allocation120_spill] sm:$0xff] }
 0x47f   : > { %v19491_v12 = vld [vmem:[#allocation100_spill] sm:$0xff] }
 0x485   : > { %13095 = vmatmul.mubr.bf16.gmra.mrb[88].mxu1 %v17616_v35  ;;  %13751 = vmatmul.mubr.bf16.gmra.mrb[24].mxu0 %v19338_v21  ;;  %v19485_v35 = vld [vmem:[#allocation95_spill] sm:$0xff]  ;;  %v19492_v21 = vld [vmem:[#allocation130_spill] sm:$0xff] }
 0x486   : > { %13098 = vmatprep.mubr.bf16.mxu1 %v17620_v26  ;;  %13754 = vmatprep.mubr.bf16.mxu0 %v19339_v14  ;;  %v19480_v14 = vld [vmem:[#allocation118_spill] sm:$0xff] }
 0x48d   : > { %13099 = vmatmul.mubr.bf16.gmra.mrb[92].mxu1 %v19470_v30  ;;  %13755 = vmatmul.mubr.bf16.gmra.mrb[28].mxu0 %v19471_v45 }
 0x48e   : > { %13102 = vmatprep.mubr.bf16.mxu1 %v19472_v42  ;;  %13758 = vmatprep.mubr.bf16.mxu0 %v19473_v7  ;;  %v19505_v7 = vld [vmem:[#allocation133_spill] sm:$0xff] }
 0x495   : > { %13103 = vmatmul.mubr.bf16.gmra.mrb[96].mxu1 %v19474_v51  ;;  %13759 = vmatmul.mubr.bf16.gmra.mrb[32].mxu0 %v19475_v17  ;;  %v19506_v51 = vld [vmem:[#allocation55_spill] sm:$0xff] }
 0x496   : > { %13106 = vmatprep.mubr.bf16.mxu1 %v19476_v43  ;;  %13762 = vmatprep.mubr.bf16.mxu0 %v19477_v53  ;;  %v19507_v17 = vld [vmem:[#allocation135_spill] sm:$0xff] }
 0x49d   : > { %13107 = vmatmul.mubr.bf16.gmra.mrb[100].mxu1 %v19478_v61  ;;  %13763 = vmatmul.mubr.bf16.gmra.mrb[36].mxu0 %v19479_v36  ;;  %v19508_v36 = vld [vmem:[#allocation56_spill] sm:$0xff] }
 0x49e   : > { %13110 = vmatprep.mubr.bf16.mxu1 %v19480_v14  ;;  %13766 = vmatprep.mubr.bf16.mxu0 %v19481_v55  ;;  %v19509_v14 = vld [vmem:[#allocation141_spill] sm:$0xff]  ;;  %v19510_v55 = vld [vmem:[#allocation59_spill] sm:$0xff] }
 0x4a5   : > { %13111 = vmatmul.mubr.bf16.gmra.mrb[104].mxu1 %v19482_v6  ;;  %13767 = vmatmul.mubr.bf16.gmra.mrb[40].mxu0 %v19483_v50 }
 0x4a6   : > { %13114 = vmatprep.mubr.bf16.mxu1 %v19484_v47  ;;  %13770 = vmatprep.mubr.bf16.mxu0 %v19485_v35 }
 0x4a8   : > { %v18035_v26 = vpop.f32.mrb[0].mxu1 }
 0x4a9   : > { %v18037_v38 = vpop.f32.mrb[1].mxu1 }
 0x4aa   : > { %v18039_v54 = vpop.f32.mrb[2].mxu1 }
 0x4ab   : > { %v18041_v63 = vpop.f32.mrb[3].mxu1 }
 0x4ad   : > { %13115 = vmatmul.mubr.bf16.gmra.mrb[108].mxu1 %v19486_v49  ;;  %13771 = vmatmul.mubr.bf16.gmra.mrb[44].mxu0 %v19487_v58  ;;  %v19512_v49 = vld [vmem:[#allocation60_spill] sm:$0xff]  ;;  %v19513_v58 = vld [vmem:[#allocation149_spill] sm:$0xff] }
 0x4ae   : > { %13118 = vmatprep.mubr.bf16.mxu1 %v19488_v4  ;;  %13774 = vmatprep.mubr.bf16.mxu0 %v19489_v8  ;;  %v19514_v4 = vld [vmem:[#allocation62_spill] sm:$0xff]  ;;  %v19515_v8 = vld [vmem:[#allocation151_spill] sm:$0xff] }
 0x4b0   : > { %v18047_v57 = vpop.f32.mrb[4].mxu1 }
 0x4b1   : > { %v18049_v18 = vpop.f32.mrb[5].mxu1 }
 0x4b2   : > { %v18051_v29 = vpop.f32.mrb[6].mxu1 }
 0x4b3   : > { %v18053_v60 = vpop.f32.mrb[7].mxu1 }
 0x4b5   : > { %13119 = vmatmul.mubr.bf16.gmra.mrb[112].mxu1 %v19490_v34  ;;  %13775 = vmatmul.mubr.bf16.gmra.mrb[48].mxu0 %v19491_v12 }
 0x4b6   : > { %13122 = vmatprep.mubr.bf16.mxu1 %v19492_v21  ;;  %13778 = vmatprep.mubr.bf16.mxu0 %v19493_v23 }
 0x4b8   : > { %v18059_v28 = vpop.f32.mrb[8].mxu1 }
 0x4b9   : > { %v18061_v24 = vpop.f32.mrb[9].mxu1 }
 0x4ba   : > { %v18063_v22 = vpop.f32.mrb[10].mxu1 }
 0x4bb   : > { %v18065_v48 = vpop.f32.mrb[11].mxu1 }
 0x4bd   : > { %13123 = vmatmul.mubr.bf16.gmra.mrb[116].mxu1 %v19494_v40  ;;  %13779 = vmatmul.mubr.bf16.gmra.mrb[52].mxu0 %v19495_v52  ;;  %v19516_v40 = vld [vmem:[#allocation64_spill] sm:$0xff]  ;;  %v19517_v52 = vld [vmem:[#allocation157_spill] sm:$0xff] }
 0x4be   : > { %13126 = vmatprep.mubr.bf16.mxu1 %v19496_v11  ;;  %13782 = vmatprep.mubr.bf16.mxu0 %v19497_v3  ;;  %v19518_v11 = vld [vmem:[#allocation66_spill] sm:$0xff]  ;;  %v19519_v3 = vld [vmem:[#allocation159_spill] sm:$0xff] }
 0x4c0   : > { %v18071_v31 = vpop.f32.mrb[12].mxu1 }
 0x4c1   : > { %v18073_v2 = vpop.f32.mrb[13].mxu1 }
 0x4c2   : > { %v18075_v10 = vpop.f32.mrb[14].mxu1 }
 0x4c3   : > { %v18077_v56 = vpop.f32.mrb[15].mxu1 }
 0x4c5   : > { %13127 = vmatmul.mubr.bf16.gmra.mrb[120].mxu1 %v19498_v37  ;;  %13783 = vmatmul.mubr.bf16.gmra.mrb[56].mxu0 %v19499_v25 }
 0x4c6   : > { %13130 = vmatprep.mubr.bf16.mxu1 %v19500_v9  ;;  %13786 = vmatprep.mubr.bf16.mxu0 %v19501_v1 }
 0x4c8   : > { %v18083_v46 = vpop.f32.mrb[16].mxu1 }
 0x4c9   : > { %v18085_v20 = vpop.f32.mrb[17].mxu1 }
 0x4ca   : > { %v18087_v39 = vpop.f32.mrb[18].mxu1 }
 0x4cb   : > { %v18089_v32 = vpop.f32.mrb[19].mxu1 }
 0x4cd   : > { %13131 = vmatmul.mubr.bf16.gmra.mrb[124].mxu1 %v19502_v44  ;;  %13787 = vmatmul.mubr.bf16.gmra.mrb[60].mxu0 %v19503_v41  ;;  %v19520_v44 = vld [vmem:[#allocation69_spill] sm:$0xff] }
 0x4ce   : > { %13214 = vmatprep.mubr.bf16.mxu1 %v19406_v33  ;;  %13790 = vmatprep.mubr.bf16.mxu0 %v19504_v59  ;;  %v19521_v41 = vld [vmem:[#allocation165_spill] sm:$0xff]  ;;  %v19522_v59 = vld [vmem:[#allocation71_spill] sm:$0xff] }
 0x4d0   : > { %v18095_v15 = vpop.f32.mrb[20].mxu1 }
 0x4d1   : > { %v18097_v30 = vpop.f32.mrb[21].mxu1 }
 0x4d2   : > { %v18099_v45 = vpop.f32.mrb[22].mxu1 }
 0x4d3   : > { %v18101_v42 = vpop.f32.mrb[23].mxu1 }
 0x4d5   : > { %13215 = vmatmul.mubr.bf16.vlgmr.msra.gmra.mrb[64].mxu1 %v19407_v27  ;;  %13791 = vmatmul.mubr.bf16.gmra.mrb[64].mxu0 %v19505_v7  ;;  %v19511_v27 = vld [vmem:[#allocation143_spill] sm:$0xff] }
 0x4d6   : > { %13218 = vmatprep.mubr.bf16.mxu1 %v19506_v51  ;;  %13794 = vmatprep.mubr.bf16.mxu0 %v19507_v17  ;;  %v19523_v7 = vld [vmem:[#allocation167_spill] sm:$0xff] }
 0x4d8   : > { %v18107_v43 = vpop.f32.mrb[24].mxu1 }
 0x4d9   : > { %v18109_v33 = vpop.f32.mrb[25].mxu1 }
 0x4da   : > { %v18111_v53 = vpop.f32.mrb[26].mxu1 }
 0x4db   : > { %v18113_v61 = vpop.f32.mrb[27].mxu1 }
 0x4dd   : > { %13219 = vmatmul.mubr.bf16.gmra.mrb[68].mxu1 %v19508_v36  ;;  %13795 = vmatmul.mubr.bf16.gmra.mrb[68].mxu0 %v19509_v14 }
 0x4de   : > { %13222 = vmatprep.mubr.bf16.mxu1 %v19510_v55  ;;  %13798 = vmatprep.mubr.bf16.mxu0 %v19511_v27  ;;  %v19527_v55 = vld [vmem:[#allocation73_spill] sm:$0xff] }
 0x4df   : > { %v19528_v27 = vld [vmem:[#allocation173_spill] sm:$0xff] }
 0x4e0   : > { %v18119_v6 = vpop.f32.mrb[28].mxu1 }
 0x4e1   : > { %v18121_v50 = vpop.f32.mrb[29].mxu1 }
 0x4e2   : > { %v18123_v47 = vpop.f32.mrb[30].mxu1 }
 0x4e3   : > { %v18125_v35 = vpop.f32.mrb[31].mxu1 }
 0x4e5   : > { %13223 = vmatmul.mubr.bf16.gmra.mrb[72].mxu1 %v19512_v49  ;;  %13799 = vmatmul.mubr.bf16.gmra.mrb[72].mxu0 %v19513_v58  ;;  %v19529_v49 = vld [vmem:[#allocation75_spill] sm:$0xff] }
 0x4e6   : > { %13226 = vmatprep.mubr.bf16.mxu1 %v19514_v4  ;;  %13802 = vmatprep.mubr.bf16.mxu0 %v19515_v8  ;;  %v19530_v58 = vld [vmem:[#allocation175_spill] sm:$0xff] }
 0x4e8   : > { %v18131_v34 = vpop.f32.mrb[32].mxu1 }
 0x4e9   : > { %v18133_v12 = vpop.f32.mrb[33].mxu1 }
 0x4ea   : > { %v18135_v21 = vpop.f32.mrb[34].mxu1 }
 0x4eb   : > { %v18137_v23 = vpop.f32.mrb[35].mxu1 }
 0x4ed   : > { %13227 = vmatmul.mubr.bf16.gmra.mrb[76].mxu1 %v19516_v40  ;;  %13803 = vmatmul.mubr.bf16.gmra.mrb[76].mxu0 %v19517_v52 }
 0x4ee   : > { %13230 = vmatprep.mubr.bf16.mxu1 %v19518_v11  ;;  %13806 = vmatprep.mubr.bf16.mxu0 %v19519_v3  ;;  %v19535_v11 = vld [vmem:[#allocation76_spill] sm:$0xff]  ;;  %v19536_v3 = vld [vmem:[#allocation181_spill] sm:$0xff] }
 0x4f0   : > { %v18143_v37 = vpop.f32.mrb[36].mxu1 }
 0x4f1   : > { %v18145_v25 = vpop.f32.mrb[37].mxu1 }
 0x4f2   : > { %v18147_v9 = vpop.f32.mrb[38].mxu1 }
 0x4f3   : > { %v18149_v1 = vpop.f32.mrb[39].mxu1 }
 0x4f5   : > { %13231 = vmatmul.mubr.bf16.gmra.mrb[80].mxu1 %v19520_v44  ;;  %13807 = vmatmul.mubr.bf16.gmra.mrb[80].mxu0 %v19521_v41  ;;  %v19537_v44 = vld [vmem:[#allocation78_spill] sm:$0xff]  ;;  %v19538_v41 = vld [vmem:[#allocation183_spill] sm:$0xff] }
 0x4f6   : > { %13234 = vmatprep.mubr.bf16.mxu1 %v19522_v59  ;;  %13810 = vmatprep.mubr.bf16.mxu0 %v19523_v7 }
 0x4f8   : > { %v18155_v51 = vpop.f32.mrb[40].mxu1 }
 0x4f9   : > { %v18157_v17 = vpop.f32.mrb[41].mxu1 }
 0x4fa   : > { %19524 = vst [vmem:[#allocation146_spill] sm:$0xff] %v18157_v17  ;;  %v18159_v36 = vpop.f32.mrb[42].mxu1 }
 0x4fb   : > { %19525 = vst [vmem:[#allocation145_spill] sm:$0xff] %v18159_v36  ;;  %v18161_v14 = vpop.f32.mrb[43].mxu1 }
 0x4fc   : > { %19526 = vst [vmem:[#allocation147_spill] sm:$0xff] %v18161_v14 }
 0x4fd   : > { %13235 = vmatmul.mubr.bf16.gmra.mrb[84].mxu1 %v19527_v55  ;;  %13811 = vmatmul.mubr.bf16.gmra.mrb[84].mxu0 %v19528_v27 }
 0x4fe   : > { %13238 = vmatprep.mubr.bf16.mxu1 %v19529_v49  ;;  %13814 = vmatprep.mubr.bf16.mxu0 %v19530_v58  ;;  %v19543_v49 = vld [vmem:[#allocation80_spill] sm:$0xff] }
 0x4ff   : > { %v19544_v58 = vld [vmem:[#allocation188_spill] sm:$0xff] }
 0x500   : > { %v18167_v4 = vpop.f32.mrb[44].mxu1 }
 0x501   : > { %19531 = vst [vmem:[#allocation152_spill] sm:$0xff] %v18167_v4  ;;  %v18169_v8 = vpop.f32.mrb[45].mxu1  ;;  %v19572_v4 = vld [vmem:[#allocation204_spill] sm:$0xff] }
 0x502   : > { %19532 = vst [vmem:[#allocation154_spill] sm:$0xff] %v18169_v8  ;;  %v18171_v40 = vpop.f32.mrb[46].mxu1 }
 0x503   : > { %19533 = vst [vmem:[#allocation153_spill] sm:$0xff] %v18171_v40  ;;  %v18173_v52 = vpop.f32.mrb[47].mxu1  ;;  %v18230_v40 = vld [vmem:[#allocation8] ss:$0 sm:$0xff] }
 0x504   : > { %19534 = vst [vmem:[#allocation155_spill] sm:$0xff] %v18173_v52  ;;  %v19545_v52 = vld [vmem:[#allocation82_spill] sm:$0xff] }
 0x505   : > { %13239 = vmatmul.mubr.bf16.gmra.mrb[88].mxu1 %v19535_v11  ;;  %13815 = vmatmul.mubr.bf16.gmra.mrb[88].mxu0 %v19536_v3  ;;  %v19546_v11 = vld [vmem:[#allocation190_spill] sm:$0xff] }
 0x506   : > { %13242 = vmatprep.mubr.bf16.mxu1 %v19537_v44  ;;  %13818 = vmatprep.mubr.bf16.mxu0 %v19538_v41 }
 0x508   : > { %v18179_v59 = vpop.f32.mrb[48].mxu1 }
 0x509   : > { %19539 = vst [vmem:[#allocation160_spill] sm:$0xff] %v18179_v59  ;;  %v18181_v7 = vpop.f32.mrb[49].mxu1 }
 0x50a   : > { %19540 = vst [vmem:[#allocation162_spill] sm:$0xff] %v18181_v7  ;;  %v18183_v55 = vpop.f32.mrb[50].mxu1  ;;  %v19551_v7 = vld [vmem:[#allocation85_spill] sm:$0xff] }
 0x50b   : > { %19541 = vst [vmem:[#allocation161_spill] sm:$0xff] %v18183_v55  ;;  %v18185_v27 = vpop.f32.mrb[51].mxu1  ;;  %v19552_v55 = vld [vmem:[#allocation192_spill] sm:$0xff] }
 0x50c   : > { %19542 = vst [vmem:[#allocation163_spill] sm:$0xff] %v18185_v27  ;;  %v19553_v27 = vld [vmem:[#allocation87_spill] sm:$0xff] }
 0x50d   : > { %13243 = vmatmul.mubr.bf16.gmra.mrb[92].mxu1 %v19543_v49  ;;  %13819 = vmatmul.mubr.bf16.gmra.mrb[92].mxu0 %v19544_v58  ;;  %v19554_v49 = vld [vmem:[#allocation194_spill] sm:$0xff] }
 0x50e   : > { %13246 = vmatprep.mubr.bf16.mxu1 %v19545_v52  ;;  %13822 = vmatprep.mubr.bf16.mxu0 %v19546_v11 }
 0x510   : > { %v18191_v3 = vpop.f32.mrb[52].mxu1 }
 0x511   : > { %19547 = vst [vmem:[#allocation168_spill] sm:$0xff] %v18191_v3  ;;  %v18193_v44 = vpop.f32.mrb[53].mxu1 }
 0x512   : > { %19548 = vst [vmem:[#allocation170_spill] sm:$0xff] %v18193_v44  ;;  %v18195_v41 = vpop.f32.mrb[54].mxu1  ;;  %v19559_v44 = vld [vmem:[#allocation89_spill] sm:$0xff] }
 0x513   : > { %19549 = vst [vmem:[#allocation169_spill] sm:$0xff] %v18195_v41  ;;  %v18197_v59 = vpop.f32.mrb[55].mxu1  ;;  %v19560_v41 = vld [vmem:[#allocation196_spill] sm:$0xff] }
 0x514   : > { %19550 = vst [vmem:[#allocation171_spill] sm:$0xff] %v18197_v59  ;;  %v19561_v59 = vld [vmem:[#allocation91_spill] sm:$0xff] }
 0x515   : > { %13247 = vmatmul.mubr.bf16.gmra.mrb[96].mxu1 %v19551_v7  ;;  %13823 = vmatmul.mubr.bf16.gmra.mrb[96].mxu0 %v19552_v55  ;;  %v19562_v7 = vld [vmem:[#allocation198_spill] sm:$0xff] }
 0x516   : > { %13250 = vmatprep.mubr.bf16.mxu1 %v19553_v27  ;;  %13826 = vmatprep.mubr.bf16.mxu0 %v19554_v49 }
 0x518   : > { %v18203_v58 = vpop.f32.mrb[56].mxu1 }
 0x519   : > { %19555 = vst [vmem:[#allocation176_spill] sm:$0xff] %v18203_v58  ;;  %v18205_v52 = vpop.f32.mrb[57].mxu1 }
 0x51a   : > { %19556 = vst [vmem:[#allocation178_spill] sm:$0xff] %v18205_v52  ;;  %v18207_v11 = vpop.f32.mrb[58].mxu1  ;;  %v19567_v52 = vld [vmem:[#allocation92_spill] sm:$0xff] }
 0x51b   : > { %19557 = vst [vmem:[#allocation177_spill] sm:$0xff] %v18207_v11  ;;  %v18209_v3 = vpop.f32.mrb[59].mxu1  ;;  %v19568_v11 = vld [vmem:[#allocation200_spill] sm:$0xff] }
 0x51c   : > { %19558 = vst [vmem:[#allocation179_spill] sm:$0xff] %v18209_v3  ;;  %v19569_v3 = vld [vmem:[#allocation94_spill] sm:$0xff] }
 0x51d   : > { %13251 = vmatmul.mubr.bf16.gmra.mrb[100].mxu1 %v19559_v44  ;;  %13827 = vmatmul.mubr.bf16.gmra.mrb[100].mxu0 %v19560_v41  ;;  %v19570_v44 = vld [vmem:[#allocation202_spill] sm:$0xff] }
 0x51e   : > { %13254 = vmatprep.mubr.bf16.mxu1 %v19561_v59  ;;  %13830 = vmatprep.mubr.bf16.mxu0 %v19562_v7  ;;  %v18227_v59 = vld [vmem:[#allocation7] ss:$0 sm:$0xff] }
 0x520   : > { %v18215_v55 = vpop.f32.mrb[60].mxu1 }
 0x521   : > { %19563 = vst [vmem:[#allocation184_spill] sm:$0xff] %v18215_v55  ;;  %v18217_v27 = vpop.f32.mrb[61].mxu1 }
 0x522   : > { %19564 = vst [vmem:[#allocation186_spill] sm:$0xff] %v18217_v27  ;;  %v18219_v49 = vpop.f32.mrb[62].mxu1 }
 0x523   : > { %19565 = vst [vmem:[#allocation185_spill] sm:$0xff] %v18219_v49  ;;  %v18221_v58 = vpop.f32.mrb[63].mxu1 }
 0x524   : > { %19566 = vst [vmem:[#allocation112_spill] sm:$0xff] %v18221_v58 }
 0x525   : > { %13255 = vmatmul.mubr.bf16.gmra.mrb[104].mxu1 %v19567_v52  ;;  %13831 = vmatmul.mubr.bf16.gmra.mrb[104].mxu0 %v19568_v11 }
 0x526   : > { %13258 = vmatprep.mubr.bf16.mxu1 %v19569_v3  ;;  %13834 = vmatprep.mubr.bf16.mxu0 %v19570_v44 }
 0x528   : > { %v13728_v41 = vpop.f32.mrb[0].mxu0 }
 0x529   : > { %v13870_v7 = vadd.f32 %v13728_v41, %v18035_v26  ;;  %v9130_v55 = vpop.f32.mrb[1].mxu0  ;;  %v19571_v41 = vld [vmem:[#allocation96_spill] sm:$0xff] }
 0x52a   : > { %v13871_v49 = vadd.f32 %v9130_v55, %v18037_v38  ;;  %v13729_v58 = vpop.f32.mrb[2].mxu0 }
 0x52b   : > { %v9778_v52 = vmul.f32 %v13870_v7, %v18227_v59  ;;  %v13872_v11 = vadd.f32 %v13729_v58, %v18039_v54  ;;  %v9133_v27 = vpop.f32.mrb[3].mxu0  ;;  %v19573_v7 = vld [vmem:[#allocation98_spill] sm:$0xff] }
 0x52c   : > { %v9776_v3 = vmul.f32 %v13871_v49, %v18227_v59  ;;  %v13873_v44 = vadd.f32 %v9133_v27, %v18041_v63  ;;  %v19574_v54 = vld [vmem:[#allocation206_spill] sm:$0xff] }
 0x52d   : > { %v9913_v8 = vadd.f32 %v18230_v40, %v9778_v52  ;;  %v9779_v26 = vmul.f32 %v13872_v11, %v18227_v59  ;;  %13259 = vmatmul.mubr.bf16.gmra.mrb[108].mxu1 %v19571_v41  ;;  %13835 = vmatmul.mubr.bf16.gmra.mrb[108].mxu0 %v19572_v4 }
 0x52e   : > { %v9911_v38 = vadd.f32 %v18230_v40, %v9776_v3  ;;  %v9777_v55 = vmul.f32 %v13873_v44, %v18227_v59  ;;  %13262 = vmatprep.mubr.bf16.mxu1 %v19573_v7  ;;  %13838 = vmatprep.mubr.bf16.mxu0 %v19574_v54 }
 0x52f   : > { %v9914_v58 = vadd.f32 %v18230_v40, %v9779_v26  ;;  %v10041_v49 = vmax.f32 %v9913_v8, 0.0 }
 0x530   : > { %v9912_v63 = vadd.f32 %v18230_v40, %v9777_v55  ;;  %v13732_v27 = vpop.f32.mrb[4].mxu0  ;;  %v10039_v4 = vmax.f32 %v9911_v38, 0.0  ;;  %v19575_v38 = vld [vmem:[#allocation101_spill] sm:$0xff] }
 0x531   : > { %v10042_v52 = vmax.f32 %v9914_v58, 0.0  ;;  %v13874_v11 = vadd.f32 %v13732_v27, %v18047_v57  ;;  %v9146_v41 = vpop.f32.mrb[5].mxu0  ;;  %v19576_v58 = vld [vmem:[#allocation208_spill] sm:$0xff] }
 0x532   : > { %v10040_v14 = vmax.f32 %v9912_v63, 0.0  ;;  %v13875_v3 = vadd.f32 %v9146_v41, %v18049_v18  ;;  %v13733_v44 = vpop.f32.mrb[6].mxu0  ;;  %v19577_v63 = vld [vmem:[#allocation103_spill] sm:$0xff] }
 0x533   : > { %v11535_v36 = vpack.c.bf16 %v10042_v52, %v10041_v49  ;;  %v9782_v7 = vmul.f32 %v13874_v11, %v18227_v59  ;;  %v13876_v54 = vadd.f32 %v13733_v44, %v18051_v29  ;;  %v9149_v17 = vpop.f32.mrb[7].mxu0  ;;  %v9032_v44 = vrot.slane %v17812_v19, 5 }
 0x534   : > { %v11530_v26 = vpack.c.bf16 %v10040_v14, %v10039_v4  ;;  %v9780_v55 = vmul.f32 %v13875_v3, %v18227_v59  ;;  %v13877_v8 = vadd.f32 %v9149_v17, %v18053_v60  ;;  %v19578_v60 = vld [vmem:[#allocation210_spill] sm:$0xff] }
 0x535   : > { %11847 = vst [vmem:[%s18254_s25 + $0x8] sm:$0xff] %v11535_v36   ;;  %v9917_v57 = vadd.f32 %v18230_v40, %v9782_v7  ;;  %v9783_v18 = vmul.f32 %v13876_v54, %v18227_v59  ;;  %13263 = vmatmul.mubr.bf16.gmra.mrb[112].mxu1 %v19575_v38  ;;  %13839 = vmatmul.mubr.bf16.gmra.mrb[112].mxu0 %v19576_v58  ;;  %v19579_v36 = vld [vmem:[#allocation139_spill] sm:$0xff] }
 0x536   : > { %11531 = vst [vmem:[%s18254_s25] sm:$0xff] %v11530_v26   ;;  %v9915_v29 = vadd.f32 %v18230_v40, %v9780_v55  ;;  %v9781_v14 = vmul.f32 %v13877_v8, %v18227_v59  ;;  %13266 = vmatprep.mubr.bf16.mxu1 %v19577_v63  ;;  %13842 = vmatprep.mubr.bf16.mxu0 %v19578_v60  ;;  %v9029_v27 = vrot.slane %v19579_v36, 5  ;;  %v19580_v8 = vld [vmem:[#allocation137_spill] sm:$0xff] }
 0x537   : > { %v9918_v17 = vadd.f32 %v18230_v40, %v9783_v18  ;;  %v10045_v11 = vmax.f32 %v9917_v57, 0.0  ;;  %v11252_v18 = vrot.slane %v19580_v8, 9  ;;  %v19581_v36 = vld [vmem:[#allocation105_spill] sm:$0xff] }
 0x538   : > { %v9916_v49 = vadd.f32 %v18230_v40, %v9781_v14  ;;  %v13736_v52 = vpop.f32.mrb[8].mxu0  ;;  %v10043_v7 = vmax.f32 %v9915_v29, 0.0  ;;  %v9031_v63 = vrot.slane %v9029_v27, 4  ;;  %v9035_v29 = vrot.slane %v17815_v62, 5 }
 0x539   : > { %v10046_v41 = vmax.f32 %v9918_v17, 0.0  ;;  %v13878_v4 = vadd.f32 %v13736_v52, %v18059_v28  ;;  %v9162_v3 = vpop.f32.mrb[9].mxu0 }
 0x53a   : > { %v10044_v54 = vmax.f32 %v9916_v49, 0.0  ;;  %v13879_v26 = vadd.f32 %v9162_v3, %v18061_v24  ;;  %v13737_v55 = vpop.f32.mrb[10].mxu0  ;;  %v19582_v49 = vld [vmem:[#allocation213_spill] sm:$0xff]  ;;  %v9033_v3 = vsel %vm16165_vm5, %v9031_v63, %v9032_v44 }
 0x53b   : > { %v11545_v38 = vpack.c.bf16 %v10046_v41, %v10045_v11  ;;  %v9786_v58 = vmul.f32 %v13878_v4, %v18227_v59  ;;  %v13880_v57 = vadd.f32 %v13737_v55, %v18063_v22  ;;  %v9165_v14 = vpop.f32.mrb[11].mxu0  ;;  %v19583_v11 = vld [vmem:[#allocation107_spill] sm:$0xff]  ;;  %v9030_v4 = vsel %vm16165_vm5, %v11252_v18, %v9029_v27 }
 0x53c   : > { %v11540_v28 = vpack.c.bf16 %v10044_v54, %v10043_v7  ;;  %v9784_v60 = vmul.f32 %v13879_v26, %v18227_v59  ;;  %v13881_v19 = vadd.f32 %v9165_v14, %v18065_v48  ;;  %v19584_v41 = vld [vmem:[#allocation215_spill] sm:$0xff]  ;;  %v9034_v26 = vrot.slane %v9032_v44, 4 }
 0x53d   : > { %11849 = vst [vmem:[%s18254_s25 + $0x18] sm:$0xff] %v11545_v38   ;;  %v9921_v24 = vadd.f32 %v18230_v40, %v9786_v58  ;;  %v9787_v17 = vmul.f32 %v13880_v57, %v18227_v59  ;;  %13267 = vmatmul.mubr.bf16.gmra.mrb[116].mxu1 %v19581_v36  ;;  %13843 = vmatmul.mubr.bf16.gmra.mrb[116].mxu0 %v19582_v49  ;;  %v9037_v55 = vrot.slane %v9035_v29, 4  ;;  %v9038_v14 = vrot.slane %v17964_v16, 5 }
 0x53e   : > { %11848 = vst [vmem:[%s18254_s25 + $0x10] sm:$0xff] %v11540_v28   ;;  %v9919_v22 = vadd.f32 %v18230_v40, %v9784_v60  ;;  %v9785_v52 = vmul.f32 %v13881_v19, %v18227_v59  ;;  %13270 = vmatprep.mubr.bf16.mxu1 %v19583_v11  ;;  %13846 = vmatprep.mubr.bf16.mxu0 %v19584_v41 }
 0x53f   : > { %v9922_v62 = vadd.f32 %v18230_v40, %v9787_v17  ;;  %v10049_v8 = vmax.f32 %v9921_v24, 0.0  ;;  %v11253_v63 = vcombine.low %v9030_v4, %v9033_v3 }
 0x540   : > { %v9920_v7 = vadd.f32 %v18230_v40, %v9785_v52  ;;  %v13740_v54 = vpop.f32.mrb[12].mxu0  ;;  %v10047_v28 = vmax.f32 %v9919_v22, 0.0  ;;  %v9036_v52 = vsel %vm16165_vm5, %v9034_v26, %v9035_v29 }
 0x541   : > { %v10050_v38 = vmax.f32 %v9922_v62, 0.0  ;;  %v13882_v58 = vadd.f32 %v13740_v54, %v18071_v31  ;;  %v9178_v57 = vpop.f32.mrb[13].mxu0 }
 0x542   : > { %v10048_v60 = vmax.f32 %v9920_v7, 0.0  ;;  %v13883_v27 = vadd.f32 %v9178_v57, %v18073_v2  ;;  %v13741_v18 = vpop.f32.mrb[14].mxu0  ;;  %v19586_v2 = vld [vmem:[#allocation217_spill] sm:$0xff] }
 0x543   : > { %v11555_v19 = vpack.c.bf16 %v10050_v38, %v10049_v8  ;;  %v9790_v17 = vmul.f32 %v13882_v58, %v18227_v59  ;;  %v13884_v44 = vadd.f32 %v13741_v18, %v18075_v10  ;;  %v9181_v24 = vpop.f32.mrb[15].mxu0 }
 0x544   : > { %v11550_v36 = vpack.c.bf16 %v10048_v60, %v10047_v28  ;;  %v9788_v49 = vmul.f32 %v13883_v27, %v18227_v59  ;;  %v13885_v31 = vadd.f32 %v9181_v24, %v18077_v56  ;;  %v9039_v56 = vsel %vm16165_vm5, %v9037_v55, %v9038_v14 }
 0x545   : > { %11851 = vst [vmem:[%s18254_s25 + $0x28] sm:$0xff] %v11555_v19   ;;  %v9925_v16 = vadd.f32 %v18230_v40, %v9790_v17  ;;  %v9791_v22 = vmul.f32 %v13884_v44, %v18227_v59  ;;  %13271 = vmatmul.mubr.bf16.gmra.mrb[120].mxu1 %v19465_v5  ;;  %13847 = vmatmul.mubr.bf16.gmra.mrb[120].mxu0 %v19586_v2 }
 0x546   : > { %11850 = vst [vmem:[%s18254_s25 + $0x20] sm:$0xff] %v11550_v36   ;;  %v9923_v10 = vadd.f32 %v18230_v40, %v9788_v49  ;;  %v9789_v11 = vmul.f32 %v13885_v31, %v18227_v59  ;;  %13274 = vmatprep.mubr.bf16.mxu1 %v17961_v13  ;;  %13850 = vmatprep.mubr.bf16.mxu0 %v11253_v63 }
 0x547   : > { %v9926_v41 = vadd.f32 %v18230_v40, %v9791_v22  ;;  %v10053_v4 = vmax.f32 %v9925_v16, 0.0  ;;  %v11254_v54 = vcombine.low %v9036_v52, %v9039_v56 }
 0x548   : > { %v9924_v5 = vadd.f32 %v18230_v40, %v9789_v11  ;;  %v13744_v62 = vpop.f32.mrb[16].mxu0  ;;  %v10051_v26 = vmax.f32 %v9923_v10, 0.0 }
 0x549   : > { %v10054_v3 = vmax.f32 %v9926_v41, 0.0  ;;  %v13886_v29 = vadd.f32 %v13744_v62, %v18083_v46  ;;  %v9194_v7 = vpop.f32.mrb[17].mxu0 }
 0x54a   : > { %v10052_v8 = vmax.f32 %v9924_v5, 0.0  ;;  %v13887_v13 = vadd.f32 %v9194_v7, %v18085_v20  ;;  %v13745_v38 = vpop.f32.mrb[18].mxu0 }
 0x54b   : > { %v11565_v48 = vpack.c.bf16 %v10054_v3, %v10053_v4  ;;  %v9794_v55 = vmul.f32 %v13886_v29, %v18227_v59  ;;  %v13888_v58 = vadd.f32 %v13745_v38, %v18087_v39  ;;  %v9197_v57 = vpop.f32.mrb[19].mxu0 }
 0x54c   : > { %v11560_v14 = vpack.c.bf16 %v10052_v8, %v10051_v26  ;;  %v9792_v28 = vmul.f32 %v13887_v13, %v18227_v59  ;;  %v13889_v60 = vadd.f32 %v9197_v57, %v18089_v32 }
 0x54d   : > { %11853 = vst [vmem:[%s18254_s25 + $0x38] sm:$0xff] %v11565_v48   ;;  %v9929_v46 = vadd.f32 %v18230_v40, %v9794_v55  ;;  %v9795_v27 = vmul.f32 %v13888_v58, %v18227_v59  ;;  %13275 = vmatmul.mubr.bf16.gmra.mrb[124].mxu1 %v17979_v0  ;;  %13851 = vmatmul.mubr.bf16.gmra.mrb[124].mxu0 %v11254_v54 }
 0x54e   : > { %11852 = vst [vmem:[%s18254_s25 + $0x30] sm:$0xff] %v11560_v14   ;;  %v9927_v20 = vadd.f32 %v18230_v40, %v9792_v28  ;;  %v9793_v18 = vmul.f32 %v13889_v60, %v18227_v59 }
 0x54f   : > { %v9930_v39 = vadd.f32 %v18230_v40, %v9795_v27  ;;  %v10057_v32 = vmax.f32 %v9929_v46, 0.0 }
 0x550   : > { %v9928_v63 = vadd.f32 %v18230_v40, %v9793_v18  ;;  %v13748_v19 = vpop.f32.mrb[20].mxu0  ;;  %v10055_v36 = vmax.f32 %v9927_v20, 0.0 }
 0x551   : > { %v10058_v17 = vmax.f32 %v9930_v39, 0.0  ;;  %v13890_v44 = vadd.f32 %v13748_v19, %v18095_v15  ;;  %v9210_v24 = vpop.f32.mrb[21].mxu0 }
 0x552   : > { %v10056_v0 = vmax.f32 %v9928_v63, 0.0  ;;  %v13891_v49 = vadd.f32 %v9210_v24, %v18097_v30  ;;  %v13749_v31 = vpop.f32.mrb[22].mxu0 }
 0x553   : > { %v11575_v16 = vpack.c.bf16 %v10058_v17, %v10057_v32  ;;  %v9798_v22 = vmul.f32 %v13890_v44, %v18227_v59  ;;  %v13892_v2 = vadd.f32 %v13749_v31, %v18099_v45  ;;  %v9213_v52 = vpop.f32.mrb[23].mxu0 }
 0x554   : > { %v11570_v10 = vpack.c.bf16 %v10056_v0, %v10055_v36  ;;  %v9796_v11 = vmul.f32 %v13891_v49, %v18227_v59  ;;  %v13893_v56 = vadd.f32 %v9213_v52, %v18101_v42 }
 0x555   : > { %11855 = vst [vmem:[%s18254_s25 + $0x48] sm:$0xff] %v11575_v16   ;;  %v9933_v15 = vadd.f32 %v18230_v40, %v9798_v22  ;;  %v9799_v41 = vmul.f32 %v13892_v2, %v18227_v59 }
 0x556   : > { %11854 = vst [vmem:[%s18254_s25 + $0x40] sm:$0xff] %v11570_v10   ;;  %v9931_v30 = vadd.f32 %v18230_v40, %v9796_v11  ;;  %v9797_v5 = vmul.f32 %v13893_v56, %v18227_v59 }
 0x557   : > { %v9934_v62 = vadd.f32 %v18230_v40, %v9799_v41  ;;  %v10061_v3 = vmax.f32 %v9933_v15, 0.0 }
 0x558   : > { %v9932_v45 = vadd.f32 %v18230_v40, %v9797_v5  ;;  %v13752_v4 = vpop.f32.mrb[24].mxu0  ;;  %v10059_v54 = vmax.f32 %v9931_v30, 0.0 }
 0x559   : > { %v10062_v29 = vmax.f32 %v9934_v62, 0.0  ;;  %v13894_v42 = vadd.f32 %v13752_v4, %v18107_v43  ;;  %v9226_v7 = vpop.f32.mrb[25].mxu0 }
 0x55a   : > { %v10060_v26 = vmax.f32 %v9932_v45, 0.0  ;;  %v13895_v8 = vadd.f32 %v9226_v7, %v18109_v33  ;;  %v13753_v13 = vpop.f32.mrb[26].mxu0 }
 0x55b   : > { %v11585_v38 = vpack.c.bf16 %v10062_v29, %v10061_v3  ;;  %v9802_v48 = vmul.f32 %v13894_v42, %v18227_v59  ;;  %v13896_v55 = vadd.f32 %v13753_v13, %v18111_v53  ;;  %v9229_v58 = vpop.f32.mrb[27].mxu0 }
 0x55c   : > { %v11580_v57 = vpack.c.bf16 %v10060_v26, %v10059_v54  ;;  %v9800_v14 = vmul.f32 %v13895_v8, %v18227_v59  ;;  %v13897_v28 = vadd.f32 %v9229_v58, %v18113_v61 }
 0x55d   : > { %11857 = vst [vmem:[%s18254_s25 + $0x58] sm:$0xff] %v11585_v38   ;;  %v9937_v43 = vadd.f32 %v18230_v40, %v9802_v48  ;;  %v9803_v60 = vmul.f32 %v13896_v55, %v18227_v59 }
 0x55e   : > { %11856 = vst [vmem:[%s18254_s25 + $0x50] sm:$0xff] %v11580_v57   ;;  %v9935_v33 = vadd.f32 %v18230_v40, %v9800_v14  ;;  %v9801_v46 = vmul.f32 %v13897_v28, %v18227_v59 }
 0x55f   : > { %v9938_v27 = vadd.f32 %v18230_v40, %v9803_v60  ;;  %v10065_v18 = vmax.f32 %v9937_v43, 0.0 }
 0x560   : > { %v9936_v53 = vadd.f32 %v18230_v40, %v9801_v46  ;;  %v13756_v20 = vpop.f32.mrb[28].mxu0  ;;  %v10063_v19 = vmax.f32 %v9935_v33, 0.0 }
 0x561   : > { %v10066_v39 = vmax.f32 %v9938_v27, 0.0  ;;  %v13898_v61 = vadd.f32 %v13756_v20, %v18119_v6  ;;  %v9242_v63 = vpop.f32.mrb[29].mxu0 }
 0x562   : > { %v10064_v32 = vmax.f32 %v9936_v53, 0.0  ;;  %v13899_v17 = vadd.f32 %v9242_v63, %v18121_v50  ;;  %v13757_v44 = vpop.f32.mrb[30].mxu0 }
 0x563   : > { %v11595_v24 = vpack.c.bf16 %v10066_v39, %v10065_v18  ;;  %v9806_v36 = vmul.f32 %v13898_v61, %v18227_v59  ;;  %v13900_v0 = vadd.f32 %v13757_v44, %v18123_v47  ;;  %v9245_v49 = vpop.f32.mrb[31].mxu0 }
 0x564   : > { %v11590_v31 = vpack.c.bf16 %v10064_v32, %v10063_v19  ;;  %v9804_v16 = vmul.f32 %v13899_v17, %v18227_v59  ;;  %v13901_v22 = vadd.f32 %v9245_v49, %v18125_v35  ;;  %v19587_v49 = vld [vmem:[#allocation146_spill] sm:$0xff] }
 0x565   : > { %11859 = vst [vmem:[%s18254_s25 + $0x68] sm:$0xff] %v11595_v24   ;;  %v9941_v6 = vadd.f32 %v18230_v40, %v9806_v36  ;;  %v9807_v2 = vmul.f32 %v13900_v0, %v18227_v59 }
 0x566   : > { %11858 = vst [vmem:[%s18254_s25 + $0x60] sm:$0xff] %v11590_v31   ;;  %v9939_v50 = vadd.f32 %v18230_v40, %v9804_v16  ;;  %v9805_v52 = vmul.f32 %v13901_v22, %v18227_v59 }
 0x567   : > { %v9942_v10 = vadd.f32 %v18230_v40, %v9807_v2  ;;  %v10069_v56 = vmax.f32 %v9941_v6, 0.0  ;;  %v19588_v2 = vld [vmem:[#allocation145_spill] sm:$0xff] }
 0x568   : > { %v9940_v47 = vadd.f32 %v18230_v40, %v9805_v52  ;;  %v13760_v11 = vpop.f32.mrb[32].mxu0  ;;  %v10067_v30 = vmax.f32 %v9939_v50, 0.0 }
 0x569   : > { %v10070_v15 = vmax.f32 %v9942_v10, 0.0  ;;  %v13902_v35 = vadd.f32 %v13760_v11, %v18131_v34  ;;  %v9258_v41 = vpop.f32.mrb[33].mxu0  ;;  %v19589_v11 = vld [vmem:[#allocation147_spill] sm:$0xff] }
 0x56a   : > { %v10068_v5 = vmax.f32 %v9940_v47, 0.0  ;;  %v13903_v62 = vadd.f32 %v9258_v41, %v18133_v12  ;;  %v13761_v45 = vpop.f32.mrb[34].mxu0 }
 0x56b   : > { %v11605_v4 = vpack.c.bf16 %v10070_v15, %v10069_v56  ;;  %v9810_v3 = vmul.f32 %v13902_v35, %v18227_v59  ;;  %v13904_v29 = vadd.f32 %v13761_v45, %v18135_v21  ;;  %v9261_v42 = vpop.f32.mrb[35].mxu0 }
 0x56c   : > { %v11600_v7 = vpack.c.bf16 %v10068_v5, %v10067_v30  ;;  %v9808_v54 = vmul.f32 %v13903_v62, %v18227_v59  ;;  %v13905_v26 = vadd.f32 %v9261_v42, %v18137_v23 }
 0x56d   : > { %11861 = vst [vmem:[%s18254_s25 + $0x78] sm:$0xff] %v11605_v4   ;;  %v9945_v34 = vadd.f32 %v18230_v40, %v9810_v3  ;;  %v9811_v8 = vmul.f32 %v13904_v29, %v18227_v59  ;;  %v19590_v3 = vld [vmem:[#allocation152_spill] sm:$0xff] }
 0x56e   : > { %11860 = vst [vmem:[%s18254_s25 + $0x70] sm:$0xff] %v11600_v7   ;;  %v9943_v12 = vadd.f32 %v18230_v40, %v9808_v54  ;;  %v9809_v13 = vmul.f32 %v13905_v26, %v18227_v59  ;;  %v19591_v26 = vld [vmem:[#allocation154_spill] sm:$0xff] }
 0x56f   : > { %v9946_v38 = vadd.f32 %v18230_v40, %v9811_v8  ;;  %v10073_v55 = vmax.f32 %v9945_v34, 0.0 }
 0x570   : > { %v9944_v21 = vadd.f32 %v18230_v40, %v9809_v13  ;;  %v13764_v48 = vpop.f32.mrb[36].mxu0  ;;  %v10071_v14 = vmax.f32 %v9943_v12, 0.0 }
 0x571   : > { %v10074_v58 = vmax.f32 %v9946_v38, 0.0  ;;  %v13906_v23 = vadd.f32 %v13764_v48, %v18143_v37  ;;  %v9274_v57 = vpop.f32.mrb[37].mxu0  ;;  %v19592_v38 = vld [vmem:[#allocation153_spill] sm:$0xff] }
 0x572   : > { %v10072_v28 = vmax.f32 %v9944_v21, 0.0  ;;  %v13907_v43 = vadd.f32 %v9274_v57, %v18145_v25  ;;  %v13765_v60 = vpop.f32.mrb[38].mxu0 }
 0x573   : > { %v11615_v33 = vpack.c.bf16 %v10074_v58, %v10073_v55  ;;  %v9814_v46 = vmul.f32 %v13906_v23, %v18227_v59  ;;  %v13908_v27 = vadd.f32 %v13765_v60, %v18147_v9  ;;  %v9277_v53 = vpop.f32.mrb[39].mxu0  ;;  %v19593_v23 = vld [vmem:[#allocation155_spill] sm:$0xff] }
 0x574   : > { %v11610_v20 = vpack.c.bf16 %v10072_v28, %v10071_v14  ;;  %v9812_v18 = vmul.f32 %v13907_v43, %v18227_v59  ;;  %v13909_v39 = vadd.f32 %v9277_v53, %v18149_v1 }
 0x575   : > { %11863 = vst [vmem:[%s18254_s25 + $0x88] sm:$0xff] %v11615_v33   ;;  %v9949_v37 = vadd.f32 %v18230_v40, %v9814_v46  ;;  %v9815_v61 = vmul.f32 %v13908_v27, %v18227_v59 }
 0x576   : > { %11862 = vst [vmem:[%s18254_s25 + $0x80] sm:$0xff] %v11610_v20   ;;  %v9947_v25 = vadd.f32 %v18230_v40, %v9812_v18  ;;  %v9813_v63 = vmul.f32 %v13909_v39, %v18227_v59  ;;  %v19594_v18 = vld [vmem:[#allocation160_spill] sm:$0xff] }
 0x577   : > { %v9950_v19 = vadd.f32 %v18230_v40, %v9815_v61  ;;  %v10077_v17 = vmax.f32 %v9949_v37, 0.0 }
 0x578   : > { %v9948_v9 = vadd.f32 %v18230_v40, %v9813_v63  ;;  %v13768_v32 = vpop.f32.mrb[40].mxu0  ;;  %v10075_v36 = vmax.f32 %v9947_v25, 0.0  ;;  %v19595_v63 = vld [vmem:[#allocation162_spill] sm:$0xff] }
 0x579   : > { %v10078_v44 = vmax.f32 %v9950_v19, 0.0  ;;  %v13910_v1 = vadd.f32 %v13768_v32, %v18155_v51  ;;  %v9290_v24 = vpop.f32.mrb[41].mxu0 }
 0x57a   : > { %v10076_v0 = vmax.f32 %v9948_v9, 0.0  ;;  %v13911_v31 = vadd.f32 %v9290_v24, %v19587_v49  ;;  %v13769_v16 = vpop.f32.mrb[42].mxu0  ;;  %v19597_v49 = vld [vmem:[#allocation163_spill] sm:$0xff] }
 0x57b   : > { %v11625_v22 = vpack.c.bf16 %v10078_v44, %v10077_v17  ;;  %v9818_v6 = vmul.f32 %v13910_v1, %v18227_v59  ;;  %v13912_v50 = vadd.f32 %v13769_v16, %v19588_v2  ;;  %v9293_v52 = vpop.f32.mrb[43].mxu0  ;;  %v19596_v44 = vld [vmem:[#allocation161_spill] sm:$0xff] }
 0x57c   : > { %v11620_v10 = vpack.c.bf16 %v10076_v0, %v10075_v36  ;;  %v9816_v47 = vmul.f32 %v13911_v31, %v18227_v59  ;;  %v13913_v56 = vadd.f32 %v9293_v52, %v19589_v11 }
 0x57d   : > { %11865 = vst [vmem:[%s18254_s25 + $0x98] sm:$0xff] %v11625_v22   ;;  %v9953_v51 = vadd.f32 %v18230_v40, %v9818_v6  ;;  %v9819_v15 = vmul.f32 %v13912_v50, %v18227_v59 }
 0x57e   : > { %11864 = vst [vmem:[%s18254_s25 + $0x90] sm:$0xff] %v11620_v10   ;;  %v9951_v35 = vadd.f32 %v18230_v40, %v9816_v47  ;;  %v9817_v41 = vmul.f32 %v13913_v56, %v18227_v59  ;;  %v19598_v56 = vld [vmem:[#allocation168_spill] sm:$0xff] }
 0x57f   : > { %v9954_v30 = vadd.f32 %v18230_v40, %v9819_v15  ;;  %v10081_v45 = vmax.f32 %v9953_v51, 0.0 }
 0x580   : > { %v9952_v5 = vadd.f32 %v18230_v40, %v9817_v41  ;;  %v13772_v62 = vpop.f32.mrb[44].mxu0  ;;  %v10079_v7 = vmax.f32 %v9951_v35, 0.0 }
 0x581   : > { %v10082_v4 = vmax.f32 %v9954_v30, 0.0  ;;  %v13914_v29 = vadd.f32 %v13772_v62, %v19590_v3  ;;  %v9306_v42 = vpop.f32.mrb[45].mxu0  ;;  %v19599_v30 = vld [vmem:[#allocation170_spill] sm:$0xff]  ;;  %v19600_v3 = vld [vmem:[#allocation169_spill] sm:$0xff] }
 0x582   : > { %v10080_v54 = vmax.f32 %v9952_v5, 0.0  ;;  %v13915_v34 = vadd.f32 %v9306_v42, %v19591_v26  ;;  %v13773_v8 = vpop.f32.mrb[46].mxu0  ;;  %v19601_v26 = vld [vmem:[#allocation171_spill] sm:$0xff] }
 0x583   : > { %v11635_v12 = vpack.c.bf16 %v10082_v4, %v10081_v45  ;;  %v9822_v13 = vmul.f32 %v13914_v29, %v18227_v59  ;;  %v13916_v21 = vadd.f32 %v13773_v8, %v19592_v38  ;;  %v9309_v48 = vpop.f32.mrb[47].mxu0 }
 0x584   : > { %v11630_v55 = vpack.c.bf16 %v10080_v54, %v10079_v7  ;;  %v9820_v58 = vmul.f32 %v13915_v34, %v18227_v59  ;;  %v13917_v57 = vadd.f32 %v9309_v48, %v19593_v23 }
 0x585   : > { %11867 = vst [vmem:[%s18254_s25 + $0xa8] sm:$0xff] %v11635_v12   ;;  %v9957_v14 = vadd.f32 %v18230_v40, %v9822_v13  ;;  %v9823_v28 = vmul.f32 %v13916_v21, %v18227_v59 }
 0x586   : > { %11866 = vst [vmem:[%s18254_s25 + $0xa0] sm:$0xff] %v11630_v55   ;;  %v9955_v43 = vadd.f32 %v18230_v40, %v9820_v58  ;;  %v9821_v60 = vmul.f32 %v13917_v57, %v18227_v59  ;;  %v19602_v57 = vld [vmem:[#allocation176_spill] sm:$0xff] }
 0x587   : > { %v9958_v33 = vadd.f32 %v18230_v40, %v9823_v28  ;;  %v10085_v53 = vmax.f32 %v9957_v14, 0.0 }
 0x588   : > { %v9956_v46 = vadd.f32 %v18230_v40, %v9821_v60  ;;  %v13776_v27 = vpop.f32.mrb[48].mxu0  ;;  %v10083_v61 = vmax.f32 %v9955_v43, 0.0 }
 0x589   : > { %v10086_v20 = vmax.f32 %v9958_v33, 0.0  ;;  %v13918_v39 = vadd.f32 %v13776_v27, %v19594_v18  ;;  %v9322_v37 = vpop.f32.mrb[49].mxu0  ;;  %v19603_v33 = vld [vmem:[#allocation178_spill] sm:$0xff]  ;;  %v19604_v18 = vld [vmem:[#allocation177_spill] sm:$0xff] }
 0x58a   : > { %v10084_v25 = vmax.f32 %v9956_v46, 0.0  ;;  %v13919_v19 = vadd.f32 %v9322_v37, %v19595_v63  ;;  %v13777_v9 = vpop.f32.mrb[50].mxu0  ;;  %v19605_v63 = vld [vmem:[#allocation179_spill] sm:$0xff] }
 0x58b   : > { %v11645_v32 = vpack.c.bf16 %v10086_v20, %v10085_v53  ;;  %v9826_v17 = vmul.f32 %v13918_v39, %v18227_v59  ;;  %v13920_v1 = vadd.f32 %v13777_v9, %v19596_v44  ;;  %v9325_v24 = vpop.f32.mrb[51].mxu0 }
 0x58c   : > { %v11640_v36 = vpack.c.bf16 %v10084_v25, %v10083_v61  ;;  %v9824_v0 = vmul.f32 %v13919_v19, %v18227_v59  ;;  %v13921_v31 = vadd.f32 %v9325_v24, %v19597_v49 }
 0x58d   : > { %11869 = vst [vmem:[%s18254_s25 + $0xb8] sm:$0xff] %v11645_v32   ;;  %v9961_v16 = vadd.f32 %v18230_v40, %v9826_v17  ;;  %v9827_v22 = vmul.f32 %v13920_v1, %v18227_v59 }
 0x58e   : > { %11868 = vst [vmem:[%s18254_s25 + $0xb0] sm:$0xff] %v11640_v36   ;;  %v9959_v6 = vadd.f32 %v18230_v40, %v9824_v0  ;;  %v9825_v2 = vmul.f32 %v13921_v31, %v18227_v59  ;;  %v19606_v31 = vld [vmem:[#allocation184_spill] sm:$0xff] }
 0x58f   : > { %v9962_v50 = vadd.f32 %v18230_v40, %v9827_v22  ;;  %v10089_v47 = vmax.f32 %v9961_v16, 0.0 }
 0x590   : > { %v9960_v52 = vadd.f32 %v18230_v40, %v9825_v2  ;;  %v13780_v10 = vpop.f32.mrb[52].mxu0  ;;  %v10087_v35 = vmax.f32 %v9959_v6, 0.0 }
 0x591   : > { %v10090_v11 = vmax.f32 %v9962_v50, 0.0  ;;  %v13922_v51 = vadd.f32 %v13780_v10, %v19598_v56  ;;  %v9338_v15 = vpop.f32.mrb[53].mxu0  ;;  %v19607_v50 = vld [vmem:[#allocation186_spill] sm:$0xff]  ;;  %v19608_v56 = vld [vmem:[#allocation185_spill] sm:$0xff] }
 0x592   : > { %v10088_v41 = vmax.f32 %v9960_v52, 0.0  ;;  %v13923_v5 = vadd.f32 %v9338_v15, %v19599_v30  ;;  %v13781_v62 = vpop.f32.mrb[54].mxu0  ;;  %v19609_v30 = vld [vmem:[#allocation112_spill] sm:$0xff] }
 0x593   : > { %v11655_v45 = vpack.c.bf16 %v10090_v11, %v10089_v47  ;;  %v9830_v4 = vmul.f32 %v13922_v51, %v18227_v59  ;;  %v13924_v29 = vadd.f32 %v13781_v62, %v19600_v3  ;;  %v9341_v42 = vpop.f32.mrb[55].mxu0 }
 0x594   : > { %v11650_v7 = vpack.c.bf16 %v10088_v41, %v10087_v35  ;;  %v9828_v54 = vmul.f32 %v13923_v5, %v18227_v59  ;;  %v13925_v34 = vadd.f32 %v9341_v42, %v19601_v26 }
 0x595   : > { %11871 = vst [vmem:[%s18254_s25 + $0xc8] sm:$0xff] %v11655_v45   ;;  %v9965_v8 = vadd.f32 %v18230_v40, %v9830_v4  ;;  %v9831_v12 = vmul.f32 %v13924_v29, %v18227_v59 }
 0x596   : > { %11870 = vst [vmem:[%s18254_s25 + $0xc0] sm:$0xff] %v11650_v7   ;;  %v9963_v13 = vadd.f32 %v18230_v40, %v9828_v54  ;;  %v9829_v38 = vmul.f32 %v13925_v34, %v18227_v59 }
 0x597   : > { %v9966_v21 = vadd.f32 %v18230_v40, %v9831_v12  ;;  %v10093_v58 = vmax.f32 %v9965_v8, 0.0 }
 0x598   : > { %v9964_v48 = vadd.f32 %v18230_v40, %v9829_v38  ;;  %v13784_v55 = vpop.f32.mrb[56].mxu0  ;;  %v10091_v43 = vmax.f32 %v9963_v13, 0.0 }
 0x599   : > { %v10094_v23 = vmax.f32 %v9966_v21, 0.0  ;;  %v13926_v14 = vadd.f32 %v13784_v55, %v19602_v57  ;;  %v9354_v28 = vpop.f32.mrb[57].mxu0 }
 0x59a   : > { %v10092_v60 = vmax.f32 %v9964_v48, 0.0  ;;  %v13927_v46 = vadd.f32 %v9354_v28, %v19603_v33  ;;  %v13785_v27 = vpop.f32.mrb[58].mxu0 }
 0x59b   : > { %v11665_v53 = vpack.c.bf16 %v10094_v23, %v10093_v58  ;;  %v9834_v20 = vmul.f32 %v13926_v14, %v18227_v59  ;;  %v13928_v39 = vadd.f32 %v13785_v27, %v19604_v18  ;;  %v9357_v37 = vpop.f32.mrb[59].mxu0 }
 0x59c   : > { %v11660_v61 = vpack.c.bf16 %v10092_v60, %v10091_v43  ;;  %v9832_v25 = vmul.f32 %v13927_v46, %v18227_v59  ;;  %v13929_v19 = vadd.f32 %v9357_v37, %v19605_v63 }
 0x59d   : > { %11873 = vst [vmem:[%s18254_s25 + $0xd8] sm:$0xff] %v11665_v53   ;;  %v9969_v9 = vadd.f32 %v18230_v40, %v9834_v20  ;;  %v9835_v32 = vmul.f32 %v13928_v39, %v18227_v59 }
 0x59e   : > { %11872 = vst [vmem:[%s18254_s25 + $0xd0] sm:$0xff] %v11660_v61   ;;  %v9967_v17 = vadd.f32 %v18230_v40, %v9832_v25  ;;  %v9833_v44 = vmul.f32 %v13929_v19, %v18227_v59 }
 0x59f   : > { %v9970_v1 = vadd.f32 %v18230_v40, %v9835_v32  ;;  %v10097_v0 = vmax.f32 %v9969_v9, 0.0 }
 0x5a0   : > { %v9968_v24 = vadd.f32 %v18230_v40, %v9833_v44  ;;  %v13788_v36 = vpop.f32.mrb[60].mxu0  ;;  %v10095_v6 = vmax.f32 %v9967_v17, 0.0 }
 0x5a1   : > { %v10098_v49 = vmax.f32 %v9970_v1, 0.0  ;;  %v13930_v16 = vadd.f32 %v13788_v36, %v19606_v31  ;;  %v9370_v22 = vpop.f32.mrb[61].mxu0 }
 0x5a2   : > { %v10096_v2 = vmax.f32 %v9968_v24, 0.0  ;;  %v13931_v52 = vadd.f32 %v9370_v22, %v19607_v50  ;;  %v13789_v10 = vpop.f32.mrb[62].mxu0 }
 0x5a3   : > { %v11675_v47 = vpack.c.bf16 %v10098_v49, %v10097_v0  ;;  %v9838_v11 = vmul.f32 %v13930_v16, %v18227_v59  ;;  %v13932_v51 = vadd.f32 %v13789_v10, %v19608_v56  ;;  %v9373_v15 = vpop.f32.mrb[63].mxu0 }
 0x5a4   : > { %v11670_v35 = vpack.c.bf16 %v10096_v2, %v10095_v6  ;;  %v9836_v41 = vmul.f32 %v13931_v52, %v18227_v59  ;;  %v13933_v5 = vadd.f32 %v9373_v15, %v19609_v30 }
 0x5a5   : > { %11875 = vst [vmem:[%s18254_s25 + $0xe8] sm:$0xff] %v11675_v47   ;;  %v9973_v62 = vadd.f32 %v18230_v40, %v9838_v11  ;;  %v9839_v45 = vmul.f32 %v13932_v51, %v18227_v59 }
 0x5a6   : > { %11874 = vst [vmem:[%s18254_s25 + $0xe0] sm:$0xff] %v11670_v35   ;;  %v9971_v4 = vadd.f32 %v18230_v40, %v9836_v41  ;;  %v9837_v3 = vmul.f32 %v13933_v5, %v18227_v59 }
 0x5a7   : > { %v9974_v29 = vadd.f32 %v18230_v40, %v9839_v45  ;;  %v10101_v26 = vmax.f32 %v9973_v62, 0.0 }
 0x5a8   : > { %v9972_v42 = vadd.f32 %v18230_v40, %v9837_v3  ;;  %v13216_v7 = vpop.f32.mrb[64].mxu1  ;;  %v13792_v54 = vpop.f32.mrb[64].mxu0  ;;  %v10099_v38 = vmax.f32 %v9971_v4, 0.0 }
 0x5a9   : > { %v10102_v34 = vmax.f32 %v9974_v29, 0.0  ;;  %v13934_v8 = vadd.f32 %v13792_v54, %v13216_v7  ;;  %v6394_v12 = vpop.f32.mrb[65].mxu1  ;;  %v9386_v13 = vpop.f32.mrb[65].mxu0 }
 0x5aa   : > { %v10100_v21 = vmax.f32 %v9972_v42, 0.0  ;;  %v13935_v48 = vadd.f32 %v9386_v13, %v6394_v12  ;;  %v13217_v55 = vpop.f32.mrb[66].mxu1  ;;  %v13793_v58 = vpop.f32.mrb[66].mxu0 }
 0x5ab   : > { %v11685_v23 = vpack.c.bf16 %v10102_v34, %v10101_v26  ;;  %v9842_v57 = vmul.f32 %v13934_v8, %v18227_v59  ;;  %v13936_v14 = vadd.f32 %v13793_v58, %v13217_v55  ;;  %v6397_v28 = vpop.f32.mrb[67].mxu1  ;;  %v9389_v43 = vpop.f32.mrb[67].mxu0 }
 0x5ac   : > { %v11680_v60 = vpack.c.bf16 %v10100_v21, %v10099_v38  ;;  %v9840_v33 = vmul.f32 %v13935_v48, %v18227_v59  ;;  %v13937_v46 = vadd.f32 %v9389_v43, %v6397_v28 }
 0x5ad   : > { %11877 = vst [vmem:[%s18254_s25 + $0xf8] sm:$0xff] %v11685_v23   ;;  %v9977_v27 = vadd.f32 %v18230_v40, %v9842_v57  ;;  %v9843_v53 = vmul.f32 %v13936_v14, %v18227_v59 }
 0x5ae   : > { %11876 = vst [vmem:[%s18254_s25 + $0xf0] sm:$0xff] %v11680_v60   ;;  %v9975_v20 = vadd.f32 %v18230_v40, %v9840_v33  ;;  %v9841_v18 = vmul.f32 %v13937_v46, %v18227_v59 }
 0x5af   : > { %v9978_v39 = vadd.f32 %v18230_v40, %v9843_v53  ;;  %v10105_v63 = vmax.f32 %v9977_v27, 0.0 }
 0x5b0   : > { %v9976_v37 = vadd.f32 %v18230_v40, %v9841_v18  ;;  %v13220_v61 = vpop.f32.mrb[68].mxu1  ;;  %v13796_v25 = vpop.f32.mrb[68].mxu0  ;;  %v10103_v44 = vmax.f32 %v9975_v20, 0.0 }
 0x5b1   : > { %v10106_v19 = vmax.f32 %v9978_v39, 0.0  ;;  %v13938_v9 = vadd.f32 %v13796_v25, %v13220_v61  ;;  %v6410_v32 = vpop.f32.mrb[69].mxu1  ;;  %v9402_v17 = vpop.f32.mrb[69].mxu0 }
 0x5b2   : > { %v10104_v1 = vmax.f32 %v9976_v37, 0.0  ;;  %v13939_v24 = vadd.f32 %v9402_v17, %v6410_v32  ;;  %v13221_v36 = vpop.f32.mrb[70].mxu1  ;;  %v13797_v0 = vpop.f32.mrb[70].mxu0 }
 0x5b3   : > { %v11695_v49 = vpack.c.bf16 %v10106_v19, %v10105_v63  ;;  %v9846_v31 = vmul.f32 %v13938_v9, %v18227_v59  ;;  %v13940_v16 = vadd.f32 %v13797_v0, %v13221_v36  ;;  %v6413_v22 = vpop.f32.mrb[71].mxu1  ;;  %v9405_v6 = vpop.f32.mrb[71].mxu0  ;;  %v18520_v36 = vld [vmem:[#allocation8] ss:$0 sm:$0xff] }
 0x5b4   : > { %v11690_v2 = vpack.c.bf16 %v10104_v1, %v10103_v44  ;;  %v9844_v50 = vmul.f32 %v13939_v24, %v18227_v59  ;;  %v13941_v52 = vadd.f32 %v9405_v6, %v6413_v22  ;;  %v18516_v44 = vld [vmem:[#allocation7] ss:$0 sm:$0xff] }
 0x5b5   : > { %11879 = vst [vmem:[%s18254_s25 + $0x108] sm:$0xff] %v11695_v49   ;;  %v9981_v10 = vadd.f32 %v18230_v40, %v9846_v31  ;;  %v9847_v47 = vmul.f32 %v13940_v16, %v18227_v59 }
 0x5b6   : > { %11878 = vst [vmem:[%s18254_s25 + $0x100] sm:$0xff] %v11690_v2   ;;  %v9979_v11 = vadd.f32 %v18230_v40, %v9844_v50  ;;  %v9845_v56 = vmul.f32 %v13941_v52, %v18227_v59 }
 0x5b7   : > { %v9982_v51 = vadd.f32 %v18230_v40, %v9847_v47  ;;  %v10109_v30 = vmax.f32 %v9981_v10, 0.0 }
 0x5b8   : > { %v9980_v15 = vadd.f32 %v18230_v40, %v9845_v56  ;;  %v13224_v35 = vpop.f32.mrb[72].mxu1  ;;  %v13800_v41 = vpop.f32.mrb[72].mxu0  ;;  %v10107_v3 = vmax.f32 %v9979_v11, 0.0 }
 0x5b9   : > { %v10110_v5 = vmax.f32 %v9982_v51, 0.0  ;;  %v13942_v62 = vadd.f32 %v13800_v41, %v13224_v35  ;;  %v6426_v45 = vpop.f32.mrb[73].mxu1  ;;  %v9418_v4 = vpop.f32.mrb[73].mxu0 }
 0x5ba   : > { %v10108_v29 = vmax.f32 %v9980_v15, 0.0  ;;  %v13943_v42 = vadd.f32 %v9418_v4, %v6426_v45  ;;  %v13225_v7 = vpop.f32.mrb[74].mxu1  ;;  %v13801_v54 = vpop.f32.mrb[74].mxu0 }
 0x5bb   : > { %v11705_v26 = vpack.c.bf16 %v10110_v5, %v10109_v30  ;;  %v9850_v34 = vmul.f32 %v13942_v62, %v18227_v59  ;;  %v13944_v8 = vadd.f32 %v13801_v54, %v13225_v7  ;;  %v6429_v12 = vpop.f32.mrb[75].mxu1  ;;  %v9421_v13 = vpop.f32.mrb[75].mxu0 }
 0x5bc   : > { %v11700_v38 = vpack.c.bf16 %v10108_v29, %v10107_v3  ;;  %v9848_v21 = vmul.f32 %v13943_v42, %v18227_v59  ;;  %v13945_v48 = vadd.f32 %v9421_v13, %v6429_v12 }
 0x5bd   : > { %11881 = vst [vmem:[%s18254_s25 + $0x118] sm:$0xff] %v11705_v26   ;;  %v9985_v55 = vadd.f32 %v18230_v40, %v9850_v34  ;;  %v9851_v58 = vmul.f32 %v13944_v8, %v18227_v59 }
 0x5be   : > { %11880 = vst [vmem:[%s18254_s25 + $0x110] sm:$0xff] %v11700_v38   ;;  %v9983_v23 = vadd.f32 %v18230_v40, %v9848_v21  ;;  %v9849_v57 = vmul.f32 %v13945_v48, %v18227_v59 }
 0x5bf   : > { %v9986_v14 = vadd.f32 %v18230_v40, %v9851_v58  ;;  %v10113_v33 = vmax.f32 %v9985_v55, 0.0 }
 0x5c0   : > { %v9984_v28 = vadd.f32 %v18230_v40, %v9849_v57  ;;  %v13228_v43 = vpop.f32.mrb[76].mxu1  ;;  %v13804_v60 = vpop.f32.mrb[76].mxu0  ;;  %v10111_v18 = vmax.f32 %v9983_v23, 0.0 }
 0x5c1   : > { %v10114_v46 = vmax.f32 %v9986_v14, 0.0  ;;  %v13946_v27 = vadd.f32 %v13804_v60, %v13228_v43  ;;  %v6442_v53 = vpop.f32.mrb[77].mxu1  ;;  %v9434_v20 = vpop.f32.mrb[77].mxu0 }
 0x5c2   : > { %v10112_v39 = vmax.f32 %v9984_v28, 0.0  ;;  %v13947_v37 = vadd.f32 %v9434_v20, %v6442_v53  ;;  %v13229_v61 = vpop.f32.mrb[78].mxu1  ;;  %v13805_v25 = vpop.f32.mrb[78].mxu0 }
 0x5c3   : > { %v11715_v63 = vpack.c.bf16 %v10114_v46, %v10113_v33  ;;  %v9854_v19 = vmul.f32 %v13946_v27, %v18227_v59  ;;  %v13948_v9 = vadd.f32 %v13805_v25, %v13229_v61  ;;  %v6445_v32 = vpop.f32.mrb[79].mxu1  ;;  %v9437_v40 = vpop.f32.mrb[79].mxu0 }
 0x5c4   : > { %v11710_v17 = vpack.c.bf16 %v10112_v39, %v10111_v18  ;;  %v9852_v1 = vmul.f32 %v18516_v44, %v13947_v37  ;;  %v13949_v24 = vadd.f32 %v9437_v40, %v6445_v32 }
 0x5c5   : > { %11883 = vst [vmem:[%s18254_s25 + $0x128] sm:$0xff] %v11715_v63   ;;  %v9989_v0 = vadd.f32 %v18520_v36, %v9854_v19  ;;  %v9855_v49 = vmul.f32 %v18516_v44, %v13948_v9 }
 0x5c6   : > { %11882 = vst [vmem:[%s18254_s25 + $0x120] sm:$0xff] %v11710_v17   ;;  %v9987_v31 = vadd.f32 %v18520_v36, %v9852_v1  ;;  %v9853_v59 = vmul.f32 %v18516_v44, %v13949_v24 }
 0x5c7   : > { %v9990_v16 = vadd.f32 %v18520_v36, %v9855_v49  ;;  %v10117_v50 = vmax.f32 %v9989_v0, 0.0 }
 0x5c8   : > { %v9988_v22 = vadd.f32 %v18520_v36, %v9853_v59  ;;  %v13232_v6 = vpop.f32.mrb[80].mxu1  ;;  %v13808_v2 = vpop.f32.mrb[80].mxu0  ;;  %v10115_v56 = vmax.f32 %v9987_v31, 0.0 }
 0x5c9   : > { %v10118_v52 = vmax.f32 %v9990_v16, 0.0  ;;  %v13950_v10 = vadd.f32 %v13808_v2, %v13232_v6  ;;  %v6458_v47 = vpop.f32.mrb[81].mxu1  ;;  %v9450_v11 = vpop.f32.mrb[81].mxu0 }
 0x5ca   : > { %v10116_v51 = vmax.f32 %v9988_v22, 0.0  ;;  %v13951_v15 = vadd.f32 %v9450_v11, %v6458_v47  ;;  %v13233_v35 = vpop.f32.mrb[82].mxu1  ;;  %v13809_v41 = vpop.f32.mrb[82].mxu0 }
 0x5cb   : > { %v11725_v30 = vpack.c.bf16 %v10118_v52, %v10117_v50  ;;  %v9858_v5 = vmul.f32 %v18516_v44, %v13950_v10  ;;  %v13952_v62 = vadd.f32 %v13809_v41, %v13233_v35  ;;  %v6461_v45 = vpop.f32.mrb[83].mxu1  ;;  %v9453_v4 = vpop.f32.mrb[83].mxu0 }
 0x5cc   : > { %v11720_v3 = vpack.c.bf16 %v10116_v51, %v10115_v56  ;;  %v9856_v29 = vmul.f32 %v18516_v44, %v13951_v15  ;;  %v13953_v42 = vadd.f32 %v9453_v4, %v6461_v45 }
 0x5cd   : > { %11885 = vst [vmem:[%s18254_s25 + $0x138] sm:$0xff] %v11725_v30   ;;  %v9993_v7 = vadd.f32 %v18520_v36, %v9858_v5  ;;  %v9859_v54 = vmul.f32 %v18516_v44, %v13952_v62 }
 0x5ce   : > { %11884 = vst [vmem:[%s18254_s25 + $0x130] sm:$0xff] %v11720_v3   ;;  %v9991_v26 = vadd.f32 %v18520_v36, %v9856_v29  ;;  %v9857_v34 = vmul.f32 %v18516_v44, %v13953_v42 }
 0x5cf   : > { %v9994_v8 = vadd.f32 %v18520_v36, %v9859_v54  ;;  %v10121_v21 = vmax.f32 %v9993_v7, 0.0 }
 0x5d0   : > { %v9992_v12 = vadd.f32 %v18520_v36, %v9857_v34  ;;  %v13236_v13 = vpop.f32.mrb[84].mxu1  ;;  %v13812_v38 = vpop.f32.mrb[84].mxu0  ;;  %v10119_v57 = vmax.f32 %v9991_v26, 0.0 }
 0x5d1   : > { %v10122_v48 = vmax.f32 %v9994_v8, 0.0  ;;  %v13954_v55 = vadd.f32 %v13812_v38, %v13236_v13  ;;  %v6474_v58 = vpop.f32.mrb[85].mxu1  ;;  %v9466_v23 = vpop.f32.mrb[85].mxu0 }
 0x5d2   : > { %v10120_v14 = vmax.f32 %v9992_v12, 0.0  ;;  %v13955_v28 = vadd.f32 %v9466_v23, %v6474_v58  ;;  %v13237_v43 = vpop.f32.mrb[86].mxu1  ;;  %v13813_v60 = vpop.f32.mrb[86].mxu0 }
 0x5d3   : > { %v11735_v33 = vpack.c.bf16 %v10122_v48, %v10121_v21  ;;  %v9862_v46 = vmul.f32 %v18516_v44, %v13954_v55  ;;  %v13956_v27 = vadd.f32 %v13813_v60, %v13237_v43  ;;  %v6477_v53 = vpop.f32.mrb[87].mxu1  ;;  %v9469_v20 = vpop.f32.mrb[87].mxu0 }
 0x5d4   : > { %v11730_v18 = vpack.c.bf16 %v10120_v14, %v10119_v57  ;;  %v9860_v39 = vmul.f32 %v18516_v44, %v13955_v28  ;;  %v13957_v37 = vadd.f32 %v9469_v20, %v6477_v53 }
 0x5d5   : > { %11887 = vst [vmem:[%s18254_s25 + $0x148] sm:$0xff] %v11735_v33   ;;  %v9997_v61 = vadd.f32 %v18520_v36, %v9862_v46  ;;  %v9863_v25 = vmul.f32 %v18516_v44, %v13956_v27 }
 0x5d6   : > { %11886 = vst [vmem:[%s18254_s25 + $0x140] sm:$0xff] %v11730_v18   ;;  %v9995_v63 = vadd.f32 %v18520_v36, %v9860_v39  ;;  %v9861_v19 = vmul.f32 %v18516_v44, %v13957_v37 }
 0x5d7   : > { %v9998_v9 = vadd.f32 %v18520_v36, %v9863_v25  ;;  %v10125_v1 = vmax.f32 %v9997_v61, 0.0 }
 0x5d8   : > { %v9996_v32 = vadd.f32 %v18520_v36, %v9861_v19  ;;  %v13240_v40 = vpop.f32.mrb[88].mxu1  ;;  %v13816_v17 = vpop.f32.mrb[88].mxu0  ;;  %v10123_v59 = vmax.f32 %v9995_v63, 0.0 }
 0x5d9   : > { %v10126_v24 = vmax.f32 %v9998_v9, 0.0  ;;  %v13958_v0 = vadd.f32 %v13816_v17, %v13240_v40  ;;  %v6490_v49 = vpop.f32.mrb[89].mxu1  ;;  %v9482_v31 = vpop.f32.mrb[89].mxu0 }
 0x5da   : > { %v10124_v16 = vmax.f32 %v9996_v32, 0.0  ;;  %v13959_v22 = vadd.f32 %v9482_v31, %v6490_v49  ;;  %v13241_v6 = vpop.f32.mrb[90].mxu1  ;;  %v13817_v2 = vpop.f32.mrb[90].mxu0 }
 0x5db   : > { %v11745_v50 = vpack.c.bf16 %v10126_v24, %v10125_v1  ;;  %v9866_v52 = vmul.f32 %v18516_v44, %v13958_v0  ;;  %v13960_v10 = vadd.f32 %v13817_v2, %v13241_v6  ;;  %v6493_v47 = vpop.f32.mrb[91].mxu1  ;;  %v9485_v11 = vpop.f32.mrb[91].mxu0 }
 0x5dc   : > { %v11740_v56 = vpack.c.bf16 %v10124_v16, %v10123_v59  ;;  %v9864_v51 = vmul.f32 %v18516_v44, %v13959_v22  ;;  %v13961_v15 = vadd.f32 %v9485_v11, %v6493_v47 }
 0x5dd   : > { %11889 = vst [vmem:[%s18254_s25 + $0x158] sm:$0xff] %v11745_v50   ;;  %v10001_v35 = vadd.f32 %v18520_v36, %v9866_v52  ;;  %v9867_v41 = vmul.f32 %v18516_v44, %v13960_v10 }
 0x5de   : > { %11888 = vst [vmem:[%s18254_s25 + $0x150] sm:$0xff] %v11740_v56   ;;  %v9999_v30 = vadd.f32 %v18520_v36, %v9864_v51  ;;  %v9865_v5 = vmul.f32 %v18516_v44, %v13961_v15 }
 0x5df   : > { %v10002_v62 = vadd.f32 %v18520_v36, %v9867_v41  ;;  %v10129_v29 = vmax.f32 %v10001_v35, 0.0 }
 0x5e0   : > { %v10000_v45 = vadd.f32 %v18520_v36, %v9865_v5  ;;  %v13244_v4 = vpop.f32.mrb[92].mxu1  ;;  %v13820_v3 = vpop.f32.mrb[92].mxu0  ;;  %v10127_v34 = vmax.f32 %v9999_v30, 0.0 }
 0x5e1   : > { %v10130_v42 = vmax.f32 %v10002_v62, 0.0  ;;  %v13962_v7 = vadd.f32 %v13820_v3, %v13244_v4  ;;  %v6506_v54 = vpop.f32.mrb[93].mxu1  ;;  %v9498_v26 = vpop.f32.mrb[93].mxu0 }
 0x5e2   : > { %v10128_v8 = vmax.f32 %v10000_v45, 0.0  ;;  %v13963_v12 = vadd.f32 %v9498_v26, %v6506_v54  ;;  %v13245_v13 = vpop.f32.mrb[94].mxu1  ;;  %v13821_v38 = vpop.f32.mrb[94].mxu0 }
 0x5e3   : > { %v11755_v21 = vpack.c.bf16 %v10130_v42, %v10129_v29  ;;  %v9870_v48 = vmul.f32 %v18516_v44, %v13962_v7  ;;  %v13964_v55 = vadd.f32 %v13821_v38, %v13245_v13  ;;  %v6509_v58 = vpop.f32.mrb[95].mxu1  ;;  %v9501_v23 = vpop.f32.mrb[95].mxu0 }
 0x5e4   : > { %v11750_v57 = vpack.c.bf16 %v10128_v8, %v10127_v34  ;;  %v9868_v14 = vmul.f32 %v18516_v44, %v13963_v12  ;;  %v13965_v28 = vadd.f32 %v9501_v23, %v6509_v58 }
 0x5e5   : > { %11891 = vst [vmem:[%s18254_s25 + $0x168] sm:$0xff] %v11755_v21   ;;  %v10005_v43 = vadd.f32 %v18520_v36, %v9870_v48  ;;  %v9871_v60 = vmul.f32 %v18516_v44, %v13964_v55 }
 0x5e6   : > { %11890 = vst [vmem:[%s18254_s25 + $0x160] sm:$0xff] %v11750_v57   ;;  %v10003_v33 = vadd.f32 %v18520_v36, %v9868_v14  ;;  %v9869_v46 = vmul.f32 %v18516_v44, %v13965_v28 }
 0x5e7   : > { %v10006_v27 = vadd.f32 %v18520_v36, %v9871_v60  ;;  %v10133_v39 = vmax.f32 %v10005_v43, 0.0 }
 0x5e8   : > { %v10004_v53 = vadd.f32 %v18520_v36, %v9869_v46  ;;  %v13248_v20 = vpop.f32.mrb[96].mxu1  ;;  %v13824_v18 = vpop.f32.mrb[96].mxu0  ;;  %v10131_v19 = vmax.f32 %v10003_v33, 0.0 }
 0x5e9   : > { %v10134_v37 = vmax.f32 %v10006_v27, 0.0  ;;  %v13966_v61 = vadd.f32 %v13824_v18, %v13248_v20  ;;  %v6522_v25 = vpop.f32.mrb[97].mxu1  ;;  %v9514_v63 = vpop.f32.mrb[97].mxu0 }
 0x5ea   : > { %v10132_v9 = vmax.f32 %v10004_v53, 0.0  ;;  %v13967_v32 = vadd.f32 %v9514_v63, %v6522_v25  ;;  %v13249_v40 = vpop.f32.mrb[98].mxu1  ;;  %v13825_v17 = vpop.f32.mrb[98].mxu0 }
 0x5eb   : > { %v11765_v1 = vpack.c.bf16 %v10134_v37, %v10133_v39  ;;  %v9874_v24 = vmul.f32 %v18516_v44, %v13966_v61  ;;  %v13968_v0 = vadd.f32 %v13825_v17, %v13249_v40  ;;  %v6525_v49 = vpop.f32.mrb[99].mxu1  ;;  %v9517_v31 = vpop.f32.mrb[99].mxu0 }
 0x5ec   : > { %v11760_v59 = vpack.c.bf16 %v10132_v9, %v10131_v19  ;;  %v9872_v16 = vmul.f32 %v18516_v44, %v13967_v32  ;;  %v13969_v22 = vadd.f32 %v9517_v31, %v6525_v49 }
 0x5ed   : > { %11893 = vst [vmem:[%s18254_s25 + $0x178] sm:$0xff] %v11765_v1   ;;  %v10009_v6 = vadd.f32 %v18520_v36, %v9874_v24  ;;  %v9875_v2 = vmul.f32 %v18516_v44, %v13968_v0 }
 0x5ee   : > { %11892 = vst [vmem:[%s18254_s25 + $0x170] sm:$0xff] %v11760_v59   ;;  %v10007_v50 = vadd.f32 %v18520_v36, %v9872_v16  ;;  %v9873_v52 = vmul.f32 %v18516_v44, %v13969_v22 }
 0x5ef   : > { %v10010_v10 = vadd.f32 %v18520_v36, %v9875_v2  ;;  %v10137_v51 = vmax.f32 %v10009_v6, 0.0 }
 0x5f0   : > { %v10008_v47 = vadd.f32 %v18520_v36, %v9873_v52  ;;  %v13252_v11 = vpop.f32.mrb[100].mxu1  ;;  %v13828_v56 = vpop.f32.mrb[100].mxu0  ;;  %v10135_v5 = vmax.f32 %v10007_v50, 0.0 }
 0x5f1   : > { %v10138_v15 = vmax.f32 %v10010_v10, 0.0  ;;  %v13970_v35 = vadd.f32 %v13828_v56, %v13252_v11  ;;  %v6538_v41 = vpop.f32.mrb[101].mxu1  ;;  %v9530_v30 = vpop.f32.mrb[101].mxu0 }
 0x5f2   : > { %v10136_v62 = vmax.f32 %v10008_v47, 0.0  ;;  %v13971_v45 = vadd.f32 %v9530_v30, %v6538_v41  ;;  %v13253_v4 = vpop.f32.mrb[102].mxu1  ;;  %v13829_v3 = vpop.f32.mrb[102].mxu0 }
 0x5f3   : > { %v11775_v29 = vpack.c.bf16 %v10138_v15, %v10137_v51  ;;  %v9878_v42 = vmul.f32 %v18516_v44, %v13970_v35  ;;  %v13972_v7 = vadd.f32 %v13829_v3, %v13253_v4  ;;  %v6541_v54 = vpop.f32.mrb[103].mxu1  ;;  %v9533_v26 = vpop.f32.mrb[103].mxu0 }
 0x5f4   : > { %v11770_v34 = vpack.c.bf16 %v10136_v62, %v10135_v5  ;;  %v9876_v8 = vmul.f32 %v18516_v44, %v13971_v45  ;;  %v13973_v12 = vadd.f32 %v9533_v26, %v6541_v54 }
 0x5f5   : > { %11895 = vst [vmem:[%s18254_s25 + $0x188] sm:$0xff] %v11775_v29   ;;  %v10013_v13 = vadd.f32 %v18520_v36, %v9878_v42  ;;  %v9879_v38 = vmul.f32 %v18516_v44, %v13972_v7 }
 0x5f6   : > { %11894 = vst [vmem:[%s18254_s25 + $0x180] sm:$0xff] %v11770_v34   ;;  %v10011_v21 = vadd.f32 %v18520_v36, %v9876_v8  ;;  %v9877_v48 = vmul.f32 %v18516_v44, %v13973_v12 }
 0x5f7   : > { %v10014_v55 = vadd.f32 %v18520_v36, %v9879_v38  ;;  %v10141_v14 = vmax.f32 %v10013_v13, 0.0 }
 0x5f8   : > { %v10012_v58 = vadd.f32 %v18520_v36, %v9877_v48  ;;  %v13256_v23 = vpop.f32.mrb[104].mxu1  ;;  %v13832_v57 = vpop.f32.mrb[104].mxu0  ;;  %v10139_v46 = vmax.f32 %v10011_v21, 0.0 }
 0x5f9   : > { %v10142_v28 = vmax.f32 %v10014_v55, 0.0  ;;  %v13974_v43 = vadd.f32 %v13832_v57, %v13256_v23  ;;  %v6554_v60 = vpop.f32.mrb[105].mxu1  ;;  %v9546_v33 = vpop.f32.mrb[105].mxu0 }
 0x5fa   : > { %v10140_v27 = vmax.f32 %v10012_v58, 0.0  ;;  %v13975_v53 = vadd.f32 %v9546_v33, %v6554_v60  ;;  %v13257_v20 = vpop.f32.mrb[106].mxu1  ;;  %v13833_v18 = vpop.f32.mrb[106].mxu0 }
 0x5fb   : > { %v11785_v39 = vpack.c.bf16 %v10142_v28, %v10141_v14  ;;  %v9882_v37 = vmul.f32 %v18516_v44, %v13974_v43  ;;  %v13976_v61 = vadd.f32 %v13833_v18, %v13257_v20  ;;  %v6557_v25 = vpop.f32.mrb[107].mxu1  ;;  %v9549_v63 = vpop.f32.mrb[107].mxu0 }
 0x5fc   : > { %v11780_v19 = vpack.c.bf16 %v10140_v27, %v10139_v46  ;;  %v9880_v9 = vmul.f32 %v18516_v44, %v13975_v53  ;;  %v13977_v32 = vadd.f32 %v9549_v63, %v6557_v25 }
 0x5fd   : > { %11897 = vst [vmem:[%s18254_s25 + $0x198] sm:$0xff] %v11785_v39   ;;  %v10017_v40 = vadd.f32 %v18520_v36, %v9882_v37  ;;  %v9883_v17 = vmul.f32 %v18516_v44, %v13976_v61 }
 0x5fe   : > { %11896 = vst [vmem:[%s18254_s25 + $0x190] sm:$0xff] %v11780_v19   ;;  %v10015_v1 = vadd.f32 %v18520_v36, %v9880_v9  ;;  %v9881_v24 = vmul.f32 %v18516_v44, %v13977_v32 }
 0x5ff   : > { %v10018_v0 = vadd.f32 %v18520_v36, %v9883_v17  ;;  %v10145_v16 = vmax.f32 %v10017_v40, 0.0 }
 0x600   : > { %v10016_v49 = vadd.f32 %v18520_v36, %v9881_v24  ;;  %v13260_v31 = vpop.f32.mrb[108].mxu1  ;;  %v13836_v59 = vpop.f32.mrb[108].mxu0  ;;  %v10143_v52 = vmax.f32 %v10015_v1, 0.0 }
 0x601   : > { %v10146_v22 = vmax.f32 %v10018_v0, 0.0  ;;  %v13978_v6 = vadd.f32 %v13836_v59, %v13260_v31  ;;  %v6570_v2 = vpop.f32.mrb[109].mxu1  ;;  %v9562_v50 = vpop.f32.mrb[109].mxu0 }
 0x602   : > { %v10144_v10 = vmax.f32 %v10016_v49, 0.0  ;;  %v13979_v47 = vadd.f32 %v9562_v50, %v6570_v2  ;;  %v13261_v11 = vpop.f32.mrb[110].mxu1  ;;  %v13837_v56 = vpop.f32.mrb[110].mxu0 }
 0x603   : > { %v11795_v51 = vpack.c.bf16 %v10146_v22, %v10145_v16  ;;  %v9886_v15 = vmul.f32 %v18516_v44, %v13978_v6  ;;  %v13980_v35 = vadd.f32 %v13837_v56, %v13261_v11  ;;  %v6573_v41 = vpop.f32.mrb[111].mxu1  ;;  %v9565_v30 = vpop.f32.mrb[111].mxu0 }
 0x604   : > { %v11790_v5 = vpack.c.bf16 %v10144_v10, %v10143_v52  ;;  %v9884_v62 = vmul.f32 %v18516_v44, %v13979_v47  ;;  %v13981_v45 = vadd.f32 %v9565_v30, %v6573_v41 }
 0x605   : > { %11899 = vst [vmem:[%s18254_s25 + $0x1a8] sm:$0xff] %v11795_v51   ;;  %v10021_v4 = vadd.f32 %v18520_v36, %v9886_v15  ;;  %v9887_v3 = vmul.f32 %v18516_v44, %v13980_v35 }
 0x606   : > { %11898 = vst [vmem:[%s18254_s25 + $0x1a0] sm:$0xff] %v11790_v5   ;;  %v10019_v29 = vadd.f32 %v18520_v36, %v9884_v62  ;;  %v9885_v42 = vmul.f32 %v18516_v44, %v13981_v45 }
 0x607   : > { %v10022_v7 = vadd.f32 %v18520_v36, %v9887_v3  ;;  %v10149_v8 = vmax.f32 %v10021_v4, 0.0 }
 0x608   : > { %v10020_v54 = vadd.f32 %v18520_v36, %v9885_v42  ;;  %v13264_v26 = vpop.f32.mrb[112].mxu1  ;;  %v13840_v34 = vpop.f32.mrb[112].mxu0  ;;  %v10147_v48 = vmax.f32 %v10019_v29, 0.0 }
 0x609   : > { %v10150_v12 = vmax.f32 %v10022_v7, 0.0  ;;  %v13982_v13 = vadd.f32 %v13840_v34, %v13264_v26  ;;  %v6586_v38 = vpop.f32.mrb[113].mxu1  ;;  %v9578_v21 = vpop.f32.mrb[113].mxu0 }
 0x60a   : > { %v10148_v55 = vmax.f32 %v10020_v54, 0.0  ;;  %v13983_v58 = vadd.f32 %v9578_v21, %v6586_v38  ;;  %v13265_v23 = vpop.f32.mrb[114].mxu1  ;;  %v13841_v57 = vpop.f32.mrb[114].mxu0 }
 0x60b   : > { %v11805_v14 = vpack.c.bf16 %v10150_v12, %v10149_v8  ;;  %v9890_v28 = vmul.f32 %v18516_v44, %v13982_v13  ;;  %v13984_v43 = vadd.f32 %v13841_v57, %v13265_v23  ;;  %v6589_v60 = vpop.f32.mrb[115].mxu1  ;;  %v9581_v33 = vpop.f32.mrb[115].mxu0 }
 0x60c   : > { %v11800_v46 = vpack.c.bf16 %v10148_v55, %v10147_v48  ;;  %v9888_v27 = vmul.f32 %v18516_v44, %v13983_v58  ;;  %v13985_v53 = vadd.f32 %v9581_v33, %v6589_v60 }
 0x60d   : > { %11901 = vst [vmem:[%s18254_s25 + $0x1b8] sm:$0xff] %v11805_v14   ;;  %v10025_v20 = vadd.f32 %v18520_v36, %v9890_v28  ;;  %v9891_v18 = vmul.f32 %v18516_v44, %v13984_v43 }
 0x60e   : > { %11900 = vst [vmem:[%s18254_s25 + $0x1b0] sm:$0xff] %v11800_v46   ;;  %v10023_v39 = vadd.f32 %v18520_v36, %v9888_v27  ;;  %v9889_v37 = vmul.f32 %v18516_v44, %v13985_v53 }
 0x60f   : > { %v10026_v61 = vadd.f32 %v18520_v36, %v9891_v18  ;;  %v10153_v9 = vmax.f32 %v10025_v20, 0.0 }
 0x610   : > { %v10024_v25 = vadd.f32 %v18520_v36, %v9889_v37  ;;  %v13268_v63 = vpop.f32.mrb[116].mxu1  ;;  %v13844_v19 = vpop.f32.mrb[116].mxu0  ;;  %v10151_v24 = vmax.f32 %v10023_v39, 0.0 }
 0x611   : > { %v10154_v32 = vmax.f32 %v10026_v61, 0.0  ;;  %v13986_v40 = vadd.f32 %v13844_v19, %v13268_v63  ;;  %v6602_v17 = vpop.f32.mrb[117].mxu1  ;;  %v9594_v1 = vpop.f32.mrb[117].mxu0 }
 0x612   : > { %v10152_v0 = vmax.f32 %v10024_v25, 0.0  ;;  %v13987_v49 = vadd.f32 %v9594_v1, %v6602_v17  ;;  %v13269_v31 = vpop.f32.mrb[118].mxu1  ;;  %v13845_v59 = vpop.f32.mrb[118].mxu0 }
 0x613   : > { %v11815_v16 = vpack.c.bf16 %v10154_v32, %v10153_v9  ;;  %v9894_v22 = vmul.f32 %v18516_v44, %v13986_v40  ;;  %v13988_v6 = vadd.f32 %v13845_v59, %v13269_v31  ;;  %v6605_v2 = vpop.f32.mrb[119].mxu1  ;;  %v9597_v50 = vpop.f32.mrb[119].mxu0 }
 0x614   : > { %v11810_v52 = vpack.c.bf16 %v10152_v0, %v10151_v24  ;;  %v9892_v10 = vmul.f32 %v18516_v44, %v13987_v49  ;;  %v13989_v47 = vadd.f32 %v9597_v50, %v6605_v2 }
 0x615   : > { %11903 = vst [vmem:[%s18254_s25 + $0x1c8] sm:$0xff] %v11815_v16   ;;  %v10029_v11 = vadd.f32 %v18520_v36, %v9894_v22  ;;  %v9895_v56 = vmul.f32 %v18516_v44, %v13988_v6 }
 0x616   : > { %11902 = vst [vmem:[%s18254_s25 + $0x1c0] sm:$0xff] %v11810_v52   ;;  %v10027_v51 = vadd.f32 %v18520_v36, %v9892_v10  ;;  %v9893_v15 = vmul.f32 %v18516_v44, %v13989_v47 }
 0x617   : > { %v10030_v35 = vadd.f32 %v18520_v36, %v9895_v56  ;;  %v10157_v62 = vmax.f32 %v10029_v11, 0.0 }
 0x618   : > { %v10028_v41 = vadd.f32 %v18520_v36, %v9893_v15  ;;  %v13272_v30 = vpop.f32.mrb[120].mxu1  ;;  %v13848_v5 = vpop.f32.mrb[120].mxu0  ;;  %v10155_v42 = vmax.f32 %v10027_v51, 0.0 }
 0x619   : > { %v10158_v45 = vmax.f32 %v10030_v35, 0.0  ;;  %v13990_v4 = vadd.f32 %v13848_v5, %v13272_v30  ;;  %v6618_v3 = vpop.f32.mrb[121].mxu1  ;;  %v9610_v29 = vpop.f32.mrb[121].mxu0 }
 0x61a   : > { %v10156_v7 = vmax.f32 %v10028_v41, 0.0  ;;  %v13991_v54 = vadd.f32 %v9610_v29, %v6618_v3  ;;  %v13273_v26 = vpop.f32.mrb[122].mxu1  ;;  %v13849_v34 = vpop.f32.mrb[122].mxu0 }
 0x61b   : > { %v11825_v8 = vpack.c.bf16 %v10158_v45, %v10157_v62  ;;  %v9898_v12 = vmul.f32 %v18516_v44, %v13990_v4  ;;  %v13992_v13 = vadd.f32 %v13849_v34, %v13273_v26  ;;  %v6621_v38 = vpop.f32.mrb[123].mxu1  ;;  %v9613_v21 = vpop.f32.mrb[123].mxu0 }
 0x61c   : > { %v11820_v48 = vpack.c.bf16 %v10156_v7, %v10155_v42  ;;  %v9896_v55 = vmul.f32 %v18516_v44, %v13991_v54  ;;  %v13993_v58 = vadd.f32 %v9613_v21, %v6621_v38 }
 0x61d   : > { %11905 = vst [vmem:[%s18254_s25 + $0x1d8] sm:$0xff] %v11825_v8   ;;  %v10033_v23 = vadd.f32 %v18520_v36, %v9898_v12  ;;  %v9899_v57 = vmul.f32 %v18516_v44, %v13992_v13 }
 0x61e   : > { %11904 = vst [vmem:[%s18254_s25 + $0x1d0] sm:$0xff] %v11820_v48   ;;  %v10031_v14 = vadd.f32 %v18520_v36, %v9896_v55  ;;  %v9897_v28 = vmul.f32 %v18516_v44, %v13993_v58 }
 0x61f   : > { %v10034_v43 = vadd.f32 %v18520_v36, %v9899_v57  ;;  %v10161_v27 = vmax.f32 %v10033_v23, 0.0 }
 0x620   : > { %v10032_v60 = vadd.f32 %v18520_v36, %v9897_v28  ;;  %v13276_v33 = vpop.f32.mrb[124].mxu1  ;;  %v13852_v46 = vpop.f32.mrb[124].mxu0  ;;  %v10159_v37 = vmax.f32 %v10031_v14, 0.0 }
 0x621   : > { %v10162_v53 = vmax.f32 %v10034_v43, 0.0  ;;  %v13994_v20 = vadd.f32 %v13852_v46, %v13276_v33  ;;  %v6634_v18 = vpop.f32.mrb[125].mxu1  ;;  %v9626_v39 = vpop.f32.mrb[125].mxu0 }
 0x622   : > { %v10160_v61 = vmax.f32 %v10032_v60, 0.0  ;;  %v13995_v25 = vadd.f32 %v9626_v39, %v6634_v18  ;;  %v13277_v63 = vpop.f32.mrb[126].mxu1  ;;  %v13853_v19 = vpop.f32.mrb[126].mxu0 }
 0x623   : > { %v11835_v9 = vpack.c.bf16 %v10162_v53, %v10161_v27  ;;  %v9902_v32 = vmul.f32 %v18516_v44, %v13994_v20  ;;  %v13996_v40 = vadd.f32 %v13853_v19, %v13277_v63  ;;  %v6637_v17 = vpop.f32.mrb[127].mxu1  ;;  %v9629_v1 = vpop.f32.mrb[127].mxu0 }
 0x624   : > { %v11830_v24 = vpack.c.bf16 %v10160_v61, %v10159_v37  ;;  %v9900_v0 = vmul.f32 %v18516_v44, %v13995_v25  ;;  %v13997_v49 = vadd.f32 %v9629_v1, %v6637_v17 }
 0x625   : > { %11907 = vst [vmem:[%s18254_s25 + $0x1e8] sm:$0xff] %v11835_v9   ;;  %v10037_v31 = vadd.f32 %v18520_v36, %v9902_v32  ;;  %v9903_v59 = vmul.f32 %v18516_v44, %v13996_v40 }
 0x626   : > { %11906 = vst [vmem:[%s18254_s25 + $0x1e0] sm:$0xff] %v11830_v24   ;;  %v10035_v16 = vadd.f32 %v18520_v36, %v9900_v0  ;;  %v9901_v22 = vmul.f32 %v18516_v44, %v13997_v49 }
 0x627   : > { %v10038_v6 = vadd.f32 %v18520_v36, %v9903_v59  ;;  %v10165_v50 = vmax.f32 %v10037_v31, 0.0 }
 0x628   : > { %v10036_v2 = vadd.f32 %v18520_v36, %v9901_v22  ;;  %v10163_v10 = vmax.f32 %v10035_v16, 0.0 }
 0x629   : > { %v10166_v52 = vmax.f32 %v10038_v6, 0.0 }
 0x62a   : > { %v10164_v47 = vmax.f32 %v10036_v2, 0.0 }
 0x62b   : > { %v11845_v11 = vpack.c.bf16 %v10166_v52, %v10165_v50 }
 0x62c   : > { %v11840_v44 = vpack.c.bf16 %v10164_v47, %v10163_v10 }
 0x62d   : > { %11909 = vst [vmem:[%s18254_s25 + $0x1f8] sm:$0xff] %v11845_v11  }
 0x62e   : > { %11908 = vst [vmem:[%s18254_s25 + $0x1f0] sm:$0xff] %v11840_v44  }
 0x62f   : > { %15476 = shalt.err (!%p15473_p0)
}
 0x630   : > { %s15477_s5 = scalar_lea.hbm %s18654_s26, 8192  ;;  %s15481_s28 = scalar_lea.hbm %s18711_s4, 16384 }
 0x631   : > { %p15478_p4 = scmp.ne.s32.totalorder %s18654_s26, %s15477_s5  ;;  %p15482_p12 = scmp.lt.u32.totalorder %s18654_s26, %s18711_s4 }
 0x632   : > { %p15483_p1 = scmp.lt.u32.totalorder %s15481_s28, %s15477_s5  ;;  %p15485_p13 = scmp.lt.u32.totalorder %s15477_s5, %s18654_s26 }
 0x633   : > { %p15479_p2 = pnand %p15478_p4, %p15744_p10 }
 0x634   : > { %p15484_p11 = por %p15483_p1, %p15482_p12 }
 0x635   : > { %p15480_p8 = pneg %p15479_p2 }
 0x636   : > { %p15486_p6 = por %p15485_p13, %p15484_p11 }
 0x638   : > { %p15487_p3 = pnand %p15486_p6, %p15480_p8 }
 0x63a   : > { %15490 = shalt.err (!%p15487_p3)
}
 0x63b   : > { %s15562_s25 = smov 64   ;;  %s15563_s27 = smov 4  }
 0x63c   : > { %14911 = dma.vmem_to_hbm [thread:$0]  (%p15744_p10), %s18656_s7, 8192, %s18654_s26, %s10808_s18, %s15562_s25, %s15562_s25, %s15563_s27  }
 0x63d PF: > { %s19610_s22 = sld [smem:[#allocation15_spill]]  ;;  %s10837_s9 = sand.u32 1, %s15533_s15  }
 0x63e   : > { %p19612_p7 = scmp.ge.s32.totalorder %s15553_s20, 2  ;;  %s10838_s10 = scalar_lea.sflag [#allocation4], %s10837_s9 }
 0x643   : > { %p19611_p5 = scmp.ne.s32.totalorder %s19610_s22, 0 }
 0x645   : > { %p14928_p9 = pnand %p19612_p7, %p19611_p5 }
 0x647   : > { %15528 = dma.done.wait (!%p14928_p9), %s10838_s10, 8192  }
 0x648   : > { %15530 = vsyncadd (!%p14928_p9), %s10838_s10, 4294959104  ;;  %s22_s20 = sadd.s32 1, %s15553_s20   ;;  %s19613_s15 = smov %s15537_s16 }
 0x649   : > { %p19_p0 = scmp.ge.s32.totalorder %s22_s20, 4   ;;  %s19614_s16 = smov %s15541_s17 }
 0x64a   : > { %s19615_s17 = smov %s15760_s24  ;;  %s19616_s18 = smov %s15549_s19 }
 0x64b   : > { %s19617_s19 = smov %s19619_s11  ;;  %21 = sbr.rel (!%p19_p0) target bundleno = 8 (0x8), region = 96 }
 0x652   :  { %10843 = vsyncpa [#allocation3], 1 }
 0x653   :  { %10845 = vsyncpa [#allocation3 + $0x1], 1 }
 0x654   :  { %10846 = vsyncpa [#allocation6], 1 }
 0x655   :  { %10847 = vsyncpa [#allocation9], 1 }
 0x656   :  { %10848 = vsyncpa [#allocation4], 1 }
 0x657   :  { %10850 = vsyncpa [#allocation4 + $0x1], 1 }

</bundles_post_ra>
